<compile_context>
chip_gen: v7x
topology: tpu7x:2x2x1
jax: 0.10.0
libtpu: 0.0.40
codegen_flags: <defaults>
</compile_context>

<pallas_src>
import functools
import numpy as np
import jax
import jax.numpy as jnp
from jax.experimental import pallas as pl
from jax.experimental.pallas import tpu as pltpu


def _round_up(x, m):
    return ((x + m - 1) // m) * m


# ----------------------------- fused Pallas kernel -----------------------------

def _fused_forward_kernel(feat_ref, wproj_ref, tcheb_ref, chebw_ref, chebb_ref,
                          bandw_ref, bandb_ref, selc_ref, seld_ref,
                          b1_ref, b2_ref, b3_ref,
                          w1_hbm, w2_hbm, w3_hbm, w4_hbm,
                          cnn_ref, pred_ref,
                          w1_vmem, w2_vmem, w3_vmem, w4_vmem, dma_sems,
                          *, k_order, n_nodes):
    f32 = jnp.float32
    bf16 = jnp.bfloat16

    # (0) kick off the big MLP-weight DMAs immediately; they overlap stages (1)-(4).
    cps = []
    for i, (src, dst) in enumerate([(w1_hbm, w1_vmem), (w2_hbm, w2_vmem),
                                    (w3_hbm, w3_vmem), (w4_hbm, w4_vmem)]):
        cp = pltpu.make_async_copy(src, dst, dma_sems.at[i])
        cp.start()
        cps.append(cp)

    # (1) feature projection: block-diag [circ_feat 0; 0 dis_feat] @ [W_circ; W_dis]
    h = jnp.dot(feat_ref[...], wproj_ref[...], preferred_element_type=f32)       # (N, F)

    # (2) ChebConv (DGL semantics) with PRECOMPUTED T_k(Lhat):
    #     x_all = [T_0; ...; T_{K-1}] @ h  (one matmul), then K independent
    #     X_k @ W_k matmuls that the MXU pipelines (no serial recurrence).
    x_all = jnp.dot(tcheb_ref[...], h, preferred_element_type=f32)               # (K*N, F)
    acc = chebb_ref[...]                                                          # (1, F) broadcast
    for k in range(k_order):
        xk = x_all[k * n_nodes:(k + 1) * n_nodes, :]
        acc = acc + jnp.dot(xk, chebw_ref[k], preferred_element_type=f32)
    res = acc                                                                      # (N, F)

    # (3) four Conv2d(1->6,(1,K)) + ReLU + Flatten + concat == one banded matmul,
    #     bf16 operands / f32 accumulation; padded columns stay exactly 0.
    cnn = jnp.maximum(
        jnp.dot(res.astype(bf16), bandw_ref[...], preferred_element_type=f32)
        + bandb_ref[...], 0.0)
    cnn_ref[...] = cnn                                                             # (N, E_PAD) f32, lane-dense

    # (4) all (circ, dis) pairwise products, built with f32 0/1 selection matmuls
    #     (K=16 contraction is negligible); single bf16 cast after the product.
    pc = jnp.dot(selc_ref[...], cnn, preferred_element_type=f32)                   # (M_PAD, E_PAD)
    pd = jnp.dot(seld_ref[...], cnn, preferred_element_type=f32)
    pairs = (pc * pd).astype(bf16)

    # (5) MLP E -> E/2 -> E/4 -> E/6 -> 1 (no bias on last), LeakyReLU(0.01), sigmoid.
    #     bf16 MXU operands, f32 accumulation & activations; dropout == identity.
    cps[0].wait()
    a = jnp.dot(pairs, w1_vmem[...], preferred_element_type=f32) + b1_ref[...]
    a = jnp.where(a > 0, a, 0.01 * a)
    cps[1].wait()
    a = jnp.dot(a.astype(bf16), w2_vmem[...], preferred_element_type=f32) + b2_ref[...]
    a = jnp.where(a > 0, a, 0.01 * a)
    cps[2].wait()
    a = jnp.dot(a.astype(bf16), w3_vmem[...], preferred_element_type=f32) + b3_ref[...]
    a = jnp.where(a > 0, a, 0.01 * a)
    cps[3].wait()
    logits = jnp.dot(a.astype(bf16), w4_vmem[...], preferred_element_type=f32)     # (M_PAD, 128); col 0 real
    # sigmoid via EUP exp + approx reciprocal (free slot), lane-dense store
    pred_ref[...] = pl.reciprocal(1.0 + jnp.exp(-logits), approx=True)


def fused_forward(feat_comb, w_proj, t_cheb, cheb_w, cheb_b, band_w, band_b,
                  sel_c, sel_d, b1, b2, b3, w1, w2, w3, w4):
    n_nodes = feat_comb.shape[0]
    e_pad = band_w.shape[1]
    m_pad = sel_c.shape[0]
    out_w = w4.shape[1]
    k_order = cheb_w.shape[0]

    vmem = lambda: pl.BlockSpec(memory_space=pltpu.MemorySpace.VMEM)
    hbm = lambda: pl.BlockSpec(memory_space=pl.ANY)       # raw HBM ref, manual DMA
    return pl.pallas_call(
        functools.partial(_fused_forward_kernel, k_order=k_order, n_nodes=n_nodes),
        out_shape=(jax.ShapeDtypeStruct((n_nodes, e_pad), jnp.float32),
                   jax.ShapeDtypeStruct((m_pad, out_w), jnp.float32)),
        in_specs=([vmem() for _ in range(12)] + [hbm() for _ in range(4)]),
        out_specs=(vmem(), vmem()),
        scratch_shapes=[
            pltpu.VMEM(w1.shape, w1.dtype),
            pltpu.VMEM(w2.shape, w2.dtype),
            pltpu.VMEM(w3.shape, w3.dtype),
            pltpu.VMEM(w4.shape, w4.dtype),
            pltpu.SemaphoreType.DMA((4,)),
        ],
    )(feat_comb, w_proj, t_cheb, cheb_w, cheb_b, band_w, band_b,
      sel_c, sel_d, b1, b2, b3, w1, w2, w3, w4)


# ----------------------------- glue: params / graph setup -----------------------------

def xavier_uniform(key, shape, gain=1.0):
    fan_in, fan_out = shape[0], shape[1]
    bound = gain * float(np.sqrt(6.0 / (fan_in + fan_out)))
    return jax.random.uniform(key, shape, jnp.float32, -bound, bound)


def conv_to_band(weight, bias, w_len):
    """Lower Conv2d(1, Cout, (1,K)) + Flatten to a dense banded weight matrix."""
    weight = np.asarray(weight)
    bias = np.asarray(bias)
    c_out, kw = weight.shape
    wp = w_len - kw + 1
    band = np.zeros((w_len, c_out * wp), dtype=np.float32)
    for c in range(c_out):
        for k in range(kw):
            for w in range(wp):
                band[w + k, c * wp + w] = weight[c, k]
    bias_band = np.repeat(bias, wp).astype(np.float32)
    return band, bias_band


def scaled_laplacian(assoc, n_circ, n_dis):
    """Lhat = (2/lambda_max) * (I - D^-1/2 A D^-1/2) - I   (DGL ChebConv semantics)."""
    N = n_circ + n_dis
    A = jnp.zeros((N, N), jnp.float32)
    A = A.at[:n_circ, n_circ:].set(assoc)
    A = A.at[n_circ:, :n_circ].set(assoc.T)
    deg = jnp.maximum(jnp.sum(A, axis=1), 1.0)
    dinv = 1.0 / jnp.sqrt(deg)
    Ahat = A * dinv[:, None] * dinv[None, :]
    L = jnp.eye(N, dtype=jnp.float32) - Ahat
    lam_max = jnp.max(jnp.linalg.eigvalsh(L))
    return (2.0 / lam_max) * L - jnp.eye(N, dtype=jnp.float32)


def cheb_polynomials(lhat, k_order):
    """Stack T_0(Lhat)..T_{K-1}(Lhat) vertically -> (K*N, N).  Done once per graph."""
    n = lhat.shape[0]
    ts = [jnp.eye(n, dtype=jnp.float32), lhat]
    for _ in range(2, k_order):
        ts.append(2.0 * (lhat @ ts[-1]) - ts[-2])
    return jnp.concatenate(ts[:k_order], axis=0)


def chebnet_cnn_dase_forward(params, circ_feat, dis_feat, assoc):
    """Eval branch of ChebNet_CNN_DASE.forward, fused into one Pallas TPU kernel."""
    n_circ, n_dis = assoc.shape
    n_dis_pad = params["n_dis_pad"]
    E = params["E"]

    in_c = circ_feat.shape[1]
    in_d = dis_feat.shape[1]
    # block-diagonal feature matrix so one matmul performs both mm(W_circ) and mm(W_dis)
    feat_comb = jnp.zeros((n_circ + n_dis, in_c + in_d), jnp.float32)
    feat_comb = feat_comb.at[:n_circ, :in_c].set(circ_feat)
    feat_comb = feat_comb.at[n_circ:, in_c:].set(dis_feat)

    cnn_pad, pred_pad = fused_forward(
        feat_comb, params["W_proj"], params["t_cheb"],
        params["cheb_w"], params["cheb_b"],
        params["cnn_band_w"], params["cnn_band_b"],
        params["sel_circ"], params["sel_dis"],
        params["mlp_b1"], params["mlp_b2"], params["mlp_b3"],
        params["mlp_w1"], params["mlp_w2"], params["mlp_w3"], params["mlp_w4"])

    cnn_outputs = cnn_pad[:, :E]                                            # (N, 1242)
    preds = pred_pad[:, 0].reshape(n_circ, n_dis_pad)[:, :n_dis].reshape(-1, 1)
    labels = assoc.reshape(-1, 1).astype(jnp.float32)
    return preds, labels, cnn_outputs


if __name__ == "__main__":
    # small shapes consistent with the module
    n_circ, n_dis = 10, 6
    N = n_circ + n_dis
    in_circfeat_size, in_disfeat_size = 32, 24
    outfeature_size = 64                      # W axis of the NCHW conv input (N,1,1,W)
    K_cheb = 6
    kernel_sizes = (1, 4, 16, 32)
    c_out = 6
    E = sum(c_out * (outfeature_size - k + 1) for k in kernel_sizes)       # 1242
    h1, h2, h3 = E // 2, E // 4, E // 6                                    # 621, 310, 207

    # lane / sublane friendly padded dims
    E_PAD = _round_up(E, 128)                  # 1280
    H1_PAD = _round_up(h1, 128)                # 640
    H2_PAD = _round_up(h2, 128)                # 384
    H3_PAD = _round_up(h3, 128)                # 256
    N_DIS_PAD = _round_up(n_dis, 8)            # 8
    M_PAD = n_circ * N_DIS_PAD                 # 80 batched pair rows (sublane aligned)
    OUT_W = 128                                # lane-dense prediction block

    key = jax.random.PRNGKey(0)
    ks = jax.random.split(key, 24)

    # inputs
    circ_feature_tensor = jax.random.normal(ks[0], (n_circ, in_circfeat_size), jnp.float32)
    dis_feature_tensor = jax.random.normal(ks[1], (n_dis, in_disfeat_size), jnp.float32)
    association_matrix = jax.random.bernoulli(ks[2], 0.3, (n_circ, n_dis)).astype(jnp.float32)
    lhat = scaled_laplacian(association_matrix, n_circ, n_dis)

    # parameters (deterministic synthetic init mirroring the module's shapes)
    params = {"E": E, "n_dis_pad": N_DIS_PAD}
    params["t_cheb"] = cheb_polynomials(lhat, K_cheb)                      # (96, 16)

    W_circ = xavier_uniform(ks[3], (in_circfeat_size, outfeature_size), gain=1.414)
    W_dis = xavier_uniform(ks[4], (in_disfeat_size, outfeature_size), gain=1.414)
    params["W_proj"] = jnp.concatenate([W_circ, W_dis], axis=0)            # (56, 64)

    # ChebConv: DGL Linear(K*F -> F); stacked as (K, F, F)
    cheb_lin = xavier_uniform(ks[5], (K_cheb * outfeature_size, outfeature_size))
    params["cheb_w"] = cheb_lin.reshape(K_cheb, outfeature_size, outfeature_size)
    params["cheb_b"] = jax.random.uniform(
        ks[6], (outfeature_size,), jnp.float32, -0.1, 0.1).reshape(1, -1)

    # CNN branches: Conv2d(1, 6, (1,K)); weight ~ U[0,1) (nn.init.uniform_), default-style bias
    bands, bbands = [], []
    for idx, kw in enumerate(kernel_sizes):
        w_conv = jax.random.uniform(ks[7 + idx], (c_out, kw), jnp.float32, 0.0, 1.0)
        bb = 1.0 / float(np.sqrt(kw))
        b_conv = jax.random.uniform(ks[11 + idx], (c_out,), jnp.float32, -bb, bb)
        band, bias_band = conv_to_band(np.asarray(w_conv), np.asarray(b_conv), outfeature_size)
        bands.append(band)
        bbands.append(bias_band)
    band_w = np.concatenate(bands, axis=1)                                 # (64, 1242)
    band_b = np.concatenate(bbands, axis=0)                                # (1242,)
    band_w_pad = np.zeros((outfeature_size, E_PAD), np.float32)
    band_w_pad[:, :E] = band_w
    band_b_pad = np.zeros((1, E_PAD), np.float32)
    band_b_pad[0, :E] = band_b
    params["cnn_band_w"] = jnp.asarray(band_w_pad, jnp.bfloat16)           # (64, 1280) bf16 operand
    params["cnn_band_b"] = jnp.asarray(band_b_pad)                         # (1, 1280)  f32 bias

    # pair selection matrices (f32 0/1): pair[i*N_DIS_PAD + j] = cnn[i] * cnn[n_circ + j]
    sel_c = np.zeros((M_PAD, N), np.float32)
    sel_d = np.zeros((M_PAD, N), np.float32)
    for i in range(n_circ):
        for j in range(n_dis):
            sel_c[i * N_DIS_PAD + j, i] = 1.0
            sel_d[i * N_DIS_PAD + j, n_circ + j] = 1.0
    params["sel_circ"] = jnp.asarray(sel_c, jnp.float32)
    params["sel_dis"] = jnp.asarray(sel_d, jnp.float32)

    # MLP: E -> E/2 -> E/4 -> E/6 -> 1 (last layer no bias), xavier init, zero biases.
    # Zero-pad every dim to a 128 multiple; bf16 weights for the MXU (kept in HBM,
    # manually prefetched inside the kernel).
    def pad2d(a, rows, cols):
        a = np.asarray(a)
        out = np.zeros((rows, cols), np.float32)
        out[:a.shape[0], :a.shape[1]] = a
        return out

    mlp_w1 = xavier_uniform(ks[15], (E, h1))
    mlp_w2 = xavier_uniform(ks[16], (h1, h2))
    mlp_w3 = xavier_uniform(ks[17], (h2, h3))
    mlp_w4 = xavier_uniform(ks[18], (h3, 1))
    params["mlp_w1"] = jnp.asarray(pad2d(mlp_w1, E_PAD, H1_PAD), jnp.bfloat16)
    params["mlp_w2"] = jnp.asarray(pad2d(mlp_w2, H1_PAD, H2_PAD), jnp.bfloat16)
    params["mlp_w3"] = jnp.asarray(pad2d(mlp_w3, H2_PAD, H3_PAD), jnp.bfloat16)
    params["mlp_w4"] = jnp.asarray(pad2d(mlp_w4, H3_PAD, OUT_W), jnp.bfloat16)   # only col 0 is real
    params["mlp_b1"] = jnp.zeros((1, H1_PAD), jnp.float32)
    params["mlp_b2"] = jnp.zeros((1, H2_PAD), jnp.float32)
    params["mlp_b3"] = jnp.zeros((1, H3_PAD), jnp.float32)

    # run fused Pallas forward
    preds, labels, cnn_outputs = chebnet_cnn_dase_forward(
        params, circ_feature_tensor, dis_feature_tensor, association_matrix)
    jax.block_until_ready((preds, labels, cnn_outputs))

    # shape / sanity checks
    assert preds.shape == (n_circ * n_dis, 1)
    assert labels.shape == (n_circ * n_dis, 1)
    assert cnn_outputs.shape == (N, E)
    assert bool(jnp.all(jnp.isfinite(preds)))
    # approx-reciprocal sigmoid may overshoot 1.0 by ~1e-3
    assert bool(jnp.all((preds >= 0.0) & (preds <= 1.0 + 1e-2)))

    # pure-JAX f32 reference for projection + cheb + banded conv
    h_ref = jnp.concatenate([circ_feature_tensor @ W_circ, dis_feature_tensor @ W_dis], axis=0)
    xs = [h_ref, lhat @ h_ref]
    for _ in range(2, K_cheb):
        xs.append(2.0 * (lhat @ xs[-1]) - xs[-2])
    res_ref = sum(x @ params["cheb_w"][k] for k, x in enumerate(xs)) + params["cheb_b"]
    cnn_ref = jnp.maximum(res_ref @ jnp.asarray(band_w_pad) + jnp.asarray(band_b_pad), 0.0)[:, :E]
    # kernel uses bf16 operands (f32 accumulation) for the banded conv -> loose tolerance
    assert bool(jnp.allclose(cnn_outputs, cnn_ref, rtol=5e-2, atol=2e-1))

    # loose check on the bf16 pair-MLP path (catches ordering / wiring bugs)
    circ_e, dis_e = cnn_ref[:n_circ], cnn_ref[n_circ:]
    pairs_ref = (circ_e[:, None, :] * dis_e[None, :, :]).reshape(n_circ * n_dis, E)
    leaky = lambda v: jnp.where(v > 0, v, 0.01 * v)
    a_ref = leaky(pairs_ref @ mlp_w1)
    a_ref = leaky(a_ref @ mlp_w2)
    a_ref = leaky(a_ref @ mlp_w3)
    preds_ref = jax.nn.sigmoid(a_ref @ mlp_w4)
    assert float(jnp.max(jnp.abs(preds - preds_ref))) < 0.3

    print("KERNEL_OK")
</pallas_src>

<mosaic_0001>
module attributes {stable_mosaic.version = 11 : i64} {
  func.func @_fused_forward_kernel(%arg0: memref<16x56xf32, #tpu.memory_space<vmem>>, %arg1: memref<56x64xf32, #tpu.memory_space<vmem>>, %arg2: memref<96x16xf32, #tpu.memory_space<vmem>>, %arg3: memref<6x64x64xf32, #tpu.memory_space<vmem>>, %arg4: memref<1x64xf32, #tpu.memory_space<vmem>>, %arg5: memref<64x1280xbf16, #tpu.memory_space<vmem>>, %arg6: memref<1x1280xf32, #tpu.memory_space<vmem>>, %arg7: memref<80x16xf32, #tpu.memory_space<vmem>>, %arg8: memref<80x16xf32, #tpu.memory_space<vmem>>, %arg9: memref<1x640xf32, #tpu.memory_space<vmem>>, %arg10: memref<1x384xf32, #tpu.memory_space<vmem>>, %arg11: memref<1x256xf32, #tpu.memory_space<vmem>>, %arg12: memref<1280x640xbf16, #tpu.memory_space<any>>, %arg13: memref<640x384xbf16, #tpu.memory_space<any>>, %arg14: memref<384x256xbf16, #tpu.memory_space<any>>, %arg15: memref<256x128xbf16, #tpu.memory_space<any>>, %arg16: memref<16x1280xf32, #tpu.memory_space<vmem>>, %arg17: memref<80x128xf32, #tpu.memory_space<vmem>>, %arg18: memref<1280x640xbf16, #tpu.memory_space<vmem>>, %arg19: memref<640x384xbf16, #tpu.memory_space<vmem>>, %arg20: memref<384x256xbf16, #tpu.memory_space<vmem>>, %arg21: memref<256x128xbf16, #tpu.memory_space<vmem>>, %arg22: memref<4x!tpu.dma_semaphore, #tpu.memory_space<semaphore_mem>>) attributes {dimension_semantics = [], scalar_prefetch = 0 : i64, scratch_operands = 5 : i64, tpu.core_type = #tpu.core_type<tc>} {
    %c0_i32 = arith.constant 0 : i32
    %0 = tpu.memref_slice %arg22[%c0_i32] : memref<4x!tpu.dma_semaphore, #tpu.memory_space<semaphore_mem>> -> memref<1x!tpu.dma_semaphore, #tpu.memory_space<semaphore_mem>>
    %1 = tpu.memref_squeeze %0 : memref<1x!tpu.dma_semaphore, #tpu.memory_space<semaphore_mem>> -> memref<!tpu.dma_semaphore, #tpu.memory_space<semaphore_mem>>
    tpu.enqueue_dma source(%arg12 : memref<1280x640xbf16, #tpu.memory_space<any>>) target(%arg18 : memref<1280x640xbf16, #tpu.memory_space<vmem>>) target_semaphore(%1 : memref<!tpu.dma_semaphore, #tpu.memory_space<semaphore_mem>>)
    %c1_i32 = arith.constant 1 : i32
    %2 = tpu.memref_slice %arg22[%c1_i32] : memref<4x!tpu.dma_semaphore, #tpu.memory_space<semaphore_mem>> -> memref<1x!tpu.dma_semaphore, #tpu.memory_space<semaphore_mem>>
    %3 = tpu.memref_squeeze %2 : memref<1x!tpu.dma_semaphore, #tpu.memory_space<semaphore_mem>> -> memref<!tpu.dma_semaphore, #tpu.memory_space<semaphore_mem>>
    tpu.enqueue_dma source(%arg13 : memref<640x384xbf16, #tpu.memory_space<any>>) target(%arg19 : memref<640x384xbf16, #tpu.memory_space<vmem>>) target_semaphore(%3 : memref<!tpu.dma_semaphore, #tpu.memory_space<semaphore_mem>>)
    %c2_i32 = arith.constant 2 : i32
    %4 = tpu.memref_slice %arg22[%c2_i32] : memref<4x!tpu.dma_semaphore, #tpu.memory_space<semaphore_mem>> -> memref<1x!tpu.dma_semaphore, #tpu.memory_space<semaphore_mem>>
    %5 = tpu.memref_squeeze %4 : memref<1x!tpu.dma_semaphore, #tpu.memory_space<semaphore_mem>> -> memref<!tpu.dma_semaphore, #tpu.memory_space<semaphore_mem>>
    tpu.enqueue_dma source(%arg14 : memref<384x256xbf16, #tpu.memory_space<any>>) target(%arg20 : memref<384x256xbf16, #tpu.memory_space<vmem>>) target_semaphore(%5 : memref<!tpu.dma_semaphore, #tpu.memory_space<semaphore_mem>>)
    %c3_i32 = arith.constant 3 : i32
    %6 = tpu.memref_slice %arg22[%c3_i32] : memref<4x!tpu.dma_semaphore, #tpu.memory_space<semaphore_mem>> -> memref<1x!tpu.dma_semaphore, #tpu.memory_space<semaphore_mem>>
    %7 = tpu.memref_squeeze %6 : memref<1x!tpu.dma_semaphore, #tpu.memory_space<semaphore_mem>> -> memref<!tpu.dma_semaphore, #tpu.memory_space<semaphore_mem>>
    tpu.enqueue_dma source(%arg15 : memref<256x128xbf16, #tpu.memory_space<any>>) target(%arg21 : memref<256x128xbf16, #tpu.memory_space<vmem>>) target_semaphore(%7 : memref<!tpu.dma_semaphore, #tpu.memory_space<semaphore_mem>>)
    %c0 = arith.constant 0 : index
    %c0_0 = arith.constant 0 : index
    %8 = vector.load %arg0[%c0, %c0_0] : memref<16x56xf32, #tpu.memory_space<vmem>>, vector<16x56xf32>
    %c0_1 = arith.constant 0 : index
    %c0_2 = arith.constant 0 : index
    %9 = vector.load %arg1[%c0_1, %c0_2] : memref<56x64xf32, #tpu.memory_space<vmem>>, vector<56x64xf32>
    %cst = arith.constant dense<0.000000e+00> : vector<16x64xf32>
    %10 = tpu.matmul %8, %9, %cst {dimension_numbers = #tpu.dot_dimension_numbers<[1], [0], [0], [1], [0, 0, 1, 1], [], []>} : vector<16x56xf32>, vector<56x64xf32>, vector<16x64xf32> -> vector<16x64xf32>
    %c0_3 = arith.constant 0 : index
    %c0_4 = arith.constant 0 : index
    %11 = vector.load %arg2[%c0_3, %c0_4] : memref<96x16xf32, #tpu.memory_space<vmem>>, vector<96x16xf32>
    %cst_5 = arith.constant dense<0.000000e+00> : vector<96x64xf32>
    %12 = tpu.matmul %11, %10, %cst_5 {dimension_numbers = #tpu.dot_dimension_numbers<[1], [0], [0], [1], [0, 0, 1, 1], [], []>} : vector<96x16xf32>, vector<16x64xf32>, vector<96x64xf32> -> vector<96x64xf32>
    %c0_6 = arith.constant 0 : index
    %c0_7 = arith.constant 0 : index
    %13 = vector.load %arg4[%c0_6, %c0_7] : memref<1x64xf32, #tpu.memory_space<vmem>>, vector<1x64xf32>
    %14 = vector.extract_strided_slice %12 {offsets = [0, 0], sizes = [16, 64], strides = [1, 1]} : vector<96x64xf32> to vector<16x64xf32>
    %c0_8 = arith.constant 0 : index
    %c0_9 = arith.constant 0 : index
    %c0_10 = arith.constant 0 : index
    %15 = vector.load %arg3[%c0_8, %c0_9, %c0_10] : memref<6x64x64xf32, #tpu.memory_space<vmem>>, vector<1x64x64xf32>
    %16 = vector.shape_cast %15 : vector<1x64x64xf32> to vector<64x64xf32>
    %cst_11 = arith.constant dense<0.000000e+00> : vector<16x64xf32>
    %17 = tpu.matmul %14, %16, %cst_11 {dimension_numbers = #tpu.dot_dimension_numbers<[1], [0], [0], [1], [0, 0, 1, 1], [], []>} : vector<16x64xf32>, vector<64x64xf32>, vector<16x64xf32> -> vector<16x64xf32>
    %18 = vector.broadcast %13 : vector<1x64xf32> to vector<16x64xf32>
    %19 = arith.addf %18, %17 : vector<16x64xf32>
    %20 = vector.extract_strided_slice %12 {offsets = [16, 0], sizes = [16, 64], strides = [1, 1]} : vector<96x64xf32> to vector<16x64xf32>
    %c1 = arith.constant 1 : index
    %c0_12 = arith.constant 0 : index
    %c0_13 = arith.constant 0 : index
    %21 = vector.load %arg3[%c1, %c0_12, %c0_13] : memref<6x64x64xf32, #tpu.memory_space<vmem>>, vector<1x64x64xf32>
    %22 = vector.shape_cast %21 : vector<1x64x64xf32> to vector<64x64xf32>
    %cst_14 = arith.constant dense<0.000000e+00> : vector<16x64xf32>
    %23 = tpu.matmul %20, %22, %cst_14 {dimension_numbers = #tpu.dot_dimension_numbers<[1], [0], [0], [1], [0, 0, 1, 1], [], []>} : vector<16x64xf32>, vector<64x64xf32>, vector<16x64xf32> -> vector<16x64xf32>
    %24 = arith.addf %19, %23 : vector<16x64xf32>
    %25 = vector.extract_strided_slice %12 {offsets = [32, 0], sizes = [16, 64], strides = [1, 1]} : vector<96x64xf32> to vector<16x64xf32>
    %c2 = arith.constant 2 : index
    %c0_15 = arith.constant 0 : index
    %c0_16 = arith.constant 0 : index
    %26 = vector.load %arg3[%c2, %c0_15, %c0_16] : memref<6x64x64xf32, #tpu.memory_space<vmem>>, vector<1x64x64xf32>
    %27 = vector.shape_cast %26 : vector<1x64x64xf32> to vector<64x64xf32>
    %cst_17 = arith.constant dense<0.000000e+00> : vector<16x64xf32>
    %28 = tpu.matmul %25, %27, %cst_17 {dimension_numbers = #tpu.dot_dimension_numbers<[1], [0], [0], [1], [0, 0, 1, 1], [], []>} : vector<16x64xf32>, vector<64x64xf32>, vector<16x64xf32> -> vector<16x64xf32>
    %29 = arith.addf %24, %28 : vector<16x64xf32>
    %30 = vector.extract_strided_slice %12 {offsets = [48, 0], sizes = [16, 64], strides = [1, 1]} : vector<96x64xf32> to vector<16x64xf32>
    %c3 = arith.constant 3 : index
    %c0_18 = arith.constant 0 : index
    %c0_19 = arith.constant 0 : index
    %31 = vector.load %arg3[%c3, %c0_18, %c0_19] : memref<6x64x64xf32, #tpu.memory_space<vmem>>, vector<1x64x64xf32>
    %32 = vector.shape_cast %31 : vector<1x64x64xf32> to vector<64x64xf32>
    %cst_20 = arith.constant dense<0.000000e+00> : vector<16x64xf32>
    %33 = tpu.matmul %30, %32, %cst_20 {dimension_numbers = #tpu.dot_dimension_numbers<[1], [0], [0], [1], [0, 0, 1, 1], [], []>} : vector<16x64xf32>, vector<64x64xf32>, vector<16x64xf32> -> vector<16x64xf32>
    %34 = arith.addf %29, %33 : vector<16x64xf32>
    %35 = vector.extract_strided_slice %12 {offsets = [64, 0], sizes = [16, 64], strides = [1, 1]} : vector<96x64xf32> to vector<16x64xf32>
    %c4 = arith.constant 4 : index
    %c0_21 = arith.constant 0 : index
    %c0_22 = arith.constant 0 : index
    %36 = vector.load %arg3[%c4, %c0_21, %c0_22] : memref<6x64x64xf32, #tpu.memory_space<vmem>>, vector<1x64x64xf32>
    %37 = vector.shape_cast %36 : vector<1x64x64xf32> to vector<64x64xf32>
    %cst_23 = arith.constant dense<0.000000e+00> : vector<16x64xf32>
    %38 = tpu.matmul %35, %37, %cst_23 {dimension_numbers = #tpu.dot_dimension_numbers<[1], [0], [0], [1], [0, 0, 1, 1], [], []>} : vector<16x64xf32>, vector<64x64xf32>, vector<16x64xf32> -> vector<16x64xf32>
    %39 = arith.addf %34, %38 : vector<16x64xf32>
    %40 = vector.extract_strided_slice %12 {offsets = [80, 0], sizes = [16, 64], strides = [1, 1]} : vector<96x64xf32> to vector<16x64xf32>
    %c5 = arith.constant 5 : index
    %c0_24 = arith.constant 0 : index
    %c0_25 = arith.constant 0 : index
    %41 = vector.load %arg3[%c5, %c0_24, %c0_25] : memref<6x64x64xf32, #tpu.memory_space<vmem>>, vector<1x64x64xf32>
    %42 = vector.shape_cast %41 : vector<1x64x64xf32> to vector<64x64xf32>
    %cst_26 = arith.constant dense<0.000000e+00> : vector<16x64xf32>
    %43 = tpu.matmul %40, %42, %cst_26 {dimension_numbers = #tpu.dot_dimension_numbers<[1], [0], [0], [1], [0, 0, 1, 1], [], []>} : vector<16x64xf32>, vector<64x64xf32>, vector<16x64xf32> -> vector<16x64xf32>
    %44 = arith.addf %39, %43 : vector<16x64xf32>
    %45 = arith.truncf %44 : vector<16x64xf32> to vector<16x64xbf16>
    %c0_27 = arith.constant 0 : index
    %c0_28 = arith.constant 0 : index
    %46 = vector.load %arg5[%c0_27, %c0_28] : memref<64x1280xbf16, #tpu.memory_space<vmem>>, vector<64x1280xbf16>
    %cst_29 = arith.constant dense<0.000000e+00> : vector<16x1280xf32>
    %47 = tpu.matmul %45, %46, %cst_29 {dimension_numbers = #tpu.dot_dimension_numbers<[1], [0], [0], [1], [0, 0, 1, 1], [], []>} : vector<16x64xbf16>, vector<64x1280xbf16>, vector<16x1280xf32> -> vector<16x1280xf32>
    %c0_30 = arith.constant 0 : index
    %c0_31 = arith.constant 0 : index
    %48 = vector.load %arg6[%c0_30, %c0_31] : memref<1x1280xf32, #tpu.memory_space<vmem>>, vector<1x1280xf32>
    %49 = vector.broadcast %48 : vector<1x1280xf32> to vector<16x1280xf32>
    %50 = arith.addf %47, %49 : vector<16x1280xf32>
    %cst_32 = arith.constant 0.000000e+00 : f32
    %51 = vector.broadcast %cst_32 : f32 to vector<16x1280xf32>
    %52 = arith.maximumf %50, %51 : vector<16x1280xf32>
    %c0_33 = arith.constant 0 : index
    %c0_34 = arith.constant 0 : index
    %53 = vector.load %arg16[%c0_33, %c0_34] : memref<16x1280xf32, #tpu.memory_space<vmem>>, vector<16x1280xf32>
    tpu.vector_store %arg16[%c0_33, %c0_34], %52 {strides = array<i32>} : memref<16x1280xf32, #tpu.memory_space<vmem>>, vector<16x1280xf32>,
    %c0_35 = arith.constant 0 : index
    %c0_36 = arith.constant 0 : index
    %54 = vector.load %arg7[%c0_35, %c0_36] : memref<80x16xf32, #tpu.memory_space<vmem>>, vector<80x16xf32>
    %cst_37 = arith.constant dense<0.000000e+00> : vector<80x1280xf32>
    %55 = tpu.matmul %54, %52, %cst_37 {dimension_numbers = #tpu.dot_dimension_numbers<[1], [0], [0], [1], [0, 0, 1, 1], [], []>} : vector<80x16xf32>, vector<16x1280xf32>, vector<80x1280xf32> -> vector<80x1280xf32>
    %c0_38 = arith.constant 0 : index
    %c0_39 = arith.constant 0 : index
    %56 = vector.load %arg8[%c0_38, %c0_39] : memref<80x16xf32, #tpu.memory_space<vmem>>, vector<80x16xf32>
    %cst_40 = arith.constant dense<0.000000e+00> : vector<80x1280xf32>
    %57 = tpu.matmul %56, %52, %cst_40 {dimension_numbers = #tpu.dot_dimension_numbers<[1], [0], [0], [1], [0, 0, 1, 1], [], []>} : vector<80x16xf32>, vector<16x1280xf32>, vector<80x1280xf32> -> vector<80x1280xf32>
    %58 = arith.mulf %55, %57 : vector<80x1280xf32>
    %59 = arith.truncf %58 : vector<80x1280xf32> to vector<80x1280xbf16>
    %c0_i32_41 = arith.constant 0 : i32
    %60 = tpu.memref_slice %arg22[%c0_i32_41] : memref<4x!tpu.dma_semaphore, #tpu.memory_space<semaphore_mem>> -> memref<1x!tpu.dma_semaphore, #tpu.memory_space<semaphore_mem>>
    %61 = tpu.memref_squeeze %60 : memref<1x!tpu.dma_semaphore, #tpu.memory_space<semaphore_mem>> -> memref<!tpu.dma_semaphore, #tpu.memory_space<semaphore_mem>>
    tpu.wait_dma2 semaphore(%61 : memref<!tpu.dma_semaphore, #tpu.memory_space<semaphore_mem>>) src(%arg12 : memref<1280x640xbf16, #tpu.memory_space<any>>) dst(%arg18 : memref<1280x640xbf16, #tpu.memory_space<vmem>>)
    %c0_42 = arith.constant 0 : index
    %c0_43 = arith.constant 0 : index
    %62 = vector.load %arg18[%c0_42, %c0_43] : memref<1280x640xbf16, #tpu.memory_space<vmem>>, vector<1280x640xbf16>
    %cst_44 = arith.constant dense<0.000000e+00> : vector<80x640xf32>
    %63 = tpu.matmul %59, %62, %cst_44 {dimension_numbers = #tpu.dot_dimension_numbers<[1], [0], [0], [1], [0, 0, 1, 1], [], []>} : vector<80x1280xbf16>, vector<1280x640xbf16>, vector<80x640xf32> -> vector<80x640xf32>
    %c0_45 = arith.constant 0 : index
    %c0_46 = arith.constant 0 : index
    %64 = vector.load %arg9[%c0_45, %c0_46] : memref<1x640xf32, #tpu.memory_space<vmem>>, vector<1x640xf32>
    %65 = vector.broadcast %64 : vector<1x640xf32> to vector<80x640xf32>
    %66 = arith.addf %63, %65 : vector<80x640xf32>
    %cst_47 = arith.constant 0.000000e+00 : f32
    %67 = vector.broadcast %cst_47 : f32 to vector<80x640xf32>
    %68 = arith.cmpf ogt, %66, %67 : vector<80x640xf32>
    %cst_48 = arith.constant 0.00999999977 : f32
    %69 = vector.broadcast %cst_48 : f32 to vector<80x640xf32>
    %70 = arith.mulf %69, %66 : vector<80x640xf32>
    %71 = arith.select %68, %66, %70 : vector<80x640xi1>, vector<80x640xf32>
    %c1_i32_49 = arith.constant 1 : i32
    %72 = tpu.memref_slice %arg22[%c1_i32_49] : memref<4x!tpu.dma_semaphore, #tpu.memory_space<semaphore_mem>> -> memref<1x!tpu.dma_semaphore, #tpu.memory_space<semaphore_mem>>
    %73 = tpu.memref_squeeze %72 : memref<1x!tpu.dma_semaphore, #tpu.memory_space<semaphore_mem>> -> memref<!tpu.dma_semaphore, #tpu.memory_space<semaphore_mem>>
    tpu.wait_dma2 semaphore(%73 : memref<!tpu.dma_semaphore, #tpu.memory_space<semaphore_mem>>) src(%arg13 : memref<640x384xbf16, #tpu.memory_space<any>>) dst(%arg19 : memref<640x384xbf16, #tpu.memory_space<vmem>>)
    %74 = arith.truncf %71 : vector<80x640xf32> to vector<80x640xbf16>
    %c0_50 = arith.constant 0 : index
    %c0_51 = arith.constant 0 : index
    %75 = vector.load %arg19[%c0_50, %c0_51] : memref<640x384xbf16, #tpu.memory_space<vmem>>, vector<640x384xbf16>
    %cst_52 = arith.constant dense<0.000000e+00> : vector<80x384xf32>
    %76 = tpu.matmul %74, %75, %cst_52 {dimension_numbers = #tpu.dot_dimension_numbers<[1], [0], [0], [1], [0, 0, 1, 1], [], []>} : vector<80x640xbf16>, vector<640x384xbf16>, vector<80x384xf32> -> vector<80x384xf32>
    %c0_53 = arith.constant 0 : index
    %c0_54 = arith.constant 0 : index
    %77 = vector.load %arg10[%c0_53, %c0_54] : memref<1x384xf32, #tpu.memory_space<vmem>>, vector<1x384xf32>
    %78 = vector.broadcast %77 : vector<1x384xf32> to vector<80x384xf32>
    %79 = arith.addf %76, %78 : vector<80x384xf32>
    %cst_55 = arith.constant 0.000000e+00 : f32
    %80 = vector.broadcast %cst_55 : f32 to vector<80x384xf32>
    %81 = arith.cmpf ogt, %79, %80 : vector<80x384xf32>
    %cst_56 = arith.constant 0.00999999977 : f32
    %82 = vector.broadcast %cst_56 : f32 to vector<80x384xf32>
    %83 = arith.mulf %82, %79 : vector<80x384xf32>
    %84 = arith.select %81, %79, %83 : vector<80x384xi1>, vector<80x384xf32>
    %c2_i32_57 = arith.constant 2 : i32
    %85 = tpu.memref_slice %arg22[%c2_i32_57] : memref<4x!tpu.dma_semaphore, #tpu.memory_space<semaphore_mem>> -> memref<1x!tpu.dma_semaphore, #tpu.memory_space<semaphore_mem>>
    %86 = tpu.memref_squeeze %85 : memref<1x!tpu.dma_semaphore, #tpu.memory_space<semaphore_mem>> -> memref<!tpu.dma_semaphore, #tpu.memory_space<semaphore_mem>>
    tpu.wait_dma2 semaphore(%86 : memref<!tpu.dma_semaphore, #tpu.memory_space<semaphore_mem>>) src(%arg14 : memref<384x256xbf16, #tpu.memory_space<any>>) dst(%arg20 : memref<384x256xbf16, #tpu.memory_space<vmem>>)
    %87 = arith.truncf %84 : vector<80x384xf32> to vector<80x384xbf16>
    %c0_58 = arith.constant 0 : index
    %c0_59 = arith.constant 0 : index
    %88 = vector.load %arg20[%c0_58, %c0_59] : memref<384x256xbf16, #tpu.memory_space<vmem>>, vector<384x256xbf16>
    %cst_60 = arith.constant dense<0.000000e+00> : vector<80x256xf32>
    %89 = tpu.matmul %87, %88, %cst_60 {dimension_numbers = #tpu.dot_dimension_numbers<[1], [0], [0], [1], [0, 0, 1, 1], [], []>} : vector<80x384xbf16>, vector<384x256xbf16>, vector<80x256xf32> -> vector<80x256xf32>
    %c0_61 = arith.constant 0 : index
    %c0_62 = arith.constant 0 : index
    %90 = vector.load %arg11[%c0_61, %c0_62] : memref<1x256xf32, #tpu.memory_space<vmem>>, vector<1x256xf32>
    %91 = vector.broadcast %90 : vector<1x256xf32> to vector<80x256xf32>
    %92 = arith.addf %89, %91 : vector<80x256xf32>
    %cst_63 = arith.constant 0.000000e+00 : f32
    %93 = vector.broadcast %cst_63 : f32 to vector<80x256xf32>
    %94 = arith.cmpf ogt, %92, %93 : vector<80x256xf32>
    %cst_64 = arith.constant 0.00999999977 : f32
    %95 = vector.broadcast %cst_64 : f32 to vector<80x256xf32>
    %96 = arith.mulf %95, %92 : vector<80x256xf32>
    %97 = arith.select %94, %92, %96 : vector<80x256xi1>, vector<80x256xf32>
    %c3_i32_65 = arith.constant 3 : i32
    %98 = tpu.memref_slice %arg22[%c3_i32_65] : memref<4x!tpu.dma_semaphore, #tpu.memory_space<semaphore_mem>> -> memref<1x!tpu.dma_semaphore, #tpu.memory_space<semaphore_mem>>
    %99 = tpu.memref_squeeze %98 : memref<1x!tpu.dma_semaphore, #tpu.memory_space<semaphore_mem>> -> memref<!tpu.dma_semaphore, #tpu.memory_space<semaphore_mem>>
    tpu.wait_dma2 semaphore(%99 : memref<!tpu.dma_semaphore, #tpu.memory_space<semaphore_mem>>) src(%arg15 : memref<256x128xbf16, #tpu.memory_space<any>>) dst(%arg21 : memref<256x128xbf16, #tpu.memory_space<vmem>>)
    %100 = arith.truncf %97 : vector<80x256xf32> to vector<80x256xbf16>
    %c0_66 = arith.constant 0 : index
    %c0_67 = arith.constant 0 : index
    %101 = vector.load %arg21[%c0_66, %c0_67] : memref<256x128xbf16, #tpu.memory_space<vmem>>, vector<256x128xbf16>
    %cst_68 = arith.constant dense<0.000000e+00> : vector<80x128xf32>
    %102 = tpu.matmul %100, %101, %cst_68 {dimension_numbers = #tpu.dot_dimension_numbers<[1], [0], [0], [1], [0, 0, 1, 1], [], []>} : vector<80x256xbf16>, vector<256x128xbf16>, vector<80x128xf32> -> vector<80x128xf32>
    %cst_69 = arith.constant 0.000000e+00 : f32
    %103 = vector.broadcast %cst_69 : f32 to vector<80x128xf32>
    %104 = arith.subf %103, %102 : vector<80x128xf32>
    %105 = math.exp %104 : vector<80x128xf32>
    %cst_70 = arith.constant 1.000000e+00 : f32
    %106 = vector.broadcast %cst_70 : f32 to vector<80x128xf32>
    %107 = arith.addf %106, %105 : vector<80x128xf32>
    %108 = tpu.reciprocal %107 {approx = true} : vector<80x128xf32> -> vector<80x128xf32>
    %c0_71 = arith.constant 0 : index
    %c0_72 = arith.constant 0 : index
    %109 = vector.load %arg17[%c0_71, %c0_72] : memref<80x128xf32, #tpu.memory_space<vmem>>, vector<80x128xf32>
    tpu.vector_store %arg17[%c0_71, %c0_72], %108 {strides = array<i32>} : memref<80x128xf32, #tpu.memory_space<vmem>>, vector<80x128xf32>,
    return
  }
}

</mosaic_0001>

<bundles_post_ra>
// kernel: tpu_custom_call.1
= control target key start
LH: loop header
LB: loop body
LE: loop exit
PB: predicated region body
PF: predicated region fallthrough
CT: control target
= control target key end

     0   :  { %s9924_s0 = inlined_call_operand.hbm [shape: f32[16,56], index: 0, kind: input, shape index: {}]   ;;  %s9925_s1 = inlined_call_operand.hbm [shape: f32[56,64], index: 1, kind: input, shape index: {}]   ;;  %s9926_s2 = inlined_call_operand.vmem [shape: f32[96,16], index: 2, kind: input, shape index: {}]   ;;  %s9927_s3 = inlined_call_operand.hbm [shape: f32[6,64,64], index: 3, kind: input, shape index: {}]   ;;  %s9928_s4 = inlined_call_operand.hbm [shape: f32[1,64], index: 4, kind: input, shape index: {}]   ;;  %s9929_s5 = inlined_call_operand.hbm [shape: bf16[64,1280], index: 5, kind: input, shape index: {}]   ;;  %s9930_s6 = inlined_call_operand.hbm [shape: f32[1,1280], index: 6, kind: input, shape index: {}]   ;;  %s9931_s7 = inlined_call_operand.vmem [shape: f32[80,16], index: 7, kind: input, shape index: {}]   ;;  %s9932_s8 = inlined_call_operand.vmem [shape: f32[80,16], index: 8, kind: input, shape index: {}]   ;;  %s9933_s9 = inlined_call_operand.hbm [shape: f32[1,640], index: 9, kind: input, shape index: {}]   ;;  %s9934_s10 = inlined_call_operand.hbm [shape: f32[1,384], index: 10, kind: input, shape index: {}]   ;;  %s9935_s11 = inlined_call_operand.hbm [shape: f32[1,256], index: 11, kind: input, shape index: {}]   ;;  %s9936_s12 = inlined_call_operand.hbm [shape: bf16[1280,640], index: 12, kind: input, shape index: {}]   ;;  %s9937_s13 = inlined_call_operand.hbm [shape: bf16[640,384], index: 13, kind: input, shape index: {}]   ;;  %s9938_s14 = inlined_call_operand.hbm [shape: bf16[384,256], index: 14, kind: input, shape index: {}]   ;;  %s9939_s15 = inlined_call_operand.hbm [shape: bf16[256,128], index: 15, kind: input, shape index: {}]   ;;  %s9940_s16 = inlined_call_operand.hbm [shape: f32[16,1280], index: 16, kind: output, shape index: {0}]   ;;  %s9941_s17 = inlined_call_operand.hbm [shape: f32[80,128], index: 17, kind: output, shape index: {1}]  }
   0x1   :  { %9964 = sst [smem:[#allocation99_spill]] %s9924_s0 }
   0x2   :  { %9965 = sst [smem:[#allocation100_spill]] %s9925_s1 }
   0x3   :  { %23 = vsyncpa [#allocation8], 0 }
   0x4   :  { %24 = vsyncpa [#allocation11], 0 }
   0x5   :  { %25 = vsyncpa [#allocation14], 0 }
   0x6   :  { %26 = vsyncpa [#allocation17], 0 }
   0x7   :  { %27 = vsyncpa [#allocation20], 0 }
   0x8   :  { %28 = vsyncpa [#allocation9], 0 }
   0x9   :  { %29 = vsyncpa [#allocation24], 0  ;;  %s7894_s24 = smov [#allocation10]   ;;  %s7895_s26 = smov [#allocation13]  }
   0xa   :  { %s47_s25 = sshll.u32 %s7894_s24, 4  ;;  %s74_s27 = sshll.u32 %s7895_s26, 4  ;;  %s48_s25 = int_to_ptr.vmem [resolvable:$true] %s47_s25  ;;  %s8023_s27 = int_to_ptr.vmem [resolvable:$true] %s74_s27 }
   0xb   :  { %s9966_s0 = sld [smem:[#allocation100_spill]] }
  0x11   :  { %s7608_s30 = scalar_lea.hbm %s9966_s0, 896 }
  0x12   :  { %p7609_p0 = scmp.ne.s32.totalorder %s9966_s0, %s7608_s30  ;;  %p7612_p1 = scmp.lt.u32.totalorder %s7608_s30, %s9966_s0 }
  0x14   :  { %p7614_p2 = pnand %p7612_p1, %p7609_p0 }
  0x16   :  { %7617 = shalt.err (!%p7614_p2)
}
  0x17   :  { %s7618_s21 = scalar_lea.vmem %s48_s25, 896  ;;  %p7623_p4 = scmp.lt.s32.totalorder %s48_s25, %s48_s25 }
  0x18   :  { %p7619_p3 = scmp.ne.s32.totalorder %s48_s25, %s7618_s21  ;;  %p7624_p5 = scmp.lt.s32.totalorder %s7618_s21, %s7618_s21 }
  0x1a   :  { %p7625_p6 = por %p7624_p5, %p7623_p4 }
  0x1c   :  { %p7626_p7 = pnand %p7625_p6, %p7619_p3 }
  0x1e   :  { %7629 = shalt.err (!%p7626_p7)
}
  0x1f   :  { %s9944_s22 = smov 128   ;;  %s7897_s23 = smov 8  }
  0x20   :  { %53 = dma.hbm_to_vmem [thread:$0]  %s9966_s0, 896, %s48_s25, [#allocation11], %s9944_s22, %s9944_s22, %s7897_s23  }
  0x21   :  { %s7630_s30 = scalar_lea.hbm %s9928_s4, 16 }
  0x22   :  { %p7631_p8 = scmp.ne.s32.totalorder %s9928_s4, %s7630_s30  ;;  %p7634_p9 = scmp.lt.u32.totalorder %s7630_s30, %s9928_s4 }
  0x24   :  { %p7636_p10 = pnand %p7634_p9, %p7631_p8 }
  0x26   :  { %7639 = shalt.err (!%p7636_p10)
}
  0x27   :  { %s7640_s21 = scalar_lea.vmem %s8023_s27, 16  ;;  %s7644_s25 = scalar_lea.vmem %s8023_s27, 32 }
  0x28   :  { %p7641_p11 = scmp.ne.s32.totalorder %s8023_s27, %s7640_s21  ;;  %p7645_p12 = scmp.lt.s32.totalorder %s8023_s27, %s8023_s27 }
  0x29   :  { %p7646_p13 = scmp.lt.s32.totalorder %s7644_s25, %s7640_s21 }
  0x2b   :  { %p7647_p0 = por %p7646_p13, %p7645_p12 }
  0x2d   :  { %p7648_p1 = pnand %p7647_p0, %p7641_p11 }
  0x2f   :  { %7651 = shalt.err (!%p7648_p1)
}
  0x30   :  { %77 = dma.hbm_to_vmem [thread:$0]  %s9928_s4, 16, %s8023_s27, [#allocation14]  }
  0x31   :  { %s7898_s26 = smov [#allocation16]   ;;  %s7899_s29 = smov [#allocation19]  }
  0x32   :  { %s96_s28 = sshll.u32 %s7898_s26, 4  ;;  %s120_s30 = sshll.u32 %s7899_s29, 4  ;;  %s97_s28 = int_to_ptr.vmem [resolvable:$true] %s96_s28  ;;  %s121_s30 = int_to_ptr.vmem [resolvable:$true] %s120_s30 }
  0x33   :  { %s7652_s1 = scalar_lea.hbm %s9930_s6, 160 }
  0x34   :  { %p7653_p2 = scmp.ne.s32.totalorder %s9930_s6, %s7652_s1  ;;  %p7656_p3 = scmp.lt.u32.totalorder %s7652_s1, %s9930_s6 }
  0x36   :  { %p7658_p4 = pnand %p7656_p3, %p7653_p2 }
  0x38   :  { %7661 = shalt.err (!%p7658_p4)
}
  0x39   :  { %s7662_s4 = scalar_lea.vmem %s97_s28, 160  ;;  %p7667_p6 = scmp.lt.s32.totalorder %s97_s28, %s97_s28 }
  0x3a   :  { %p7663_p5 = scmp.ne.s32.totalorder %s97_s28, %s7662_s4  ;;  %p7668_p7 = scmp.lt.s32.totalorder %s7662_s4, %s7662_s4 }
  0x3c   :  { %p7669_p8 = por %p7668_p7, %p7667_p6 }
  0x3e   :  { %p7670_p9 = pnand %p7669_p8, %p7663_p5 }
  0x40   :  { %7673 = shalt.err (!%p7670_p9)
}
  0x41   :  { %99 = dma.hbm_to_vmem [thread:$0]  %s9930_s6, 160, %s97_s28, [#allocation17]  }
  0x42   :  { %s7674_s29 = scalar_lea.hbm %s9934_s10, 48 }
  0x43   :  { %p7675_p10 = scmp.ne.s32.totalorder %s9934_s10, %s7674_s29  ;;  %p7678_p11 = scmp.lt.u32.totalorder %s7674_s29, %s9934_s10 }
  0x45   :  { %p7680_p12 = pnand %p7678_p11, %p7675_p10 }
  0x47   :  { %7683 = shalt.err (!%p7680_p12)
}
  0x48   :  { %s7684_s20 = scalar_lea.vmem %s121_s30, 48  ;;  %s7688_s21 = scalar_lea.vmem %s121_s30, 64 }
  0x49   :  { %p7685_p13 = scmp.ne.s32.totalorder %s121_s30, %s7684_s20  ;;  %p7689_p0 = scmp.lt.s32.totalorder %s121_s30, %s121_s30 }
  0x4a   :  { %p7690_p1 = scmp.lt.s32.totalorder %s7688_s21, %s7684_s20 }
  0x4c   :  { %p7691_p2 = por %p7690_p1, %p7689_p0 }
  0x4e   :  { %p7692_p3 = pnand %p7691_p2, %p7685_p13 }
  0x50   :  { %7695 = shalt.err (!%p7692_p3)
}
  0x51   :  { %123 = dma.hbm_to_vmem [thread:$0]  %s9934_s10, 48, %s121_s30, [#allocation20]  }
  0x52   :  { %s7900_s25 = smov [#allocation7]   ;;  %s7901_s27 = smov [#allocation12]  }
  0x53   :  { %s35_s4 = sshll.u32 %s7900_s25, 4  ;;  %s61_s0 = sshll.u32 %s7901_s27, 4  ;;  %s36_s4 = int_to_ptr.vmem [resolvable:$true] %s35_s4  ;;  %s8082_s0 = int_to_ptr.vmem [resolvable:$true] %s61_s0 }
  0x54   :  { %s9967_s29 = sld [smem:[#allocation99_spill]] }
  0x5a   :  { %s7696_s18 = scalar_lea.hbm %s9967_s29, 256 }
  0x5b   :  { %p7697_p4 = scmp.ne.s32.totalorder %s9967_s29, %s7696_s18  ;;  %p7700_p5 = scmp.lt.u32.totalorder %s7696_s18, %s9967_s29 }
  0x5d   :  { %p7702_p6 = pnand %p7700_p5, %p7697_p4 }
  0x5f   :  { %7705 = shalt.err (!%p7702_p6)
}
  0x60   :  { %s7706_s10 = scalar_lea.vmem %s36_s4, 256  ;;  %p7711_p8 = scmp.lt.s32.totalorder %s36_s4, %s36_s4 }
  0x61   :  { %p7707_p7 = scmp.ne.s32.totalorder %s36_s4, %s7706_s10  ;;  %p7712_p9 = scmp.lt.s32.totalorder %s7706_s10, %s7706_s10 }
  0x63   :  { %p7713_p10 = por %p7712_p9, %p7711_p8 }
  0x65   :  { %p7714_p11 = pnand %p7713_p10, %p7707_p7 }
  0x67   :  { %7717 = shalt.err (!%p7714_p11)
}
  0x68   :  { %s9968_s30 = smov 128   ;;  %s7718_s27 = scalar_lea.hbm %s9927_s3, 6144 }
  0x69   :  { %41 = dma.hbm_to_vmem [thread:$0]  %s9967_s29, 256, %s36_s4, [#allocation8], %s9968_s30, %s9968_s30, %s7897_s23  }
  0x6a   :  { %p7719_p12 = scmp.ne.s32.totalorder %s9927_s3, %s7718_s27  ;;  %p7722_p13 = scmp.lt.u32.totalorder %s7718_s27, %s9927_s3 }
  0x6c   :  { %p7724_p0 = pnand %p7722_p13, %p7719_p12 }
  0x6e   :  { %7727 = shalt.err (!%p7724_p0)
}
  0x6f   :  { %s7728_s19 = scalar_lea.vmem %s8082_s0, 6144  ;;  %p7733_p2 = scmp.lt.s32.totalorder %s8082_s0, %s8082_s0 }
  0x70   :  { %p7729_p1 = scmp.ne.s32.totalorder %s8082_s0, %s7728_s19  ;;  %p7734_p3 = scmp.lt.s32.totalorder %s7728_s19, %s7728_s19 }
  0x72   :  { %p7735_p4 = por %p7734_p3, %p7733_p2 }
  0x74   :  { %p7736_p5 = pnand %p7735_p4, %p7729_p1 }
  0x76   :  { %7739 = shalt.err (!%p7736_p5)
}
  0x77   :  { %67 = dma.hbm_to_vmem [thread:$0]  %s9927_s3, 6144, %s8082_s0, [#allocation11], %s9968_s30, %s9968_s30, %s7897_s23  }
  0x78   :  { %s7902_s1 = smov [#allocation15]   ;;  %s7740_s6 = scalar_lea.hbm %s9929_s5, 5120 }
  0x79   :  { %s83_s20 = sshll.u32 %s7902_s1, 4  ;;  %p7741_p6 = scmp.ne.s32.totalorder %s9929_s5, %s7740_s6  ;;  %s84_s20 = int_to_ptr.vmem [resolvable:$true] %s83_s20 }
  0x7a   :  { %p7744_p7 = scmp.lt.u32.totalorder %s7740_s6, %s9929_s5 }
  0x7c   :  { %p7746_p8 = pnand %p7744_p7, %p7741_p6 }
  0x7e   :  { %7749 = shalt.err (!%p7746_p8)
}
  0x7f   :  { %s7750_s26 = scalar_lea.vmem %s84_s20, 5120  ;;  %p7755_p10 = scmp.lt.s32.totalorder %s84_s20, %s84_s20 }
  0x80   :  { %p7751_p9 = scmp.ne.s32.totalorder %s84_s20, %s7750_s26  ;;  %p7756_p11 = scmp.lt.s32.totalorder %s7750_s26, %s7750_s26 }
  0x82   :  { %p7757_p12 = por %p7756_p11, %p7755_p10 }
  0x84   :  { %p7758_p13 = pnand %p7757_p12, %p7751_p9 }
  0x86   :  { %7761 = shalt.err (!%p7758_p13)
}
  0x87   :  { %s7903_s3 = smov 640   ;;  %s7904_s0 = smov 40  }
  0x88   :  { %89 = dma.hbm_to_vmem [thread:$0]  %s9929_s5, 5120, %s84_s20, [#allocation14], %s7903_s3, %s7903_s3, %s7904_s0  }
  0x89   :  { %s7905_s19 = smov [#allocation18]   ;;  %s7906_s29 = smov [#allocation21]  }
  0x8a   :  { %s110_s4 = sshll.u32 %s7905_s19, 4  ;;  %s130_s1 = sshll.u32 %s7906_s29, 4  ;;  %s111_s4 = int_to_ptr.vmem [resolvable:$true] %s110_s4  ;;  %s131_s1 = int_to_ptr.vmem [resolvable:$true] %s130_s1 }
  0x8b   :  { %s7762_s6 = scalar_lea.hbm %s9933_s9, 80 }
  0x8c   :  { %p7763_p0 = scmp.ne.s32.totalorder %s9933_s9, %s7762_s6  ;;  %p7766_p1 = scmp.lt.u32.totalorder %s7762_s6, %s9933_s9 }
  0x8e   :  { %p7768_p2 = pnand %p7766_p1, %p7763_p0 }
  0x90   :  { %7771 = shalt.err (!%p7768_p2)
}
  0x91   :  { %s7772_s5 = scalar_lea.vmem %s111_s4, 80  ;;  %s7776_s20 = scalar_lea.vmem %s111_s4, 96 }
  0x92   :  { %p7773_p3 = scmp.ne.s32.totalorder %s111_s4, %s7772_s5  ;;  %p7777_p4 = scmp.lt.s32.totalorder %s111_s4, %s111_s4 }
  0x93   :  { %p7778_p5 = scmp.lt.s32.totalorder %s7776_s20, %s7772_s5 }
  0x95   :  { %p7779_p6 = por %p7778_p5, %p7777_p4 }
  0x97   :  { %p7780_p7 = pnand %p7779_p6, %p7773_p3 }
  0x99   :  { %7783 = shalt.err (!%p7780_p7)
}
  0x9a   :  { %113 = dma.hbm_to_vmem [thread:$0]  %s9933_s9, 80, %s111_s4, [#allocation17]  }
  0x9b   :  { %s7784_s19 = scalar_lea.hbm %s9935_s11, 32 }
  0x9c   :  { %p7785_p8 = scmp.ne.s32.totalorder %s9935_s11, %s7784_s19  ;;  %p7788_p9 = scmp.lt.u32.totalorder %s7784_s19, %s9935_s11 }
  0x9e   :  { %p7790_p10 = pnand %p7788_p9, %p7785_p8 }
  0xa0   :  { %7793 = shalt.err (!%p7790_p10)
}
  0xa1   :  { %s7794_s28 = scalar_lea.vmem %s131_s1, 32  ;;  %p7799_p12 = scmp.lt.s32.totalorder %s131_s1, %s131_s1 }
  0xa2   :  { %p7795_p11 = scmp.ne.s32.totalorder %s131_s1, %s7794_s28  ;;  %p7800_p13 = scmp.lt.s32.totalorder %s7794_s28, %s7794_s28 }
  0xa4   :  { %p7801_p0 = por %p7800_p13, %p7799_p12 }
  0xa6   :  { %p7802_p1 = pnand %p7801_p0, %p7795_p11 }
  0xa8   :  { %7805 = shalt.err (!%p7802_p1)
}
  0xa9   :  { %133 = dma.hbm_to_vmem [thread:$0]  %s9935_s11, 32, %s131_s1, [#allocation20]  }
  0xaa   :  { %7872 = dma.done.wait [#allocation8], 256  }
  0xab   :  { %7873 = vsyncadd [#allocation8], 4294967040 }
  0xac   :  { %7874 = dma.done.wait [#allocation11], 7040  }
  0xad   :  { %7875 = vsyncadd [#allocation11], 4294960256 }
  0xae   :  { %7876 = dma.done.wait [#allocation14], 5136  }
  0xaf   :  { %7877 = vsyncadd [#allocation14], 4294962160 }
  0xb0   :  { %7878 = dma.done.wait [#allocation17], 240  }
  0xb1   :  { %7879 = vsyncadd [#allocation17], 4294967056 }
  0xb2   :  { %7880 = dma.done.wait [#allocation20], 80  }
  0xb3   :  { %7881 = vsyncadd [#allocation20], 4294967216  ;;  %s166_s25 = sld [smem:[#allocation0]]   ;;  %178 = sst [smem:[#allocation26]] %s7903_s3  ;;  %vm288_vm0 = vcmask 457728   ;;  %vm382_vm1 = vcmask 130048  }
  0xb4   :  { %180 = sst [smem:[#allocation26 + $0x1]] %s7903_s3  ;;  %s7907_s27 = smov 5   ;;  %vm553_vm2 = vcmask 523264  }
  0xb5   :  { %182 = sst [smem:[#allocation26 + $0x2]] %s7907_s27  ;;  %s7908_s24 = smov 64  }
  0xb6   :  { %184 = sst [smem:[#allocation26 + $0x3]] %s7908_s24  ;;  %s7909_s11 = smov [#allocation2]  }
  0xb7   :  { %s174_s1 = sshll.u32 %s7909_s11, 4  ;;  %186 = sst [smem:[#allocation26 + $0x4]] %s9968_s30  ;;  %s175_s1 = int_to_ptr.vmem [resolvable:$true] %s174_s1 }
  0xb8   :  { %s7910_s5 = smov 320   ;;  %192 = sst [smem:[#allocation26 + $0x7]] %s7908_s24 }
  0xb9   :  { %190 = sst [smem:[#allocation26 + $0x6]] %s7910_s5  ;;  %s6168_s20 = sshll.u32 %s166_s25, 26 }
  0xba   :  { %s8162_s26 = sadd.s32 134217728, %s6168_s20  ;;  %s7911_s0 = smov 2  }
  0xbb   :  { %188 = sst [smem:[#allocation26 + $0x5]] %s7911_s0  ;;  %s7912_s3 = smov 4  }
  0xbc   :  { %194 = sst [smem:[#allocation26 + $0x8]] %s7912_s3  ;;  %s7913_s18 = smov [#allocation6]  }
  0xbd   :  { %s7914_s22 = smov [#allocation25]   ;;  %s7915_s10 = smov 384  }
  0xbe   :  { %196 = dma.general %s9936_s12, 51200, %s175_s1, %s7913_s18, %s7914_s22, [#allocation26], %s8162_s26, 0  }
  0xbf   :  { %213 = sst [smem:[#allocation28]] %s7915_s10  ;;  %s7916_s21 = smov 3  }
  0xc0   :  { %215 = sst [smem:[#allocation28 + $0x1]] %s7915_s10  ;;  %s7917_s6 = smov [#allocation3]  }
  0xc1   :  { %217 = sst [smem:[#allocation28 + $0x2]] %s7916_s21  ;;  %s209_s28 = sshll.u32 %s7917_s6, 4  ;;  %s210_s28 = int_to_ptr.vmem [resolvable:$true] %s209_s28 }
  0xc2   :  { %219 = sst [smem:[#allocation28 + $0x3]] %s7908_s24  ;;  %s7918_s9 = smov 192  }
  0xc3   :  { %221 = sst [smem:[#allocation28 + $0x4]] %s9968_s30  ;;  %s7919_s12 = smov [#allocation6 + $0x1]  }
  0xc4   :  { %223 = sst [smem:[#allocation28 + $0x5]] %s7911_s0  ;;  %s7920_s4 = smov [#allocation27]  }
  0xc5   :  { %225 = sst [smem:[#allocation28 + $0x6]] %s7918_s9  ;;  %s7921_s11 = smov 256  }
  0xc6   :  { %227 = sst [smem:[#allocation28 + $0x7]] %s7908_s24  ;;  %s7922_s1 = smov [#allocation4]  }
  0xc7   :  { %229 = sst [smem:[#allocation28 + $0x8]] %s7912_s3  ;;  %s244_s5 = sshll.u32 %s7922_s1, 4  ;;  %s245_s5 = int_to_ptr.vmem [resolvable:$true] %s244_s5 }
  0xc8   :  { %231 = dma.general %s9937_s13, 15360, %s210_s28, %s7919_s12, %s7920_s4, [#allocation28], %s8162_s26, 0  }
  0xc9   :  { %248 = sst [smem:[#allocation30]] %s7921_s11  ;;  %s7923_s13 = smov [#allocation6 + $0x2]  }
  0xca   :  { %250 = sst [smem:[#allocation30 + $0x1]] %s7921_s11  ;;  %s7924_s20 = smov [#allocation29]  }
  0xcb   :  { %252 = sst [smem:[#allocation30 + $0x2]] %s7911_s0 }
  0xcc   :  { %254 = sst [smem:[#allocation30 + $0x3]] %s7908_s24 }
  0xcd   :  { %256 = sst [smem:[#allocation30 + $0x4]] %s9968_s30 }
  0xce   :  { %258 = sst [smem:[#allocation30 + $0x5]] %s7911_s0 }
  0xcf   :  { %260 = sst [smem:[#allocation30 + $0x6]] %s9968_s30 }
  0xd0   :  { %262 = sst [smem:[#allocation30 + $0x7]] %s7908_s24 }
  0xd1   :  { %264 = sst [smem:[#allocation30 + $0x8]] %s7912_s3 }
  0xd2   :  { %266 = dma.general %s9938_s14, 6144, %s245_s5, %s7923_s13, %s7924_s20, [#allocation30], %s8162_s26, 0  }
  0xd3   :  { %v281_v0 = vld [vmem:[#allocation10] sm:$0xff]  ;;  %v282_v1 = vld [vmem:[#allocation10 + $0x8] sm:$0xff]  ;;  %v283_v2 = vld [vmem:[#allocation10 + $0x10] sm:$0xff]  ;;  %s7806_s5 = scalar_lea.hbm %s9939_s15, 2048 }
  0xd4   :  { %v7003_v3 = vpack.c.bf16 %v282_v1, %v281_v0  ;;  %v284_v4 = vld [vmem:[#allocation10 + $0x18] sm:$0xff]  ;;  %v285_v6 = vld [vmem:[#allocation10 + $0x20] sm:$0xff]  ;;  %v286_v7 = vld [vmem:[#allocation10 + $0x28] sm:$0xff]  ;;  %p7807_p2 = scmp.ne.s32.totalorder %s9939_s15, %s7806_s5  ;;  %p7810_p3 = scmp.lt.u32.totalorder %s7806_s5, %s9939_s15 }
  0xd5   :  { %v7007_v5 = vpack.c.bf16 %v284_v4, %v283_v2  ;;  %v279_v8 = vld [vmem:[#allocation7] sm:$0xff]  ;;  %v7011_v9 = vpack.c.bf16 %v286_v7, %v285_v6  ;;  %v280_v11 = vld [vmem:[#allocation7 + $0x8] sm:$0xff]  ;;  %v546_v14 = vld [vmem:[#allocation12 + $0x8] sm:$0xff] }
  0xd6   :  { %7004 = vmatprep.subr.bf16.mxu0 %v7003_v3  ;;  %6828 = vmatprep.mubr.msk.f32.mxu0 %vm288_vm0, %v279_v8  ;;  %v287_v10 = vld [vmem:[#allocation10 + $0x30] sm:$0xff]  ;;  %v545_v13 = vld [vmem:[#allocation12] sm:$0xff]  ;;  %v547_v19 = vld [vmem:[#allocation12 + $0x10] sm:$0xff]  ;;  %p7812_p4 = pnand %p7810_p3, %p7807_p2 }
  0xd7   :  { %7006 = vmatpush3.bf16.msra.mxu0 %v7003_v3  ;;  %v370_v12 = vld [vmem:[%s9926_s2] sm:$0xff]  ;;  %v7019_v18 = vpack.c.bf16 %v546_v14, %v545_v13  ;;  %v371_v21 = vld [vmem:[%s9926_s2 + $0x8] sm:$0xff]  ;;  %v372_v22 = vld [vmem:[%s9926_s2 + $0x10] sm:$0xff] }
  0xd8   :  { %7008 = vmatprep.subr.bf16.mxu0 %v7007_v5  ;;  %6835 = vmatprep.mubr.msk.f32.mxu1 %vm382_vm1, %v370_v12  ;;  %v548_v20 = vld [vmem:[#allocation12 + $0x18] sm:$0xff]  ;;  %v549_v24 = vld [vmem:[#allocation12 + $0x20] sm:$0xff]  ;;  %v550_v25 = vld [vmem:[#allocation12 + $0x28] sm:$0xff] }
  0xd9   :  { %v7023_v23 = vpack.c.bf16 %v548_v20, %v547_v19  ;;  %v373_v26 = vld [vmem:[%s9926_s2 + $0x18] sm:$0xff]  ;;  %v374_v27 = vld [vmem:[%s9926_s2 + $0x20] sm:$0xff]  ;;  %v7027_v28 = vpack.c.bf16 %v550_v25, %v549_v24  ;;  %v375_v31 = vld [vmem:[%s9926_s2 + $0x28] sm:$0xff] }
  0xda   :  { %v551_v29 = vld [vmem:[#allocation12 + $0x30] sm:$0xff]  ;;  %v552_v30 = vld [vmem:[#allocation12 + $0x38] sm:$0xff]  ;;  %v376_v32 = vld [vmem:[%s9926_s2 + $0x30] sm:$0xff] }
  0xdb   :  { %7010 = vmatpush3.bf16.msra.mxu0 %v7007_v5  ;;  %v7031_v33 = vpack.c.bf16 %v552_v30, %v551_v29  ;;  %v377_v34 = vld [vmem:[%s9926_s2 + $0x38] sm:$0xff]  ;;  %v378_v35 = vld [vmem:[%s9926_s2 + $0x40] sm:$0xff]  ;;  %v379_v36 = vld [vmem:[%s9926_s2 + $0x48] sm:$0xff] }
  0xdc   :  { %7012 = vmatprep.subr.bf16.mxu0 %v7011_v9  ;;  %v380_v37 = vld [vmem:[%s9926_s2 + $0x50] sm:$0xff]  ;;  %v381_v38 = vld [vmem:[%s9926_s2 + $0x58] sm:$0xff]  ;;  %v644_v39 = vld [vmem:[#allocation12 + $0x40] sm:$0xff] }
  0xdd   :  { %v645_v40 = vld [vmem:[#allocation12 + $0x48] sm:$0xff]  ;;  %v7513_v44 = vld [vmem:[#allocation15 + $0x54] ss:$40 sps:$4 sm:$0xff]   ;;  %v7511_v45 = vld [vmem:[#allocation15 + $0x50] ss:$40 sps:$4 sm:$0xff]  }
  0xde   :  { %v7035_v41 = vpack.c.bf16 %v645_v40, %v644_v39  ;;  %v7508_v42 = vld [vmem:[#allocation15] ss:$40 sps:$4 sm:$0xff]   ;;  %v7510_v43 = vld [vmem:[#allocation15 + $0x4] ss:$40 sps:$4 sm:$0xff]   ;;  %v647_v49 = vld [vmem:[#allocation12 + $0x58] sm:$0xff] }
  0xdf   :  { %7014 = vmatpush3.bf16.msra.mxu0 %v7011_v9  ;;  %v7516_v46 = vld [vmem:[#allocation15 + $0xa4] ss:$40 sps:$4 sm:$0xff]   ;;  %v7514_v47 = vld [vmem:[#allocation15 + $0xa0] ss:$40 sps:$4 sm:$0xff]   ;;  %v651_v59 = vld [vmem:[#allocation12 + $0x78] sm:$0xff] }
  0xe0   :  { %6826 = vmatprep.subr.mxu0 %v287_v10  ;;  %v646_v48 = vld [vmem:[#allocation12 + $0x50] sm:$0xff]  ;;  %v648_v53 = vld [vmem:[#allocation12 + $0x60] sm:$0xff]  ;;  %v649_v54 = vld [vmem:[#allocation12 + $0x68] sm:$0xff] }
  0xe1   :  { %v7039_v52 = vpack.c.bf16 %v647_v49, %v646_v48  ;;  %v7043_v56 = vpack.c.bf16 %v649_v54, %v648_v53  ;;  %v650_v58 = vld [vmem:[#allocation12 + $0x70] sm:$0xff]  ;;  %v736_v63 = vld [vmem:[#allocation12 + $0x80] sm:$0xff]  ;;  %v737_v0 = vld [vmem:[#allocation12 + $0x88] sm:$0xff] }
  0xe2   :  { %v7047_v61 = vpack.c.bf16 %v651_v59, %v650_v58  ;;  %v7051_v2 = vpack.c.bf16 %v737_v0, %v736_v63  ;;  %v738_v4 = vld [vmem:[#allocation12 + $0x90] sm:$0xff]  ;;  %v739_v5 = vld [vmem:[#allocation12 + $0x98] sm:$0xff]  ;;  %v740_v9 = vld [vmem:[#allocation12 + $0xa0] sm:$0xff] }
  0xe3   :  { %6827 = vmatpush3.msra.mxu0 %v287_v10  ;;  %v7055_v7 = vpack.c.bf16 %v739_v5, %v738_v4  ;;  %v741_v10 = vld [vmem:[#allocation12 + $0xa8] sm:$0xff]  ;;  %v742_v14 = vld [vmem:[#allocation12 + $0xb0] sm:$0xff]  ;;  %v920_v29 = vld [vmem:[#allocation12 + $0x100] sm:$0xff] }
  0xe4   :  { %6829 = vmatmul.mubr.msk.f32.vlgmr.msra.gmra.mrb[0].mxu0 %vm288_vm0, %v280_v11  ;;  %1401 = vmatprep.subr.bf16.mxu0 %v7510_v43  ;;  %v7059_v12 = vpack.c.bf16 %v741_v10, %v740_v9  ;;  %v830_v20 = vld [vmem:[#allocation12 + $0xd0] sm:$0xff]  ;;  %v833_v24 = vld [vmem:[#allocation12 + $0xe8] sm:$0xff]  ;;  %v927_v39 = vld [vmem:[#allocation12 + $0x138] sm:$0xff] }
  0xe5   :  { %1402 = vmatpush1.bf16.msra.mxu0 %v7508_v42  ;;  %v921_v30 = vld [vmem:[#allocation12 + $0x108] sm:$0xff]  ;;  %v7519_v53 = vld [vmem:[#allocation15 + $0xf4] ss:$40 sps:$4 sm:$0xff]   ;;  %v7517_v54 = vld [vmem:[#allocation15 + $0xf0] ss:$40 sps:$4 sm:$0xff]  }
  0xe6   :  { %1403 = vmatprep.subr.bf16.mxu0 %v7513_v44  ;;  %v1013_v42 = vld [vmem:[#allocation12 + $0x148] sm:$0xff]  ;;  %v1014_v44 = vld [vmem:[#allocation12 + $0x150] sm:$0xff]  ;;  %v7529_v5 = vld [vmem:[#allocation15 + $0xf8] ss:$40 sps:$4 sm:$0xff]  }
  0xe7   :  { %v1017_v48 = vld [vmem:[#allocation12 + $0x168] sm:$0xff]  ;;  %v7540_v10 = vld [vmem:[#allocation15 + $0xb4] ss:$40 sps:$4 sm:$0xff]  }
  0xe8   :  { %v7525_v0 = vld [vmem:[#allocation15 + $0x5c] ss:$40 sps:$4 sm:$0xff]   ;;  %v7535_v9 = vld [vmem:[#allocation15 + $0x60] ss:$40 sps:$4 sm:$0xff]  }
  0xe9   :  { %1404 = vmatpush1.bf16.msra.mxu0 %v7511_v45  ;;  %v1015_v45 = vld [vmem:[#allocation12 + $0x158] sm:$0xff] }
  0xea   :  { %1405 = vmatprep.subr.bf16.mxu0 %v7516_v46  ;;  %v7103_v46 = vpack.c.bf16 %v1015_v45, %v1014_v44  ;;  %v7531_v4 = vld [vmem:[#allocation15 + $0xfc] ss:$40 sps:$4 sm:$0xff]  }
  0xed   :  { %1406 = vmatpush1.bf16.msra.mxu0 %v7514_v47  ;;  %v1016_v47 = vld [vmem:[#allocation12 + $0x160] sm:$0xff] }
  0xee   :  { %v7107_v49 = vpack.c.bf16 %v1017_v48, %v1016_v47  ;;  %1407 = vmatprep.subr.bf16.mxu0 %v7519_v53 }
  0xf1   :  { %1408 = vmatpush1.bf16.msra.mxu0 %v7517_v54  ;;  %v8309_v54 = vld [vmem:[%s9931_s7 + $0x28] sm:$0xff] }
 0x1b7   :  { %v6830_v15 = vpop.f32.mrb[0].mxu0 }
 0x1b8   :  { %v361_v16 = vpop.f32.mrb[1].mxu0 }
 0x1b9   :  { %v7015_v17 = vpack.c.bf16 %v6830_v15, %v361_v16  ;;  %v743_v15 = vld [vmem:[#allocation12 + $0xb8] sm:$0xff] }
 0x1ba   :  { %v7063_v16 = vpack.c.bf16 %v743_v15, %v742_v14  ;;  %v7546_v14 = vld [vmem:[#allocation15 + $0x1c] ss:$40 sps:$4 sm:$0xff]   ;;  %v7544_v15 = vld [vmem:[#allocation15 + $0x18] ss:$40 sps:$4 sm:$0xff]  }
 0x1bb   :  { %7016 = vmatprep.subr.bf16.mxu1 %v7015_v17 }
 0x1bc   :  { %7018 = vmatpush3.bf16.msra.mxu1 %v7015_v17  ;;  %v828_v17 = vld [vmem:[#allocation12 + $0xc0] sm:$0xff] }
 0x1bd   :  { %7020 = vmatprep.subr.bf16.mxu1 %v7019_v18 }
 0x1bf   :  { %6836 = vmatmul.mubr.msk.f32.vlgmr.msra.gmra.mrb[0].mxu1 %vm382_vm1, %v371_v21  ;;  %v831_v21 = vld [vmem:[#allocation12 + $0xd8] sm:$0xff] }
 0x1c0   :  { %6838 = vmatprep.mubr.msk.f32.mxu1 %vm382_vm1, %v372_v22  ;;  %7022 = vmatpush3.bf16.msra.mxu1 %v7019_v18  ;;  %v829_v18 = vld [vmem:[#allocation12 + $0xc8] sm:$0xff]  ;;  %v7071_v22 = vpack.c.bf16 %v831_v21, %v830_v20 }
 0x1c1   :  { %7024 = vmatprep.subr.bf16.mxu1 %v7023_v23  ;;  %v7067_v19 = vpack.c.bf16 %v829_v18, %v828_v17  ;;  %v7547_v17 = vld [vmem:[#allocation15 + $0x68] ss:$40 sps:$4 sm:$0xff]   ;;  %v7552_v18 = vld [vmem:[#allocation15 + $0xbc] ss:$40 sps:$4 sm:$0xff]   ;;  %v7555_v20 = vld [vmem:[#allocation15 + $0x10c] ss:$40 sps:$4 sm:$0xff]  }
 0x1c2   :  { %v7553_v21 = vld [vmem:[#allocation15 + $0x108] ss:$40 sps:$4 sm:$0xff]  }
 0x1c3   :  { %6839 = vmatmul.mubr.msk.f32.gmra.mrb[2].mxu1 %vm382_vm1, %v373_v26  ;;  %v834_v26 = vld [vmem:[#allocation12 + $0xf0] sm:$0xff] }
 0x1c4   :  { %6841 = vmatprep.mubr.msk.f32.mxu1 %vm382_vm1, %v374_v27  ;;  %7026 = vmatpush3.bf16.msra.mxu1 %v7023_v23  ;;  %v832_v23 = vld [vmem:[#allocation12 + $0xe0] sm:$0xff]  ;;  %v835_v27 = vld [vmem:[#allocation12 + $0xf8] sm:$0xff] }
 0x1c5   :  { %7028 = vmatprep.subr.bf16.mxu1 %v7027_v28  ;;  %v7075_v25 = vpack.c.bf16 %v833_v24, %v832_v23  ;;  %v7556_v23 = vld [vmem:[#allocation15 + $0x20] ss:$40 sps:$4 sm:$0xff]   ;;  %v7561_v24 = vld [vmem:[#allocation15 + $0x74] ss:$40 sps:$4 sm:$0xff]  }
 0x1c7   :  { %6842 = vmatmul.mubr.msk.f32.gmra.mrb[4].mxu1 %vm382_vm1, %v375_v31  ;;  %v7083_v31 = vpack.c.bf16 %v921_v30, %v920_v29  ;;  %v7565_v29 = vld [vmem:[#allocation15 + $0x110] ss:$40 sps:$4 sm:$0xff]   ;;  %v9948_v30 = vmov 0.0  }
 0x1c8   :  { %6844 = vmatprep.mubr.msk.f32.mxu1 %vm382_vm1, %v376_v32  ;;  %7030 = vmatpush3.bf16.msra.mxu1 %v7027_v28  ;;  %v7079_v28 = vpack.c.bf16 %v835_v27, %v834_v26  ;;  %v922_v32 = vld [vmem:[#allocation12 + $0x110] sm:$0xff]  ;;  %v7562_v27 = vld [vmem:[#allocation15 + $0xc0] ss:$40 sps:$4 sm:$0xff]  }
 0x1c9   :  { %7032 = vmatprep.subr.bf16.mxu1 %v7031_v33  ;;  %v7564_v26 = vld [vmem:[#allocation15 + $0xc4] ss:$40 sps:$4 sm:$0xff]  }
 0x1cb   :  { %6845 = vmatmul.mubr.msk.f32.gmra.mrb[6].mxu1 %vm382_vm1, %v377_v34 }
 0x1cc   :  { %6847 = vmatprep.mubr.msk.f32.mxu1 %vm382_vm1, %v378_v35  ;;  %7034 = vmatpush3.bf16.msra.mxu1 %v7031_v33  ;;  %v923_v33 = vld [vmem:[#allocation12 + $0x118] sm:$0xff]  ;;  %v924_v35 = vld [vmem:[#allocation12 + $0x120] sm:$0xff] }
 0x1cd   :  { %7036 = vmatprep.subr.bf16.mxu1 %v7035_v41  ;;  %v7087_v34 = vpack.c.bf16 %v923_v33, %v922_v32 }
 0x1cf   :  { %6848 = vmatmul.mubr.msk.f32.gmra.mrb[8].mxu1 %vm382_vm1, %v379_v36  ;;  %v925_v36 = vld [vmem:[#allocation12 + $0x128] sm:$0xff] }
 0x1d0   :  { %6850 = vmatprep.mubr.msk.f32.mxu1 %vm382_vm1, %v380_v37  ;;  %v7091_v37 = vpack.c.bf16 %v925_v36, %v924_v35 }
 0x1d3   :  { %6851 = vmatmul.mubr.msk.f32.gmra.mrb[10].mxu1 %vm382_vm1, %v381_v38  ;;  %v926_v38 = vld [vmem:[#allocation12 + $0x130] sm:$0xff] }
 0x1d4   :  { %v7095_v40 = vpack.c.bf16 %v927_v39, %v926_v38 }
 0x292   :  { %v6837_v50 = vpop.f32.mrb[0].mxu1 }
 0x293   :  { %v485_v51 = vpop.f32.mrb[1].mxu1 }
 0x294   :  { %6869 = vmatprep.mubr.msk.f32.mxu1 %vm553_vm2, %v485_v51  ;;  %v1019_v51 = vld [vmem:[#allocation12 + $0x178] sm:$0xff] }
 0x295   :  { %6870 = vmatmul.mubr.msk.f32.vlgmr.msra.gmra.mrb[12].mxu1 %vm553_vm2, %v6837_v50  ;;  %v1018_v50 = vld [vmem:[#allocation12 + $0x170] sm:$0xff] }
 0x296   :  { %7038 = vmatpush3.bf16.msra.mxu1 %v7035_v41  ;;  %v6840_v55 = vpop.f32.mrb[2].mxu1  ;;  %v1012_v41 = vld [vmem:[#allocation12 + $0x140] sm:$0xff] }
 0x297   :  { %7040 = vmatprep.subr.bf16.mxu1 %v7039_v52  ;;  %v495_v57 = vpop.f32.mrb[3].mxu1  ;;  %v7099_v43 = vpack.c.bf16 %v1013_v42, %v1012_v41 }
 0x298   :  { %6888 = vmatprep.mubr.msk.f32.mxu1 %vm553_vm2, %v495_v57  ;;  %v6190_v57 = vld [vmem:[#allocation13] ss:$0 sm:$0xff] }
 0x29a   :  { %7042 = vmatpush3.bf16.msra.mxu1 %v7039_v52  ;;  %v6843_v60 = vpop.f32.mrb[4].mxu1  ;;  %v7111_v52 = vpack.c.bf16 %v1019_v51, %v1018_v50 }
 0x29b   :  { %7044 = vmatprep.subr.bf16.mxu1 %v7043_v56  ;;  %v505_v62 = vpop.f32.mrb[5].mxu1 }
 0x29e   :  { %7046 = vmatpush3.bf16.msra.mxu1 %v7043_v56  ;;  %v6846_v1 = vpop.f32.mrb[6].mxu1  ;;  %v9946_v56 = vmov 0  }
 0x29f   :  { %7048 = vmatprep.subr.bf16.mxu1 %v7047_v61  ;;  %v515_v3 = vpop.f32.mrb[7].mxu1  ;;  %1433 = vmatprep.mubr.bf16.mxu0 %v9946_v56 }
 0x2a2   :  { %7050 = vmatpush3.bf16.msra.mxu1 %v7047_v61  ;;  %v8243_v6 = vpop.f32.mrb[8].mxu1 }
 0x2a3   :  { %7052 = vmatprep.subr.bf16.mxu1 %v7051_v2  ;;  %v525_v8 = vpop.f32.mrb[9].mxu1 }
 0x2a5   :  { %6889 = vmatmul.mubr.msk.f32.vlgmr.msra.gmra.mrb[12].mxu1 %vm553_vm2, %v6840_v55  ;;  %v7522_v55 = vld [vmem:[#allocation15 + $0xc] ss:$40 sps:$4 sm:$0xff]  }
 0x2a6   :  { %7054 = vmatpush3.bf16.msra.mxu1 %v7051_v2  ;;  %6907 = vmatprep.mubr.msk.f32.mxu1 %vm553_vm2, %v505_v62  ;;  %v8247_v11 = vpop.f32.mrb[10].mxu1  ;;  %v7520_v62 = vld [vmem:[#allocation15 + $0x8] ss:$40 sps:$4 sm:$0xff]   ;;  %v7528_v2 = vld [vmem:[#allocation15 + $0xac] ss:$40 sps:$4 sm:$0xff]  }
 0x2a7   :  { %7056 = vmatprep.subr.bf16.mxu1 %v7055_v7  ;;  %v8249_v13 = vpop.f32.mrb[11].mxu1  ;;  %1444 = vmatprep.subr.bf16.mxu0 %v7522_v55  ;;  %v8314_v55 = vld [vmem:[%s9931_s7] sm:$0xff] }
 0x2aa   :  { %7058 = vmatpush3.bf16.msra.mxu1 %v7055_v7  ;;  %v7532_v7 = vld [vmem:[#allocation15 + $0x10] ss:$40 sps:$4 sm:$0xff]  }
 0x2ab   :  { %7060 = vmatprep.subr.bf16.mxu1 %v7059_v12 }
 0x2ae   :  { %7062 = vmatpush3.bf16.msra.mxu1 %v7059_v12  ;;  %v7543_v12 = vld [vmem:[#allocation15 + $0x104] ss:$40 sps:$4 sm:$0xff]  }
 0x2af   :  { %7064 = vmatprep.subr.bf16.mxu1 %v7063_v16 }
 0x2b2   :  { %7066 = vmatpush3.bf16.msra.mxu1 %v7063_v16  ;;  %v7549_v16 = vld [vmem:[#allocation15 + $0x6c] ss:$40 sps:$4 sm:$0xff]  }
 0x2b3   :  { %7068 = vmatprep.subr.bf16.mxu1 %v7067_v19 }
 0x2b5   :  { %6908 = vmatmul.mubr.msk.f32.vlgmr.msra.gmra.mrb[12].mxu1 %vm553_vm2, %v6843_v60 }
 0x2b6   :  { %7070 = vmatpush3.bf16.msra.mxu1 %v7067_v19  ;;  %6926 = vmatprep.mubr.msk.f32.mxu1 %vm553_vm2, %v515_v3  ;;  %v7526_v3 = vld [vmem:[#allocation15 + $0xa8] ss:$40 sps:$4 sm:$0xff]   ;;  %v7550_v19 = vld [vmem:[#allocation15 + $0xb8] ss:$40 sps:$4 sm:$0xff]  }
 0x2b7   :  { %7072 = vmatprep.subr.bf16.mxu1 %v7071_v22 }
 0x2ba   :  { %7074 = vmatpush3.bf16.msra.mxu1 %v7071_v22  ;;  %v7558_v22 = vld [vmem:[#allocation15 + $0x24] ss:$40 sps:$4 sm:$0xff]  }
 0x2bb   :  { %7076 = vmatprep.subr.bf16.mxu1 %v7075_v25 }
 0x2be   :  { %7078 = vmatpush3.bf16.msra.mxu1 %v7075_v25  ;;  %v7559_v25 = vld [vmem:[#allocation15 + $0x70] ss:$40 sps:$4 sm:$0xff]  }
 0x2bf   :  { %7080 = vmatprep.subr.bf16.mxu1 %v7079_v28 }
 0x2c2   :  { %7082 = vmatpush3.bf16.msra.mxu1 %v7079_v28  ;;  %v7567_v28 = vld [vmem:[#allocation15 + $0x114] ss:$40 sps:$4 sm:$0xff]  }
 0x2c3   :  { %7084 = vmatprep.subr.bf16.mxu1 %v7083_v31 }
 0x2c5   :  { %6927 = vmatmul.mubr.msk.f32.vlgmr.msra.gmra.mrb[12].mxu1 %vm553_vm2, %v6846_v1  ;;  %v7523_v1 = vld [vmem:[#allocation15 + $0x58] ss:$40 sps:$4 sm:$0xff]  }
 0x2c6   :  { %7086 = vmatpush3.bf16.msra.mxu1 %v7083_v31  ;;  %6945 = vmatprep.mubr.msk.f32.mxu1 %vm553_vm2, %v525_v8  ;;  %v7537_v8 = vld [vmem:[#allocation15 + $0x64] ss:$40 sps:$4 sm:$0xff]   ;;  %v1148_v31 = vlaneseq }
 0x2c7   :  { %7088 = vmatprep.subr.bf16.mxu1 %v7087_v34 }
 0x2c8   :  { %v8280_v32 = vshrl.u32 %v1148_v31, 7 }
 0x2ca   :  { %7090 = vmatpush3.bf16.msra.mxu1 %v7087_v34  ;;  %9969 = vst [vmem:[#allocation46_spill] sm:$0xff] %v8280_v32  ;;  %v8283_v33 = vsub.s32 0, %v8280_v32  ;;  %v8285_v34 = vld [vmem:[#allocation16] sm:$0xff]  ;;  %v8288_v35 = vsub.s32 1, %v8280_v32  ;;  %v9951_v53 = vsub.s32 3, %v8280_v32 }
 0x2cb   :  { %7092 = vmatprep.subr.bf16.mxu1 %v7091_v37 }
 0x2cc   :  { %9970 = vst [vmem:[#allocation47_spill] sm:$0xff] %v8283_v33  ;;  %9971 = vst [vmem:[#allocation48_spill] sm:$0xff] %v8288_v35  ;;  %v1151_v36 = vrot.slane %v8285_v34, %v8283_v33 }
 0x2ce   :  { %7094 = vmatpush3.bf16.msra.mxu1 %v7091_v37  ;;  %v1155_v37 = vrot.slane %v8285_v34, %v8288_v35 }
 0x2cf   :  { %7096 = vmatprep.subr.bf16.mxu1 %v7095_v40 }
 0x2d2   :  { %7098 = vmatpush3.bf16.msra.mxu1 %v7095_v40 }
 0x2d3   :  { %7100 = vmatprep.subr.bf16.mxu1 %v7099_v43 }
 0x2d5   :  { %6946 = vmatmul.mubr.msk.f32.vlgmr.msra.gmra.mrb[12].mxu1 %vm553_vm2, %v8243_v6  ;;  %v7534_v6 = vld [vmem:[#allocation15 + $0x14] ss:$40 sps:$4 sm:$0xff]  }
 0x2d6   :  { %7102 = vmatpush3.bf16.msra.mxu1 %v7099_v43  ;;  %6964 = vmatprep.mubr.msk.f32.mxu1 %vm553_vm2, %v8249_v13  ;;  %v7541_v13 = vld [vmem:[#allocation15 + $0x100] ss:$40 sps:$4 sm:$0xff]  }
 0x2d7   :  { %7104 = vmatprep.subr.bf16.mxu1 %v7103_v46 }
 0x2da   :  { %7106 = vmatpush3.bf16.msra.mxu1 %v7103_v46 }
 0x2db   :  { %7108 = vmatprep.subr.bf16.mxu1 %v7107_v49 }
 0x2de   :  { %7110 = vmatpush3.bf16.msra.mxu1 %v7107_v49 }
 0x2df   :  { %7112 = vmatprep.subr.bf16.mxu1 %v7111_v52 }
 0x2e2   :  { %7114 = vmatpush3.bf16.msra.mxu1 %v7111_v52  ;;  %v8299_v52 = vsub.s32 2, %v8280_v32 }
 0x2e4   :  { %9972 = vst [vmem:[#allocation49_spill] sm:$0xff] %v8299_v52 }
 0x2e5   :  { %6965 = vmatmul.mubr.msk.f32.vlgmr.msra.gmra.mrb[12].mxu1 %vm553_vm2, %v8247_v11  ;;  %v7538_v11 = vld [vmem:[#allocation15 + $0xb0] ss:$40 sps:$4 sm:$0xff]  }
 0x2e6   :  { %1790 = vmatprep.mubr.f32.mxu1 %v9948_v30 }
 0x3b8   :  { %v6966_v58 = vpop.f32.mrb[12].mxu1 }
 0x3b9   :  { %v7157_v59 = vadd.f32 %v6966_v58, %v6190_v57  ;;  %v1092_v60 = vpop.f32.mrb[13].mxu1  ;;  %v1163_v58 = vrot.slane %v8285_v34, %v9951_v53 }
 0x3ba   :  { %v7158_v61 = vadd.f32 %v6190_v57, %v1092_v60  ;;  %v1159_v57 = vrot.slane %v8285_v34, %v8299_v52  ;;  %v8335_v60 = vld [vmem:[%s9931_s7 + $0x8] sm:$0xff] }
 0x3bc   :  { %v8262_v63 = vpack.c.bf16 %v7157_v59, %v7158_v61  ;;  %v8329_v59 = vld [vmem:[%s9931_s7 + $0x30] sm:$0xff] }
 0x3be   :  { %6241 = vmatmul.mubr.msk.bf16.vlgmr.msra.gmra.mrb[4].mxu0 %vm553_vm2, %v8262_v63 }
 0x3bf   :  { %1445 = vmatpush1.bf16.msra.mxu0 %v7520_v62  ;;  %1476 = vmatprep.mubr.bf16.mxu0 %v9946_v56 }
 0x3c0   :  { %1446 = vmatprep.subr.bf16.mxu0 %v7525_v0 }
 0x3c3   :  { %1447 = vmatpush1.bf16.msra.mxu0 %v7523_v1 }
 0x3c4   :  { %1448 = vmatprep.subr.bf16.mxu0 %v7528_v2 }
 0x3c7   :  { %1449 = vmatpush1.bf16.msra.mxu0 %v7526_v3 }
 0x3c8   :  { %1450 = vmatprep.subr.bf16.mxu0 %v7531_v4 }
 0x3cb   :  { %1451 = vmatpush1.bf16.msra.mxu0 %v7529_v5  ;;  %v8345_v5 = vld [vmem:[%s9931_s7 + $0x38] sm:$0xff] }
 0x3cc   :  { %1487 = vmatprep.subr.bf16.mxu0 %v7534_v6  ;;  %v8351_v6 = vld [vmem:[%s9931_s7 + $0x10] sm:$0xff] }
 0x3ce   :  { %6242 = vmatmul.mubr.msk.bf16.vlgmr.msra.gmra.mrb[8].mxu0 %vm553_vm2, %v8262_v63 }
 0x3cf   :  { %1488 = vmatpush1.bf16.msra.mxu0 %v7532_v7  ;;  %1519 = vmatprep.mubr.bf16.mxu0 %v9946_v56 }
 0x3d0   :  { %1489 = vmatprep.subr.bf16.mxu0 %v7537_v8 }
 0x3d3   :  { %1490 = vmatpush1.bf16.msra.mxu0 %v7535_v9 }
 0x3d4   :  { %1491 = vmatprep.subr.bf16.mxu0 %v7540_v10 }
 0x3d7   :  { %1492 = vmatpush1.bf16.msra.mxu0 %v7538_v11 }
 0x3d8   :  { %1493 = vmatprep.subr.bf16.mxu0 %v7543_v12  ;;  %v8363_v12 = vld [vmem:[%s9931_s7 + $0x40] sm:$0xff] }
 0x3db   :  { %1494 = vmatpush1.bf16.msra.mxu0 %v7541_v13 }
 0x3dc   :  { %1530 = vmatprep.subr.bf16.mxu0 %v7546_v14  ;;  %v9950_v14 = vsub.s32 4, %v8280_v32 }
 0x3de   :  { %6243 = vmatmul.mubr.msk.bf16.vlgmr.msra.gmra.mrb[12].mxu0 %vm553_vm2, %v8262_v63 }
 0x3df   :  { %1531 = vmatpush1.bf16.msra.mxu0 %v7544_v15  ;;  %1562 = vmatprep.mubr.bf16.mxu0 %v9946_v56  ;;  %v8372_v15 = vld [vmem:[%s9931_s7 + $0x18] sm:$0xff] }
 0x3e0   :  { %1532 = vmatprep.subr.bf16.mxu0 %v7549_v16  ;;  %v1170_v16 = vsub.s32 5, %v8280_v32 }
 0x3e3   :  { %1533 = vmatpush1.bf16.msra.mxu0 %v7547_v17  ;;  %v8383_v17 = vld [vmem:[%s9931_s7 + $0x48] sm:$0xff] }
 0x3e4   :  { %1534 = vmatprep.subr.bf16.mxu0 %v7552_v18  ;;  %v1167_v18 = vrot.slane %v8285_v34, %v9950_v14 }
 0x3e7   :  { %1535 = vmatpush1.bf16.msra.mxu0 %v7550_v19  ;;  %v8394_v19 = vld [vmem:[%s9931_s7 + $0x20] sm:$0xff] }
 0x3e8   :  { %1536 = vmatprep.subr.bf16.mxu0 %v7555_v20  ;;  %v1171_v20 = vrot.slane %v8285_v34, %v1170_v16 }
 0x3eb   :  { %1537 = vmatpush1.bf16.msra.mxu0 %v7553_v21 }
 0x3ec   :  { %1573 = vmatprep.subr.bf16.mxu0 %v7558_v22 }
 0x3ee   :  { %6244 = vmatmul.mubr.msk.bf16.vlgmr.msra.gmra.mrb[16].mxu0 %vm553_vm2, %v8262_v63 }
 0x3ef   :  { %1574 = vmatpush1.bf16.msra.mxu0 %v7556_v23  ;;  %1605 = vmatprep.mubr.bf16.mxu0 %v9946_v56 }
 0x3f0   :  { %1575 = vmatprep.subr.bf16.mxu0 %v7561_v24 }
 0x3f3   :  { %1576 = vmatpush1.bf16.msra.mxu0 %v7559_v25 }
 0x3f4   :  { %1577 = vmatprep.subr.bf16.mxu0 %v7564_v26 }
 0x3f7   :  { %1578 = vmatpush1.bf16.msra.mxu0 %v7562_v27 }
 0x3f8   :  { %1579 = vmatprep.subr.bf16.mxu0 %v7567_v28 }
 0x3fb   :  { %1580 = vmatpush1.bf16.msra.mxu0 %v7565_v29 }
 0x3fe   :  { %6245 = vmatmul.mubr.msk.bf16.vlgmr.msra.gmra.mrb[20].mxu0 %vm553_vm2, %v8262_v63 }
 0x3ff   :  { %1760 = vmatprep.mubr.f32.mxu0 %v9948_v30 }
 0x491   :  { %v1435_v38 = vpop.f32.mrb[4].mxu0 }
 0x492   :  { %v1436_v39 = vadd.f32 %v1435_v38, %v1151_v36  ;;  %v1437_v40 = vpop.f32.mrb[5].mxu0 }
 0x493   :  { %v1438_v41 = vadd.f32 %v1437_v40, %v1155_v37  ;;  %v1439_v42 = vpop.f32.mrb[6].mxu0  ;;  %v1174_v40 = vsub.s32 6, %v8280_v32 }
 0x494   :  { %v1616_v43 = vmax.f32 %v1436_v39, 0.0  ;;  %v1440_v44 = vadd.f32 %v1439_v42, %v1151_v36  ;;  %v1441_v45 = vpop.f32.mrb[7].mxu0 }
 0x495   :  { %v1617_v46 = vmax.f32 %v1438_v41, 0.0  ;;  %v1442_v47 = vadd.f32 %v1441_v45, %v1155_v37  ;;  %v1178_v41 = vsub.s32 7, %v8280_v32  ;;  %v1175_v42 = vrot.slane %v8285_v34, %v1174_v40 }
 0x496   :  { %1636 = vst [vmem:[#allocation22] sm:$0xff] %v1616_v43  ;;  %v1626_v48 = vmax.f32 %v1440_v44, 0.0 }
 0x497   :  { %1637 = vst [vmem:[#allocation22 + $0x8] sm:$0xff] %v1617_v46  ;;  %v1627_v49 = vmax.f32 %v1442_v47, 0.0 }
 0x498   :  { %1646 = vst [vmem:[#allocation22 + $0x50] sm:$0xff] %v1626_v48  ;;  %v8294_v50 = vpack.c.bf16 %v1626_v48, %v1616_v43  ;;  %v1179_v43 = vrot.slane %v8285_v34, %v1178_v41 }
 0x499   :  { %1647 = vst [vmem:[#allocation22 + $0x58] sm:$0xff] %v1627_v49  ;;  %v8296_v51 = vpack.c.bf16 %v1627_v49, %v1617_v46 }
 0x49b   :  { %7116 = vmatprep.subr.bf16.mxu0 %v8296_v51  ;;  %7155 = vmatprep.subr.bf16.mxu1 %v8296_v51 }
 0x49c   :  { %7118 = vmatpush1.bf16.msra.mxu0 %v8294_v50  ;;  %7156 = vmatpush1.bf16.msra.mxu1 %v8294_v50 }
 0x49f   :  { %6251 = vmatmul.mubr.msk.f32.vlgmr.msra.gmra.mrb[14].mxu1 %vm382_vm1, %v8309_v54  ;;  %6246 = vmatmul.mubr.msk.f32.vlgmr.msra.gmra.mrb[2].mxu0 %vm382_vm1, %v8314_v55 }
 0x4a0   :  { %1796 = vmatprep.mubr.f32.mxu1 %v9948_v30  ;;  %1766 = vmatprep.mubr.f32.mxu0 %v9948_v30 }
 0x4a1   :  { %v1478_v61 = vpop.f32.mrb[8].mxu0 }
 0x4a2   :  { %v1479_v62 = vadd.f32 %v1478_v61, %v1159_v57  ;;  %v1480_v63 = vpop.f32.mrb[9].mxu0 }
 0x4a3   :  { %v1481_v0 = vadd.f32 %v1480_v63, %v1163_v58  ;;  %v1482_v1 = vpop.f32.mrb[10].mxu0  ;;  %6252 = vmatmul.mubr.msk.f32.gmra.mrb[16].mxu1 %vm382_vm1, %v8329_v59  ;;  %6247 = vmatmul.mubr.msk.f32.gmra.mrb[24].mxu0 %vm382_vm1, %v8335_v60 }
 0x4a4   :  { %v1618_v2 = vmax.f32 %v1479_v62, 0.0  ;;  %v1483_v3 = vadd.f32 %v1482_v1, %v1159_v57  ;;  %v1484_v4 = vpop.f32.mrb[11].mxu0  ;;  %1802 = vmatprep.mubr.f32.mxu1 %v9948_v30  ;;  %1772 = vmatprep.mubr.f32.mxu0 %v9948_v30 }
 0x4a5   :  { %v1619_v7 = vmax.f32 %v1481_v0, 0.0  ;;  %v1485_v8 = vadd.f32 %v1484_v4, %v1163_v58 }
 0x4a6   :  { %1638 = vst [vmem:[#allocation22 + $0x10] sm:$0xff] %v1618_v2  ;;  %v1628_v9 = vmax.f32 %v1483_v3, 0.0 }
 0x4a7   :  { %1639 = vst [vmem:[#allocation22 + $0x18] sm:$0xff] %v1619_v7  ;;  %v1629_v10 = vmax.f32 %v1485_v8, 0.0  ;;  %6253 = vmatmul.mubr.msk.f32.gmra.mrb[18].mxu1 %vm382_vm1, %v8345_v5  ;;  %6248 = vmatmul.mubr.msk.f32.gmra.mrb[26].mxu0 %vm382_vm1, %v8351_v6 }
 0x4a8   :  { %1648 = vst [vmem:[#allocation22 + $0x60] sm:$0xff] %v1628_v9  ;;  %v8357_v11 = vpack.c.bf16 %v1628_v9, %v1618_v2  ;;  %1808 = vmatprep.mubr.f32.mxu1 %v9948_v30  ;;  %1778 = vmatprep.mubr.f32.mxu0 %v9948_v30  ;;  %v1145_v2 = vld [vmem:[#allocation16 + $0x8] sm:$0x3] }
 0x4a9   :  { %1649 = vst [vmem:[#allocation22 + $0x68] sm:$0xff] %v1629_v10  ;;  %v8366_v13 = vpack.c.bf16 %v1629_v10, %v1619_v7  ;;  %v1183_v3 = vrot.slane %v1145_v2, %v8283_v33  ;;  %v1187_v4 = vrot.slane %v1145_v2, %v8288_v35 }
 0x4ab   :  { %7120 = vmatprep.subr.bf16.mxu1 %v8366_v13  ;;  %6254 = vmatmul.mubr.msk.f32.gmra.mrb[20].mxu1 %vm382_vm1, %v8363_v12 }
 0x4ac   :  { %7122 = vmatpush1.bf16.msra.mxu1 %v8357_v11  ;;  %1814 = vmatprep.mubr.f32.mxu1 %v9948_v30 }
 0x4ad   :  { %6249 = vmatmul.mubr.msk.f32.gmra.mrb[28].mxu0 %vm382_vm1, %v8372_v15 }
 0x4ae   :  { %1784 = vmatprep.mubr.f32.mxu0 %v9948_v30 }
 0x4af   :  { %6255 = vmatmul.mubr.msk.f32.gmra.mrb[22].mxu1 %vm382_vm1, %v8383_v17 }
 0x4b0   :  { %1885 = vmatprep.mubr.f32.mxu1 %v9948_v30 }
 0x4b1   :  { %v1521_v21 = vpop.f32.mrb[12].mxu0  ;;  %6250 = vmatmul.mubr.msk.f32.gmra.mrb[30].mxu0 %vm382_vm1, %v8394_v19 }
 0x4b2   :  { %v1522_v22 = vadd.f32 %v1521_v21, %v1167_v18  ;;  %v1523_v23 = vpop.f32.mrb[13].mxu0  ;;  %2010 = vmatprep.mubr.f32.mxu0 %v9948_v30 }
 0x4b3   :  { %v1524_v24 = vadd.f32 %v1523_v23, %v1171_v20  ;;  %v1525_v25 = vpop.f32.mrb[14].mxu0  ;;  %6256 = vmatmul.mubr.msk.f32.vlgmr.msra.gmra.mrb[24].mxu1 %vm382_vm1, %v8314_v55 }
 0x4b4   :  { %v1620_v26 = vmax.f32 %v1522_v22, 0.0  ;;  %v1526_v27 = vadd.f32 %v1525_v25, %v1167_v18  ;;  %v1527_v28 = vpop.f32.mrb[15].mxu0  ;;  %1891 = vmatprep.mubr.f32.mxu1 %v9948_v30 }
 0x4b5   :  { %v1621_v29 = vmax.f32 %v1524_v24, 0.0  ;;  %v1528_v31 = vadd.f32 %v1527_v28, %v1171_v20 }
 0x4b6   :  { %1640 = vst [vmem:[#allocation22 + $0x20] sm:$0xff] %v1620_v26  ;;  %v1630_v36 = vmax.f32 %v1526_v27, 0.0 }
 0x4b7   :  { %1641 = vst [vmem:[#allocation22 + $0x28] sm:$0xff] %v1621_v29  ;;  %v1631_v37 = vmax.f32 %v1528_v31, 0.0  ;;  %6257 = vmatmul.mubr.msk.f32.gmra.mrb[26].mxu1 %vm382_vm1, %v8335_v60 }
 0x4b8   :  { %1650 = vst [vmem:[#allocation22 + $0x70] sm:$0xff] %v1630_v36  ;;  %v8408_v38 = vpack.c.bf16 %v1630_v36, %v1620_v26  ;;  %1897 = vmatprep.mubr.f32.mxu1 %v9948_v30 }
 0x4b9   :  { %1651 = vst [vmem:[#allocation22 + $0x78] sm:$0xff] %v1631_v37  ;;  %v8411_v39 = vpack.c.bf16 %v1631_v37, %v1621_v29 }
 0x4bb   :  { %7124 = vmatprep.subr.bf16.mxu0 %v8411_v39  ;;  %6258 = vmatmul.mubr.msk.f32.gmra.mrb[28].mxu1 %vm382_vm1, %v8351_v6 }
 0x4bc   :  { %7126 = vmatpush1.bf16.msra.mxu0 %v8408_v38  ;;  %1903 = vmatprep.mubr.f32.mxu1 %v9948_v30 }
 0x4bf   :  { %6266 = vmatmul.mubr.msk.f32.vlgmr.msra.gmra.mrb[32].mxu0 %vm382_vm1, %v8314_v55  ;;  %6259 = vmatmul.mubr.msk.f32.gmra.mrb[30].mxu1 %vm382_vm1, %v8372_v15 }
 0x4c0   :  { %2016 = vmatprep.mubr.f32.mxu0 %v9948_v30  ;;  %1909 = vmatprep.mubr.f32.mxu1 %v9948_v30 }
 0x4c1   :  { %v1564_v44 = vpop.f32.mrb[16].mxu0 }
 0x4c2   :  { %v1565_v45 = vadd.f32 %v1564_v44, %v1175_v42  ;;  %v1566_v46 = vpop.f32.mrb[17].mxu0 }
 0x4c3   :  { %v1567_v47 = vadd.f32 %v1566_v46, %v1179_v43  ;;  %v1568_v48 = vpop.f32.mrb[18].mxu0  ;;  %6267 = vmatmul.mubr.msk.f32.gmra.mrb[34].mxu0 %vm382_vm1, %v8335_v60  ;;  %6260 = vmatmul.mubr.msk.f32.gmra.mrb[32].mxu1 %vm382_vm1, %v8394_v19 }
 0x4c4   :  { %v1622_v49 = vmax.f32 %v1565_v45, 0.0  ;;  %v1569_v57 = vadd.f32 %v1568_v48, %v1175_v42  ;;  %v1570_v58 = vpop.f32.mrb[19].mxu0  ;;  %2022 = vmatprep.mubr.f32.mxu0 %v9948_v30  ;;  %1915 = vmatprep.mubr.f32.mxu1 %v9948_v30 }
 0x4c5   :  { %v1623_v34 = vmax.f32 %v1567_v47, 0.0  ;;  %v1571_v61 = vadd.f32 %v1570_v58, %v1179_v43 }
 0x4c6   :  { %1642 = vst [vmem:[#allocation22 + $0x30] sm:$0xff] %v1622_v49  ;;  %v1632_v62 = vmax.f32 %v1569_v57, 0.0 }
 0x4c7   :  { %1643 = vst [vmem:[#allocation22 + $0x38] sm:$0xff] %v1623_v34  ;;  %v1633_v63 = vmax.f32 %v1571_v61, 0.0  ;;  %6268 = vmatmul.mubr.msk.f32.gmra.mrb[36].mxu0 %vm382_vm1, %v8351_v6  ;;  %6261 = vmatmul.mubr.msk.f32.gmra.mrb[34].mxu1 %vm382_vm1, %v8309_v54 }
 0x4c8   :  { %1652 = vst [vmem:[#allocation22 + $0x80] sm:$0xff] %v1632_v62  ;;  %v8438_v0 = vpack.c.bf16 %v1632_v62, %v1622_v49  ;;  %2028 = vmatprep.mubr.f32.mxu0 %v9948_v30  ;;  %1921 = vmatprep.mubr.f32.mxu1 %v9948_v30 }
 0x4c9   :  { %1653 = vst [vmem:[#allocation22 + $0x88] sm:$0xff] %v1633_v63  ;;  %v7127_v1 = vpack.c.bf16 %v1633_v63, %v1623_v34 }
 0x4cb   :  { %6269 = vmatmul.mubr.msk.f32.gmra.mrb[38].mxu0 %vm382_vm1, %v8372_v15  ;;  %7128 = vmatprep.subr.bf16.mxu1 %v7127_v1 }
 0x4cc   :  { %6262 = vmatmul.mubr.msk.f32.gmra.mrb[36].mxu1 %vm382_vm1, %v8329_v59  ;;  %2034 = vmatprep.mubr.f32.mxu0 %v9948_v30 }
 0x4cd   :  { %7130 = vmatpush1.bf16.msra.mxu1 %v8438_v0  ;;  %1927 = vmatprep.mubr.f32.mxu1 %v9948_v30 }
 0x4ce   :  { %7136 = vmatprep.subr.bf16.mxu1 %v8296_v51 }
 0x4cf   :  { %6270 = vmatmul.mubr.msk.f32.gmra.mrb[40].mxu0 %vm382_vm1, %v8394_v19 }
 0x4d0   :  { %6263 = vmatmul.mubr.msk.f32.gmra.mrb[38].mxu1 %vm382_vm1, %v8345_v5  ;;  %2040 = vmatprep.mubr.f32.mxu0 %v9948_v30 }
 0x4d1   :  { %v1607_v7 = vpop.f32.mrb[20].mxu0  ;;  %1933 = vmatprep.mubr.f32.mxu1 %v9948_v30 }
 0x4d2   :  { %v1608_v8 = vadd.f32 %v1607_v7, %v1183_v3  ;;  %v1609_v9 = vpop.f32.mrb[21].mxu0 }
 0x4d3   :  { %v1610_v10 = vadd.f32 %v1609_v9, %v1187_v4  ;;  %v1611_v16 = vpop.f32.mrb[22].mxu0  ;;  %6271 = vmatmul.mubr.msk.f32.gmra.mrb[42].mxu0 %vm382_vm1, %v8309_v54 }
 0x4d4   :  { %v1624_v51 = vmax.f32 %v1608_v8, 0.0  ;;  %v1612_v18 = vadd.f32 %v1611_v16, %v1183_v3  ;;  %v1613_v20 = vpop.f32.mrb[23].mxu0  ;;  %6264 = vmatmul.mubr.msk.f32.gmra.mrb[40].mxu1 %vm382_vm1, %v8363_v12  ;;  %2046 = vmatprep.mubr.f32.mxu0 %v9948_v30 }
 0x4d5   :  { %v1625_v21 = vmax.f32 %v1610_v10, 0.0  ;;  %v1614_v22 = vadd.f32 %v1613_v20, %v1187_v4  ;;  %1939 = vmatprep.mubr.f32.mxu1 %v9948_v30 }
 0x4d6   :  { %1644 = vst [vmem:[#allocation22 + $0x40] sm:$0xff] %v1624_v51  ;;  %v1634_v23 = vmax.f32 %v1612_v18, 0.0 }
 0x4d7   :  { %1645 = vst [vmem:[#allocation22 + $0x48] sm:$0xff] %v1625_v21  ;;  %v1635_v24 = vmax.f32 %v1614_v22, 0.0  ;;  %6272 = vmatmul.mubr.msk.f32.gmra.mrb[44].mxu0 %vm382_vm1, %v8329_v59 }
 0x4d8   :  { %1654 = vst [vmem:[#allocation22 + $0x90] sm:$0xff] %v1634_v23  ;;  %v8466_v25 = vpack.c.bf16 %v1634_v23, %v1624_v51  ;;  %6265 = vmatmul.mubr.msk.f32.gmra.mrb[42].mxu1 %vm382_vm1, %v8383_v17  ;;  %2052 = vmatprep.mubr.f32.mxu0 %v9948_v30 }
 0x4d9   :  { %1655 = vst [vmem:[#allocation22 + $0x98] sm:$0xff] %v1635_v24  ;;  %v7131_v26 = vpack.c.bf16 %v1635_v24, %v1625_v21  ;;  %2135 = vmatprep.mubr.f32.mxu1 %v9948_v30 }
 0x4db   :  { %6273 = vmatmul.mubr.msk.f32.gmra.mrb[46].mxu0 %vm382_vm1, %v8345_v5  ;;  %7132 = vmatprep.subr.bf16.mxu0 %v7131_v26 }
 0x4dc   :  { %6276 = vmatmul.mubr.msk.f32.vlgmr.msra.gmra.mrb[44].mxu1 %vm382_vm1, %v8314_v55  ;;  %7134 = vmatpush1.bf16.msra.mxu0 %v8466_v25 }
 0x4dd   :  { %7138 = vmatpush1.bf16.msra.mxu1 %v8294_v50  ;;  %7140 = vmatprep.subr.bf16.mxu0 %v8366_v13  ;;  %v8540_v50 = vld [vmem:[%s9932_s8] sm:$0xff]  ;;  %v8641_v13 = vld [vmem:[%s9932_s8 + $0x48] sm:$0xff] }
 0x4de   :  { %7144 = vmatprep.subr.bf16.mxu1 %v8411_v39  ;;  %2058 = vmatprep.mubr.f32.mxu0 %v9948_v30 }
 0x4df   :  { %6274 = vmatmul.mubr.msk.f32.gmra.mrb[48].mxu0 %vm382_vm1, %v8363_v12  ;;  %2141 = vmatprep.mubr.f32.mxu1 %v9948_v30 }
 0x4e0   :  { %6277 = vmatmul.mubr.msk.f32.gmra.mrb[46].mxu1 %vm382_vm1, %v8335_v60  ;;  %2064 = vmatprep.mubr.f32.mxu0 %v9948_v30 }
 0x4e1   :  { %2147 = vmatprep.mubr.f32.mxu1 %v9948_v30 }
 0x4e3   :  { %6275 = vmatmul.mubr.msk.f32.gmra.mrb[50].mxu0 %vm382_vm1, %v8383_v17 }
 0x4e4   :  { %6278 = vmatmul.mubr.msk.f32.gmra.mrb[48].mxu1 %vm382_vm1, %v8351_v6  ;;  %2260 = vmatprep.mubr.f32.mxu0 %v9948_v30 }
 0x4e5   :  { %2153 = vmatprep.mubr.f32.mxu1 %v9948_v30 }
 0x4e7   :  { %6286 = vmatmul.mubr.msk.f32.vlgmr.msra.gmra.mrb[52].mxu0 %vm382_vm1, %v8314_v55  ;;  %v8563_v55 = vld [vmem:[%s9932_s8 + $0x10] sm:$0xff] }
 0x4e8   :  { %7142 = vmatpush1.bf16.msra.mxu0 %v8357_v11  ;;  %6279 = vmatmul.mubr.msk.f32.gmra.mrb[50].mxu1 %vm382_vm1, %v8372_v15  ;;  %v8619_v11 = vld [vmem:[%s9932_s8 + $0x38] sm:$0xff] }
 0x4e9   :  { %7148 = vmatprep.subr.bf16.mxu0 %v7127_v1  ;;  %2266 = vmatprep.mubr.f32.mxu0 %v9948_v30 }
 0x4ea   :  { %2159 = vmatprep.mubr.f32.mxu1 %v9948_v30 }
 0x4eb   :  { %6287 = vmatmul.mubr.msk.f32.gmra.mrb[54].mxu0 %vm382_vm1, %v8335_v60  ;;  %v8586_v60 = vld [vmem:[%s9932_s8 + $0x20] sm:$0xff] }
 0x4ec   :  { %6280 = vmatmul.mubr.msk.f32.gmra.mrb[52].mxu1 %vm382_vm1, %v8394_v19  ;;  %2272 = vmatprep.mubr.f32.mxu0 %v9948_v30 }
 0x4ed   :  { %2165 = vmatprep.mubr.f32.mxu1 %v9948_v30 }
 0x4ef   :  { %6288 = vmatmul.mubr.msk.f32.gmra.mrb[56].mxu0 %vm382_vm1, %v8351_v6  ;;  %v8608_v6 = vld [vmem:[%s9932_s8 + $0x30] sm:$0xff] }
 0x4f0   :  { %6281 = vmatmul.mubr.msk.f32.gmra.mrb[54].mxu1 %vm382_vm1, %v8309_v54  ;;  %2278 = vmatprep.mubr.f32.mxu0 %v9948_v30 }
 0x4f1   :  { %2171 = vmatprep.mubr.f32.mxu1 %v9948_v30 }
 0x4f3   :  { %6289 = vmatmul.mubr.msk.f32.gmra.mrb[58].mxu0 %vm382_vm1, %v8372_v15 }
 0x4f4   :  { %6282 = vmatmul.mubr.msk.f32.gmra.mrb[56].mxu1 %vm382_vm1, %v8329_v59  ;;  %2284 = vmatprep.mubr.f32.mxu0 %v9948_v30 }
 0x4f5   :  { %2177 = vmatprep.mubr.f32.mxu1 %v9948_v30 }
 0x4f7   :  { %6290 = vmatmul.mubr.msk.f32.gmra.mrb[60].mxu0 %vm382_vm1, %v8394_v19 }
 0x4f8   :  { %6283 = vmatmul.mubr.msk.f32.gmra.mrb[58].mxu1 %vm382_vm1, %v8345_v5  ;;  %2290 = vmatprep.mubr.f32.mxu0 %v9948_v30 }
 0x4f9   :  { %2183 = vmatprep.mubr.f32.mxu1 %v9948_v30 }
 0x4fb   :  { %6291 = vmatmul.mubr.msk.f32.gmra.mrb[62].mxu0 %vm382_vm1, %v8309_v54  ;;  %v8552_v54 = vld [vmem:[%s9932_s8 + $0x8] sm:$0xff] }
 0x4fc   :  { %6284 = vmatmul.mubr.msk.f32.gmra.mrb[60].mxu1 %vm382_vm1, %v8363_v12  ;;  %2296 = vmatprep.mubr.f32.mxu0 %v9948_v30 }
 0x4fd   :  { %2189 = vmatprep.mubr.f32.mxu1 %v9948_v30 }
 0x4ff   :  { %6292 = vmatmul.mubr.msk.f32.gmra.mrb[64].mxu0 %vm382_vm1, %v8329_v59  ;;  %v8574_v59 = vld [vmem:[%s9932_s8 + $0x18] sm:$0xff] }
 0x500   :  { %6285 = vmatmul.mubr.msk.f32.gmra.mrb[62].mxu1 %vm382_vm1, %v8383_v17  ;;  %2302 = vmatprep.mubr.f32.mxu0 %v9948_v30 }
 0x501   :  { %2425 = vmatprep.mubr.f32.mxu1 %v9948_v30 }
 0x503   :  { %6293 = vmatmul.mubr.msk.f32.gmra.mrb[66].mxu0 %vm382_vm1, %v8345_v5  ;;  %v8597_v5 = vld [vmem:[%s9932_s8 + $0x28] sm:$0xff] }
 0x504   :  { %6296 = vmatmul.mubr.msk.f32.vlgmr.msra.gmra.mrb[64].mxu1 %vm382_vm1, %v8540_v50  ;;  %2308 = vmatprep.mubr.f32.mxu0 %v9948_v30 }
 0x505   :  { %7146 = vmatpush1.bf16.msra.mxu1 %v8408_v38  ;;  %2431 = vmatprep.mubr.f32.mxu1 %v9948_v30 }
 0x506   :  { %7152 = vmatprep.subr.bf16.mxu1 %v7131_v26 }
 0x507   :  { %6294 = vmatmul.mubr.msk.f32.gmra.mrb[68].mxu0 %vm382_vm1, %v8363_v12  ;;  %v8630_v12 = vld [vmem:[%s9932_s8 + $0x40] sm:$0xff]  ;;  %s7927_s8 = smov [#allocation5]  }
 0x508   :  { %6297 = vmatmul.mubr.msk.f32.gmra.mrb[66].mxu1 %vm382_vm1, %v8552_v54  ;;  %2314 = vmatprep.mubr.f32.mxu0 %v9948_v30  ;;  %s275_s27 = sshll.u32 %s7927_s8, 4  ;;  %s276_s27 = int_to_ptr.vmem [resolvable:$true] %s275_s27 }
 0x509   :  { %2437 = vmatprep.mubr.f32.mxu1 %v9948_v30 }
 0x50b   :  { %6295 = vmatmul.mubr.msk.f32.gmra.mrb[70].mxu0 %vm382_vm1, %v8383_v17 }
 0x50c   :  { %6298 = vmatmul.mubr.msk.f32.gmra.mrb[68].mxu1 %vm382_vm1, %v8563_v55  ;;  %2550 = vmatprep.mubr.f32.mxu0 %v9948_v30 }
 0x50d   :  { %2443 = vmatprep.mubr.f32.mxu1 %v9948_v30 }
 0x50f   :  { %6306 = vmatmul.mubr.msk.f32.vlgmr.msra.gmra.mrb[72].mxu0 %vm382_vm1, %v8540_v50 }
 0x510   :  { %7150 = vmatpush1.bf16.msra.mxu0 %v8438_v0  ;;  %6299 = vmatmul.mubr.msk.f32.gmra.mrb[70].mxu1 %vm382_vm1, %v8574_v59 }
 0x511   :  { %2556 = vmatprep.mubr.f32.mxu0 %v9948_v30  ;;  %2449 = vmatprep.mubr.f32.mxu1 %v9948_v30 }
 0x513   :  { %6307 = vmatmul.mubr.msk.f32.gmra.mrb[74].mxu0 %vm382_vm1, %v8552_v54 }
 0x514   :  { %6300 = vmatmul.mubr.msk.f32.gmra.mrb[72].mxu1 %vm382_vm1, %v8586_v60  ;;  %2562 = vmatprep.mubr.f32.mxu0 %v9948_v30 }
 0x515   :  { %2455 = vmatprep.mubr.f32.mxu1 %v9948_v30 }
 0x517   :  { %6308 = vmatmul.mubr.msk.f32.gmra.mrb[76].mxu0 %vm382_vm1, %v8563_v55 }
 0x518   :  { %6301 = vmatmul.mubr.msk.f32.gmra.mrb[74].mxu1 %vm382_vm1, %v8597_v5  ;;  %2568 = vmatprep.mubr.f32.mxu0 %v9948_v30 }
 0x519   :  { %2461 = vmatprep.mubr.f32.mxu1 %v9948_v30 }
 0x51b   :  { %6309 = vmatmul.mubr.msk.f32.gmra.mrb[78].mxu0 %vm382_vm1, %v8574_v59 }
 0x51c   :  { %6302 = vmatmul.mubr.msk.f32.gmra.mrb[76].mxu1 %vm382_vm1, %v8608_v6  ;;  %2574 = vmatprep.mubr.f32.mxu0 %v9948_v30 }
 0x51d   :  { %2467 = vmatprep.mubr.f32.mxu1 %v9948_v30 }
 0x51f   :  { %6310 = vmatmul.mubr.msk.f32.gmra.mrb[80].mxu0 %vm382_vm1, %v8586_v60 }
 0x520   :  { %6303 = vmatmul.mubr.msk.f32.gmra.mrb[78].mxu1 %vm382_vm1, %v8619_v11  ;;  %2580 = vmatprep.mubr.f32.mxu0 %v9948_v30 }
 0x521   :  { %2473 = vmatprep.mubr.f32.mxu1 %v9948_v30 }
 0x523   :  { %6311 = vmatmul.mubr.msk.f32.gmra.mrb[82].mxu0 %vm382_vm1, %v8597_v5 }
 0x524   :  { %6304 = vmatmul.mubr.msk.f32.gmra.mrb[80].mxu1 %vm382_vm1, %v8630_v12  ;;  %2586 = vmatprep.mubr.f32.mxu0 %v9948_v30 }
 0x525   :  { %2479 = vmatprep.mubr.f32.mxu1 %v9948_v30 }
 0x527   :  { %6312 = vmatmul.mubr.msk.f32.gmra.mrb[84].mxu0 %vm382_vm1, %v8608_v6 }
 0x528   :  { %6305 = vmatmul.mubr.msk.f32.gmra.mrb[82].mxu1 %vm382_vm1, %v8641_v13  ;;  %2592 = vmatprep.mubr.f32.mxu0 %v9948_v30 }
 0x529   :  { %2675 = vmatprep.mubr.f32.mxu1 %v9948_v30 }
 0x52b   :  { %6313 = vmatmul.mubr.msk.f32.gmra.mrb[86].mxu0 %vm382_vm1, %v8619_v11 }
 0x52c   :  { %6316 = vmatmul.mubr.msk.f32.vlgmr.msra.gmra.mrb[84].mxu1 %vm382_vm1, %v8540_v50  ;;  %2598 = vmatprep.mubr.f32.mxu0 %v9948_v30 }
 0x52d   :  { %7154 = vmatpush1.bf16.msra.mxu1 %v8466_v25  ;;  %2681 = vmatprep.mubr.f32.mxu1 %v9948_v30 }
 0x52f   :  { %6314 = vmatmul.mubr.msk.f32.gmra.mrb[88].mxu0 %vm382_vm1, %v8630_v12 }
 0x530   :  { %6317 = vmatmul.mubr.msk.f32.gmra.mrb[86].mxu1 %vm382_vm1, %v8552_v54  ;;  %2604 = vmatprep.mubr.f32.mxu0 %v9948_v30 }
 0x531   :  { %2687 = vmatprep.mubr.f32.mxu1 %v9948_v30 }
 0x533   :  { %6315 = vmatmul.mubr.msk.f32.gmra.mrb[90].mxu0 %vm382_vm1, %v8641_v13 }
 0x534   :  { %6318 = vmatmul.mubr.msk.f32.gmra.mrb[88].mxu1 %vm382_vm1, %v8563_v55  ;;  %2800 = vmatprep.mubr.f32.mxu0 %v9948_v30 }
 0x535   :  { %2693 = vmatprep.mubr.f32.mxu1 %v9948_v30 }
 0x537   :  { %6326 = vmatmul.mubr.msk.f32.vlgmr.msra.gmra.mrb[92].mxu0 %vm382_vm1, %v8540_v50 }
 0x538   :  { %6319 = vmatmul.mubr.msk.f32.gmra.mrb[90].mxu1 %vm382_vm1, %v8574_v59  ;;  %2806 = vmatprep.mubr.f32.mxu0 %v9948_v30 }
 0x539   :  { %2699 = vmatprep.mubr.f32.mxu1 %v9948_v30 }
 0x53b   :  { %6327 = vmatmul.mubr.msk.f32.gmra.mrb[94].mxu0 %vm382_vm1, %v8552_v54 }
 0x53c   :  { %6320 = vmatmul.mubr.msk.f32.gmra.mrb[92].mxu1 %vm382_vm1, %v8586_v60  ;;  %2812 = vmatprep.mubr.f32.mxu0 %v9948_v30 }
 0x53d   :  { %2705 = vmatprep.mubr.f32.mxu1 %v9948_v30 }
 0x53f   :  { %6328 = vmatmul.mubr.msk.f32.gmra.mrb[96].mxu0 %vm382_vm1, %v8563_v55 }
 0x540   :  { %6321 = vmatmul.mubr.msk.f32.gmra.mrb[94].mxu1 %vm382_vm1, %v8597_v5  ;;  %2818 = vmatprep.mubr.f32.mxu0 %v9948_v30 }
 0x541   :  { %2711 = vmatprep.mubr.f32.mxu1 %v9948_v30 }
 0x543   :  { %6329 = vmatmul.mubr.msk.f32.gmra.mrb[98].mxu0 %vm382_vm1, %v8574_v59 }
 0x544   :  { %6322 = vmatmul.mubr.msk.f32.gmra.mrb[96].mxu1 %vm382_vm1, %v8608_v6  ;;  %2824 = vmatprep.mubr.f32.mxu0 %v9948_v30 }
 0x545   :  { %2717 = vmatprep.mubr.f32.mxu1 %v9948_v30 }
 0x547   :  { %6330 = vmatmul.mubr.msk.f32.gmra.mrb[100].mxu0 %vm382_vm1, %v8586_v60 }
 0x548   :  { %6323 = vmatmul.mubr.msk.f32.gmra.mrb[98].mxu1 %vm382_vm1, %v8619_v11  ;;  %2830 = vmatprep.mubr.f32.mxu0 %v9948_v30 }
 0x549   :  { %2723 = vmatprep.mubr.f32.mxu1 %v9948_v30 }
 0x54b   :  { %6331 = vmatmul.mubr.msk.f32.gmra.mrb[102].mxu0 %vm382_vm1, %v8597_v5 }
 0x54c   :  { %6324 = vmatmul.mubr.msk.f32.gmra.mrb[100].mxu1 %vm382_vm1, %v8630_v12  ;;  %2836 = vmatprep.mubr.f32.mxu0 %v9948_v30 }
 0x54d   :  { %2729 = vmatprep.mubr.f32.mxu1 %v9948_v30 }
 0x54f   :  { %6332 = vmatmul.mubr.msk.f32.gmra.mrb[104].mxu0 %vm382_vm1, %v8608_v6 }
 0x550   :  { %6325 = vmatmul.mubr.msk.f32.gmra.mrb[102].mxu1 %vm382_vm1, %v8641_v13  ;;  %2842 = vmatprep.mubr.f32.mxu0 %v9948_v30 }
 0x551   :  { %2925 = vmatprep.mubr.f32.mxu1 %v9948_v30 }
 0x553   :  { %6333 = vmatmul.mubr.msk.f32.gmra.mrb[106].mxu0 %vm382_vm1, %v8619_v11 }
 0x554   :  { %6336 = vmatmul.mubr.msk.f32.vlgmr.msra.gmra.mrb[104].mxu1 %vm382_vm1, %v8540_v50  ;;  %2848 = vmatprep.mubr.f32.mxu0 %v9948_v30 }
 0x555   :  { %2931 = vmatprep.mubr.f32.mxu1 %v9948_v30 }
 0x557   :  { %6334 = vmatmul.mubr.msk.f32.gmra.mrb[108].mxu0 %vm382_vm1, %v8630_v12 }
 0x558   :  { %6337 = vmatmul.mubr.msk.f32.gmra.mrb[106].mxu1 %vm382_vm1, %v8552_v54  ;;  %2854 = vmatprep.mubr.f32.mxu0 %v9948_v30 }
 0x559   :  { %2937 = vmatprep.mubr.f32.mxu1 %v9948_v30 }
 0x55b   :  { %6335 = vmatmul.mubr.msk.f32.gmra.mrb[110].mxu0 %vm382_vm1, %v8641_v13 }
 0x55c   :  { %6338 = vmatmul.mubr.msk.f32.gmra.mrb[108].mxu1 %vm382_vm1, %v8563_v55 }
 0x55d   :  { %2943 = vmatprep.mubr.f32.mxu1 %v9948_v30 }
 0x560   :  { %6339 = vmatmul.mubr.msk.f32.gmra.mrb[110].mxu1 %vm382_vm1, %v8574_v59 }
 0x561   :  { %2949 = vmatprep.mubr.f32.mxu1 %v9948_v30 }
 0x564   :  { %6340 = vmatmul.mubr.msk.f32.gmra.mrb[112].mxu1 %vm382_vm1, %v8586_v60 }
 0x565   :  { %2955 = vmatprep.mubr.f32.mxu1 %v9948_v30 }
 0x568   :  { %6341 = vmatmul.mubr.msk.f32.gmra.mrb[114].mxu1 %vm382_vm1, %v8597_v5 }
 0x569   :  { %2961 = vmatprep.mubr.f32.mxu1 %v9948_v30 }
 0x56c   :  { %6342 = vmatmul.mubr.msk.f32.gmra.mrb[116].mxu1 %vm382_vm1, %v8608_v6 }
 0x56d   :  { %2967 = vmatprep.mubr.f32.mxu1 %v9948_v30 }
 0x570   :  { %6343 = vmatmul.mubr.msk.f32.gmra.mrb[118].mxu1 %vm382_vm1, %v8619_v11 }
 0x571   :  { %2973 = vmatprep.mubr.f32.mxu1 %v9948_v30 }
 0x572   :  { %v8742_v15 = vpop.f32.mrb[14].mxu1  ;;  %v8744_v17 = vpop.f32.mrb[2].mxu0 }
 0x573   :  { %v8746_v19 = vpop.f32.mrb[15].mxu1  ;;  %v8748_v27 = vpop.f32.mrb[3].mxu0 }
 0x574   :  { %6344 = vmatmul.mubr.msk.f32.gmra.mrb[120].mxu1 %vm382_vm1, %v8630_v12 }
 0x575   :  { %2979 = vmatprep.mubr.f32.mxu1 %v9948_v30 }
 0x576   :  { %v8753_v28 = vpop.f32.mrb[16].mxu1  ;;  %v8755_v29 = vpop.f32.mrb[24].mxu0 }
 0x577   :  { %v8757_v31 = vpop.f32.mrb[17].mxu1  ;;  %v8759_v36 = vpop.f32.mrb[25].mxu0 }
 0x578   :  { %6345 = vmatmul.mubr.msk.f32.gmra.mrb[122].mxu1 %vm382_vm1, %v8641_v13 }
 0x57a   :  { %v8763_v37 = vpop.f32.mrb[18].mxu1  ;;  %v8765_v38 = vpop.f32.mrb[26].mxu0 }
 0x57b   :  { %v8767_v39 = vpop.f32.mrb[19].mxu1  ;;  %v8769_v40 = vpop.f32.mrb[27].mxu0 }
 0x57e   :  { %v8771_v41 = vpop.f32.mrb[20].mxu1 }
 0x57f   :  { %v8773_v42 = vpop.f32.mrb[21].mxu1 }
 0x580   :  { %v8775_v43 = vpop.f32.mrb[28].mxu0 }
 0x581   :  { %v8777_v44 = vpop.f32.mrb[29].mxu0 }
 0x582   :  { %v8779_v45 = vpop.f32.mrb[22].mxu1 }
 0x583   :  { %v8781_v46 = vpop.f32.mrb[23].mxu1 }
 0x584   :  { %v8783_v47 = vpop.f32.mrb[30].mxu0 }
 0x585   :  { %v8785_v48 = vpop.f32.mrb[31].mxu0 }
 0x586   :  { %v8787_v49 = vpop.f32.mrb[24].mxu1 }
 0x587   :  { %v8789_v57 = vpop.f32.mrb[25].mxu1 }
 0x58a   :  { %v8791_v58 = vpop.f32.mrb[26].mxu1 }
 0x58b   :  { %v8793_v34 = vpop.f32.mrb[27].mxu1 }
 0x58e   :  { %v8795_v61 = vpop.f32.mrb[28].mxu1 }
 0x58f   :  { %v8797_v62 = vpop.f32.mrb[29].mxu1 }
 0x592   :  { %v8799_v63 = vpop.f32.mrb[30].mxu1  ;;  %v8801_v0 = vpop.f32.mrb[32].mxu0 }
 0x593   :  { %v8803_v1 = vpop.f32.mrb[31].mxu1  ;;  %v8805_v2 = vpop.f32.mrb[33].mxu0 }
 0x596   :  { %v8807_v3 = vpop.f32.mrb[32].mxu1  ;;  %v8809_v4 = vpop.f32.mrb[34].mxu0 }
 0x597   :  { %v8811_v7 = vpop.f32.mrb[33].mxu1  ;;  %v8813_v8 = vpop.f32.mrb[35].mxu0 }
 0x59a   :  { %v8815_v9 = vpop.f32.mrb[34].mxu1  ;;  %v8817_v10 = vpop.f32.mrb[36].mxu0 }
 0x59b   :  { %v8819_v16 = vpop.f32.mrb[35].mxu1  ;;  %v8821_v51 = vpop.f32.mrb[37].mxu0 }
 0x59e   :  { %v8823_v18 = vpop.f32.mrb[38].mxu0 }
 0x59f   :  { %v8825_v20 = vpop.f32.mrb[36].mxu1  ;;  %v8827_v21 = vpop.f32.mrb[39].mxu0 }
 0x5a0   :  { %v8829_v22 = vpop.f32.mrb[37].mxu1 }
 0x5a2   :  { %v8831_v23 = vpop.f32.mrb[40].mxu0 }
 0x5a3   :  { %9973 = vst [vmem:[#allocation50_spill] sm:$0xff] %v8831_v23  ;;  %v8833_v24 = vpop.f32.mrb[38].mxu1  ;;  %v8835_v25 = vpop.f32.mrb[41].mxu0 }
 0x5a4   :  { %9974 = vst [vmem:[#allocation51_spill] sm:$0xff] %v8835_v25  ;;  %v8837_v26 = vpop.f32.mrb[39].mxu1 }
 0x5a6   :  { %v8839_v50 = vpop.f32.mrb[42].mxu0 }
 0x5a7   :  { %9975 = vst [vmem:[#allocation52_spill] sm:$0xff] %v8839_v50  ;;  %v8841_v54 = vpop.f32.mrb[40].mxu1  ;;  %v8843_v55 = vpop.f32.mrb[43].mxu0 }
 0x5a8   :  { %9976 = vst [vmem:[#allocation53_spill] sm:$0xff] %v8843_v55  ;;  %v8845_v59 = vpop.f32.mrb[41].mxu1 }
 0x5aa   :  { %v8847_v60 = vpop.f32.mrb[44].mxu0 }
 0x5ab   :  { %9977 = vst [vmem:[#allocation54_spill] sm:$0xff] %v8847_v60  ;;  %v8849_v5 = vpop.f32.mrb[42].mxu1  ;;  %v8851_v6 = vpop.f32.mrb[45].mxu0 }
 0x5ac   :  { %9978 = vst [vmem:[#allocation55_spill] sm:$0xff] %v8851_v6  ;;  %v8853_v11 = vpop.f32.mrb[43].mxu1 }
 0x5ae   :  { %v8855_v12 = vpop.f32.mrb[46].mxu0 }
 0x5af   :  { %9979 = vst [vmem:[#allocation56_spill] sm:$0xff] %v8855_v12  ;;  %v8857_v13 = vpop.f32.mrb[44].mxu1  ;;  %v8859_v56 = vpop.f32.mrb[47].mxu0 }
 0x5b0   :  { %9980 = vst [vmem:[#allocation57_spill] sm:$0xff] %v8859_v56  ;;  %v8861_v30 = vpop.f32.mrb[45].mxu1 }
 0x5b2   :  { %v8863_v14 = vpop.f32.mrb[48].mxu0 }
 0x5b3   :  { %9981 = vst [vmem:[#allocation58_spill] sm:$0xff] %v8863_v14  ;;  %v8865_v53 = vpop.f32.mrb[46].mxu1  ;;  %v8867_v32 = vpop.f32.mrb[49].mxu0 }
 0x5b4   :  { %9982 = vst [vmem:[#allocation59_spill] sm:$0xff] %v8865_v53  ;;  %9983 = vst [vmem:[#allocation60_spill] sm:$0xff] %v8867_v32  ;;  %v8869_v35 = vpop.f32.mrb[47].mxu1 }
 0x5b5   :  { %9984 = vst [vmem:[#allocation61_spill] sm:$0xff] %v8869_v35 }
 0x5b6   :  { %v8871_v52 = vpop.f32.mrb[50].mxu0 }
 0x5b7   :  { %9985 = vst [vmem:[#allocation62_spill] sm:$0xff] %v8871_v52  ;;  %v8873_v33 = vpop.f32.mrb[48].mxu1  ;;  %v8875_v6 = vpop.f32.mrb[51].mxu0 }
 0x5b8   :  { %9986 = vst [vmem:[#allocation63_spill] sm:$0xff] %v8873_v33  ;;  %9987 = vst [vmem:[#allocation64_spill] sm:$0xff] %v8875_v6  ;;  %v8877_v12 = vpop.f32.mrb[49].mxu1 }
 0x5b9   :  { %9988 = vst [vmem:[#allocation65_spill] sm:$0xff] %v8877_v12 }
 0x5ba   :  { %v8879_v60 = vpop.f32.mrb[52].mxu0 }
 0x5bb   :  { %9989 = vst [vmem:[#allocation66_spill] sm:$0xff] %v8879_v60  ;;  %v8881_v56 = vpop.f32.mrb[50].mxu1  ;;  %v8883_v55 = vpop.f32.mrb[53].mxu0 }
 0x5bc   :  { %9990 = vst [vmem:[#allocation67_spill] sm:$0xff] %v8881_v56  ;;  %9991 = vst [vmem:[#allocation68_spill] sm:$0xff] %v8883_v55  ;;  %v8885_v14 = vpop.f32.mrb[51].mxu1 }
 0x5bd   :  { %9992 = vst [vmem:[#allocation69_spill] sm:$0xff] %v8885_v14 }
 0x5be   :  { %v8887_v50 = vpop.f32.mrb[54].mxu0 }
 0x5bf   :  { %9993 = vst [vmem:[#allocation70_spill] sm:$0xff] %v8887_v50  ;;  %v8889_v32 = vpop.f32.mrb[52].mxu1  ;;  %v8891_v25 = vpop.f32.mrb[55].mxu0 }
 0x5c0   :  { %9994 = vst [vmem:[#allocation71_spill] sm:$0xff] %v8889_v32  ;;  %9995 = vst [vmem:[#allocation72_spill] sm:$0xff] %v8891_v25  ;;  %v8893_v52 = vpop.f32.mrb[53].mxu1 }
 0x5c1   :  { %9996 = vst [vmem:[#allocation73_spill] sm:$0xff] %v8893_v52 }
 0x5c2   :  { %v8895_v33 = vpop.f32.mrb[56].mxu0 }
 0x5c3   :  { %9997 = vst [vmem:[#allocation74_spill] sm:$0xff] %v8895_v33  ;;  %v8897_v6 = vpop.f32.mrb[54].mxu1  ;;  %v8899_v12 = vpop.f32.mrb[57].mxu0 }
 0x5c4   :  { %9998 = vst [vmem:[#allocation75_spill] sm:$0xff] %v8897_v6  ;;  %9999 = vst [vmem:[#allocation76_spill] sm:$0xff] %v8899_v12  ;;  %v8901_v60 = vpop.f32.mrb[55].mxu1 }
 0x5c5   :  { %10000 = vst [vmem:[#allocation77_spill] sm:$0xff] %v8901_v60 }
 0x5c6   :  { %v8903_v56 = vpop.f32.mrb[58].mxu0 }
 0x5c7   :  { %10001 = vst [vmem:[#allocation78_spill] sm:$0xff] %v8903_v56  ;;  %v8905_v55 = vpop.f32.mrb[56].mxu1  ;;  %v8907_v14 = vpop.f32.mrb[59].mxu0 }
 0x5c8   :  { %10002 = vst [vmem:[#allocation79_spill] sm:$0xff] %v8905_v55  ;;  %10003 = vst [vmem:[#allocation80_spill] sm:$0xff] %v8907_v14  ;;  %v8909_v50 = vpop.f32.mrb[57].mxu1 }
 0x5c9   :  { %10004 = vst [vmem:[#allocation81_spill] sm:$0xff] %v8909_v50 }
 0x5ca   :  { %v8911_v32 = vpop.f32.mrb[60].mxu0 }
 0x5cb   :  { %10005 = vst [vmem:[#allocation82_spill] sm:$0xff] %v8911_v32  ;;  %v8913_v25 = vpop.f32.mrb[58].mxu1  ;;  %v8915_v52 = vpop.f32.mrb[61].mxu0 }
 0x5cc   :  { %10006 = vst [vmem:[#allocation83_spill] sm:$0xff] %v8913_v25  ;;  %10007 = vst [vmem:[#allocation84_spill] sm:$0xff] %v8915_v52  ;;  %v8917_v33 = vpop.f32.mrb[59].mxu1 }
 0x5cd   :  { %10008 = vst [vmem:[#allocation85_spill] sm:$0xff] %v8917_v33 }
 0x5ce   :  { %v8919_v6 = vpop.f32.mrb[62].mxu0 }
 0x5cf   :  { %10009 = vst [vmem:[#allocation86_spill] sm:$0xff] %v8919_v6  ;;  %v8921_v12 = vpop.f32.mrb[60].mxu1  ;;  %v8923_v56 = vpop.f32.mrb[63].mxu0 }
 0x5d0   :  { %10010 = vst [vmem:[#allocation87_spill] sm:$0xff] %v8921_v12  ;;  %10011 = vst [vmem:[#allocation88_spill] sm:$0xff] %v8923_v56  ;;  %v8925_v14 = vpop.f32.mrb[61].mxu1 }
 0x5d1   :  { %10012 = vst [vmem:[#allocation89_spill] sm:$0xff] %v8925_v14 }
 0x5d2   :  { %7815 = shalt.err (!%p7812_p4)  }
 0x5d3   :  { %s7816_s22 = scalar_lea.vmem %s276_s27, 2048  ;;  %p7821_p6 = scmp.lt.s32.totalorder %s276_s27, %s276_s27 }
 0x5d4   :  { %p7817_p5 = scmp.ne.s32.totalorder %s276_s27, %s7816_s22  ;;  %p7822_p7 = scmp.lt.s32.totalorder %s7816_s22, %s7816_s22 }
 0x5d6   :  { %p7823_p8 = por %p7822_p7, %p7821_p6 }
 0x5d8   :  { %p7824_p9 = pnand %p7823_p8, %p7817_p5 }
 0x5da   :  { %7827 = shalt.err (!%p7824_p9)  }
 0x5db   :  { %278 = dma.hbm_to_vmem [thread:$0]  %s9939_s15, 2048, %s276_s27, [#allocation6 + $0x3]  ;;  %v8939_v56 = vpop.f32.mrb[64].mxu0  ;;  %v8941_v6 = vpop.f32.mrb[62].mxu1 }
 0x5dc   :  { %10013 = vst [vmem:[#allocation90_spill] sm:$0xff] %v8939_v56  ;;  %10014 = vst [vmem:[#allocation91_spill] sm:$0xff] %v8941_v6  ;;  %v8943_v52 = vpop.f32.mrb[65].mxu0  ;;  %v8945_v32 = vpop.f32.mrb[63].mxu1 }
 0x5dd   :  { %10015 = vst [vmem:[#allocation92_spill] sm:$0xff] %v8943_v52  ;;  %10016 = vst [vmem:[#allocation93_spill] sm:$0xff] %v8945_v32  ;;  %v8947_v14 = vpop.f32.mrb[66].mxu0  ;;  %v2427_v12 = vpop.f32.mrb[64].mxu1 }
 0x5de   :  { %10017 = vst [vmem:[#allocation94_spill] sm:$0xff] %v8947_v14  ;;  %v8949_v33 = vpop.f32.mrb[67].mxu0  ;;  %v2986_v25 = vmul.f32 %v2427_v12, %v8744_v17  ;;  %v2429_v50 = vpop.f32.mrb[65].mxu1 }
 0x5df   :  { %10018 = vst [vmem:[#allocation95_spill] sm:$0xff] %v8949_v33  ;;  %v2987_v55 = vmul.f32 %v2429_v50, %v8748_v27  ;;  %v8953_v60 = vpop.f32.mrb[68].mxu0  ;;  %v2433_v35 = vpop.f32.mrb[66].mxu1 }
 0x5e0   :  { %10019 = vst [vmem:[#allocation96_spill] sm:$0xff] %v8953_v60  ;;  %v8955_v56 = vpop.f32.mrb[69].mxu0  ;;  %v2996_v6 = vmul.f32 %v2433_v35, %v8755_v29  ;;  %v2435_v52 = vpop.f32.mrb[67].mxu1 }
 0x5e1   :  { %10020 = vst [vmem:[#allocation97_spill] sm:$0xff] %v8955_v56  ;;  %v2997_v32 = vmul.f32 %v2435_v52, %v8759_v36  ;;  %v8961_v14 = vpop.f32.mrb[70].mxu0  ;;  %v2439_v17 = vpop.f32.mrb[68].mxu1 }
 0x5e2   :  { %v8959_v23 = vpack.c.bf16 %v2996_v6, %v2986_v25  ;;  %v8965_v12 = vpop.f32.mrb[71].mxu0  ;;  %v3006_v27 = vmul.f32 %v2439_v17, %v8765_v38  ;;  %v2441_v50 = vpop.f32.mrb[69].mxu1 }
 0x5e3   :  { %v8963_v33 = vpack.c.bf16 %v2997_v32, %v2987_v55  ;;  %v3007_v60 = vmul.f32 %v2441_v50, %v8769_v40  ;;  %v2552_v56 = vpop.f32.mrb[72].mxu0  ;;  %v2445_v29 = vpop.f32.mrb[70].mxu1 }
 0x5e4   :  { %10021 = vst [vmem:[#allocation98_spill] sm:$0xff] %v8959_v23  ;;  %v2988_v35 = vmul.f32 %v2552_v56, %v8787_v49  ;;  %v2554_v53 = vpop.f32.mrb[73].mxu0  ;;  %v3016_v52 = vmul.f32 %v2445_v29, %v8775_v43  ;;  %v2447_v25 = vpop.f32.mrb[71].mxu1 }
 0x5e5   :  { %v2989_v36 = vmul.f32 %v2554_v53, %v8789_v57  ;;  %v3017_v32 = vmul.f32 %v2447_v25, %v8777_v44 }
 0x5e6   :  { %v8973_v55 = vpack.c.bf16 %v3016_v52, %v3006_v27  ;;  %v2558_v6 = vpop.f32.mrb[74].mxu0 }
 0x5e7   :  { %v8975_v23 = vpack.c.bf16 %v3017_v32, %v3007_v60  ;;  %v2998_v38 = vmul.f32 %v2558_v6, %v8791_v58  ;;  %v2451_v40 = vpop.f32.mrb[72].mxu1  ;;  %v2560_v17 = vpop.f32.mrb[75].mxu0 }
 0x5e8   :  { %v3026_v56 = vmul.f32 %v2451_v40, %v8783_v47  ;;  %v2999_v49 = vmul.f32 %v2560_v17, %v8793_v34  ;;  %v2453_v50 = vpop.f32.mrb[73].mxu1 }
 0x5e9   :  { %v8980_v43 = vpack.c.bf16 %v2998_v38, %v2988_v35  ;;  %v3027_v53 = vmul.f32 %v2453_v50, %v8785_v48 }
 0x5ea   :  { %v8983_v57 = vpack.c.bf16 %v2999_v49, %v2989_v36  ;;  %v2564_v44 = vpop.f32.mrb[76].mxu0 }
 0x5eb   :  { %v3008_v27 = vmul.f32 %v2564_v44, %v8795_v61  ;;  %v2457_v60 = vpop.f32.mrb[74].mxu1  ;;  %v2566_v29 = vpop.f32.mrb[77].mxu0 }
 0x5ec   :  { %v3036_v58 = vmul.f32 %v2457_v60, %v8742_v15  ;;  %v3009_v52 = vmul.f32 %v2566_v29, %v8797_v62  ;;  %v2459_v25 = vpop.f32.mrb[75].mxu1 }
 0x5ed   :  { %v3037_v47 = vmul.f32 %v2459_v25, %v8746_v19 }
 0x5ee   :  { %v8989_v34 = vpack.c.bf16 %v3036_v58, %v3026_v56  ;;  %v2570_v35 = vpop.f32.mrb[78].mxu0 }
 0x5ef   :  { %v8991_v32 = vpack.c.bf16 %v3037_v47, %v3027_v53  ;;  %v3018_v48 = vmul.f32 %v2570_v35, %v8799_v63  ;;  %v2463_v36 = vpop.f32.mrb[76].mxu1  ;;  %v2572_v6 = vpop.f32.mrb[79].mxu0 }
 0x5f0   :  { %v3046_v61 = vmul.f32 %v2463_v36, %v8753_v28  ;;  %v3019_v38 = vmul.f32 %v2572_v6, %v8803_v1  ;;  %v2465_v40 = vpop.f32.mrb[77].mxu1 }
 0x5f1   :  { %v8996_v15 = vpack.c.bf16 %v3018_v48, %v3008_v27  ;;  %v3047_v62 = vmul.f32 %v2465_v40, %v8757_v31 }
 0x5f2   :  { %v8999_v17 = vpack.c.bf16 %v3019_v38, %v3009_v52  ;;  %v2576_v19 = vpop.f32.mrb[80].mxu0 }
 0x5f3   :  { %v3028_v56 = vmul.f32 %v2576_v19, %v8807_v3  ;;  %v2469_v49 = vpop.f32.mrb[78].mxu1  ;;  %v2578_v50 = vpop.f32.mrb[81].mxu0 }
 0x5f4   :  { %v3056_v63 = vmul.f32 %v2469_v49, %v8763_v37  ;;  %v3029_v53 = vmul.f32 %v2578_v50, %v8811_v7  ;;  %v2471_v44 = vpop.f32.mrb[79].mxu1 }
 0x5f5   :  { %v3057_v28 = vmul.f32 %v2471_v44, %v8767_v39 }
 0x5f6   :  { %v9005_v1 = vpack.c.bf16 %v3056_v63, %v3046_v61  ;;  %v2582_v27 = vpop.f32.mrb[82].mxu0 }
 0x5f7   :  { %v9007_v60 = vpack.c.bf16 %v3057_v28, %v3047_v62  ;;  %v3038_v31 = vmul.f32 %v2582_v27, %v8815_v9  ;;  %v2475_v29 = vpop.f32.mrb[80].mxu1  ;;  %v2584_v58 = vpop.f32.mrb[83].mxu0 }
 0x5f8   :  { %v3066_v3 = vmul.f32 %v2475_v29, %v8771_v41  ;;  %v3039_v52 = vmul.f32 %v2584_v58, %v8819_v16  ;;  %v2477_v25 = vpop.f32.mrb[81].mxu1 }
 0x5f9   :  { %v9012_v37 = vpack.c.bf16 %v3038_v31, %v3028_v56  ;;  %v3067_v7 = vmul.f32 %v2477_v25, %v8773_v42 }
 0x5fa   :  { %v9015_v47 = vpack.c.bf16 %v3039_v52, %v3029_v53  ;;  %v2588_v39 = vpop.f32.mrb[84].mxu0 }
 0x5fb   :  { %v3048_v35 = vmul.f32 %v2588_v39, %v8825_v20  ;;  %v2481_v48 = vpop.f32.mrb[82].mxu1  ;;  %v2590_v36 = vpop.f32.mrb[85].mxu0 }
 0x5fc   :  { %v3076_v9 = vmul.f32 %v2481_v48, %v8779_v45  ;;  %v3049_v6 = vmul.f32 %v2590_v36, %v8829_v22  ;;  %v2483_v61 = vpop.f32.mrb[83].mxu1 }
 0x5fd   :  { %v3077_v41 = vmul.f32 %v2483_v61, %v8781_v46 }
 0x5fe   :  { %v9021_v16 = vpack.c.bf16 %v3076_v9, %v3066_v3  ;;  %v2594_v38 = vpop.f32.mrb[86].mxu0 }
 0x5ff   :  { %v9023_v40 = vpack.c.bf16 %v3077_v41, %v3067_v7  ;;  %v3058_v42 = vmul.f32 %v2594_v38, %v8833_v24  ;;  %v2596_v62 = vpop.f32.mrb[87].mxu0  ;;  %v2677_v19 = vpop.f32.mrb[84].mxu1 }
 0x600   :  { %v3059_v20 = vmul.f32 %v2596_v62, %v8837_v26  ;;  %v2990_v56 = vmul.f32 %v2677_v19, %v8801_v0  ;;  %v2679_v49 = vpop.f32.mrb[85].mxu1  ;;  %v10023_v62 = vld [vmem:[#allocation50_spill] sm:$0xff]  ;;  %v10024_v19 = vld [vmem:[#allocation61_spill] sm:$0xff] }
 0x601   :  { %v9028_v45 = vpack.c.bf16 %v3058_v42, %v3048_v35  ;;  %v2991_v22 = vmul.f32 %v2679_v49, %v8805_v2 }
 0x602   :  { %v9031_v50 = vpack.c.bf16 %v3059_v20, %v3049_v6  ;;  %v2600_v46 = vpop.f32.mrb[88].mxu0 }
 0x603   :  { %v3068_v63 = vmul.f32 %v2600_v46, %v8841_v54  ;;  %v2602_v53 = vpop.f32.mrb[89].mxu0  ;;  %v2683_v44 = vpop.f32.mrb[86].mxu1  ;;  %v10026_v46 = vld [vmem:[#allocation63_spill] sm:$0xff] }
 0x604   :  { %v3069_v24 = vmul.f32 %v2602_v53, %v8845_v59  ;;  %v3000_v28 = vmul.f32 %v2683_v44, %v8809_v4  ;;  %v2685_v27 = vpop.f32.mrb[87].mxu1 }
 0x605   :  { %v3001_v26 = vmul.f32 %v2685_v27, %v8813_v8  ;;  %v10028_v27 = vld [vmem:[#allocation65_spill] sm:$0xff] }
 0x606   :  { %v9037_v0 = vpack.c.bf16 %v3000_v28, %v2990_v56  ;;  %v2606_v31 = vpop.f32.mrb[90].mxu0 }
 0x607   :  { %v9039_v29 = vpack.c.bf16 %v3001_v26, %v2991_v22  ;;  %v3078_v2 = vmul.f32 %v2606_v31, %v8849_v5  ;;  %v2608_v58 = vpop.f32.mrb[91].mxu0  ;;  %v2689_v3 = vpop.f32.mrb[88].mxu1 }
 0x608   :  { %v3079_v54 = vmul.f32 %v2608_v58, %v8853_v11  ;;  %v3010_v52 = vmul.f32 %v2689_v3, %v8817_v10  ;;  %v2691_v25 = vpop.f32.mrb[89].mxu1 }
 0x609   :  { %v9044_v59 = vpack.c.bf16 %v3078_v2, %v3068_v63  ;;  %v3011_v4 = vmul.f32 %v2691_v25, %v8821_v51  ;;  %v10022_v51 = vld [vmem:[#allocation59_spill] sm:$0xff]  ;;  %v10029_v2 = vld [vmem:[#allocation53_spill] sm:$0xff] }
 0x60a   :  { %v9047_v7 = vpack.c.bf16 %v3079_v54, %v3069_v24  ;;  %v2802_v8 = vpop.f32.mrb[92].mxu0  ;;  %v10027_v24 = vld [vmem:[#allocation52_spill] sm:$0xff]  ;;  %v10030_v25 = vld [vmem:[#allocation67_spill] sm:$0xff] }
 0x60b   :  { %v2992_v39 = vmul.f32 %v2802_v8, %v8857_v13  ;;  %v2695_v35 = vpop.f32.mrb[90].mxu1  ;;  %v2804_v48 = vpop.f32.mrb[93].mxu0 }
 0x60c   :  { %v3020_v5 = vmul.f32 %v2695_v35, %v8823_v18  ;;  %v2993_v36 = vmul.f32 %v2804_v48, %v8861_v30  ;;  %v2697_v9 = vpop.f32.mrb[91].mxu1  ;;  %v10025_v30 = vld [vmem:[#allocation51_spill] sm:$0xff]  ;;  %v10031_v35 = vld [vmem:[#allocation54_spill] sm:$0xff] }
 0x60d   :  { %v3021_v11 = vmul.f32 %v2697_v9, %v8827_v21 }
 0x60e   :  { %v9053_v10 = vpack.c.bf16 %v3020_v5, %v3010_v52  ;;  %v2808_v6 = vpop.f32.mrb[94].mxu0  ;;  %v10032_v5 = vld [vmem:[#allocation69_spill] sm:$0xff] }
 0x60f   :  { %v9055_v61 = vpack.c.bf16 %v3021_v11, %v3011_v4  ;;  %v3002_v41 = vmul.f32 %v2808_v6, %v10022_v51  ;;  %v2701_v38 = vpop.f32.mrb[92].mxu1  ;;  %v2810_v42 = vpop.f32.mrb[95].mxu0  ;;  %v10033_v6 = vld [vmem:[#allocation55_spill] sm:$0xff] }
 0x610   :  { %v3030_v13 = vmul.f32 %v2701_v38, %v10023_v62  ;;  %v3003_v20 = vmul.f32 %v2810_v42, %v10024_v19  ;;  %v2703_v56 = vpop.f32.mrb[93].mxu1  ;;  %v10034_v42 = vld [vmem:[#allocation71_spill] sm:$0xff] }
 0x611   :  { %v9060_v18 = vpack.c.bf16 %v3002_v41, %v2992_v39  ;;  %v3031_v49 = vmul.f32 %v2703_v56, %v10025_v30  ;;  %v10036_v30 = vld [vmem:[#allocation73_spill] sm:$0xff] }
 0x612   :  { %v9063_v22 = vpack.c.bf16 %v3003_v20, %v2993_v36  ;;  %v2814_v21 = vpop.f32.mrb[96].mxu0  ;;  %v10035_v20 = vld [vmem:[#allocation56_spill] sm:$0xff] }
 0x613   :  { %v3012_v63 = vmul.f32 %v2814_v21, %v10026_v46  ;;  %v2707_v53 = vpop.f32.mrb[94].mxu1  ;;  %v2816_v44 = vpop.f32.mrb[97].mxu0  ;;  %v10037_v46 = vld [vmem:[#allocation57_spill] sm:$0xff] }
 0x614   :  { %v3040_v28 = vmul.f32 %v2707_v53, %v10027_v24  ;;  %v3013_v26 = vmul.f32 %v2816_v44, %v10028_v27  ;;  %v2709_v31 = vpop.f32.mrb[95].mxu1 }
 0x615   :  { %v3041_v58 = vmul.f32 %v2709_v31, %v10029_v2  ;;  %v10039_v2 = vld [vmem:[#allocation58_spill] sm:$0xff] }
 0x616   :  { %v9069_v3 = vpack.c.bf16 %v3040_v28, %v3030_v13  ;;  %v2820_v54 = vpop.f32.mrb[98].mxu0  ;;  %v10038_v28 = vld [vmem:[#allocation75_spill] sm:$0xff] }
 0x617   :  { %v9071_v52 = vpack.c.bf16 %v3041_v58, %v3031_v49  ;;  %v3022_v4 = vmul.f32 %v2820_v54, %v10030_v25  ;;  %v2713_v8 = vpop.f32.mrb[96].mxu1  ;;  %v2822_v39 = vpop.f32.mrb[99].mxu0  ;;  %v10040_v54 = vld [vmem:[#allocation77_spill] sm:$0xff] }
 0x618   :  { %v3050_v48 = vmul.f32 %v2713_v8, %v10031_v35  ;;  %v3023_v36 = vmul.f32 %v2822_v39, %v10032_v5  ;;  %v2715_v9 = vpop.f32.mrb[97].mxu1  ;;  %v10041_v39 = vld [vmem:[#allocation60_spill] sm:$0xff] }
 0x619   :  { %v9076_v11 = vpack.c.bf16 %v3022_v4, %v3012_v63  ;;  %v3051_v51 = vmul.f32 %v2715_v9, %v10033_v6 }
 0x61a   :  { %v9079_v41 = vpack.c.bf16 %v3023_v36, %v3013_v26  ;;  %v2826_v38 = vpop.f32.mrb[100].mxu0  ;;  %v10042_v36 = vld [vmem:[#allocation79_spill] sm:$0xff] }
 0x61b   :  { %v3032_v62 = vmul.f32 %v2826_v38, %v10034_v42  ;;  %v2719_v13 = vpop.f32.mrb[98].mxu1  ;;  %v2828_v19 = vpop.f32.mrb[101].mxu0  ;;  %v10043_v38 = vld [vmem:[#allocation62_spill] sm:$0xff] }
 0x61c   :  { %v3060_v56 = vmul.f32 %v2719_v13, %v10035_v20  ;;  %v3033_v49 = vmul.f32 %v2828_v19, %v10036_v30  ;;  %v2721_v21 = vpop.f32.mrb[99].mxu1  ;;  %v10044_v13 = vld [vmem:[#allocation81_spill] sm:$0xff] }
 0x61d   :  { %v3061_v53 = vmul.f32 %v2721_v21, %v10037_v46 }
 0x61e   :  { %v9085_v44 = vpack.c.bf16 %v3060_v56, %v3050_v48  ;;  %v2832_v63 = vpop.f32.mrb[102].mxu0  ;;  %v10045_v56 = vld [vmem:[#allocation64_spill] sm:$0xff] }
 0x61f   :  { %v9087_v24 = vpack.c.bf16 %v3061_v53, %v3051_v51  ;;  %v3042_v27 = vmul.f32 %v2832_v63, %v10038_v28  ;;  %v2725_v26 = vpop.f32.mrb[100].mxu1  ;;  %v2834_v31 = vpop.f32.mrb[103].mxu0  ;;  %v10046_v53 = vld [vmem:[#allocation83_spill] sm:$0xff] }
 0x620   :  { %v3070_v58 = vmul.f32 %v2725_v26, %v10039_v2  ;;  %v3043_v25 = vmul.f32 %v2834_v31, %v10040_v54  ;;  %v2727_v4 = vpop.f32.mrb[101].mxu1  ;;  %v10048_v31 = vld [vmem:[#allocation66_spill] sm:$0xff] }
 0x621   :  { %v9092_v8 = vpack.c.bf16 %v3042_v27, %v3032_v62  ;;  %v3071_v35 = vmul.f32 %v2727_v4, %v10041_v39  ;;  %v10047_v27 = vld [vmem:[#allocation85_spill] sm:$0xff]  ;;  %v10049_v4 = vld [vmem:[#allocation68_spill] sm:$0xff] }
 0x622   :  { %v9095_v5 = vpack.c.bf16 %v3043_v25, %v3033_v49  ;;  %v2838_v48 = vpop.f32.mrb[104].mxu0 }
 0x623   :  { %v3052_v9 = vmul.f32 %v2838_v48, %v10042_v36  ;;  %v2731_v6 = vpop.f32.mrb[102].mxu1  ;;  %v2840_v51 = vpop.f32.mrb[105].mxu0  ;;  %v10050_v36 = vld [vmem:[#allocation87_spill] sm:$0xff] }
 0x624   :  { %v3080_v42 = vmul.f32 %v2731_v6, %v10043_v38  ;;  %v3053_v19 = vmul.f32 %v2840_v51, %v10044_v13  ;;  %v2733_v20 = vpop.f32.mrb[103].mxu1  ;;  %v10051_v38 = vld [vmem:[#allocation89_spill] sm:$0xff]  ;;  %v10052_v13 = vld [vmem:[#allocation70_spill] sm:$0xff] }
 0x625   :  { %v3081_v30 = vmul.f32 %v2733_v20, %v10045_v56 }
 0x626   :  { %v9101_v21 = vpack.c.bf16 %v3080_v42, %v3070_v58  ;;  %v2844_v62 = vpop.f32.mrb[106].mxu0 }
 0x627   :  { %v9103_v46 = vpack.c.bf16 %v3081_v30, %v3071_v35  ;;  %v3062_v49 = vmul.f32 %v2844_v62, %v10046_v53  ;;  %v2846_v63 = vpop.f32.mrb[107].mxu0  ;;  %v2927_v28 = vpop.f32.mrb[104].mxu1  ;;  %v10053_v30 = vld [vmem:[#allocation72_spill] sm:$0xff] }
 0x628   :  { %v3063_v26 = vmul.f32 %v2846_v63, %v10047_v27  ;;  %v2994_v2 = vmul.f32 %v2927_v28, %v10048_v31  ;;  %v2929_v54 = vpop.f32.mrb[105].mxu1  ;;  %v10055_v63 = vld [vmem:[#allocation91_spill] sm:$0xff] }
 0x629   :  { %v9108_v25 = vpack.c.bf16 %v3062_v49, %v3052_v9  ;;  %v2995_v39 = vmul.f32 %v2929_v54, %v10049_v4  ;;  %v10057_v54 = vld [vmem:[#allocation74_spill] sm:$0xff] }
 0x62a   :  { %v9111_v48 = vpack.c.bf16 %v3063_v26, %v3053_v19  ;;  %v2850_v58 = vpop.f32.mrb[108].mxu0  ;;  %v10056_v26 = vld [vmem:[#allocation93_spill] sm:$0xff] }
 0x62b   :  { %v3072_v6 = vmul.f32 %v2850_v58, %v10050_v36  ;;  %v2852_v35 = vpop.f32.mrb[109].mxu0  ;;  %v2933_v51 = vpop.f32.mrb[106].mxu1 }
 0x62c   :  { %v3073_v42 = vmul.f32 %v2852_v35, %v10051_v38  ;;  %v3004_v20 = vmul.f32 %v2933_v51, %v10052_v13  ;;  %v2935_v56 = vpop.f32.mrb[107].mxu1  ;;  %v10058_v35 = vld [vmem:[#allocation76_spill] sm:$0xff]  ;;  %v10059_v13 = vld [vmem:[#allocation78_spill] sm:$0xff] }
 0x62d   :  { %v3005_v62 = vmul.f32 %v2935_v56, %v10053_v30  ;;  %v10060_v56 = vld [vmem:[#allocation80_spill] sm:$0xff] }
 0x62e   :  { %v9117_v53 = vpack.c.bf16 %v3004_v20, %v2994_v2  ;;  %v2856_v9 = vpop.f32.mrb[110].mxu0 }
 0x62f   :  { %v9119_v49 = vpack.c.bf16 %v3005_v62, %v2995_v39  ;;  %v3082_v19 = vmul.f32 %v2856_v9, %v10055_v63  ;;  %v2858_v28 = vpop.f32.mrb[111].mxu0  ;;  %v2939_v27 = vpop.f32.mrb[108].mxu1 }
 0x630   :  { %10054 = vst [vmem:[#allocation59_spill] sm:$0xff] %v9117_v53  ;;  %v3083_v31 = vmul.f32 %v2858_v28, %v10056_v26  ;;  %v3014_v4 = vmul.f32 %v2939_v27, %v10057_v54  ;;  %v2941_v58 = vpop.f32.mrb[109].mxu1  ;;  %v10063_v28 = vld [vmem:[#allocation82_spill] sm:$0xff] }
 0x631   :  { %v9124_v36 = vpack.c.bf16 %v3082_v19, %v3072_v6  ;;  %v3015_v51 = vmul.f32 %v2941_v58, %v10058_v35  ;;  %v10064_v6 = vld [vmem:[#allocation84_spill] sm:$0xff]  ;;  %v10065_v58 = vld [vmem:[#allocation86_spill] sm:$0xff] }
 0x632   :  { %v9127_v38 = vpack.c.bf16 %v3083_v31, %v3073_v42  ;;  %v10066_v35 = vld [vmem:[#allocation88_spill] sm:$0xff] }
 0x633   :  { %v2945_v2 = vpop.f32.mrb[110].mxu1 }
 0x634   :  { %v3024_v20 = vmul.f32 %v2945_v2, %v10059_v13  ;;  %v2947_v39 = vpop.f32.mrb[111].mxu1 }
 0x635   :  { %v3025_v30 = vmul.f32 %v2947_v39, %v10060_v56  ;;  %v10068_v56 = vld [vmem:[#allocation92_spill] sm:$0xff] }
 0x636   :  { %v9131_v62 = vpack.c.bf16 %v3024_v20, %v3014_v4  ;;  %v10067_v20 = vld [vmem:[#allocation90_spill] sm:$0xff] }
 0x637   :  { %v9133_v9 = vpack.c.bf16 %v3025_v30, %v3015_v51  ;;  %v2951_v63 = vpop.f32.mrb[112].mxu1 }
 0x638   :  { %10061 = vst [vmem:[#allocation50_spill] sm:$0xff] %v9131_v62  ;;  %v3034_v27 = vmul.f32 %v2951_v63, %v10063_v28  ;;  %v2953_v26 = vpop.f32.mrb[113].mxu1  ;;  %v10069_v28 = vld [vmem:[#allocation94_spill] sm:$0xff] }
 0x639   :  { %10062 = vst [vmem:[#allocation61_spill] sm:$0xff] %v9133_v9  ;;  %v3035_v19 = vmul.f32 %v2953_v26, %v10064_v6  ;;  %v10070_v6 = vld [vmem:[#allocation95_spill] sm:$0xff] }
 0x63b   :  { %v2957_v54 = vpop.f32.mrb[114].mxu1 }
 0x63c   :  { %v3044_v42 = vmul.f32 %v2957_v54, %v10065_v58  ;;  %v2959_v31 = vpop.f32.mrb[115].mxu1 }
 0x63d   :  { %v3045_v53 = vmul.f32 %v2959_v31, %v10066_v35  ;;  %v10072_v31 = vld [vmem:[#allocation97_spill] sm:$0xff] }
 0x63e   :  { %v9139_v2 = vpack.c.bf16 %v3044_v42, %v3034_v27  ;;  %v10071_v42 = vld [vmem:[#allocation96_spill] sm:$0xff] }
 0x63f   :  { %v9141_v13 = vpack.c.bf16 %v3045_v53, %v3035_v19  ;;  %v2963_v4 = vpop.f32.mrb[116].mxu1 }
 0x640   :  { %v3054_v51 = vmul.f32 %v2963_v4, %v10067_v20  ;;  %v2965_v39 = vpop.f32.mrb[117].mxu1 }
 0x641   :  { %v3055_v30 = vmul.f32 %v2965_v39, %v10068_v56 }
 0x643   :  { %v2969_v63 = vpop.f32.mrb[118].mxu1 }
 0x644   :  { %v3064_v62 = vmul.f32 %v2969_v63, %v10069_v28  ;;  %v2971_v26 = vpop.f32.mrb[119].mxu1 }
 0x645   :  { %v3065_v9 = vmul.f32 %v2971_v26, %v10070_v6 }
 0x646   :  { %v9147_v54 = vpack.c.bf16 %v3064_v62, %v3054_v51 }
 0x647   :  { %v9149_v58 = vpack.c.bf16 %v3065_v9, %v3055_v30  ;;  %v2975_v27 = vpop.f32.mrb[120].mxu1 }
 0x648   :  { %v3074_v53 = vmul.f32 %v2975_v27, %v10071_v42  ;;  %v2977_v19 = vpop.f32.mrb[121].mxu1 }
 0x649   :  { %v3075_v35 = vmul.f32 %v2977_v19, %v10072_v31 }
 0x64b   :  { %v2981_v4 = vpop.f32.mrb[122].mxu1 }
 0x64c   :  { %v3084_v20 = vmul.f32 %v2981_v4, %v8961_v14  ;;  %v2983_v39 = vpop.f32.mrb[123].mxu1 }
 0x64d   :  { %v3085_v56 = vmul.f32 %v2983_v39, %v8965_v12 }
 0x64e   :  { %v9155_v63 = vpack.c.bf16 %v3084_v20, %v3074_v53 }
 0x64f   :  { %v9157_v28 = vpack.c.bf16 %v3085_v56, %v3075_v35 }
 0x650   :  { %7882 = dma.done.wait [#allocation6], 51200 }
 0x651   :  { %7883 = vsyncadd [#allocation6], 4294916096  ;;  %3599 = vmatprep.mubr.bf16.mxu0 %v8963_v33  ;;  %4014 = vmatprep.mubr.bf16.mxu1 %v8963_v33  ;;  %v3141_v62 = vld [vmem:[#allocation2 + $0x8] sm:$0xff]  ;;  %v3143_v9 = vld [vmem:[#allocation2 + $0x18] sm:$0xff] }
 0x652   :  { %v3140_v51 = vld [vmem:[#allocation2] sm:$0xff]  ;;  %3567 = vmatprep.subr.bf16.mxu0 %v3141_v62  ;;  %3982 = vmatprep.subr.bf16.mxu1 %v3143_v9  ;;  %v3142_v30 = vld [vmem:[#allocation2 + $0x10] sm:$0xff]  ;;  %v3145_v12 = vld [vmem:[#allocation2 + $0x28] sm:$0xff] }
 0x653   :  { %v3146_v14 = vld [vmem:[#allocation2 + $0x30] sm:$0xff]  ;;  %v3148_v26 = vld [vmem:[#allocation2 + $0x40] sm:$0xff]  ;;  %3568 = vmatpush1.bf16.msra.mxu0 %v3140_v51  ;;  %3983 = vmatpush1.bf16.msra.mxu1 %v3142_v30  ;;  %v3147_v6 = vld [vmem:[#allocation2 + $0x38] sm:$0xff] }
 0x654   :  { %3569 = vmatprep.subr.bf16.mxu0 %v3146_v14  ;;  %3984 = vmatprep.subr.bf16.mxu1 %v3148_v26  ;;  %v3151_v27 = vld [vmem:[#allocation2 + $0x58] sm:$0xff]  ;;  %v3153_v42 = vld [vmem:[#allocation2 + $0x68] sm:$0xff]  ;;  %v3150_v53 = vld [vmem:[#allocation2 + $0x50] sm:$0xff] }
 0x655   :  { %v3152_v19 = vld [vmem:[#allocation2 + $0x60] sm:$0xff]  ;;  %v3158_v35 = vld [vmem:[#allocation2 + $0x90] sm:$0xff]  ;;  %v3155_v4 = vld [vmem:[#allocation2 + $0x78] sm:$0xff] }
 0x656   :  { %v3156_v31 = vld [vmem:[#allocation2 + $0x80] sm:$0xff]  ;;  %v3157_v20 = vld [vmem:[#allocation2 + $0x88] sm:$0xff]  ;;  %v3163_v56 = vld [vmem:[#allocation2 + $0xb8] sm:$0xff] }
 0x657   :  { %3570 = vmatpush1.bf16.msra.mxu0 %v3145_v12  ;;  %3985 = vmatpush1.bf16.msra.mxu1 %v3147_v6  ;;  %v3161_v39 = vld [vmem:[#allocation2 + $0xa8] sm:$0xff]  ;;  %v3160_v62 = vld [vmem:[#allocation2 + $0xa0] sm:$0xff]  ;;  %v3162_v9 = vld [vmem:[#allocation2 + $0xb0] sm:$0xff] }
 0x658   :  { %3571 = vmatprep.subr.bf16.mxu0 %v3151_v27  ;;  %3986 = vmatprep.subr.bf16.mxu1 %v3153_v42  ;;  %v3166_v51 = vld [vmem:[#allocation2 + $0xd0] sm:$0xff]  ;;  %v3168_v30 = vld [vmem:[#allocation2 + $0xe0] sm:$0xff]  ;;  %v3165_v14 = vld [vmem:[#allocation2 + $0xc8] sm:$0xff] }
 0x659   :  { %v3167_v26 = vld [vmem:[#allocation2 + $0xd8] sm:$0xff]  ;;  %v3173_v6 = vld [vmem:[#allocation2 + $0x108] sm:$0xff]  ;;  %v3170_v27 = vld [vmem:[#allocation2 + $0xf0] sm:$0xff] }
 0x65a   :  { %v3171_v12 = vld [vmem:[#allocation2 + $0xf8] sm:$0xff]  ;;  %v3172_v42 = vld [vmem:[#allocation2 + $0x100] sm:$0xff] }
 0x65b   :  { %3572 = vmatpush1.bf16.msra.mxu0 %v3150_v53  ;;  %3987 = vmatpush1.bf16.msra.mxu1 %v3152_v19  ;;  %v3176_v53 = vld [vmem:[#allocation2 + $0x120] sm:$0xff]  ;;  %v3178_v19 = vld [vmem:[#allocation2 + $0x130] sm:$0xff] }
 0x65c   :  { %3573 = vmatprep.subr.bf16.mxu0 %v3156_v31  ;;  %3988 = vmatprep.subr.bf16.mxu1 %v3158_v35  ;;  %v3175_v31 = vld [vmem:[#allocation2 + $0x118] sm:$0xff]  ;;  %v3177_v35 = vld [vmem:[#allocation2 + $0x128] sm:$0xff] }
 0x65f   :  { %3574 = vmatpush1.bf16.msra.mxu0 %v3155_v4  ;;  %3989 = vmatpush1.bf16.msra.mxu1 %v3157_v20  ;;  %v3181_v4 = vld [vmem:[#allocation2 + $0x148] sm:$0xff]  ;;  %v3183_v20 = vld [vmem:[#allocation2 + $0x158] sm:$0xff] }
 0x660   :  { %3575 = vmatprep.subr.bf16.mxu0 %v3161_v39  ;;  %3990 = vmatprep.subr.bf16.mxu1 %v3163_v56  ;;  %v3180_v39 = vld [vmem:[#allocation2 + $0x140] sm:$0xff]  ;;  %v3182_v56 = vld [vmem:[#allocation2 + $0x150] sm:$0xff] }
 0x663   :  { %3576 = vmatpush1.bf16.msra.mxu0 %v3160_v62  ;;  %3991 = vmatpush1.bf16.msra.mxu1 %v3162_v9  ;;  %v3186_v62 = vld [vmem:[#allocation2 + $0x170] sm:$0xff]  ;;  %v3188_v9 = vld [vmem:[#allocation2 + $0x180] sm:$0xff] }
 0x664   :  { %3577 = vmatprep.subr.bf16.mxu0 %v3166_v51  ;;  %3992 = vmatprep.subr.bf16.mxu1 %v3168_v30  ;;  %v3185_v51 = vld [vmem:[#allocation2 + $0x168] sm:$0xff]  ;;  %v3187_v30 = vld [vmem:[#allocation2 + $0x178] sm:$0xff] }
 0x667   :  { %3578 = vmatpush1.bf16.msra.mxu0 %v3165_v14  ;;  %3993 = vmatpush1.bf16.msra.mxu1 %v3167_v26  ;;  %v3191_v14 = vld [vmem:[#allocation2 + $0x198] sm:$0xff]  ;;  %v3193_v26 = vld [vmem:[#allocation2 + $0x1a8] sm:$0xff] }
 0x668   :  { %3579 = vmatprep.subr.bf16.mxu0 %v3171_v12  ;;  %3994 = vmatprep.subr.bf16.mxu1 %v3173_v6  ;;  %v3190_v12 = vld [vmem:[#allocation2 + $0x190] sm:$0xff]  ;;  %v3192_v6 = vld [vmem:[#allocation2 + $0x1a0] sm:$0xff] }
 0x66b   :  { %3580 = vmatpush1.bf16.msra.mxu0 %v3170_v27  ;;  %3995 = vmatpush1.bf16.msra.mxu1 %v3172_v42  ;;  %v3196_v27 = vld [vmem:[#allocation2 + $0x1c0] sm:$0xff]  ;;  %v3198_v42 = vld [vmem:[#allocation2 + $0x1d0] sm:$0xff] }
 0x66c   :  { %3581 = vmatprep.subr.bf16.mxu0 %v3176_v53  ;;  %3996 = vmatprep.subr.bf16.mxu1 %v3178_v19  ;;  %v3195_v53 = vld [vmem:[#allocation2 + $0x1b8] sm:$0xff]  ;;  %v3197_v19 = vld [vmem:[#allocation2 + $0x1c8] sm:$0xff] }
 0x66f   :  { %3582 = vmatpush1.bf16.msra.mxu0 %v3175_v31  ;;  %3997 = vmatpush1.bf16.msra.mxu1 %v3177_v35  ;;  %v3201_v31 = vld [vmem:[#allocation2 + $0x1e8] sm:$0xff]  ;;  %v3203_v35 = vld [vmem:[#allocation2 + $0x1f8] sm:$0xff] }
 0x670   :  { %3583 = vmatprep.subr.bf16.mxu0 %v3181_v4  ;;  %3998 = vmatprep.subr.bf16.mxu1 %v3183_v20  ;;  %v3200_v4 = vld [vmem:[#allocation2 + $0x1e0] sm:$0xff]  ;;  %v3202_v20 = vld [vmem:[#allocation2 + $0x1f0] sm:$0xff] }
 0x673   :  { %3584 = vmatpush1.bf16.msra.mxu0 %v3180_v39  ;;  %3999 = vmatpush1.bf16.msra.mxu1 %v3182_v56  ;;  %v3206_v39 = vld [vmem:[#allocation2 + $0x210] sm:$0xff]  ;;  %v3208_v56 = vld [vmem:[#allocation2 + $0x220] sm:$0xff] }
 0x674   :  { %3585 = vmatprep.subr.bf16.mxu0 %v3186_v62  ;;  %4000 = vmatprep.subr.bf16.mxu1 %v3188_v9  ;;  %v3205_v62 = vld [vmem:[#allocation2 + $0x208] sm:$0xff]  ;;  %v3207_v9 = vld [vmem:[#allocation2 + $0x218] sm:$0xff] }
 0x677   :  { %3586 = vmatpush1.bf16.msra.mxu0 %v3185_v51  ;;  %4001 = vmatpush1.bf16.msra.mxu1 %v3187_v30  ;;  %v3211_v51 = vld [vmem:[#allocation2 + $0x238] sm:$0xff]  ;;  %v3213_v30 = vld [vmem:[#allocation2 + $0x248] sm:$0xff] }
 0x678   :  { %3587 = vmatprep.subr.bf16.mxu0 %v3191_v14  ;;  %4002 = vmatprep.subr.bf16.mxu1 %v3193_v26  ;;  %v3210_v14 = vld [vmem:[#allocation2 + $0x230] sm:$0xff]  ;;  %v3212_v26 = vld [vmem:[#allocation2 + $0x240] sm:$0xff] }
 0x67b   :  { %3588 = vmatpush1.bf16.msra.mxu0 %v3190_v12  ;;  %4003 = vmatpush1.bf16.msra.mxu1 %v3192_v6  ;;  %v3216_v12 = vld [vmem:[#allocation2 + $0x260] sm:$0xff]  ;;  %v3218_v6 = vld [vmem:[#allocation2 + $0x270] sm:$0xff] }
 0x67c   :  { %3589 = vmatprep.subr.bf16.mxu0 %v3196_v27  ;;  %4004 = vmatprep.subr.bf16.mxu1 %v3198_v42  ;;  %v3215_v27 = vld [vmem:[#allocation2 + $0x258] sm:$0xff]  ;;  %v3217_v42 = vld [vmem:[#allocation2 + $0x268] sm:$0xff] }
 0x67f   :  { %3590 = vmatpush1.bf16.msra.mxu0 %v3195_v53  ;;  %4005 = vmatpush1.bf16.msra.mxu1 %v3197_v19  ;;  %v3221_v53 = vld [vmem:[#allocation2 + $0x288] sm:$0xff]  ;;  %v3223_v19 = vld [vmem:[#allocation2 + $0x298] sm:$0xff] }
 0x680   :  { %3591 = vmatprep.subr.bf16.mxu0 %v3201_v31  ;;  %4006 = vmatprep.subr.bf16.mxu1 %v3203_v35  ;;  %v3220_v31 = vld [vmem:[#allocation2 + $0x280] sm:$0xff]  ;;  %v3222_v35 = vld [vmem:[#allocation2 + $0x290] sm:$0xff] }
 0x683   :  { %3592 = vmatpush1.bf16.msra.mxu0 %v3200_v4  ;;  %4007 = vmatpush1.bf16.msra.mxu1 %v3202_v20  ;;  %v3226_v4 = vld [vmem:[#allocation2 + $0x2b0] sm:$0xff]  ;;  %v3228_v20 = vld [vmem:[#allocation2 + $0x2c0] sm:$0xff] }
 0x684   :  { %3593 = vmatprep.subr.bf16.mxu0 %v3206_v39  ;;  %4008 = vmatprep.subr.bf16.mxu1 %v3208_v56  ;;  %v10073_v39 = vld [vmem:[#allocation98_spill] sm:$0xff]  ;;  %v3225_v56 = vld [vmem:[#allocation2 + $0x2a8] sm:$0xff] }
 0x687   :  { %3594 = vmatpush1.bf16.msra.mxu0 %v3205_v62  ;;  %4009 = vmatpush1.bf16.msra.mxu1 %v3207_v9  ;;  %v3227_v62 = vld [vmem:[#allocation2 + $0x2b8] sm:$0xff] }
 0x688   :  { %3595 = vmatprep.subr.bf16.mxu0 %v3211_v51  ;;  %4010 = vmatprep.subr.bf16.mxu1 %v3213_v30  ;;  %v3231_v9 = vld [vmem:[#allocation2 + $0x2d8] sm:$0xff]  ;;  %v3233_v51 = vld [vmem:[#allocation2 + $0x2e8] sm:$0xff]  ;;  %v3230_v30 = vld [vmem:[#allocation2 + $0x2d0] sm:$0xff] }
 0x68b   :  { %3596 = vmatpush1.bf16.msra.mxu0 %v3210_v14  ;;  %4011 = vmatpush1.bf16.msra.mxu1 %v3212_v26  ;;  %v3232_v14 = vld [vmem:[#allocation2 + $0x2e0] sm:$0xff] }
 0x68c   :  { %3597 = vmatprep.subr.bf16.mxu0 %v3216_v12  ;;  %4012 = vmatprep.subr.bf16.mxu1 %v3218_v6  ;;  %v3236_v26 = vld [vmem:[#allocation2 + $0x300] sm:$0xff]  ;;  %v3238_v12 = vld [vmem:[#allocation2 + $0x310] sm:$0xff]  ;;  %v3235_v6 = vld [vmem:[#allocation2 + $0x2f8] sm:$0xff] }
 0x68f   :  { %3598 = vmatpush1.bf16.msra.mxu0 %v3215_v27  ;;  %4013 = vmatpush1.bf16.msra.mxu1 %v3217_v42  ;;  %v3237_v27 = vld [vmem:[#allocation2 + $0x308] sm:$0xff] }
 0x690   :  { %3650 = vmatprep.subr.bf16.mxu0 %v3221_v53  ;;  %4065 = vmatprep.subr.bf16.mxu1 %v3223_v19  ;;  %v3241_v42 = vld [vmem:[#allocation2 + $0x328] sm:$0xff]  ;;  %v3243_v53 = vld [vmem:[#allocation2 + $0x338] sm:$0xff]  ;;  %v3240_v19 = vld [vmem:[#allocation2 + $0x320] sm:$0xff] }
 0x692   :  { %3600 = vmatmul.mubr.bf16.vlgmr.msra.gmra.mrb[112].mxu0 %v10073_v39  ;;  %4015 = vmatmul.mubr.bf16.vlgmr.msra.gmra.mrb[124].mxu1 %v10073_v39 }
 0x693   :  { %3651 = vmatpush1.bf16.msra.mxu0 %v3220_v31  ;;  %4066 = vmatpush1.bf16.msra.mxu1 %v3222_v35  ;;  %v3242_v31 = vld [vmem:[#allocation2 + $0x330] sm:$0xff] }
 0x694   :  { %3652 = vmatprep.subr.bf16.mxu0 %v3226_v4  ;;  %4067 = vmatprep.subr.bf16.mxu1 %v3228_v20  ;;  %v3246_v35 = vld [vmem:[#allocation2 + $0x350] sm:$0xff]  ;;  %v3248_v4 = vld [vmem:[#allocation2 + $0x360] sm:$0xff]  ;;  %v3245_v20 = vld [vmem:[#allocation2 + $0x348] sm:$0xff] }
 0x695   :  { %3609 = vmatprep.mubr.bf16.mxu0 %v8975_v23  ;;  %4024 = vmatprep.mubr.bf16.mxu1 %v8975_v23 }
 0x697   :  { %3653 = vmatpush1.bf16.msra.mxu0 %v3225_v56  ;;  %4068 = vmatpush1.bf16.msra.mxu1 %v3227_v62  ;;  %v3247_v56 = vld [vmem:[#allocation2 + $0x358] sm:$0xff] }
 0x698   :  { %3654 = vmatprep.subr.bf16.mxu0 %v3231_v9  ;;  %4069 = vmatprep.subr.bf16.mxu1 %v3233_v51  ;;  %v3251_v62 = vld [vmem:[#allocation2 + $0x378] sm:$0xff]  ;;  %v3253_v9 = vld [vmem:[#allocation2 + $0x388] sm:$0xff]  ;;  %v3250_v51 = vld [vmem:[#allocation2 + $0x370] sm:$0xff] }
 0x69a   :  { %3610 = vmatmul.mubr.bf16.gmra.mrb[116].mxu0 %v8973_v55  ;;  %4025 = vmatmul.mubr.bf16.gmra.mrb[128].mxu1 %v8973_v55 }
 0x69b   :  { %3655 = vmatpush1.bf16.msra.mxu0 %v3230_v30  ;;  %4070 = vmatpush1.bf16.msra.mxu1 %v3232_v14  ;;  %v3252_v30 = vld [vmem:[#allocation2 + $0x380] sm:$0xff] }
 0x69c   :  { %3656 = vmatprep.subr.bf16.mxu0 %v3236_v26  ;;  %4071 = vmatprep.subr.bf16.mxu1 %v3238_v12  ;;  %v3256_v14 = vld [vmem:[#allocation2 + $0x3a0] sm:$0xff]  ;;  %v3258_v26 = vld [vmem:[#allocation2 + $0x3b0] sm:$0xff]  ;;  %v3255_v12 = vld [vmem:[#allocation2 + $0x398] sm:$0xff] }
 0x69d   :  { %3619 = vmatprep.mubr.bf16.mxu0 %v8991_v32  ;;  %4034 = vmatprep.mubr.bf16.mxu1 %v8991_v32 }
 0x69f   :  { %3657 = vmatpush1.bf16.msra.mxu0 %v3235_v6  ;;  %4072 = vmatpush1.bf16.msra.mxu1 %v3237_v27  ;;  %v3257_v6 = vld [vmem:[#allocation2 + $0x3a8] sm:$0xff] }
 0x6a0   :  { %3658 = vmatprep.subr.bf16.mxu0 %v3241_v42  ;;  %4073 = vmatprep.subr.bf16.mxu1 %v3243_v53  ;;  %v3261_v27 = vld [vmem:[#allocation2 + $0x3c8] sm:$0xff]  ;;  %v3263_v42 = vld [vmem:[#allocation2 + $0x3d8] sm:$0xff]  ;;  %v3260_v53 = vld [vmem:[#allocation2 + $0x3c0] sm:$0xff] }
 0x6a2   :  { %3620 = vmatmul.mubr.bf16.gmra.mrb[120].mxu0 %v8989_v34  ;;  %4035 = vmatmul.mubr.bf16.gmra.mrb[132].mxu1 %v8989_v34 }
 0x6a3   :  { %3659 = vmatpush1.bf16.msra.mxu0 %v3240_v19  ;;  %4074 = vmatpush1.bf16.msra.mxu1 %v3242_v31  ;;  %v3262_v19 = vld [vmem:[#allocation2 + $0x3d0] sm:$0xff] }
 0x6a4   :  { %3660 = vmatprep.subr.bf16.mxu0 %v3246_v35  ;;  %4075 = vmatprep.subr.bf16.mxu1 %v3248_v4  ;;  %v3266_v31 = vld [vmem:[#allocation2 + $0x3f0] sm:$0xff]  ;;  %v3268_v35 = vld [vmem:[#allocation2 + $0x400] sm:$0xff]  ;;  %v3265_v4 = vld [vmem:[#allocation2 + $0x3e8] sm:$0xff] }
 0x6a5   :  { %3629 = vmatprep.mubr.bf16.mxu0 %v9007_v60  ;;  %4044 = vmatprep.mubr.bf16.mxu1 %v9007_v60 }
 0x6a7   :  { %3661 = vmatpush1.bf16.msra.mxu0 %v3245_v20  ;;  %4076 = vmatpush1.bf16.msra.mxu1 %v3247_v56  ;;  %v3267_v20 = vld [vmem:[#allocation2 + $0x3f8] sm:$0xff] }
 0x6a8   :  { %3662 = vmatprep.subr.bf16.mxu0 %v3251_v62  ;;  %4077 = vmatprep.subr.bf16.mxu1 %v3253_v9  ;;  %v3271_v56 = vld [vmem:[#allocation2 + $0x418] sm:$0xff]  ;;  %v3273_v62 = vld [vmem:[#allocation2 + $0x428] sm:$0xff]  ;;  %v3270_v9 = vld [vmem:[#allocation2 + $0x410] sm:$0xff] }
 0x6aa   :  { %3630 = vmatmul.mubr.bf16.gmra.mrb[124].mxu0 %v9005_v1  ;;  %4045 = vmatmul.mubr.bf16.gmra.mrb[136].mxu1 %v9005_v1 }
 0x6ab   :  { %3663 = vmatpush1.bf16.msra.mxu0 %v3250_v51  ;;  %4078 = vmatpush1.bf16.msra.mxu1 %v3252_v30  ;;  %v3272_v51 = vld [vmem:[#allocation2 + $0x420] sm:$0xff] }
 0x6ac   :  { %3664 = vmatprep.subr.bf16.mxu0 %v3256_v14  ;;  %4079 = vmatprep.subr.bf16.mxu1 %v3258_v26  ;;  %v3276_v30 = vld [vmem:[#allocation2 + $0x440] sm:$0xff]  ;;  %v3278_v14 = vld [vmem:[#allocation2 + $0x450] sm:$0xff]  ;;  %v3275_v26 = vld [vmem:[#allocation2 + $0x438] sm:$0xff] }
 0x6ad   :  { %3639 = vmatprep.mubr.bf16.mxu0 %v9023_v40  ;;  %4054 = vmatprep.mubr.bf16.mxu1 %v9023_v40 }
 0x6af   :  { %3665 = vmatpush1.bf16.msra.mxu0 %v3255_v12  ;;  %4080 = vmatpush1.bf16.msra.mxu1 %v3257_v6  ;;  %v3277_v12 = vld [vmem:[#allocation2 + $0x448] sm:$0xff] }
 0x6b0   :  { %3666 = vmatprep.subr.bf16.mxu0 %v3261_v27  ;;  %4081 = vmatprep.subr.bf16.mxu1 %v3263_v42  ;;  %v3281_v6 = vld [vmem:[#allocation2 + $0x468] sm:$0xff]  ;;  %v3283_v27 = vld [vmem:[#allocation2 + $0x478] sm:$0xff]  ;;  %v3280_v42 = vld [vmem:[#allocation2 + $0x460] sm:$0xff] }
 0x6b2   :  { %3640 = vmatmul.mubr.bf16.gmra.mrb[128].mxu0 %v9021_v16  ;;  %4055 = vmatmul.mubr.bf16.gmra.mrb[140].mxu1 %v9021_v16 }
 0x6b3   :  { %3667 = vmatpush1.bf16.msra.mxu0 %v3260_v53  ;;  %4082 = vmatpush1.bf16.msra.mxu1 %v3262_v19  ;;  %v3282_v53 = vld [vmem:[#allocation2 + $0x470] sm:$0xff] }
 0x6b4   :  { %3668 = vmatprep.subr.bf16.mxu0 %v3266_v31  ;;  %4083 = vmatprep.subr.bf16.mxu1 %v3268_v35  ;;  %v3286_v19 = vld [vmem:[#allocation2 + $0x490] sm:$0xff]  ;;  %v3288_v31 = vld [vmem:[#allocation2 + $0x4a0] sm:$0xff]  ;;  %v3285_v35 = vld [vmem:[#allocation2 + $0x488] sm:$0xff] }
 0x6b5   :  { %3682 = vmatprep.mubr.bf16.mxu0 %v8983_v57  ;;  %4097 = vmatprep.mubr.bf16.mxu1 %v8983_v57 }
 0x6b7   :  { %3669 = vmatpush1.bf16.msra.mxu0 %v3265_v4  ;;  %4084 = vmatpush1.bf16.msra.mxu1 %v3267_v20  ;;  %v3287_v4 = vld [vmem:[#allocation2 + $0x498] sm:$0xff] }
 0x6b8   :  { %3670 = vmatprep.subr.bf16.mxu0 %v3271_v56  ;;  %4085 = vmatprep.subr.bf16.mxu1 %v3273_v62  ;;  %v3291_v20 = vld [vmem:[#allocation2 + $0x4b8] sm:$0xff]  ;;  %v3293_v56 = vld [vmem:[#allocation2 + $0x4c8] sm:$0xff]  ;;  %v3290_v62 = vld [vmem:[#allocation2 + $0x4b0] sm:$0xff] }
 0x6bb   :  { %3671 = vmatpush1.bf16.msra.mxu0 %v3270_v9  ;;  %4086 = vmatpush1.bf16.msra.mxu1 %v3272_v51  ;;  %v3292_v9 = vld [vmem:[#allocation2 + $0x4c0] sm:$0xff] }
 0x6bc   :  { %3672 = vmatprep.subr.bf16.mxu0 %v3276_v30  ;;  %4087 = vmatprep.subr.bf16.mxu1 %v3278_v14  ;;  %v3296_v51 = vld [vmem:[#allocation2 + $0x4e0] sm:$0xff]  ;;  %v3298_v30 = vld [vmem:[#allocation2 + $0x4f0] sm:$0xff]  ;;  %v3295_v14 = vld [vmem:[#allocation2 + $0x4d8] sm:$0xff] }
 0x6bf   :  { %3673 = vmatpush1.bf16.msra.mxu0 %v3275_v26  ;;  %4088 = vmatpush1.bf16.msra.mxu1 %v3277_v12  ;;  %v3297_v26 = vld [vmem:[#allocation2 + $0x4e8] sm:$0xff] }
 0x6c0   :  { %3674 = vmatprep.subr.bf16.mxu0 %v3281_v6  ;;  %4089 = vmatprep.subr.bf16.mxu1 %v3283_v27  ;;  %v3301_v12 = vld [vmem:[#allocation2 + $0x508] sm:$0xff]  ;;  %v3303_v6 = vld [vmem:[#allocation2 + $0x518] sm:$0xff]  ;;  %v3300_v27 = vld [vmem:[#allocation2 + $0x500] sm:$0xff] }
 0x6c3   :  { %3675 = vmatpush1.bf16.msra.mxu0 %v3280_v42  ;;  %4090 = vmatpush1.bf16.msra.mxu1 %v3282_v53  ;;  %v3302_v42 = vld [vmem:[#allocation2 + $0x510] sm:$0xff] }
 0x6c4   :  { %3676 = vmatprep.subr.bf16.mxu0 %v3286_v19  ;;  %4091 = vmatprep.subr.bf16.mxu1 %v3288_v31  ;;  %v3306_v53 = vld [vmem:[#allocation2 + $0x530] sm:$0xff]  ;;  %v3308_v19 = vld [vmem:[#allocation2 + $0x540] sm:$0xff]  ;;  %v3305_v31 = vld [vmem:[#allocation2 + $0x528] sm:$0xff] }
 0x6c7   :  { %3677 = vmatpush1.bf16.msra.mxu0 %v3285_v35  ;;  %4092 = vmatpush1.bf16.msra.mxu1 %v3287_v4  ;;  %v3307_v35 = vld [vmem:[#allocation2 + $0x538] sm:$0xff] }
 0x6c8   :  { %3678 = vmatprep.subr.bf16.mxu0 %v3291_v20  ;;  %4093 = vmatprep.subr.bf16.mxu1 %v3293_v56  ;;  %v3311_v4 = vld [vmem:[#allocation2 + $0x558] sm:$0xff]  ;;  %v3313_v20 = vld [vmem:[#allocation2 + $0x568] sm:$0xff]  ;;  %v3310_v56 = vld [vmem:[#allocation2 + $0x550] sm:$0xff] }
 0x6cb   :  { %3679 = vmatpush1.bf16.msra.mxu0 %v3290_v62  ;;  %4094 = vmatpush1.bf16.msra.mxu1 %v3292_v9  ;;  %v3312_v62 = vld [vmem:[#allocation2 + $0x560] sm:$0xff] }
 0x6cc   :  { %3680 = vmatprep.subr.bf16.mxu0 %v3296_v51  ;;  %4095 = vmatprep.subr.bf16.mxu1 %v3298_v30  ;;  %v3316_v9 = vld [vmem:[#allocation2 + $0x580] sm:$0xff]  ;;  %v3318_v51 = vld [vmem:[#allocation2 + $0x590] sm:$0xff]  ;;  %v3315_v30 = vld [vmem:[#allocation2 + $0x578] sm:$0xff] }
 0x6cf   :  { %3681 = vmatpush1.bf16.msra.mxu0 %v3295_v14  ;;  %4096 = vmatpush1.bf16.msra.mxu1 %v3297_v26  ;;  %v3317_v14 = vld [vmem:[#allocation2 + $0x588] sm:$0xff] }
 0x6d0   :  { %3733 = vmatprep.subr.bf16.mxu0 %v3301_v12  ;;  %4148 = vmatprep.subr.bf16.mxu1 %v3303_v6  ;;  %v3321_v26 = vld [vmem:[#allocation2 + $0x5a8] sm:$0xff]  ;;  %v3323_v12 = vld [vmem:[#allocation2 + $0x5b8] sm:$0xff]  ;;  %v3320_v6 = vld [vmem:[#allocation2 + $0x5a0] sm:$0xff] }
 0x6d2   :  { %3683 = vmatmul.mubr.bf16.vlgmr.msra.gmra.mrb[112].mxu0 %v8980_v43  ;;  %4098 = vmatmul.mubr.bf16.vlgmr.msra.gmra.mrb[124].mxu1 %v8980_v43 }
 0x6d3   :  { %3734 = vmatpush1.bf16.msra.mxu0 %v3300_v27  ;;  %4149 = vmatpush1.bf16.msra.mxu1 %v3302_v42  ;;  %v3322_v27 = vld [vmem:[#allocation2 + $0x5b0] sm:$0xff] }
 0x6d4   :  { %3735 = vmatprep.subr.bf16.mxu0 %v3306_v53  ;;  %4150 = vmatprep.subr.bf16.mxu1 %v3308_v19  ;;  %v3326_v42 = vld [vmem:[#allocation2 + $0x5d0] sm:$0xff]  ;;  %v3328_v53 = vld [vmem:[#allocation2 + $0x5e0] sm:$0xff]  ;;  %v3325_v19 = vld [vmem:[#allocation2 + $0x5c8] sm:$0xff] }
 0x6d5   :  { %3692 = vmatprep.mubr.bf16.mxu0 %v8999_v17  ;;  %4107 = vmatprep.mubr.bf16.mxu1 %v8999_v17 }
 0x6d7   :  { %3736 = vmatpush1.bf16.msra.mxu0 %v3305_v31  ;;  %4151 = vmatpush1.bf16.msra.mxu1 %v3307_v35  ;;  %v3327_v31 = vld [vmem:[#allocation2 + $0x5d8] sm:$0xff] }
 0x6d8   :  { %3737 = vmatprep.subr.bf16.mxu0 %v3311_v4  ;;  %4152 = vmatprep.subr.bf16.mxu1 %v3313_v20  ;;  %v3331_v35 = vld [vmem:[#allocation2 + $0x5f8] sm:$0xff]  ;;  %v3333_v4 = vld [vmem:[#allocation2 + $0x608] sm:$0xff]  ;;  %v3330_v20 = vld [vmem:[#allocation2 + $0x5f0] sm:$0xff] }
 0x6da   :  { %3693 = vmatmul.mubr.bf16.gmra.mrb[116].mxu0 %v8996_v15  ;;  %4108 = vmatmul.mubr.bf16.gmra.mrb[128].mxu1 %v8996_v15 }
 0x6db   :  { %3738 = vmatpush1.bf16.msra.mxu0 %v3310_v56  ;;  %4153 = vmatpush1.bf16.msra.mxu1 %v3312_v62  ;;  %v3332_v56 = vld [vmem:[#allocation2 + $0x600] sm:$0xff] }
 0x6dc   :  { %3739 = vmatprep.subr.bf16.mxu0 %v3316_v9  ;;  %4154 = vmatprep.subr.bf16.mxu1 %v3318_v51  ;;  %v3336_v62 = vld [vmem:[#allocation2 + $0x620] sm:$0xff]  ;;  %v3338_v9 = vld [vmem:[#allocation2 + $0x630] sm:$0xff]  ;;  %v3335_v51 = vld [vmem:[#allocation2 + $0x618] sm:$0xff] }
 0x6dd   :  { %3702 = vmatprep.mubr.bf16.mxu0 %v9015_v47  ;;  %4117 = vmatprep.mubr.bf16.mxu1 %v9015_v47 }
 0x6df   :  { %3740 = vmatpush1.bf16.msra.mxu0 %v3315_v30  ;;  %4155 = vmatpush1.bf16.msra.mxu1 %v3317_v14  ;;  %v3337_v30 = vld [vmem:[#allocation2 + $0x628] sm:$0xff] }
 0x6e0   :  { %3741 = vmatprep.subr.bf16.mxu0 %v3321_v26  ;;  %4156 = vmatprep.subr.bf16.mxu1 %v3323_v12  ;;  %v3341_v14 = vld [vmem:[#allocation2 + $0x648] sm:$0xff]  ;;  %v3343_v26 = vld [vmem:[#allocation2 + $0x658] sm:$0xff]  ;;  %v3340_v12 = vld [vmem:[#allocation2 + $0x640] sm:$0xff] }
 0x6e2   :  { %3703 = vmatmul.mubr.bf16.gmra.mrb[120].mxu0 %v9012_v37  ;;  %4118 = vmatmul.mubr.bf16.gmra.mrb[132].mxu1 %v9012_v37 }
 0x6e3   :  { %3742 = vmatpush1.bf16.msra.mxu0 %v3320_v6  ;;  %4157 = vmatpush1.bf16.msra.mxu1 %v3322_v27  ;;  %v3342_v6 = vld [vmem:[#allocation2 + $0x650] sm:$0xff] }
 0x6e4   :  { %3743 = vmatprep.subr.bf16.mxu0 %v3326_v42  ;;  %4158 = vmatprep.subr.bf16.mxu1 %v3328_v53  ;;  %v3346_v27 = vld [vmem:[#allocation2 + $0x670] sm:$0xff]  ;;  %v3348_v42 = vld [vmem:[#allocation2 + $0x680] sm:$0xff]  ;;  %v3345_v53 = vld [vmem:[#allocation2 + $0x668] sm:$0xff] }
 0x6e5   :  { %3712 = vmatprep.mubr.bf16.mxu0 %v9031_v50  ;;  %4127 = vmatprep.mubr.bf16.mxu1 %v9031_v50 }
 0x6e7   :  { %3744 = vmatpush1.bf16.msra.mxu0 %v3325_v19  ;;  %4159 = vmatpush1.bf16.msra.mxu1 %v3327_v31  ;;  %v3347_v19 = vld [vmem:[#allocation2 + $0x678] sm:$0xff] }
 0x6e8   :  { %3745 = vmatprep.subr.bf16.mxu0 %v3331_v35  ;;  %4160 = vmatprep.subr.bf16.mxu1 %v3333_v4  ;;  %v3351_v31 = vld [vmem:[#allocation2 + $0x698] sm:$0xff]  ;;  %v3353_v35 = vld [vmem:[#allocation2 + $0x6a8] sm:$0xff]  ;;  %v3350_v4 = vld [vmem:[#allocation2 + $0x690] sm:$0xff] }
 0x6ea   :  { %3713 = vmatmul.mubr.bf16.gmra.mrb[124].mxu0 %v9028_v45  ;;  %4128 = vmatmul.mubr.bf16.gmra.mrb[136].mxu1 %v9028_v45 }
 0x6eb   :  { %3746 = vmatpush1.bf16.msra.mxu0 %v3330_v20  ;;  %4161 = vmatpush1.bf16.msra.mxu1 %v3332_v56  ;;  %v3352_v20 = vld [vmem:[#allocation2 + $0x6a0] sm:$0xff] }
 0x6ec   :  { %3747 = vmatprep.subr.bf16.mxu0 %v3336_v62  ;;  %4162 = vmatprep.subr.bf16.mxu1 %v3338_v9  ;;  %v3356_v56 = vld [vmem:[#allocation2 + $0x6c0] sm:$0xff]  ;;  %v3358_v62 = vld [vmem:[#allocation2 + $0x6d0] sm:$0xff]  ;;  %v3355_v9 = vld [vmem:[#allocation2 + $0x6b8] sm:$0xff] }
 0x6ed   :  { %3722 = vmatprep.mubr.bf16.mxu0 %v9047_v7  ;;  %4137 = vmatprep.mubr.bf16.mxu1 %v9047_v7 }
 0x6ef   :  { %3748 = vmatpush1.bf16.msra.mxu0 %v3335_v51  ;;  %4163 = vmatpush1.bf16.msra.mxu1 %v3337_v30  ;;  %v3357_v51 = vld [vmem:[#allocation2 + $0x6c8] sm:$0xff] }
 0x6f0   :  { %3749 = vmatprep.subr.bf16.mxu0 %v3341_v14  ;;  %4164 = vmatprep.subr.bf16.mxu1 %v3343_v26  ;;  %v3361_v30 = vld [vmem:[#allocation2 + $0x6e8] sm:$0xff]  ;;  %v3363_v14 = vld [vmem:[#allocation2 + $0x6f8] sm:$0xff]  ;;  %v3360_v26 = vld [vmem:[#allocation2 + $0x6e0] sm:$0xff] }
 0x6f2   :  { %3723 = vmatmul.mubr.bf16.gmra.mrb[128].mxu0 %v9044_v59  ;;  %4138 = vmatmul.mubr.bf16.gmra.mrb[140].mxu1 %v9044_v59 }
 0x6f3   :  { %3750 = vmatpush1.bf16.msra.mxu0 %v3340_v12  ;;  %4165 = vmatpush1.bf16.msra.mxu1 %v3342_v6  ;;  %v3362_v12 = vld [vmem:[#allocation2 + $0x6f0] sm:$0xff] }
 0x6f4   :  { %3751 = vmatprep.subr.bf16.mxu0 %v3346_v27  ;;  %4166 = vmatprep.subr.bf16.mxu1 %v3348_v42  ;;  %v3366_v6 = vld [vmem:[#allocation2 + $0x710] sm:$0xff]  ;;  %v3368_v27 = vld [vmem:[#allocation2 + $0x720] sm:$0xff]  ;;  %v3365_v42 = vld [vmem:[#allocation2 + $0x708] sm:$0xff] }
 0x6f5   :  { %3765 = vmatprep.mubr.bf16.mxu0 %v9039_v29  ;;  %4180 = vmatprep.mubr.bf16.mxu1 %v9039_v29 }
 0x6f7   :  { %3752 = vmatpush1.bf16.msra.mxu0 %v3345_v53  ;;  %4167 = vmatpush1.bf16.msra.mxu1 %v3347_v19  ;;  %v3367_v53 = vld [vmem:[#allocation2 + $0x718] sm:$0xff] }
 0x6f8   :  { %3753 = vmatprep.subr.bf16.mxu0 %v3351_v31  ;;  %4168 = vmatprep.subr.bf16.mxu1 %v3353_v35  ;;  %v3371_v19 = vld [vmem:[#allocation2 + $0x738] sm:$0xff]  ;;  %v3373_v31 = vld [vmem:[#allocation2 + $0x748] sm:$0xff]  ;;  %v3370_v35 = vld [vmem:[#allocation2 + $0x730] sm:$0xff] }
 0x6fb   :  { %3754 = vmatpush1.bf16.msra.mxu0 %v3350_v4  ;;  %4169 = vmatpush1.bf16.msra.mxu1 %v3352_v20  ;;  %v3372_v4 = vld [vmem:[#allocation2 + $0x740] sm:$0xff] }
 0x6fc   :  { %3755 = vmatprep.subr.bf16.mxu0 %v3356_v56  ;;  %4170 = vmatprep.subr.bf16.mxu1 %v3358_v62  ;;  %v3376_v20 = vld [vmem:[#allocation2 + $0x760] sm:$0xff]  ;;  %v3378_v56 = vld [vmem:[#allocation2 + $0x770] sm:$0xff]  ;;  %v3375_v62 = vld [vmem:[#allocation2 + $0x758] sm:$0xff] }
 0x6ff   :  { %3756 = vmatpush1.bf16.msra.mxu0 %v3355_v9  ;;  %4171 = vmatpush1.bf16.msra.mxu1 %v3357_v51  ;;  %v3377_v9 = vld [vmem:[#allocation2 + $0x768] sm:$0xff] }
 0x700   :  { %3757 = vmatprep.subr.bf16.mxu0 %v3361_v30  ;;  %4172 = vmatprep.subr.bf16.mxu1 %v3363_v14  ;;  %v3381_v51 = vld [vmem:[#allocation2 + $0x788] sm:$0xff]  ;;  %v3383_v30 = vld [vmem:[#allocation2 + $0x798] sm:$0xff]  ;;  %v3380_v14 = vld [vmem:[#allocation2 + $0x780] sm:$0xff] }
 0x703   :  { %3758 = vmatpush1.bf16.msra.mxu0 %v3360_v26  ;;  %4173 = vmatpush1.bf16.msra.mxu1 %v3362_v12  ;;  %v3382_v26 = vld [vmem:[#allocation2 + $0x790] sm:$0xff] }
 0x704   :  { %3759 = vmatprep.subr.bf16.mxu0 %v3366_v6  ;;  %4174 = vmatprep.subr.bf16.mxu1 %v3368_v27  ;;  %v3386_v12 = vld [vmem:[#allocation2 + $0x7b0] sm:$0xff]  ;;  %v3388_v6 = vld [vmem:[#allocation2 + $0x7c0] sm:$0xff]  ;;  %v3385_v27 = vld [vmem:[#allocation2 + $0x7a8] sm:$0xff] }
 0x707   :  { %3760 = vmatpush1.bf16.msra.mxu0 %v3365_v42  ;;  %4175 = vmatpush1.bf16.msra.mxu1 %v3367_v53  ;;  %v3387_v42 = vld [vmem:[#allocation2 + $0x7b8] sm:$0xff] }
 0x708   :  { %3761 = vmatprep.subr.bf16.mxu0 %v3371_v19  ;;  %4176 = vmatprep.subr.bf16.mxu1 %v3373_v31  ;;  %v3391_v53 = vld [vmem:[#allocation2 + $0x7d8] sm:$0xff]  ;;  %v3393_v19 = vld [vmem:[#allocation2 + $0x7e8] sm:$0xff]  ;;  %v3390_v31 = vld [vmem:[#allocation2 + $0x7d0] sm:$0xff] }
 0x70b   :  { %3762 = vmatpush1.bf16.msra.mxu0 %v3370_v35  ;;  %4177 = vmatpush1.bf16.msra.mxu1 %v3372_v4  ;;  %v3392_v35 = vld [vmem:[#allocation2 + $0x7e0] sm:$0xff] }
 0x70c   :  { %3763 = vmatprep.subr.bf16.mxu0 %v3376_v20  ;;  %4178 = vmatprep.subr.bf16.mxu1 %v3378_v56  ;;  %v3396_v4 = vld [vmem:[#allocation2 + $0x800] sm:$0xff]  ;;  %v3398_v20 = vld [vmem:[#allocation2 + $0x810] sm:$0xff]  ;;  %v3395_v56 = vld [vmem:[#allocation2 + $0x7f8] sm:$0xff] }
 0x70f   :  { %3764 = vmatpush1.bf16.msra.mxu0 %v3375_v62  ;;  %4179 = vmatpush1.bf16.msra.mxu1 %v3377_v9  ;;  %v3397_v62 = vld [vmem:[#allocation2 + $0x808] sm:$0xff] }
 0x710   :  { %3816 = vmatprep.subr.bf16.mxu0 %v3381_v51  ;;  %4231 = vmatprep.subr.bf16.mxu1 %v3383_v30  ;;  %v3401_v9 = vld [vmem:[#allocation2 + $0x828] sm:$0xff]  ;;  %v3403_v51 = vld [vmem:[#allocation2 + $0x838] sm:$0xff]  ;;  %v3400_v30 = vld [vmem:[#allocation2 + $0x820] sm:$0xff] }
 0x712   :  { %3766 = vmatmul.mubr.bf16.vlgmr.msra.gmra.mrb[112].mxu0 %v9037_v0  ;;  %4181 = vmatmul.mubr.bf16.vlgmr.msra.gmra.mrb[124].mxu1 %v9037_v0 }
 0x713   :  { %3817 = vmatpush1.bf16.msra.mxu0 %v3380_v14  ;;  %4232 = vmatpush1.bf16.msra.mxu1 %v3382_v26  ;;  %v3402_v14 = vld [vmem:[#allocation2 + $0x830] sm:$0xff] }
 0x714   :  { %3818 = vmatprep.subr.bf16.mxu0 %v3386_v12  ;;  %4233 = vmatprep.subr.bf16.mxu1 %v3388_v6  ;;  %v3406_v26 = vld [vmem:[#allocation2 + $0x850] sm:$0xff]  ;;  %v3408_v12 = vld [vmem:[#allocation2 + $0x860] sm:$0xff]  ;;  %v3405_v6 = vld [vmem:[#allocation2 + $0x848] sm:$0xff] }
 0x715   :  { %3775 = vmatprep.mubr.bf16.mxu0 %v9055_v61  ;;  %4190 = vmatprep.mubr.bf16.mxu1 %v9055_v61 }
 0x717   :  { %3819 = vmatpush1.bf16.msra.mxu0 %v3385_v27  ;;  %4234 = vmatpush1.bf16.msra.mxu1 %v3387_v42  ;;  %v3407_v27 = vld [vmem:[#allocation2 + $0x858] sm:$0xff] }
 0x718   :  { %3820 = vmatprep.subr.bf16.mxu0 %v3391_v53  ;;  %4235 = vmatprep.subr.bf16.mxu1 %v3393_v19  ;;  %v3411_v42 = vld [vmem:[#allocation2 + $0x878] sm:$0xff]  ;;  %v3413_v53 = vld [vmem:[#allocation2 + $0x888] sm:$0xff]  ;;  %v3410_v19 = vld [vmem:[#allocation2 + $0x870] sm:$0xff] }
 0x71a   :  { %3776 = vmatmul.mubr.bf16.gmra.mrb[116].mxu0 %v9053_v10  ;;  %4191 = vmatmul.mubr.bf16.gmra.mrb[128].mxu1 %v9053_v10 }
 0x71b   :  { %3821 = vmatpush1.bf16.msra.mxu0 %v3390_v31  ;;  %4236 = vmatpush1.bf16.msra.mxu1 %v3392_v35  ;;  %v3412_v31 = vld [vmem:[#allocation2 + $0x880] sm:$0xff] }
 0x71c   :  { %3822 = vmatprep.subr.bf16.mxu0 %v3396_v4  ;;  %4237 = vmatprep.subr.bf16.mxu1 %v3398_v20  ;;  %v3416_v35 = vld [vmem:[#allocation2 + $0x8a0] sm:$0xff]  ;;  %v3418_v4 = vld [vmem:[#allocation2 + $0x8b0] sm:$0xff]  ;;  %v3415_v20 = vld [vmem:[#allocation2 + $0x898] sm:$0xff] }
 0x71d   :  { %3785 = vmatprep.mubr.bf16.mxu0 %v9071_v52  ;;  %4200 = vmatprep.mubr.bf16.mxu1 %v9071_v52 }
 0x71f   :  { %3823 = vmatpush1.bf16.msra.mxu0 %v3395_v56  ;;  %4238 = vmatpush1.bf16.msra.mxu1 %v3397_v62  ;;  %v3417_v56 = vld [vmem:[#allocation2 + $0x8a8] sm:$0xff] }
 0x720   :  { %3824 = vmatprep.subr.bf16.mxu0 %v3401_v9  ;;  %4239 = vmatprep.subr.bf16.mxu1 %v3403_v51  ;;  %v3421_v62 = vld [vmem:[#allocation2 + $0x8c8] sm:$0xff]  ;;  %v3423_v9 = vld [vmem:[#allocation2 + $0x8d8] sm:$0xff]  ;;  %v3420_v51 = vld [vmem:[#allocation2 + $0x8c0] sm:$0xff] }
 0x722   :  { %3786 = vmatmul.mubr.bf16.gmra.mrb[120].mxu0 %v9069_v3  ;;  %4201 = vmatmul.mubr.bf16.gmra.mrb[132].mxu1 %v9069_v3 }
 0x723   :  { %3825 = vmatpush1.bf16.msra.mxu0 %v3400_v30  ;;  %4240 = vmatpush1.bf16.msra.mxu1 %v3402_v14  ;;  %v3422_v30 = vld [vmem:[#allocation2 + $0x8d0] sm:$0xff] }
 0x724   :  { %3826 = vmatprep.subr.bf16.mxu0 %v3406_v26  ;;  %4241 = vmatprep.subr.bf16.mxu1 %v3408_v12  ;;  %v3426_v14 = vld [vmem:[#allocation2 + $0x8f0] sm:$0xff]  ;;  %v3428_v26 = vld [vmem:[#allocation2 + $0x900] sm:$0xff]  ;;  %v3425_v12 = vld [vmem:[#allocation2 + $0x8e8] sm:$0xff] }
 0x725   :  { %3795 = vmatprep.mubr.bf16.mxu0 %v9087_v24  ;;  %4210 = vmatprep.mubr.bf16.mxu1 %v9087_v24 }
 0x727   :  { %3827 = vmatpush1.bf16.msra.mxu0 %v3405_v6  ;;  %4242 = vmatpush1.bf16.msra.mxu1 %v3407_v27  ;;  %v3427_v6 = vld [vmem:[#allocation2 + $0x8f8] sm:$0xff] }
 0x728   :  { %3828 = vmatprep.subr.bf16.mxu0 %v3411_v42  ;;  %4243 = vmatprep.subr.bf16.mxu1 %v3413_v53  ;;  %v3431_v27 = vld [vmem:[#allocation2 + $0x918] sm:$0xff]  ;;  %v3433_v42 = vld [vmem:[#allocation2 + $0x928] sm:$0xff]  ;;  %v3430_v53 = vld [vmem:[#allocation2 + $0x910] sm:$0xff] }
 0x72a   :  { %3796 = vmatmul.mubr.bf16.gmra.mrb[124].mxu0 %v9085_v44  ;;  %4211 = vmatmul.mubr.bf16.gmra.mrb[136].mxu1 %v9085_v44 }
 0x72b   :  { %3829 = vmatpush1.bf16.msra.mxu0 %v3410_v19  ;;  %4244 = vmatpush1.bf16.msra.mxu1 %v3412_v31  ;;  %v3432_v19 = vld [vmem:[#allocation2 + $0x920] sm:$0xff] }
 0x72c   :  { %3830 = vmatprep.subr.bf16.mxu0 %v3416_v35  ;;  %4245 = vmatprep.subr.bf16.mxu1 %v3418_v4  ;;  %v3436_v31 = vld [vmem:[#allocation2 + $0x940] sm:$0xff]  ;;  %v3438_v35 = vld [vmem:[#allocation2 + $0x950] sm:$0xff]  ;;  %v3435_v4 = vld [vmem:[#allocation2 + $0x938] sm:$0xff] }
 0x72d   :  { %3805 = vmatprep.mubr.bf16.mxu0 %v9103_v46  ;;  %4220 = vmatprep.mubr.bf16.mxu1 %v9103_v46 }
 0x72f   :  { %3831 = vmatpush1.bf16.msra.mxu0 %v3415_v20  ;;  %4246 = vmatpush1.bf16.msra.mxu1 %v3417_v56  ;;  %v3437_v20 = vld [vmem:[#allocation2 + $0x948] sm:$0xff] }
 0x730   :  { %3832 = vmatprep.subr.bf16.mxu0 %v3421_v62  ;;  %4247 = vmatprep.subr.bf16.mxu1 %v3423_v9  ;;  %v3441_v56 = vld [vmem:[#allocation2 + $0x968] sm:$0xff]  ;;  %v3443_v62 = vld [vmem:[#allocation2 + $0x978] sm:$0xff]  ;;  %v3440_v9 = vld [vmem:[#allocation2 + $0x960] sm:$0xff] }
 0x732   :  { %3806 = vmatmul.mubr.bf16.gmra.mrb[128].mxu0 %v9101_v21  ;;  %4221 = vmatmul.mubr.bf16.gmra.mrb[140].mxu1 %v9101_v21 }
 0x733   :  { %3833 = vmatpush1.bf16.msra.mxu0 %v3420_v51  ;;  %4248 = vmatpush1.bf16.msra.mxu1 %v3422_v30  ;;  %v3442_v51 = vld [vmem:[#allocation2 + $0x970] sm:$0xff] }
 0x734   :  { %3834 = vmatprep.subr.bf16.mxu0 %v3426_v14  ;;  %4249 = vmatprep.subr.bf16.mxu1 %v3428_v26  ;;  %v3446_v30 = vld [vmem:[#allocation2 + $0x990] sm:$0xff]  ;;  %v3448_v14 = vld [vmem:[#allocation2 + $0x9a0] sm:$0xff]  ;;  %v3445_v26 = vld [vmem:[#allocation2 + $0x988] sm:$0xff] }
 0x735   :  { %3848 = vmatprep.mubr.bf16.mxu0 %v9063_v22  ;;  %4263 = vmatprep.mubr.bf16.mxu1 %v9063_v22 }
 0x737   :  { %3835 = vmatpush1.bf16.msra.mxu0 %v3425_v12  ;;  %4250 = vmatpush1.bf16.msra.mxu1 %v3427_v6  ;;  %v3447_v12 = vld [vmem:[#allocation2 + $0x998] sm:$0xff] }
 0x738   :  { %3836 = vmatprep.subr.bf16.mxu0 %v3431_v27  ;;  %4251 = vmatprep.subr.bf16.mxu1 %v3433_v42  ;;  %v3451_v6 = vld [vmem:[#allocation2 + $0x9b8] sm:$0xff]  ;;  %v3453_v27 = vld [vmem:[#allocation2 + $0x9c8] sm:$0xff]  ;;  %v3450_v42 = vld [vmem:[#allocation2 + $0x9b0] sm:$0xff] }
 0x73b   :  { %3837 = vmatpush1.bf16.msra.mxu0 %v3430_v53  ;;  %4252 = vmatpush1.bf16.msra.mxu1 %v3432_v19  ;;  %v3452_v53 = vld [vmem:[#allocation2 + $0x9c0] sm:$0xff] }
 0x73c   :  { %3838 = vmatprep.subr.bf16.mxu0 %v3436_v31  ;;  %4253 = vmatprep.subr.bf16.mxu1 %v3438_v35  ;;  %v3456_v19 = vld [vmem:[#allocation2 + $0x9e0] sm:$0xff]  ;;  %v3458_v31 = vld [vmem:[#allocation2 + $0x9f0] sm:$0xff]  ;;  %v3455_v35 = vld [vmem:[#allocation2 + $0x9d8] sm:$0xff] }
 0x73f   :  { %3839 = vmatpush1.bf16.msra.mxu0 %v3435_v4  ;;  %4254 = vmatpush1.bf16.msra.mxu1 %v3437_v20  ;;  %v3457_v4 = vld [vmem:[#allocation2 + $0x9e8] sm:$0xff] }
 0x740   :  { %3840 = vmatprep.subr.bf16.mxu0 %v3441_v56  ;;  %4255 = vmatprep.subr.bf16.mxu1 %v3443_v62  ;;  %v3461_v20 = vld [vmem:[#allocation2 + $0xa08] sm:$0xff]  ;;  %v3463_v56 = vld [vmem:[#allocation2 + $0xa18] sm:$0xff]  ;;  %v3460_v62 = vld [vmem:[#allocation2 + $0xa00] sm:$0xff] }
 0x743   :  { %3841 = vmatpush1.bf16.msra.mxu0 %v3440_v9  ;;  %4256 = vmatpush1.bf16.msra.mxu1 %v3442_v51  ;;  %v3462_v9 = vld [vmem:[#allocation2 + $0xa10] sm:$0xff] }
 0x744   :  { %3842 = vmatprep.subr.bf16.mxu0 %v3446_v30  ;;  %4257 = vmatprep.subr.bf16.mxu1 %v3448_v14  ;;  %v3466_v51 = vld [vmem:[#allocation2 + $0xa30] sm:$0xff]  ;;  %v3468_v30 = vld [vmem:[#allocation2 + $0xa40] sm:$0xff]  ;;  %v3465_v14 = vld [vmem:[#allocation2 + $0xa28] sm:$0xff] }
 0x747   :  { %3843 = vmatpush1.bf16.msra.mxu0 %v3445_v26  ;;  %4258 = vmatpush1.bf16.msra.mxu1 %v3447_v12  ;;  %v3467_v26 = vld [vmem:[#allocation2 + $0xa38] sm:$0xff] }
 0x748   :  { %3844 = vmatprep.subr.bf16.mxu0 %v3451_v6  ;;  %4259 = vmatprep.subr.bf16.mxu1 %v3453_v27  ;;  %v3471_v12 = vld [vmem:[#allocation2 + $0xa58] sm:$0xff]  ;;  %v3473_v6 = vld [vmem:[#allocation2 + $0xa68] sm:$0xff]  ;;  %v3470_v27 = vld [vmem:[#allocation2 + $0xa50] sm:$0xff] }
 0x74b   :  { %3845 = vmatpush1.bf16.msra.mxu0 %v3450_v42  ;;  %4260 = vmatpush1.bf16.msra.mxu1 %v3452_v53  ;;  %v3472_v42 = vld [vmem:[#allocation2 + $0xa60] sm:$0xff] }
 0x74c   :  { %3846 = vmatprep.subr.bf16.mxu0 %v3456_v19  ;;  %4261 = vmatprep.subr.bf16.mxu1 %v3458_v31  ;;  %v3476_v53 = vld [vmem:[#allocation2 + $0xa80] sm:$0xff]  ;;  %v3478_v19 = vld [vmem:[#allocation2 + $0xa90] sm:$0xff]  ;;  %v3475_v31 = vld [vmem:[#allocation2 + $0xa78] sm:$0xff] }
 0x74f   :  { %3847 = vmatpush1.bf16.msra.mxu0 %v3455_v35  ;;  %4262 = vmatpush1.bf16.msra.mxu1 %v3457_v4  ;;  %v3477_v35 = vld [vmem:[#allocation2 + $0xa88] sm:$0xff] }
 0x750   :  { %3899 = vmatprep.subr.bf16.mxu0 %v3461_v20  ;;  %4314 = vmatprep.subr.bf16.mxu1 %v3463_v56  ;;  %v3481_v4 = vld [vmem:[#allocation2 + $0xaa8] sm:$0xff]  ;;  %v3483_v20 = vld [vmem:[#allocation2 + $0xab8] sm:$0xff]  ;;  %v3480_v56 = vld [vmem:[#allocation2 + $0xaa0] sm:$0xff] }
 0x752   :  { %3849 = vmatmul.mubr.bf16.vlgmr.msra.gmra.mrb[112].mxu0 %v9060_v18  ;;  %4264 = vmatmul.mubr.bf16.vlgmr.msra.gmra.mrb[124].mxu1 %v9060_v18 }
 0x753   :  { %3900 = vmatpush1.bf16.msra.mxu0 %v3460_v62  ;;  %4315 = vmatpush1.bf16.msra.mxu1 %v3462_v9  ;;  %v3482_v62 = vld [vmem:[#allocation2 + $0xab0] sm:$0xff] }
 0x754   :  { %3901 = vmatprep.subr.bf16.mxu0 %v3466_v51  ;;  %4316 = vmatprep.subr.bf16.mxu1 %v3468_v30  ;;  %v3486_v9 = vld [vmem:[#allocation2 + $0xad0] sm:$0xff]  ;;  %v3488_v51 = vld [vmem:[#allocation2 + $0xae0] sm:$0xff]  ;;  %v3485_v30 = vld [vmem:[#allocation2 + $0xac8] sm:$0xff] }
 0x755   :  { %3858 = vmatprep.mubr.bf16.mxu0 %v9079_v41  ;;  %4273 = vmatprep.mubr.bf16.mxu1 %v9079_v41 }
 0x757   :  { %3902 = vmatpush1.bf16.msra.mxu0 %v3465_v14  ;;  %4317 = vmatpush1.bf16.msra.mxu1 %v3467_v26  ;;  %v3487_v14 = vld [vmem:[#allocation2 + $0xad8] sm:$0xff] }
 0x758   :  { %3903 = vmatprep.subr.bf16.mxu0 %v3471_v12  ;;  %4318 = vmatprep.subr.bf16.mxu1 %v3473_v6  ;;  %v3491_v26 = vld [vmem:[#allocation2 + $0xaf8] sm:$0xff]  ;;  %v3493_v12 = vld [vmem:[#allocation2 + $0xb08] sm:$0xff]  ;;  %v3490_v6 = vld [vmem:[#allocation2 + $0xaf0] sm:$0xff] }
 0x75a   :  { %3859 = vmatmul.mubr.bf16.gmra.mrb[116].mxu0 %v9076_v11  ;;  %4274 = vmatmul.mubr.bf16.gmra.mrb[128].mxu1 %v9076_v11 }
 0x75b   :  { %3904 = vmatpush1.bf16.msra.mxu0 %v3470_v27  ;;  %4319 = vmatpush1.bf16.msra.mxu1 %v3472_v42  ;;  %v3492_v27 = vld [vmem:[#allocation2 + $0xb00] sm:$0xff] }
 0x75c   :  { %3905 = vmatprep.subr.bf16.mxu0 %v3476_v53  ;;  %4320 = vmatprep.subr.bf16.mxu1 %v3478_v19  ;;  %v3496_v42 = vld [vmem:[#allocation2 + $0xb20] sm:$0xff]  ;;  %v3498_v53 = vld [vmem:[#allocation2 + $0xb30] sm:$0xff]  ;;  %v3495_v19 = vld [vmem:[#allocation2 + $0xb18] sm:$0xff] }
 0x75d   :  { %3868 = vmatprep.mubr.bf16.mxu0 %v9095_v5  ;;  %4283 = vmatprep.mubr.bf16.mxu1 %v9095_v5 }
 0x75f   :  { %3906 = vmatpush1.bf16.msra.mxu0 %v3475_v31  ;;  %4321 = vmatpush1.bf16.msra.mxu1 %v3477_v35  ;;  %v3497_v31 = vld [vmem:[#allocation2 + $0xb28] sm:$0xff] }
 0x760   :  { %3907 = vmatprep.subr.bf16.mxu0 %v3481_v4  ;;  %4322 = vmatprep.subr.bf16.mxu1 %v3483_v20  ;;  %v3501_v35 = vld [vmem:[#allocation2 + $0xb48] sm:$0xff]  ;;  %v3503_v4 = vld [vmem:[#allocation2 + $0xb58] sm:$0xff]  ;;  %v3500_v20 = vld [vmem:[#allocation2 + $0xb40] sm:$0xff] }
 0x762   :  { %3869 = vmatmul.mubr.bf16.gmra.mrb[120].mxu0 %v9092_v8  ;;  %4284 = vmatmul.mubr.bf16.gmra.mrb[132].mxu1 %v9092_v8 }
 0x763   :  { %3908 = vmatpush1.bf16.msra.mxu0 %v3480_v56  ;;  %4323 = vmatpush1.bf16.msra.mxu1 %v3482_v62  ;;  %v3502_v56 = vld [vmem:[#allocation2 + $0xb50] sm:$0xff] }
 0x764   :  { %3909 = vmatprep.subr.bf16.mxu0 %v3486_v9  ;;  %4324 = vmatprep.subr.bf16.mxu1 %v3488_v51  ;;  %v3506_v62 = vld [vmem:[#allocation2 + $0xb70] sm:$0xff]  ;;  %v3508_v9 = vld [vmem:[#allocation2 + $0xb80] sm:$0xff]  ;;  %v3505_v51 = vld [vmem:[#allocation2 + $0xb68] sm:$0xff] }
 0x765   :  { %3878 = vmatprep.mubr.bf16.mxu0 %v9111_v48  ;;  %4293 = vmatprep.mubr.bf16.mxu1 %v9111_v48 }
 0x767   :  { %3910 = vmatpush1.bf16.msra.mxu0 %v3485_v30  ;;  %4325 = vmatpush1.bf16.msra.mxu1 %v3487_v14  ;;  %v3507_v30 = vld [vmem:[#allocation2 + $0xb78] sm:$0xff] }
 0x768   :  { %3911 = vmatprep.subr.bf16.mxu0 %v3491_v26  ;;  %4326 = vmatprep.subr.bf16.mxu1 %v3493_v12  ;;  %v3511_v14 = vld [vmem:[#allocation2 + $0xb98] sm:$0xff]  ;;  %v3513_v26 = vld [vmem:[#allocation2 + $0xba8] sm:$0xff]  ;;  %v3510_v12 = vld [vmem:[#allocation2 + $0xb90] sm:$0xff] }
 0x76a   :  { %3879 = vmatmul.mubr.bf16.gmra.mrb[124].mxu0 %v9108_v25  ;;  %4294 = vmatmul.mubr.bf16.gmra.mrb[136].mxu1 %v9108_v25 }
 0x76b   :  { %3912 = vmatpush1.bf16.msra.mxu0 %v3490_v6  ;;  %4327 = vmatpush1.bf16.msra.mxu1 %v3492_v27  ;;  %v3512_v6 = vld [vmem:[#allocation2 + $0xba0] sm:$0xff] }
 0x76c   :  { %3913 = vmatprep.subr.bf16.mxu0 %v3496_v42  ;;  %4328 = vmatprep.subr.bf16.mxu1 %v3498_v53  ;;  %v3516_v27 = vld [vmem:[#allocation2 + $0xbc0] sm:$0xff]  ;;  %v3518_v42 = vld [vmem:[#allocation2 + $0xbd0] sm:$0xff]  ;;  %v3515_v53 = vld [vmem:[#allocation2 + $0xbb8] sm:$0xff] }
 0x76d   :  { %3888 = vmatprep.mubr.bf16.mxu0 %v9127_v38  ;;  %4303 = vmatprep.mubr.bf16.mxu1 %v9127_v38 }
 0x76f   :  { %3914 = vmatpush1.bf16.msra.mxu0 %v3495_v19  ;;  %4329 = vmatpush1.bf16.msra.mxu1 %v3497_v31  ;;  %v3517_v19 = vld [vmem:[#allocation2 + $0xbc8] sm:$0xff] }
 0x770   :  { %3915 = vmatprep.subr.bf16.mxu0 %v3501_v35  ;;  %4330 = vmatprep.subr.bf16.mxu1 %v3503_v4  ;;  %v3521_v31 = vld [vmem:[#allocation2 + $0xbe8] sm:$0xff]  ;;  %v3523_v35 = vld [vmem:[#allocation2 + $0xbf8] sm:$0xff]  ;;  %v3520_v4 = vld [vmem:[#allocation2 + $0xbe0] sm:$0xff] }
 0x772   :  { %3889 = vmatmul.mubr.bf16.gmra.mrb[128].mxu0 %v9124_v36  ;;  %4304 = vmatmul.mubr.bf16.gmra.mrb[140].mxu1 %v9124_v36 }
 0x773   :  { %3916 = vmatpush1.bf16.msra.mxu0 %v3500_v20  ;;  %4331 = vmatpush1.bf16.msra.mxu1 %v3502_v56  ;;  %v3522_v20 = vld [vmem:[#allocation2 + $0xbf0] sm:$0xff] }
 0x774   :  { %3917 = vmatprep.subr.bf16.mxu0 %v3506_v62  ;;  %4332 = vmatprep.subr.bf16.mxu1 %v3508_v9  ;;  %v3526_v56 = vld [vmem:[#allocation2 + $0xc10] sm:$0xff]  ;;  %v3528_v62 = vld [vmem:[#allocation2 + $0xc20] sm:$0xff]  ;;  %v3525_v9 = vld [vmem:[#allocation2 + $0xc08] sm:$0xff] }
 0x775   :  { %3931 = vmatprep.mubr.bf16.mxu0 %v9119_v49  ;;  %4346 = vmatprep.mubr.bf16.mxu1 %v9119_v49 }
 0x777   :  { %3918 = vmatpush1.bf16.msra.mxu0 %v3505_v51  ;;  %4333 = vmatpush1.bf16.msra.mxu1 %v3507_v30  ;;  %v3527_v51 = vld [vmem:[#allocation2 + $0xc18] sm:$0xff] }
 0x778   :  { %3919 = vmatprep.subr.bf16.mxu0 %v3511_v14  ;;  %4334 = vmatprep.subr.bf16.mxu1 %v3513_v26  ;;  %v3531_v30 = vld [vmem:[#allocation2 + $0xc38] sm:$0xff]  ;;  %v3533_v14 = vld [vmem:[#allocation2 + $0xc48] sm:$0xff]  ;;  %v3530_v26 = vld [vmem:[#allocation2 + $0xc30] sm:$0xff] }
 0x77b   :  { %3920 = vmatpush1.bf16.msra.mxu0 %v3510_v12  ;;  %4335 = vmatpush1.bf16.msra.mxu1 %v3512_v6  ;;  %v3532_v12 = vld [vmem:[#allocation2 + $0xc40] sm:$0xff] }
 0x77c   :  { %3921 = vmatprep.subr.bf16.mxu0 %v3516_v27  ;;  %4336 = vmatprep.subr.bf16.mxu1 %v3518_v42  ;;  %v3536_v6 = vld [vmem:[#allocation2 + $0xc60] sm:$0xff]  ;;  %v3538_v27 = vld [vmem:[#allocation2 + $0xc70] sm:$0xff]  ;;  %v3535_v42 = vld [vmem:[#allocation2 + $0xc58] sm:$0xff] }
 0x77f   :  { %3922 = vmatpush1.bf16.msra.mxu0 %v3515_v53  ;;  %4337 = vmatpush1.bf16.msra.mxu1 %v3517_v19  ;;  %v3537_v53 = vld [vmem:[#allocation2 + $0xc68] sm:$0xff]  ;;  %v3184_v19 = vld [vmem:[#allocation2 + $0x160] sm:$0xff] }
 0x780   :  { %3923 = vmatprep.subr.bf16.mxu0 %v3521_v31  ;;  %4338 = vmatprep.subr.bf16.mxu1 %v3523_v35  ;;  %v3264_v31 = vld [vmem:[#allocation2 + $0x3e0] sm:$0xff] }
 0x781   :  { %v3144_v35 = vld [vmem:[#allocation2 + $0x20] sm:$0xff] }
 0x783   :  { %3924 = vmatpush1.bf16.msra.mxu0 %v3520_v4  ;;  %4339 = vmatpush1.bf16.msra.mxu1 %v3522_v20  ;;  %v3189_v4 = vld [vmem:[#allocation2 + $0x188] sm:$0xff]  ;;  %v10074_v20 = vld [vmem:[#allocation59_spill] sm:$0xff] }
 0x784   :  { %3925 = vmatprep.subr.bf16.mxu0 %v3526_v56  ;;  %4340 = vmatprep.subr.bf16.mxu1 %v3528_v62  ;;  %v3224_v56 = vld [vmem:[#allocation2 + $0x2a0] sm:$0xff]  ;;  %v10075_v62 = vld [vmem:[#allocation61_spill] sm:$0xff] }
 0x787   :  { %3926 = vmatpush1.bf16.msra.mxu0 %v3525_v9  ;;  %4341 = vmatpush1.bf16.msra.mxu1 %v3527_v51  ;;  %v3269_v9 = vld [vmem:[#allocation2 + $0x408] sm:$0xff] }
 0x788   :  { %3927 = vmatprep.subr.bf16.mxu0 %v3531_v30  ;;  %4342 = vmatprep.subr.bf16.mxu1 %v3533_v14  ;;  %v3149_v51 = vld [vmem:[#allocation2 + $0x48] sm:$0xff]  ;;  %v3194_v30 = vld [vmem:[#allocation2 + $0x1b0] sm:$0xff] }
 0x789   :  { %v3229_v14 = vld [vmem:[#allocation2 + $0x2c8] sm:$0xff] }
 0x78b   :  { %3928 = vmatpush1.bf16.msra.mxu0 %v3530_v26  ;;  %4343 = vmatpush1.bf16.msra.mxu1 %v3532_v12  ;;  %v3154_v26 = vld [vmem:[#allocation2 + $0x70] sm:$0xff]  ;;  %v3199_v12 = vld [vmem:[#allocation2 + $0x1d8] sm:$0xff] }
 0x78c   :  { %3929 = vmatprep.subr.bf16.mxu0 %v3536_v6  ;;  %4344 = vmatprep.subr.bf16.mxu1 %v3538_v27  ;;  %v10076_v6 = vld [vmem:[#allocation50_spill] sm:$0xff] }
 0x78d   :  { %v3274_v27 = vld [vmem:[#allocation2 + $0x430] sm:$0xff] }
 0x78f   :  { %3930 = vmatpush1.bf16.msra.mxu0 %v3535_v42  ;;  %4345 = vmatpush1.bf16.msra.mxu1 %v3537_v53  ;;  %v3234_v42 = vld [vmem:[#allocation2 + $0x2f0] sm:$0xff]  ;;  %v3159_v53 = vld [vmem:[#allocation2 + $0x98] sm:$0xff] }
 0x790   :  { %6433 = vmatprep.subr.bf16.mxu0 %v3184_v19  ;;  %6479 = vmatprep.subr.bf16.mxu1 %v3264_v31  ;;  %v3279_v19 = vld [vmem:[#allocation2 + $0x458] sm:$0xff]  ;;  %v3204_v31 = vld [vmem:[#allocation2 + $0x200] sm:$0xff] }
 0x792   :  { %3932 = vmatmul.mubr.bf16.vlgmr.msra.gmra.mrb[112].mxu0 %v10074_v20  ;;  %4347 = vmatmul.mubr.bf16.vlgmr.msra.gmra.mrb[124].mxu1 %v10074_v20 }
 0x793   :  { %6434 = vmatpush3.bf16.msra.mxu0 %v3144_v35  ;;  %3941 = vmatprep.mubr.bf16.mxu0 %v10075_v62  ;;  %v3164_v35 = vld [vmem:[#allocation2 + $0xc0] sm:$0xff] }
 0x794   :  { %6435 = vmatprep.subr.bf16.mxu0 %v3189_v4  ;;  %4356 = vmatprep.mubr.bf16.mxu1 %v10075_v62  ;;  %v3239_v4 = vld [vmem:[#allocation2 + $0x318] sm:$0xff] }
 0x795   :  { %6480 = vmatpush3.bf16.msra.mxu1 %v3224_v56  ;;  %v3209_v56 = vld [vmem:[#allocation2 + $0x228] sm:$0xff] }
 0x796   :  { %6481 = vmatprep.subr.bf16.mxu1 %v3269_v9  ;;  %v3284_v9 = vld [vmem:[#allocation2 + $0x480] sm:$0xff] }
 0x797   :  { %6436 = vmatpush3.bf16.msra.mxu0 %v3149_v51  ;;  %v3169_v51 = vld [vmem:[#allocation2 + $0xe8] sm:$0xff] }
 0x798   :  { %6437 = vmatprep.subr.bf16.mxu0 %v3194_v30  ;;  %v3244_v30 = vld [vmem:[#allocation2 + $0x340] sm:$0xff] }
 0x799   :  { %6482 = vmatpush3.bf16.msra.mxu1 %v3229_v14  ;;  %v3214_v14 = vld [vmem:[#allocation2 + $0x250] sm:$0xff] }
 0x79a   :  { %3942 = vmatmul.mubr.bf16.gmra.mrb[116].mxu0 %v10076_v6  ;;  %4357 = vmatmul.mubr.bf16.gmra.mrb[128].mxu1 %v10076_v6 }
 0x79b   :  { %6438 = vmatpush3.bf16.msra.mxu0 %v3154_v26  ;;  %3951 = vmatprep.mubr.bf16.mxu0 %v9141_v13  ;;  %v3289_v26 = vld [vmem:[#allocation2 + $0x4a8] sm:$0xff] }
 0x79c   :  { %4366 = vmatprep.mubr.bf16.mxu1 %v9141_v13  ;;  %6439 = vmatprep.subr.bf16.mxu0 %v3199_v12  ;;  %v3174_v12 = vld [vmem:[#allocation2 + $0x110] sm:$0xff] }
 0x79d   :  { %6483 = vmatprep.subr.bf16.mxu1 %v3274_v27  ;;  %v3249_v27 = vld [vmem:[#allocation2 + $0x368] sm:$0xff] }
 0x79e   :  { %6484 = vmatpush3.bf16.msra.mxu1 %v3234_v42  ;;  %v3294_v42 = vld [vmem:[#allocation2 + $0x4d0] sm:$0xff] }
 0x79f   :  { %6440 = vmatpush3.bf16.msra.mxu0 %v3159_v53  ;;  %6485 = vmatprep.subr.bf16.mxu1 %v3279_v19  ;;  %v3219_v53 = vld [vmem:[#allocation2 + $0x278] sm:$0xff]  ;;  %v3254_v19 = vld [vmem:[#allocation2 + $0x390] sm:$0xff] }
 0x7a0   :  { %6441 = vmatprep.subr.bf16.mxu0 %v3204_v31  ;;  %v3179_v31 = vld [vmem:[#allocation2 + $0x138] sm:$0xff] }
 0x7a2   :  { %3952 = vmatmul.mubr.bf16.gmra.mrb[120].mxu0 %v9139_v2  ;;  %4367 = vmatmul.mubr.bf16.gmra.mrb[132].mxu1 %v9139_v2 }
 0x7a3   :  { %6442 = vmatpush3.bf16.msra.mxu0 %v3164_v35  ;;  %3961 = vmatprep.mubr.bf16.mxu0 %v9149_v58  ;;  %v3299_v35 = vld [vmem:[#allocation2 + $0x4f8] sm:$0xff] }
 0x7a4   :  { %4376 = vmatprep.mubr.bf16.mxu1 %v9149_v58  ;;  %6486 = vmatpush3.bf16.msra.mxu1 %v3239_v4  ;;  %v3344_v4 = vld [vmem:[#allocation2 + $0x660] sm:$0xff] }
 0x7a5   :  { %6443 = vmatprep.subr.bf16.mxu0 %v3209_v56  ;;  %6487 = vmatprep.subr.bf16.mxu1 %v3284_v9  ;;  %v3259_v56 = vld [vmem:[#allocation2 + $0x3b8] sm:$0xff]  ;;  %v3424_v9 = vld [vmem:[#allocation2 + $0x8e0] sm:$0xff] }
 0x7a7   :  { %6444 = vmatpush3.bf16.msra.mxu0 %v3169_v51  ;;  %v3304_v51 = vld [vmem:[#allocation2 + $0x520] sm:$0xff] }
 0x7a8   :  { %6488 = vmatpush3.bf16.msra.mxu1 %v3244_v30  ;;  %6445 = vmatprep.subr.bf16.mxu0 %v3214_v14  ;;  %v3349_v30 = vld [vmem:[#allocation2 + $0x688] sm:$0xff]  ;;  %v3384_v14 = vld [vmem:[#allocation2 + $0x7a0] sm:$0xff] }
 0x7a9   :  { %6489 = vmatprep.subr.bf16.mxu1 %v3289_v26  ;;  %v3429_v26 = vld [vmem:[#allocation2 + $0x908] sm:$0xff] }
 0x7aa   :  { %3962 = vmatmul.mubr.bf16.gmra.mrb[124].mxu0 %v9147_v54  ;;  %4377 = vmatmul.mubr.bf16.gmra.mrb[136].mxu1 %v9147_v54 }
 0x7ab   :  { %3971 = vmatprep.mubr.bf16.mxu0 %v9157_v28  ;;  %4386 = vmatprep.mubr.bf16.mxu1 %v9157_v28 }
 0x7ac   :  { %6446 = vmatpush3.bf16.msra.mxu0 %v3174_v12  ;;  %6490 = vmatpush3.bf16.msra.mxu1 %v3249_v27  ;;  %v3309_v12 = vld [vmem:[#allocation2 + $0x548] sm:$0xff]  ;;  %v3314_v27 = vld [vmem:[#allocation2 + $0x570] sm:$0xff] }
 0x7ad   :  { %6491 = vmatprep.subr.bf16.mxu1 %v3294_v42  ;;  %6447 = vmatprep.subr.bf16.mxu0 %v3219_v53  ;;  %v3359_v42 = vld [vmem:[#allocation2 + $0x6d8] sm:$0xff]  ;;  %v3364_v53 = vld [vmem:[#allocation2 + $0x700] sm:$0xff] }
 0x7b0   :  { %6492 = vmatpush3.bf16.msra.mxu1 %v3254_v19  ;;  %6448 = vmatpush3.bf16.msra.mxu0 %v3179_v31  ;;  %v3324_v19 = vld [vmem:[#allocation2 + $0x5c0] sm:$0xff] }
 0x7b1   :  { %6493 = vmatprep.subr.bf16.mxu1 %v3299_v35  ;;  %6525 = vmatprep.subr.bf16.mxu0 %v3344_v4  ;;  %v3404_v31 = vld [vmem:[#allocation2 + $0x840] sm:$0xff]  ;;  %v3374_v35 = vld [vmem:[#allocation2 + $0x750] sm:$0xff]  ;;  %v3449_v4 = vld [vmem:[#allocation2 + $0x9a8] sm:$0xff] }
 0x7b2   :  { %3972 = vmatmul.mubr.bf16.gmra.mrb[128].mxu0 %v9155_v63  ;;  %4387 = vmatmul.mubr.bf16.gmra.mrb[140].mxu1 %v9155_v63 }
 0x7b3   :  { %4429 = vmatprep.mubr.bf16.mxu0 %v8963_v33  ;;  %4502 = vmatprep.mubr.bf16.mxu1 %v8983_v57  ;;  %v3354_v33 = vld [vmem:[#allocation2 + $0x6b0] sm:$0xff]  ;;  %v3389_v57 = vld [vmem:[#allocation2 + $0x7c8] sm:$0xff] }
 0x7b4   :  { %6494 = vmatpush3.bf16.msra.mxu1 %v3259_v56  ;;  %v3379_v56 = vld [vmem:[#allocation2 + $0x778] sm:$0xff] }
 0x7b5   :  { %6571 = vmatprep.subr.bf16.mxu1 %v3424_v9  ;;  %v3414_v9 = vld [vmem:[#allocation2 + $0x890] sm:$0xff] }
 0x7ba   :  { %4430 = vmatmul.mubr.bf16.vlgmr.msra.gmra.mrb[132].mxu0 %v10073_v39  ;;  %4503 = vmatmul.mubr.bf16.vlgmr.msra.gmra.mrb[144].mxu1 %v8980_v43  ;;  %v3434_v43 = vld [vmem:[#allocation2 + $0x930] sm:$0xff]  ;;  %v3439_v39 = vld [vmem:[#allocation2 + $0x958] sm:$0xff] }
 0x7bb   :  { %6526 = vmatpush3.bf16.msra.mxu0 %v3304_v51  ;;  %4437 = vmatprep.mubr.bf16.mxu0 %v8975_v23  ;;  %v3394_v23 = vld [vmem:[#allocation2 + $0x7f0] sm:$0xff]  ;;  %v3504_v51 = vld [vmem:[#allocation2 + $0xb60] sm:$0xff] }
 0x7bc   :  { %6527 = vmatprep.subr.bf16.mxu0 %v3349_v30  ;;  %4510 = vmatprep.mubr.bf16.mxu1 %v8999_v17  ;;  %v3319_v17 = vld [vmem:[#allocation2 + $0x598] sm:$0xff] }
 0x7bd   :  { %6572 = vmatpush3.bf16.msra.mxu1 %v3384_v14  ;;  %v3459_v30 = vld [vmem:[#allocation2 + $0x9f8] sm:$0xff] }
 0x7be   :  { %6573 = vmatprep.subr.bf16.mxu1 %v3429_v26 }
 0x7bf   :  { %6528 = vmatpush3.bf16.msra.mxu0 %v3309_v12 }
 0x7c0   :  { %6529 = vmatprep.subr.bf16.mxu0 %v3354_v33 }
 0x7c1   :  { %6574 = vmatpush3.bf16.msra.mxu1 %v3389_v57 }
 0x7c2   :  { %4438 = vmatmul.mubr.bf16.gmra.mrb[136].mxu0 %v8973_v55  ;;  %4511 = vmatmul.mubr.bf16.gmra.mrb[148].mxu1 %v8996_v15  ;;  %v3399_v55 = vld [vmem:[#allocation2 + $0x818] sm:$0xff]  ;;  %v3369_v15 = vld [vmem:[#allocation2 + $0x728] sm:$0xff] }
 0x7c3   :  { %6530 = vmatpush3.bf16.msra.mxu0 %v3314_v27  ;;  %4445 = vmatprep.mubr.bf16.mxu0 %v8991_v32  ;;  %v3444_v32 = vld [vmem:[#allocation2 + $0x980] sm:$0xff] }
 0x7c4   :  { %6531 = vmatprep.subr.bf16.mxu0 %v3359_v42  ;;  %4518 = vmatprep.mubr.bf16.mxu1 %v9015_v47  ;;  %v3329_v47 = vld [vmem:[#allocation2 + $0x5e8] sm:$0xff] }
 0x7c5   :  { %6575 = vmatprep.subr.bf16.mxu1 %v3434_v43 }
 0x7c6   :  { %6576 = vmatpush3.bf16.msra.mxu1 %v3394_v23 }
 0x7c7   :  { %6532 = vmatpush3.bf16.msra.mxu0 %v3319_v17  ;;  %6577 = vmatprep.subr.bf16.mxu1 %v3439_v39 }
 0x7c8   :  { %6533 = vmatprep.subr.bf16.mxu0 %v3364_v53 }
 0x7ca   :  { %4446 = vmatmul.mubr.bf16.gmra.mrb[140].mxu0 %v8989_v34  ;;  %4519 = vmatmul.mubr.bf16.gmra.mrb[152].mxu1 %v9012_v37  ;;  %v3334_v34 = vld [vmem:[#allocation2 + $0x610] sm:$0xff]  ;;  %v3409_v37 = vld [vmem:[#allocation2 + $0x868] sm:$0xff] }
 0x7cb   :  { %6534 = vmatpush3.bf16.msra.mxu0 %v3324_v19  ;;  %4453 = vmatprep.mubr.bf16.mxu0 %v9007_v60  ;;  %v3454_v60 = vld [vmem:[#allocation2 + $0x9d0] sm:$0xff] }
 0x7cc   :  { %6578 = vmatpush3.bf16.msra.mxu1 %v3399_v55  ;;  %4526 = vmatprep.mubr.bf16.mxu1 %v9031_v50  ;;  %v3339_v50 = vld [vmem:[#allocation2 + $0x638] sm:$0xff] }
 0x7cd   :  { %6535 = vmatprep.subr.bf16.mxu0 %v3369_v15  ;;  %6579 = vmatprep.subr.bf16.mxu1 %v3444_v32 }
 0x7cf   :  { %6536 = vmatpush3.bf16.msra.mxu0 %v3329_v47 }
 0x7d0   :  { %6580 = vmatpush3.bf16.msra.mxu1 %v3404_v31  ;;  %6537 = vmatprep.subr.bf16.mxu0 %v3374_v35 }
 0x7d1   :  { %6581 = vmatprep.subr.bf16.mxu1 %v3449_v4 }
 0x7d2   :  { %4454 = vmatmul.mubr.bf16.gmra.mrb[144].mxu0 %v9005_v1  ;;  %4527 = vmatmul.mubr.bf16.gmra.mrb[156].mxu1 %v9028_v45  ;;  %v3419_v1 = vld [vmem:[#allocation2 + $0x8b8] sm:$0xff]  ;;  %v3509_v45 = vld [vmem:[#allocation2 + $0xb88] sm:$0xff] }
 0x7d3   :  { %4461 = vmatprep.mubr.bf16.mxu0 %v9023_v40  ;;  %6538 = vmatpush3.bf16.msra.mxu0 %v3334_v34  ;;  %v3464_v40 = vld [vmem:[#allocation2 + $0xa20] sm:$0xff] }
 0x7d4   :  { %6582 = vmatpush3.bf16.msra.mxu1 %v3409_v37  ;;  %4534 = vmatprep.mubr.bf16.mxu1 %v9047_v7  ;;  %v3469_v7 = vld [vmem:[#allocation2 + $0xa48] sm:$0xff] }
 0x7d5   :  { %6583 = vmatprep.subr.bf16.mxu1 %v3454_v60  ;;  %6539 = vmatprep.subr.bf16.mxu0 %v3379_v56 }
 0x7d7   :  { %6540 = vmatpush3.bf16.msra.mxu0 %v3339_v50 }
 0x7d8   :  { %6584 = vmatpush3.bf16.msra.mxu1 %v3414_v9  ;;  %6617 = vmatprep.subr.bf16.mxu0 %v3504_v51 }
 0x7d9   :  { %6585 = vmatprep.subr.bf16.mxu1 %v3459_v30 }
 0x7da   :  { %4462 = vmatmul.mubr.bf16.gmra.mrb[148].mxu0 %v9021_v16  ;;  %4535 = vmatmul.mubr.bf16.gmra.mrb[160].mxu1 %v9044_v59  ;;  %v3514_v16 = vld [vmem:[#allocation2 + $0xbb0] sm:$0xff]  ;;  %v3519_v59 = vld [vmem:[#allocation2 + $0xbd8] sm:$0xff] }
 0x7db   :  { %4575 = vmatprep.mubr.bf16.mxu0 %v9039_v29  ;;  %4648 = vmatprep.mubr.bf16.mxu1 %v9063_v22  ;;  %v3474_v29 = vld [vmem:[#allocation2 + $0xa70] sm:$0xff]  ;;  %v3529_v22 = vld [vmem:[#allocation2 + $0xc28] sm:$0xff] }
 0x7dc   :  { %6586 = vmatpush3.bf16.msra.mxu1 %v3419_v1 }
 0x7e2   :  { %4576 = vmatmul.mubr.bf16.vlgmr.msra.gmra.mrb[152].mxu0 %v9037_v0  ;;  %4649 = vmatmul.mubr.bf16.vlgmr.msra.gmra.mrb[164].mxu1 %v9060_v18  ;;  %v3479_v0 = vld [vmem:[#allocation2 + $0xa98] sm:$0xff]  ;;  %v3484_v18 = vld [vmem:[#allocation2 + $0xac0] sm:$0xff] }
 0x7e3   :  { %6618 = vmatpush3.bf16.msra.mxu0 %v3464_v40  ;;  %4583 = vmatprep.mubr.bf16.mxu0 %v9055_v61  ;;  %v3524_v61 = vld [vmem:[#allocation2 + $0xc00] sm:$0xff] }
 0x7e4   :  { %6619 = vmatprep.subr.bf16.mxu0 %v3509_v45  ;;  %4656 = vmatprep.mubr.bf16.mxu1 %v9079_v41  ;;  %v3539_v41 = vld [vmem:[#allocation2 + $0xc78] sm:$0xff] }
 0x7e7   :  { %6620 = vmatpush3.bf16.msra.mxu0 %v3469_v7 }
 0x7e8   :  { %6621 = vmatprep.subr.bf16.mxu0 %v3514_v16 }
 0x7ea   :  { %4584 = vmatmul.mubr.bf16.gmra.mrb[156].mxu0 %v9053_v10  ;;  %4657 = vmatmul.mubr.bf16.gmra.mrb[168].mxu1 %v9076_v11  ;;  %v3489_v10 = vld [vmem:[#allocation2 + $0xae8] sm:$0xff]  ;;  %v3494_v11 = vld [vmem:[#allocation2 + $0xb10] sm:$0xff] }
 0x7eb   :  { %6622 = vmatpush3.bf16.msra.mxu0 %v3474_v29  ;;  %4591 = vmatprep.mubr.bf16.mxu0 %v9071_v52  ;;  %v3534_v52 = vld [vmem:[#allocation2 + $0xc50] sm:$0xff] }
 0x7ec   :  { %6623 = vmatprep.subr.bf16.mxu0 %v3519_v59  ;;  %4664 = vmatprep.mubr.bf16.mxu1 %v9095_v5  ;;  %v10078_v5 = vld [vmem:[#allocation49_spill] sm:$0xff] }
 0x7ef   :  { %6624 = vmatpush3.bf16.msra.mxu0 %v3479_v0 }
 0x7f0   :  { %6625 = vmatprep.subr.bf16.mxu0 %v3524_v61 }
 0x7f2   :  { %4592 = vmatmul.mubr.bf16.gmra.mrb[160].mxu0 %v9069_v3  ;;  %4665 = vmatmul.mubr.bf16.gmra.mrb[172].mxu1 %v9092_v8  ;;  %v3499_v3 = vld [vmem:[#allocation2 + $0xb38] sm:$0xff] }
 0x7f3   :  { %6626 = vmatpush3.bf16.msra.mxu0 %v3484_v18  ;;  %4599 = vmatprep.mubr.bf16.mxu0 %v9087_v24  ;;  %v10077_v24 = vld [vmem:[#allocation47_spill] sm:$0xff] }
 0x7f4   :  { %4672 = vmatprep.mubr.bf16.mxu1 %v9111_v48  ;;  %6627 = vmatprep.subr.bf16.mxu0 %v3529_v22  ;;  %v10080_v48 = vld [vmem:[#allocation46_spill] sm:$0xff] }
 0x7f7   :  { %6628 = vmatpush3.bf16.msra.mxu0 %v3489_v10 }
 0x7f8   :  { %6629 = vmatprep.subr.bf16.mxu0 %v3534_v52 }
 0x7fa   :  { %4600 = vmatmul.mubr.bf16.gmra.mrb[164].mxu0 %v9085_v44  ;;  %4673 = vmatmul.mubr.bf16.gmra.mrb[176].mxu1 %v9108_v25  ;;  %v9309_v44 = vld [vmem:[#allocation18] sm:$0x1f] }
 0x7fb   :  { %4607 = vmatprep.mubr.bf16.mxu0 %v9103_v46  ;;  %6630 = vmatpush3.bf16.msra.mxu0 %v3494_v11  ;;  %v9313_v8 = vrot.slane %v9309_v44, %v10077_v24  ;;  %v10079_v46 = vld [vmem:[#allocation48_spill] sm:$0xff] }
 0x7fc   :  { %4680 = vmatprep.mubr.bf16.mxu1 %v9127_v38  ;;  %6631 = vmatprep.subr.bf16.mxu0 %v3539_v41  ;;  %v9321_v25 = vrot.slane %v9309_v44, %v10079_v46 }
 0x7ff   :  { %6632 = vmatpush3.bf16.msra.mxu0 %v3499_v3 }
 0x802   :  { %4608 = vmatmul.mubr.bf16.gmra.mrb[168].mxu0 %v9101_v21  ;;  %4681 = vmatmul.mubr.bf16.gmra.mrb[180].mxu1 %v9124_v36  ;;  %v9317_v21 = vrot.slane %v9309_v44, %v10078_v5 }
 0x803   :  { %4721 = vmatprep.mubr.bf16.mxu0 %v9119_v49  ;;  %v10081_v49 = vsub.s32 3, %v10080_v48 }
 0x805   :  { %v9326_v36 = vrot.slane %v9309_v44, %v10081_v49 }
 0x80a   :  { %4722 = vmatmul.mubr.bf16.vlgmr.msra.gmra.mrb[172].mxu0 %v10074_v20 }
 0x80b   :  { %4729 = vmatprep.mubr.bf16.mxu0 %v10075_v62 }
 0x812   :  { %4730 = vmatmul.mubr.bf16.gmra.mrb[176].mxu0 %v10076_v6 }
 0x813   :  { %4737 = vmatprep.mubr.bf16.mxu0 %v9141_v13 }
 0x81a   :  { %4738 = vmatmul.mubr.bf16.gmra.mrb[180].mxu0 %v9139_v2 }
 0x81b   :  { %4745 = vmatprep.mubr.bf16.mxu0 %v9149_v58 }
 0x822   :  { %4746 = vmatmul.mubr.bf16.gmra.mrb[184].mxu0 %v9147_v54 }
 0x823   :  { %4753 = vmatprep.mubr.bf16.mxu0 %v9157_v28 }
 0x82a   :  { %4754 = vmatmul.mubr.bf16.gmra.mrb[188].mxu0 %v9155_v63 }
 0x865   :  { %v3933_v38 = vpop.f32.mrb[112].mxu0  ;;  %v4348_v2 = vpop.f32.mrb[124].mxu1 }
 0x866   :  { %v7159_v13 = vadd.f32 %v3933_v38, %v9313_v8  ;;  %v7179_v54 = vadd.f32 %v4348_v2, %v9317_v21  ;;  %v3935_v58 = vpop.f32.mrb[113].mxu0  ;;  %v4350_v63 = vpop.f32.mrb[125].mxu1 }
 0x867   :  { %v7160_v28 = vadd.f32 %v3935_v58, %v9321_v25  ;;  %v7180_v20 = vadd.f32 %v4350_v63, %v9326_v36  ;;  %v3937_v62 = vpop.f32.mrb[114].mxu0  ;;  %v4352_v6 = vpop.f32.mrb[126].mxu1 }
 0x868   :  { %vm4762_vm3 = vcmp.gt.f32.partialorder %v7159_v13, 0.0  ;;  %v4812_v14 = vmul.f32 0.01, %v7159_v13  ;;  %vm4764_vm4 = vcmp.gt.f32.partialorder %v7179_v54, 0.0  ;;  %v4814_v26 = vmul.f32 0.01, %v7179_v54 }
 0x869   :  { %vm4763_vm5 = vcmp.gt.f32.partialorder %v7160_v28, 0.0  ;;  %v4813_v12 = vmul.f32 0.01, %v7160_v28  ;;  %vm4765_vm6 = vcmp.gt.f32.partialorder %v7180_v20, 0.0  ;;  %v4815_v33 = vmul.f32 0.01, %v7180_v20 }
 0x86a   :  { %v9332_v57 = vsel %vm4762_vm3, %v7159_v13, %v4812_v14  ;;  %v9334_v27 = vsel %vm4764_vm4, %v7179_v54, %v4814_v26  ;;  %v7161_v42 = vadd.f32 %v3937_v62, %v9313_v8  ;;  %v7181_v43 = vadd.f32 %v4352_v6, %v9317_v21  ;;  %v3939_v23 = vpop.f32.mrb[115].mxu0  ;;  %v4354_v17 = vpop.f32.mrb[127].mxu1 }
 0x86b   :  { %v9338_v39 = vsel %vm4763_vm5, %v7160_v28, %v4813_v12  ;;  %v9340_v53 = vsel %vm4765_vm6, %v7180_v20, %v4815_v33  ;;  %v7162_v19 = vadd.f32 %v3939_v23, %v9321_v25  ;;  %v7182_v55 = vadd.f32 %v4354_v17, %v9326_v36 }
 0x86c   :  { %vm4767_vm7 = vcmp.gt.f32.partialorder %v7161_v42, 0.0  ;;  %v4817_v15 = vmul.f32 0.01, %v7161_v42  ;;  %vm4769_vm8 = vcmp.gt.f32.partialorder %v7181_v43, 0.0  ;;  %v4819_v32 = vmul.f32 0.01, %v7181_v43 }
 0x86d   :  { %vm4768_vm9 = vcmp.gt.f32.partialorder %v7162_v19, 0.0  ;;  %v4818_v47 = vmul.f32 0.01, %v7162_v19  ;;  %vm4770_vm10 = vcmp.gt.f32.partialorder %v7182_v55, 0.0  ;;  %v4820_v31 = vmul.f32 0.01, %v7182_v55 }
 0x86e   :  { %v9344_v35 = vsel %vm4767_vm7, %v7161_v42, %v4817_v15  ;;  %v9346_v4 = vsel %vm4769_vm8, %v7181_v43, %v4819_v32  ;;  %v3943_v34 = vpop.f32.mrb[116].mxu0  ;;  %v4358_v37 = vpop.f32.mrb[128].mxu1 }
 0x86f   :  { %v9348_v60 = vsel %vm4768_vm9, %v7162_v19, %v4818_v47  ;;  %v9350_v56 = vsel %vm4770_vm10, %v7182_v55, %v4820_v31  ;;  %v7163_v50 = vadd.f32 %v3943_v34, %v9313_v8  ;;  %v7183_v9 = vadd.f32 %v4358_v37, %v9317_v21  ;;  %v3945_v51 = vpop.f32.mrb[117].mxu0  ;;  %v4360_v30 = vpop.f32.mrb[129].mxu1 }
 0x870   :  { %v7164_v1 = vadd.f32 %v3945_v51, %v9321_v25  ;;  %v7184_v40 = vadd.f32 %v4360_v30, %v9326_v36  ;;  %v3947_v45 = vpop.f32.mrb[118].mxu0  ;;  %v4362_v7 = vpop.f32.mrb[130].mxu1  ;;  %v10082_v55 = vsub.s32 4, %v10080_v48 }
 0x871   :  { %vm4772_vm11 = vcmp.gt.f32.partialorder %v7163_v50, 0.0  ;;  %v4822_v16 = vmul.f32 0.01, %v7163_v50  ;;  %vm4774_vm12 = vcmp.gt.f32.partialorder %v7183_v9, 0.0  ;;  %v4824_v29 = vmul.f32 0.01, %v7183_v9 }
 0x872   :  { %vm4773_vm13 = vcmp.gt.f32.partialorder %v7164_v1, 0.0  ;;  %v4823_v59 = vmul.f32 0.01, %v7164_v1  ;;  %vm4775_vm14 = vcmp.gt.f32.partialorder %v7184_v40, 0.0  ;;  %v4825_v0 = vmul.f32 0.01, %v7184_v40 }
 0x873   :  { %v9356_v61 = vsel %vm4772_vm11, %v7163_v50, %v4822_v16  ;;  %v9358_v18 = vsel %vm4774_vm12, %v7183_v9, %v4824_v29  ;;  %v7165_v22 = vadd.f32 %v3947_v45, %v9313_v8  ;;  %v7185_v10 = vadd.f32 %v4362_v7, %v9317_v21  ;;  %v3949_v52 = vpop.f32.mrb[119].mxu0  ;;  %v4364_v11 = vpop.f32.mrb[131].mxu1 }
 0x874   :  { %v9362_v41 = vsel %vm4773_vm13, %v7164_v1, %v4823_v59  ;;  %v9364_v3 = vsel %vm4775_vm14, %v7184_v40, %v4825_v0  ;;  %v7166_v49 = vadd.f32 %v3949_v52, %v9321_v25  ;;  %v7186_v38 = vadd.f32 %v4364_v11, %v9326_v36 }
 0x875   :  { %vm4777_vm15 = vcmp.gt.f32.partialorder %v7165_v22, 0.0  ;;  %v4827_v2 = vmul.f32 0.01, %v7165_v22  ;;  %vm4779_vm0 = vcmp.gt.f32.partialorder %v7185_v10, 0.0  ;;  %v4829_v13 = vmul.f32 0.01, %v7185_v10 }
 0x876   :  { %vm4778_vm1 = vcmp.gt.f32.partialorder %v7166_v49, 0.0  ;;  %v4828_v54 = vmul.f32 0.01, %v7166_v49  ;;  %vm4780_vm2 = vcmp.gt.f32.partialorder %v7186_v38, 0.0  ;;  %v4830_v58 = vmul.f32 0.01, %v7186_v38 }
 0x877   :  { %v9368_v63 = vsel %vm4777_vm15, %v7165_v22, %v4827_v2  ;;  %v9370_v28 = vsel %vm4779_vm0, %v7185_v10, %v4829_v13  ;;  %v3953_v20 = vpop.f32.mrb[120].mxu0  ;;  %v4368_v62 = vpop.f32.mrb[132].mxu1  ;;  %v9383_v15 = vrot.slane %v9309_v44, %v10082_v55 }
 0x878   :  { %v9372_v6 = vsel %vm4778_vm1, %v7166_v49, %v4828_v54  ;;  %v9374_v14 = vsel %vm4780_vm2, %v7186_v38, %v4830_v58  ;;  %v7167_v26 = vadd.f32 %v3953_v20, %v9313_v8  ;;  %v7187_v12 = vadd.f32 %v4368_v62, %v9317_v21  ;;  %v3955_v33 = vpop.f32.mrb[121].mxu0  ;;  %v4370_v42 = vpop.f32.mrb[133].mxu1 }
 0x879   :  { %v7168_v43 = vadd.f32 %v3955_v33, %v9321_v25  ;;  %v7188_v23 = vadd.f32 %v4370_v42, %v9326_v36  ;;  %v3957_v17 = vpop.f32.mrb[122].mxu0  ;;  %v4372_v19 = vpop.f32.mrb[134].mxu1 }
 0x87a   :  { %vm4782_vm3 = vcmp.gt.f32.partialorder %v7167_v26, 0.0  ;;  %v4832_v32 = vmul.f32 0.01, %v7167_v26  ;;  %vm4784_vm4 = vcmp.gt.f32.partialorder %v7187_v12, 0.0  ;;  %v4834_v47 = vmul.f32 0.01, %v7187_v12 }
 0x87b   :  { %vm4783_vm5 = vcmp.gt.f32.partialorder %v7168_v43, 0.0  ;;  %v4833_v31 = vmul.f32 0.01, %v7168_v43  ;;  %vm4785_vm6 = vcmp.gt.f32.partialorder %v7188_v23, 0.0  ;;  %v4835_v34 = vmul.f32 0.01, %v7188_v23 }
 0x87c   :  { %v9385_v37 = vsel %vm4782_vm3, %v7167_v26, %v4832_v32  ;;  %v9387_v50 = vsel %vm4784_vm4, %v7187_v12, %v4834_v47  ;;  %v7169_v9 = vadd.f32 %v3957_v17, %v9313_v8  ;;  %v7189_v51 = vadd.f32 %v4372_v19, %v9317_v21  ;;  %v3959_v48 = vpop.f32.mrb[123].mxu0  ;;  %v4374_v30 = vpop.f32.mrb[135].mxu1 }
 0x87d   :  { %v9391_v44 = vsel %vm4783_vm5, %v7168_v43, %v4833_v31  ;;  %v9393_v1 = vsel %vm4785_vm6, %v7188_v23, %v4835_v34  ;;  %v7170_v40 = vadd.f32 %v3959_v48, %v9321_v25  ;;  %v7190_v45 = vadd.f32 %v4374_v30, %v9326_v36  ;;  %v3963_v7 = vpop.f32.mrb[124].mxu0  ;;  %v4378_v16 = vpop.f32.mrb[136].mxu1 }
 0x87e   :  { %vm4787_vm7 = vcmp.gt.f32.partialorder %v7169_v9, 0.0  ;;  %v4837_v29 = vmul.f32 0.01, %v7169_v9  ;;  %vm4789_vm8 = vcmp.gt.f32.partialorder %v7189_v51, 0.0  ;;  %v4839_v59 = vmul.f32 0.01, %v7189_v51 }
 0x87f   :  { %vm4788_vm9 = vcmp.gt.f32.partialorder %v7170_v40, 0.0  ;;  %v4838_v0 = vmul.f32 0.01, %v7170_v40  ;;  %vm4790_vm10 = vcmp.gt.f32.partialorder %v7190_v45, 0.0  ;;  %v4840_v22 = vmul.f32 0.01, %v7190_v45 }
 0x880   :  { %v9397_v10 = vsel %vm4787_vm7, %v7169_v9, %v4837_v29  ;;  %v9399_v52 = vsel %vm4789_vm8, %v7189_v51, %v4839_v59  ;;  %v7171_v11 = vadd.f32 %v3963_v7, %v9313_v8  ;;  %v7191_v49 = vadd.f32 %v4378_v16, %v9317_v21  ;;  %v3965_v38 = vpop.f32.mrb[125].mxu0  ;;  %v4380_v2 = vpop.f32.mrb[137].mxu1 }
 0x881   :  { %v9403_v13 = vsel %vm4788_vm9, %v7170_v40, %v4838_v0  ;;  %v9405_v54 = vsel %vm4790_vm10, %v7190_v45, %v4840_v22  ;;  %v7172_v58 = vadd.f32 %v3965_v38, %v9321_v25  ;;  %v7192_v20 = vadd.f32 %v4380_v2, %v9326_v36  ;;  %v3967_v62 = vpop.f32.mrb[126].mxu0  ;;  %v4382_v26 = vpop.f32.mrb[138].mxu1 }
 0x882   :  { %vm4792_vm11 = vcmp.gt.f32.partialorder %v7171_v11, 0.0  ;;  %v4842_v12 = vmul.f32 0.01, %v7171_v11  ;;  %vm4794_vm12 = vcmp.gt.f32.partialorder %v7191_v49, 0.0  ;;  %v4844_v33 = vmul.f32 0.01, %v7191_v49 }
 0x883   :  { %vm4793_vm13 = vcmp.gt.f32.partialorder %v7172_v58, 0.0  ;;  %v4843_v42 = vmul.f32 0.01, %v7172_v58  ;;  %vm4795_vm14 = vcmp.gt.f32.partialorder %v7192_v20, 0.0  ;;  %v4845_v43 = vmul.f32 0.01, %v7192_v20 }
 0x884   :  { %v9409_v23 = vsel %vm4792_vm11, %v7171_v11, %v4842_v12  ;;  %v9411_v17 = vsel %vm4794_vm12, %v7191_v49, %v4844_v33  ;;  %v7173_v19 = vadd.f32 %v3967_v62, %v9313_v8  ;;  %v7193_v55 = vadd.f32 %v4382_v26, %v9317_v21  ;;  %v3969_v32 = vpop.f32.mrb[127].mxu0  ;;  %v4384_v47 = vpop.f32.mrb[139].mxu1 }
 0x885   :  { %10083 = vst [vmem:[#allocation51_spill] sm:$0xff] %v9411_v17  ;;  %v9415_v31 = vsel %vm4793_vm13, %v7172_v58, %v4843_v42  ;;  %v9417_v34 = vsel %vm4795_vm14, %v7192_v20, %v4845_v43  ;;  %v7174_v9 = vadd.f32 %v3969_v32, %v9321_v25  ;;  %v7194_v51 = vadd.f32 %v4384_v47, %v9326_v36  ;;  %v3973_v48 = vpop.f32.mrb[128].mxu0  ;;  %v4388_v30 = vpop.f32.mrb[140].mxu1 }
 0x886   :  { %10084 = vst [vmem:[#allocation63_spill] sm:$0xff] %v9417_v34  ;;  %vm4797_vm15 = vcmp.gt.f32.partialorder %v7173_v19, 0.0  ;;  %v4847_v40 = vmul.f32 0.01, %v7173_v19  ;;  %vm4799_vm0 = vcmp.gt.f32.partialorder %v7193_v55, 0.0  ;;  %v7175_v0 = vadd.f32 %v3973_v48, %v9313_v8  ;;  %v3975_v11 = vpop.f32.mrb[129].mxu0 }
 0x887   :  { %v4849_v45 = vmul.f32 0.01, %v7193_v55  ;;  %vm4798_vm1 = vcmp.gt.f32.partialorder %v7174_v9, 0.0  ;;  %v4848_v7 = vmul.f32 0.01, %v7174_v9  ;;  %vm4800_vm2 = vcmp.gt.f32.partialorder %v7194_v51, 0.0 }
 0x888   :  { %v4850_v16 = vmul.f32 0.01, %v7194_v51  ;;  %v9421_v29 = vsel %vm4797_vm15, %v7173_v19, %v4847_v40  ;;  %v7195_v22 = vadd.f32 %v4388_v30, %v9317_v21  ;;  %v4390_v49 = vpop.f32.mrb[141].mxu1  ;;  %v7176_v58 = vadd.f32 %v3975_v11, %v9321_v25  ;;  %v3977_v62 = vpop.f32.mrb[130].mxu0 }
 0x889   :  { %v9423_v59 = vsel %vm4799_vm0, %v7193_v55, %v4849_v45  ;;  %v9427_v38 = vsel %vm4798_vm1, %v7174_v9, %v4848_v7  ;;  %v7196_v20 = vadd.f32 %v4390_v49, %v9326_v36  ;;  %v4392_v26 = vpop.f32.mrb[142].mxu1  ;;  %vm4802_vm3 = vcmp.gt.f32.partialorder %v7175_v0, 0.0  ;;  %v3979_v9 = vpop.f32.mrb[131].mxu0 }
 0x88a   :  { %10085 = vst [vmem:[#allocation52_spill] sm:$0xff] %v9423_v59  ;;  %v9429_v2 = vsel %vm4800_vm2, %v7194_v51, %v4850_v16  ;;  %v4852_v12 = vmul.f32 0.01, %v7175_v0  ;;  %vm4804_vm4 = vcmp.gt.f32.partialorder %v7195_v22, 0.0  ;;  %v4854_v33 = vmul.f32 0.01, %v7195_v22 }
 0x88b   :  { %10086 = vst [vmem:[#allocation65_spill] sm:$0xff] %v9429_v2  ;;  %vm4803_vm5 = vcmp.gt.f32.partialorder %v7176_v58, 0.0  ;;  %v4853_v42 = vmul.f32 0.01, %v7176_v58  ;;  %vm4805_vm6 = vcmp.gt.f32.partialorder %v7196_v20, 0.0  ;;  %v7177_v32 = vadd.f32 %v3977_v62, %v9313_v8  ;;  %v4394_v51 = vpop.f32.mrb[143].mxu1 }
 0x88c   :  { %v4855_v43 = vmul.f32 0.01, %v7196_v20  ;;  %v9433_v19 = vsel %vm4802_vm3, %v7175_v0, %v4852_v12  ;;  %v9435_v55 = vsel %vm4804_vm4, %v7195_v22, %v4854_v33  ;;  %v7197_v47 = vadd.f32 %v4392_v26, %v9317_v21 }
 0x88d   :  { %10087 = vst [vmem:[#allocation53_spill] sm:$0xff] %v9435_v55  ;;  %v9439_v48 = vsel %vm4803_vm5, %v7176_v58, %v4853_v42  ;;  %v7178_v40 = vadd.f32 %v3979_v9, %v9321_v25  ;;  %v7198_v45 = vadd.f32 %v4394_v51, %v9326_v36  ;;  %v6449_v7 = vpop.f32.mrb[132].mxu0  ;;  %v6495_v16 = vpop.f32.mrb[144].mxu1  ;;  %vm4807_vm7 = vcmp.gt.f32.partialorder %v7177_v32, 0.0 }
 0x88e   :  { %v9441_v30 = vsel %vm4805_vm6, %v7196_v20, %v4855_v43  ;;  %v4857_v0 = vmul.f32 0.01, %v7177_v32  ;;  %vm4809_vm8 = vcmp.gt.f32.partialorder %v7197_v47, 0.0  ;;  %v4859_v22 = vmul.f32 0.01, %v7197_v47  ;;  %v6450_v58 = vpop.f32.mrb[133].mxu0 }
 0x88f   :  { %10088 = vst [vmem:[#allocation67_spill] sm:$0xff] %v9441_v30  ;;  %vm4808_vm9 = vcmp.gt.f32.partialorder %v7178_v40, 0.0  ;;  %v4858_v8 = vmul.f32 0.01, %v7178_v40  ;;  %vm4810_vm10 = vcmp.gt.f32.partialorder %v7198_v45, 0.0  ;;  %v6496_v20 = vpop.f32.mrb[145].mxu1  ;;  %v6451_v36 = vadd.f32 %v6450_v58, %v6449_v7 }
 0x890   :  { %v4860_v21 = vmul.f32 0.01, %v7198_v45  ;;  %v9445_v11 = vsel %vm4807_vm7, %v7177_v32, %v4857_v0  ;;  %v9447_v49 = vsel %vm4809_vm8, %v7197_v47, %v4859_v22  ;;  %v6452_v26 = vpop.f32.mrb[134].mxu0  ;;  %v6497_v12 = vadd.f32 %v6496_v20, %v6495_v16  ;;  %v6498_v33 = vpop.f32.mrb[146].mxu1 }
 0x891   :  { %10089 = vst [vmem:[#allocation54_spill] sm:$0xff] %v9447_v49  ;;  %v9449_v62 = vsel %vm4808_vm9, %v7178_v40, %v4858_v8  ;;  %v6453_v42 = vpop.f32.mrb[135].mxu0  ;;  %v6499_v43 = vpop.f32.mrb[147].mxu1  ;;  %v4432_v9 = vadd.f32 %v6451_v36, %v9383_v15 }
 0x892   :  { %v9451_v25 = vsel %vm4810_vm10, %v7198_v45, %v4860_v21  ;;  %v6454_v51 = vadd.f32 %v6453_v42, %v6452_v26  ;;  %v6500_v46 = vadd.f32 %v6499_v43, %v6498_v33 }
 0x893   :  { %10090 = vst [vmem:[#allocation69_spill] sm:$0xff] %v9451_v25  ;;  %v9455_v47 = vadd.f32 %v6497_v12, %v4432_v9 }
 0x894   :  { %v4435_v32 = vadd.f32 %v6454_v51, %v9383_v15 }
 0x895   :  { %v6455_v0 = vpop.f32.mrb[136].mxu0  ;;  %v6501_v22 = vpop.f32.mrb[148].mxu1 }
 0x896   :  { %v6456_v40 = vpop.f32.mrb[137].mxu0  ;;  %v6502_v8 = vpop.f32.mrb[149].mxu1  ;;  %v9457_v45 = vadd.f32 %v6500_v46, %v4435_v32 }
 0x897   :  { %v6457_v7 = vadd.f32 %v6456_v40, %v6455_v0  ;;  %v6458_v21 = vpop.f32.mrb[138].mxu0  ;;  %v6503_v16 = vadd.f32 %v6502_v8, %v6501_v22  ;;  %v6504_v58 = vpop.f32.mrb[150].mxu1 }
 0x898   :  { %v6459_v20 = vpop.f32.mrb[139].mxu0  ;;  %v6505_v24 = vpop.f32.mrb[151].mxu1 }
 0x899   :  { %v4440_v36 = vadd.f32 %v6457_v7, %v9383_v15  ;;  %v6460_v26 = vadd.f32 %v6459_v20, %v6458_v21  ;;  %v6506_v33 = vadd.f32 %v6505_v24, %v6504_v58 }
 0x89b   :  { %v4443_v42 = vadd.f32 %v6460_v26, %v9383_v15  ;;  %v9461_v12 = vadd.f32 %v6503_v16, %v4440_v36 }
 0x89d   :  { %v9463_v43 = vadd.f32 %v6506_v33, %v4443_v42  ;;  %v6461_v9 = vpop.f32.mrb[140].mxu0  ;;  %v6507_v51 = vpop.f32.mrb[152].mxu1 }
 0x89e   :  { %v6462_v46 = vpop.f32.mrb[141].mxu0  ;;  %v6508_v32 = vpop.f32.mrb[153].mxu1 }
 0x89f   :  { %v6463_v0 = vadd.f32 %v6462_v46, %v6461_v9  ;;  %v6464_v40 = vpop.f32.mrb[142].mxu0  ;;  %v6509_v22 = vadd.f32 %v6508_v32, %v6507_v51  ;;  %v6510_v8 = vpop.f32.mrb[154].mxu1 }
 0x8a0   :  { %v6465_v5 = vpop.f32.mrb[143].mxu0  ;;  %v6511_v49 = vpop.f32.mrb[155].mxu1 }
 0x8a1   :  { %v4448_v7 = vadd.f32 %v6463_v0, %v9383_v15  ;;  %v6466_v21 = vadd.f32 %v6465_v5, %v6464_v40  ;;  %v6512_v24 = vadd.f32 %v6511_v49, %v6510_v8 }
 0x8a3   :  { %v4451_v58 = vadd.f32 %v6466_v21, %v9383_v15  ;;  %v9467_v16 = vadd.f32 %v6509_v22, %v4448_v7 }
 0x8a5   :  { %v9469_v20 = vadd.f32 %v6512_v24, %v4451_v58  ;;  %v6467_v36 = vpop.f32.mrb[144].mxu0  ;;  %v6513_v26 = vpop.f32.mrb[156].mxu1 }
 0x8a6   :  { %v6468_v33 = vpop.f32.mrb[145].mxu0  ;;  %v6514_v42 = vpop.f32.mrb[157].mxu1 }
 0x8a7   :  { %v6469_v9 = vadd.f32 %v6468_v33, %v6467_v36  ;;  %v6470_v46 = vpop.f32.mrb[146].mxu0  ;;  %v6515_v51 = vadd.f32 %v6514_v42, %v6513_v26  ;;  %v6516_v32 = vpop.f32.mrb[158].mxu1 }
 0x8a8   :  { %v6471_v55 = vpop.f32.mrb[147].mxu0  ;;  %v6517_v25 = vpop.f32.mrb[159].mxu1 }
 0x8a9   :  { %v4456_v0 = vadd.f32 %v6469_v9, %v9383_v15  ;;  %v6472_v5 = vadd.f32 %v6471_v55, %v6470_v46  ;;  %v6518_v49 = vadd.f32 %v6517_v25, %v6516_v32 }
 0x8ab   :  { %v4459_v40 = vadd.f32 %v6472_v5, %v9383_v15  ;;  %v9473_v22 = vadd.f32 %v6515_v51, %v4456_v0 }
 0x8ad   :  { %v9475_v8 = vadd.f32 %v6518_v49, %v4459_v40  ;;  %v6473_v7 = vpop.f32.mrb[148].mxu0  ;;  %v6519_v21 = vpop.f32.mrb[160].mxu1 }
 0x8ae   :  { %v6474_v24 = vpop.f32.mrb[149].mxu0  ;;  %v6520_v58 = vpop.f32.mrb[161].mxu1 }
 0x8af   :  { %v6475_v36 = vadd.f32 %v6474_v24, %v6473_v7  ;;  %v6476_v33 = vpop.f32.mrb[150].mxu0  ;;  %v6521_v26 = vadd.f32 %v6520_v58, %v6519_v21  ;;  %v6522_v42 = vpop.f32.mrb[162].mxu1 }
 0x8b0   :  { %v6477_v30 = vpop.f32.mrb[151].mxu0  ;;  %v6523_v59 = vpop.f32.mrb[163].mxu1 }
 0x8b1   :  { %v4464_v9 = vadd.f32 %v6475_v36, %v9383_v15  ;;  %v6478_v55 = vadd.f32 %v6477_v30, %v6476_v33  ;;  %v6524_v25 = vadd.f32 %v6523_v59, %v6522_v42 }
 0x8b3   :  { %v4467_v46 = vadd.f32 %v6478_v55, %v9383_v15  ;;  %v9479_v51 = vadd.f32 %v6521_v26, %v4464_v9 }
 0x8b5   :  { %v9481_v32 = vadd.f32 %v6524_v25, %v4467_v46  ;;  %v6541_v0 = vpop.f32.mrb[152].mxu0  ;;  %v6587_v5 = vpop.f32.mrb[164].mxu1 }
 0x8b6   :  { %v6542_v49 = vpop.f32.mrb[153].mxu0  ;;  %v6588_v40 = vpop.f32.mrb[165].mxu1 }
 0x8b7   :  { %v6543_v7 = vadd.f32 %v6542_v49, %v6541_v0  ;;  %v6544_v24 = vpop.f32.mrb[154].mxu0  ;;  %v6589_v21 = vadd.f32 %v6588_v40, %v6587_v5  ;;  %v6590_v58 = vpop.f32.mrb[166].mxu1 }
 0x8b8   :  { %v6545_v17 = vpop.f32.mrb[155].mxu0  ;;  %v6591_v2 = vpop.f32.mrb[167].mxu1 }
 0x8b9   :  { %v4578_v36 = vadd.f32 %v6543_v7, %v9455_v47  ;;  %v6546_v30 = vadd.f32 %v6545_v17, %v6544_v24  ;;  %v6592_v59 = vadd.f32 %v6591_v2, %v6590_v58 }
 0x8bb   :  { %v4581_v15 = vadd.f32 %v6546_v30, %v9457_v45  ;;  %v9485_v33 = vadd.f32 %v6589_v21, %v4578_v36 }
 0x8bd   :  { %v9487_v26 = vadd.f32 %v6592_v59, %v4581_v15  ;;  %v6547_v42 = vpop.f32.mrb[156].mxu0  ;;  %v6593_v9 = vpop.f32.mrb[168].mxu1 }
 0x8be   :  { %v6548_v55 = vpop.f32.mrb[157].mxu0  ;;  %v6594_v25 = vpop.f32.mrb[169].mxu1 }
 0x8bf   :  { %v6549_v46 = vadd.f32 %v6548_v55, %v6547_v42  ;;  %v6550_v0 = vpop.f32.mrb[158].mxu0  ;;  %v6595_v5 = vadd.f32 %v6594_v25, %v6593_v9  ;;  %v6596_v49 = vpop.f32.mrb[170].mxu1 }
 0x8c0   :  { %v6551_v40 = vpop.f32.mrb[159].mxu0  ;;  %v6597_v34 = vpop.f32.mrb[171].mxu1 }
 0x8c1   :  { %v4586_v47 = vadd.f32 %v6549_v46, %v9461_v12  ;;  %v6552_v17 = vadd.f32 %v6551_v40, %v6550_v0  ;;  %v6598_v2 = vadd.f32 %v6597_v34, %v6596_v49 }
 0x8c3   :  { %v4589_v45 = vadd.f32 %v6552_v17, %v9463_v43  ;;  %v9491_v7 = vadd.f32 %v6595_v5, %v4586_v47 }
 0x8c5   :  { %v9493_v24 = vadd.f32 %v6598_v2, %v4589_v45  ;;  %v6553_v21 = vpop.f32.mrb[160].mxu0  ;;  %v6599_v58 = vpop.f32.mrb[172].mxu1 }
 0x8c6   :  { %v6554_v36 = vpop.f32.mrb[161].mxu0  ;;  %v6600_v30 = vpop.f32.mrb[173].mxu1 }
 0x8c7   :  { %v6555_v59 = vadd.f32 %v6554_v36, %v6553_v21  ;;  %v6556_v15 = vpop.f32.mrb[162].mxu0  ;;  %v6601_v42 = vadd.f32 %v6600_v30, %v6599_v58  ;;  %v6602_v9 = vpop.f32.mrb[174].mxu1 }
 0x8c8   :  { %v6557_v55 = vpop.f32.mrb[163].mxu0  ;;  %v6603_v25 = vpop.f32.mrb[175].mxu1 }
 0x8c9   :  { %v4594_v12 = vadd.f32 %v6555_v59, %v9467_v16  ;;  %v6558_v46 = vadd.f32 %v6557_v55, %v6556_v15  ;;  %v6604_v34 = vadd.f32 %v6603_v25, %v6602_v9 }
 0x8cb   :  { %v4597_v43 = vadd.f32 %v6558_v46, %v9469_v20  ;;  %v9497_v0 = vadd.f32 %v6601_v42, %v4594_v12 }
 0x8cd   :  { %v9499_v5 = vadd.f32 %v6604_v34, %v4597_v43  ;;  %v6559_v49 = vpop.f32.mrb[164].mxu0  ;;  %v6605_v40 = vpop.f32.mrb[176].mxu1 }
 0x8ce   :  { %v6560_v47 = vpop.f32.mrb[165].mxu0  ;;  %v6606_v17 = vpop.f32.mrb[177].mxu1 }
 0x8cf   :  { %v6561_v2 = vadd.f32 %v6560_v47, %v6559_v49  ;;  %v6562_v45 = vpop.f32.mrb[166].mxu0  ;;  %v6607_v21 = vadd.f32 %v6606_v17, %v6605_v40  ;;  %v6608_v58 = vpop.f32.mrb[178].mxu1 }
 0x8d0   :  { %v6563_v36 = vpop.f32.mrb[167].mxu0  ;;  %v6609_v30 = vpop.f32.mrb[179].mxu1 }
 0x8d1   :  { %v4602_v16 = vadd.f32 %v6561_v2, %v9473_v22  ;;  %v6564_v59 = vadd.f32 %v6563_v36, %v6562_v45  ;;  %v6610_v15 = vadd.f32 %v6609_v30, %v6608_v58 }
 0x8d3   :  { %v4605_v20 = vadd.f32 %v6564_v59, %v9475_v8  ;;  %v9503_v42 = vadd.f32 %v6607_v21, %v4602_v16 }
 0x8d5   :  { %v9505_v9 = vadd.f32 %v6610_v15, %v4605_v20  ;;  %v6565_v55 = vpop.f32.mrb[168].mxu0  ;;  %v6611_v25 = vpop.f32.mrb[180].mxu1 }
 0x8d6   :  { %v6566_v12 = vpop.f32.mrb[169].mxu0  ;;  %v6612_v46 = vpop.f32.mrb[181].mxu1 }
 0x8d7   :  { %v6567_v34 = vadd.f32 %v6566_v12, %v6565_v55  ;;  %v6568_v43 = vpop.f32.mrb[170].mxu0  ;;  %v6613_v49 = vadd.f32 %v6612_v46, %v6611_v25  ;;  %v6614_v40 = vpop.f32.mrb[182].mxu1 }
 0x8d8   :  { %v6569_v47 = vpop.f32.mrb[171].mxu0  ;;  %v6615_v17 = vpop.f32.mrb[183].mxu1 }
 0x8d9   :  { %v4610_v22 = vadd.f32 %v6567_v34, %v9479_v51  ;;  %v6570_v2 = vadd.f32 %v6569_v47, %v6568_v43  ;;  %v6616_v45 = vadd.f32 %v6615_v17, %v6614_v40 }
 0x8db   :  { %v4613_v8 = vadd.f32 %v6570_v2, %v9481_v32  ;;  %v9509_v21 = vadd.f32 %v6613_v49, %v4610_v22 }
 0x8dd   :  { %v9511_v58 = vadd.f32 %v6616_v45, %v4613_v8  ;;  %v6633_v36 = vpop.f32.mrb[172].mxu0 }
 0x8de   :  { %v6634_v30 = vpop.f32.mrb[173].mxu0 }
 0x8df   :  { %v6635_v16 = vadd.f32 %v6634_v30, %v6633_v36  ;;  %v6636_v59 = vpop.f32.mrb[174].mxu0 }
 0x8e0   :  { %v6637_v15 = vpop.f32.mrb[175].mxu0 }
 0x8e1   :  { %v4724_v20 = vadd.f32 %v6635_v16, %v9485_v33  ;;  %v6638_v55 = vadd.f32 %v6637_v15, %v6636_v59 }
 0x8e3   :  { %vm4766_vm11 = vcmp.gt.f32.partialorder %v4724_v20, 0.0  ;;  %v4816_v25 = vmul.f32 0.01, %v4724_v20  ;;  %v4727_v51 = vadd.f32 %v6638_v55, %v9487_v26 }
 0x8e5   :  { %v9515_v12 = vsel %vm4766_vm11, %v4724_v20, %v4816_v25  ;;  %vm4771_vm12 = vcmp.gt.f32.partialorder %v4727_v51, 0.0  ;;  %v4821_v32 = vmul.f32 0.01, %v4727_v51  ;;  %v6639_v46 = vpop.f32.mrb[176].mxu0 }
 0x8e6   :  { %v6640_v34 = vpop.f32.mrb[177].mxu0 }
 0x8e7   :  { %v9517_v43 = vsel %vm4771_vm12, %v4727_v51, %v4821_v32  ;;  %v6641_v49 = vadd.f32 %v6640_v34, %v6639_v46  ;;  %v6642_v40 = vpop.f32.mrb[178].mxu0 }
 0x8e8   :  { %v6643_v47 = vpop.f32.mrb[179].mxu0 }
 0x8e9   :  { %v4732_v17 = vadd.f32 %v6641_v49, %v9491_v7  ;;  %v6644_v22 = vadd.f32 %v6643_v47, %v6642_v40 }
 0x8eb   :  { %vm4776_vm13 = vcmp.gt.f32.partialorder %v4732_v17, 0.0  ;;  %v4826_v33 = vmul.f32 0.01, %v4732_v17  ;;  %v4735_v2 = vadd.f32 %v6644_v22, %v9493_v24 }
 0x8ed   :  { %v9521_v45 = vsel %vm4776_vm13, %v4732_v17, %v4826_v33  ;;  %vm4781_vm14 = vcmp.gt.f32.partialorder %v4735_v2, 0.0  ;;  %v4831_v26 = vmul.f32 0.01, %v4735_v2  ;;  %v6645_v8 = vpop.f32.mrb[180].mxu0 }
 0x8ee   :  { %v6646_v36 = vpop.f32.mrb[181].mxu0 }
 0x8ef   :  { %v9523_v30 = vsel %vm4781_vm14, %v4735_v2, %v4831_v26  ;;  %v6647_v16 = vadd.f32 %v6646_v36, %v6645_v8  ;;  %v6648_v59 = vpop.f32.mrb[182].mxu0 }
 0x8f0   :  { %v6649_v15 = vpop.f32.mrb[183].mxu0 }
 0x8f1   :  { %v4740_v20 = vadd.f32 %v6647_v16, %v9497_v0  ;;  %v6650_v55 = vadd.f32 %v6649_v15, %v6648_v59 }
 0x8f3   :  { %vm4786_vm15 = vcmp.gt.f32.partialorder %v4740_v20, 0.0  ;;  %v4836_v7 = vmul.f32 0.01, %v4740_v20  ;;  %v4743_v25 = vadd.f32 %v6650_v55, %v9499_v5 }
 0x8f5   :  { %v9527_v51 = vsel %vm4786_vm15, %v4740_v20, %v4836_v7  ;;  %vm4791_vm0 = vcmp.gt.f32.partialorder %v4743_v25, 0.0  ;;  %v4841_v24 = vmul.f32 0.01, %v4743_v25  ;;  %v6651_v32 = vpop.f32.mrb[184].mxu0 }
 0x8f6   :  { %v6652_v46 = vpop.f32.mrb[185].mxu0 }
 0x8f7   :  { %v9529_v34 = vsel %vm4791_vm0, %v4743_v25, %v4841_v24  ;;  %v6653_v49 = vadd.f32 %v6652_v46, %v6651_v32  ;;  %v6654_v40 = vpop.f32.mrb[186].mxu0 }
 0x8f8   :  { %v6655_v47 = vpop.f32.mrb[187].mxu0 }
 0x8f9   :  { %v4748_v17 = vadd.f32 %v6653_v49, %v9503_v42  ;;  %v6656_v22 = vadd.f32 %v6655_v47, %v6654_v40 }
 0x8fb   :  { %vm4796_vm1 = vcmp.gt.f32.partialorder %v4748_v17, 0.0  ;;  %v4846_v0 = vmul.f32 0.01, %v4748_v17  ;;  %v4751_v33 = vadd.f32 %v6656_v22, %v9505_v9 }
 0x8fd   :  { %v9533_v2 = vsel %vm4796_vm1, %v4748_v17, %v4846_v0  ;;  %vm4801_vm2 = vcmp.gt.f32.partialorder %v4751_v33, 0.0  ;;  %v4851_v5 = vmul.f32 0.01, %v4751_v33  ;;  %v6657_v26 = vpop.f32.mrb[188].mxu0 }
 0x8fe   :  { %v6658_v8 = vpop.f32.mrb[189].mxu0 }
 0x8ff   :  { %v9535_v36 = vsel %vm4801_vm2, %v4751_v33, %v4851_v5  ;;  %v6659_v16 = vadd.f32 %v6658_v8, %v6657_v26  ;;  %v6660_v59 = vpop.f32.mrb[190].mxu0 }
 0x900   :  { %v6661_v15 = vpop.f32.mrb[191].mxu0 }
 0x901   :  { %v4756_v20 = vadd.f32 %v6659_v16, %v9509_v21  ;;  %v6662_v55 = vadd.f32 %v6661_v15, %v6660_v59 }
 0x903   :  { %vm4806_vm3 = vcmp.gt.f32.partialorder %v4756_v20, 0.0  ;;  %v4856_v42 = vmul.f32 0.01, %v4756_v20  ;;  %v4759_v7 = vadd.f32 %v6662_v55, %v9511_v58 }
 0x905   :  { %v9539_v25 = vsel %vm4806_vm3, %v4756_v20, %v4856_v42  ;;  %vm4811_vm4 = vcmp.gt.f32.partialorder %v4759_v7, 0.0  ;;  %v4861_v9 = vmul.f32 0.01, %v4759_v7 }
 0x907   :  { %v9541_v24 = vsel %vm4811_vm4, %v4759_v7, %v4861_v9 }
 0x908   :  { %7884 = dma.done.wait [#allocation6 + $0x1], 15360 }
 0x909   :  { %7885 = vsyncadd [#allocation6 + $0x1], 4294951936  ;;  %v4917_v32 = vpack.c.bf16 %v9348_v60, %v9338_v39  ;;  %v4942_v46 = vld [vmem:[#allocation3 + $0x8] sm:$0xff]  ;;  %v4967_v21 = vld [vmem:[#allocation3 + $0xd0] sm:$0xff]  ;;  %vm7928_vm5 = vmmov 0  }
 0x90a   :  { %v4941_v49 = vld [vmem:[#allocation3] sm:$0xff]  ;;  %5078 = vmatprep.subr.bf16.mxu1 %v4942_v46  ;;  %6663 = vmatprep.subr.bf16.mxu0 %v4967_v21  ;;  %v4943_v40 = vld [vmem:[#allocation3 + $0x10] sm:$0xff]  ;;  %v4970_v47 = vld [vmem:[#allocation3 + $0xe8] sm:$0xff] }
 0x90b   :  { %5359 = vmatprep.mubr.bf16.mxu0 %v4917_v32  ;;  %5110 = vmatprep.mubr.bf16.mxu1 %v4917_v32  ;;  %v4945_v58 = vld [vmem:[#allocation3 + $0x20] sm:$0xff]  ;;  %v4944_v17 = vld [vmem:[#allocation3 + $0x18] sm:$0xff]  ;;  %v4946_v22 = vld [vmem:[#allocation3 + $0x28] sm:$0xff] }
 0x90c   :  { %5079 = vmatpush1.bf16.msra.mxu1 %v4941_v49  ;;  %6664 = vmatpush3.bf16.msra.mxu0 %v4943_v40  ;;  %v4948_v0 = vld [vmem:[#allocation3 + $0x38] sm:$0xff]  ;;  %v4973_v33 = vld [vmem:[#allocation3 + $0x100] sm:$0xff]  ;;  %v4947_v39 = vld [vmem:[#allocation3 + $0x30] sm:$0xff] }
 0x90d   :  { %5080 = vmatprep.subr.bf16.mxu1 %v4945_v58  ;;  %6665 = vmatprep.subr.bf16.mxu0 %v4970_v47  ;;  %v4949_v60 = vld [vmem:[#allocation3 + $0x40] sm:$0xff]  ;;  %v4951_v5 = vld [vmem:[#allocation3 + $0x50] sm:$0xff]  ;;  %v4976_v26 = vld [vmem:[#allocation3 + $0x118] sm:$0xff] }
 0x90e   :  { %v4950_v8 = vld [vmem:[#allocation3 + $0x48] sm:$0xff]  ;;  %v4952_v16 = vld [vmem:[#allocation3 + $0x58] sm:$0xff]  ;;  %v4979_v15 = vld [vmem:[#allocation3 + $0x130] sm:$0xff] }
 0x90f   :  { %v4954_v59 = vld [vmem:[#allocation3 + $0x68] sm:$0xff]  ;;  %v4953_v20 = vld [vmem:[#allocation3 + $0x60] sm:$0xff]  ;;  %v4955_v55 = vld [vmem:[#allocation3 + $0x70] sm:$0xff] }
 0x910   :  { %5081 = vmatpush1.bf16.msra.mxu1 %v4944_v17  ;;  %6666 = vmatpush3.bf16.msra.mxu0 %v4946_v22  ;;  %v4957_v42 = vld [vmem:[#allocation3 + $0x80] sm:$0xff]  ;;  %v4982_v7 = vld [vmem:[#allocation3 + $0x148] sm:$0xff]  ;;  %v4956_v9 = vld [vmem:[#allocation3 + $0x78] sm:$0xff] }
 0x911   :  { %5082 = vmatprep.subr.bf16.mxu1 %v4948_v0  ;;  %6667 = vmatprep.subr.bf16.mxu0 %v4973_v33  ;;  %v4958_v32 = vld [vmem:[#allocation3 + $0x88] sm:$0xff]  ;;  %v4960_v46 = vld [vmem:[#allocation3 + $0x98] sm:$0xff]  ;;  %v4985_v21 = vld [vmem:[#allocation3 + $0x160] sm:$0xff] }
 0x912   :  { %v4959_v49 = vld [vmem:[#allocation3 + $0x90] sm:$0xff]  ;;  %v4961_v40 = vld [vmem:[#allocation3 + $0xa0] sm:$0xff]  ;;  %v4988_v47 = vld [vmem:[#allocation3 + $0x178] sm:$0xff] }
 0x913   :  { %v4963_v58 = vld [vmem:[#allocation3 + $0xb0] sm:$0xff]  ;;  %v4962_v17 = vld [vmem:[#allocation3 + $0xa8] sm:$0xff]  ;;  %v4964_v22 = vld [vmem:[#allocation3 + $0xb8] sm:$0xff] }
 0x914   :  { %5083 = vmatpush1.bf16.msra.mxu1 %v4947_v39  ;;  %6668 = vmatpush3.bf16.msra.mxu0 %v4949_v60  ;;  %v4966_v0 = vld [vmem:[#allocation3 + $0xc8] sm:$0xff]  ;;  %v5015_v33 = vld [vmem:[#allocation3 + $0x250] sm:$0xff]  ;;  %v9547_v39 = vpack.c.bf16 %v9344_v35, %v9332_v57  ;;  %v9551_v60 = vpack.c.bf16 %v9372_v6, %v9362_v41  ;;  %v4968_v57 = vld [vmem:[#allocation3 + $0xd8] sm:$0xff]  ;;  %v9557_v41 = vpack.c.bf16 %v9368_v63, %v9356_v61 }
 0x915   :  { %5084 = vmatprep.subr.bf16.mxu1 %v4951_v5  ;;  %6669 = vmatprep.subr.bf16.mxu0 %v4976_v26  ;;  %v4965_v5 = vld [vmem:[#allocation3 + $0xc0] sm:$0xff]  ;;  %v4972_v35 = vld [vmem:[#allocation3 + $0xf8] sm:$0xff]  ;;  %v4974_v61 = vld [vmem:[#allocation3 + $0x108] sm:$0xff] }
 0x916   :  { %v4969_v26 = vld [vmem:[#allocation3 + $0xe0] sm:$0xff]  ;;  %v4978_v63 = vld [vmem:[#allocation3 + $0x128] sm:$0xff] }
 0x917   :  { %v5021_v6 = vld [vmem:[#allocation3 + $0x280] sm:$0xff] }
 0x918   :  { %5085 = vmatpush1.bf16.msra.mxu1 %v4950_v8  ;;  %6670 = vmatpush3.bf16.msra.mxu0 %v4952_v16  ;;  %v4991_v8 = vld [vmem:[#allocation3 + $0x190] sm:$0xff]  ;;  %v5018_v16 = vld [vmem:[#allocation3 + $0x268] sm:$0xff] }
 0x919   :  { %5086 = vmatprep.subr.bf16.mxu1 %v4954_v59  ;;  %6671 = vmatprep.subr.bf16.mxu0 %v4979_v15  ;;  %v4994_v59 = vld [vmem:[#allocation3 + $0x1a8] sm:$0xff]  ;;  %v9561_v15 = vpack.c.bf16 %v9403_v13, %v9391_v44  ;;  %v9567_v44 = vpack.c.bf16 %v9397_v10, %v9385_v37  ;;  %v5027_v13 = vld [vmem:[#allocation3 + $0x2b0] sm:$0xff]  ;;  %v4980_v37 = vld [vmem:[#allocation3 + $0x138] sm:$0xff] }
 0x91a   :  { %v4984_v10 = vld [vmem:[#allocation3 + $0x158] sm:$0xff] }
 0x91c   :  { %5087 = vmatpush1.bf16.msra.mxu1 %v4953_v20  ;;  %6672 = vmatpush3.bf16.msra.mxu0 %v4955_v55  ;;  %v4971_v20 = vld [vmem:[#allocation3 + $0xf0] sm:$0xff] }
 0x91d   :  { %5088 = vmatprep.subr.bf16.mxu1 %v4957_v42  ;;  %6673 = vmatprep.subr.bf16.mxu0 %v4982_v7  ;;  %v4975_v55 = vld [vmem:[#allocation3 + $0x110] sm:$0xff]  ;;  %v4997_v42 = vld [vmem:[#allocation3 + $0x1c0] sm:$0xff]  ;;  %v5024_v7 = vld [vmem:[#allocation3 + $0x298] sm:$0xff] }
 0x920   :  { %5089 = vmatpush1.bf16.msra.mxu1 %v4956_v9  ;;  %6674 = vmatpush3.bf16.msra.mxu0 %v4958_v32  ;;  %v5000_v9 = vld [vmem:[#allocation3 + $0x1d8] sm:$0xff]  ;;  %v9571_v32 = vpack.c.bf16 %v9427_v38, %v9415_v31  ;;  %v9577_v31 = vpack.c.bf16 %v9421_v29, %v9409_v23  ;;  %v5033_v38 = vld [vmem:[#allocation3 + $0x2e0] sm:$0xff]  ;;  %v4986_v23 = vld [vmem:[#allocation3 + $0x168] sm:$0xff] }
 0x921   :  { %5090 = vmatprep.subr.bf16.mxu1 %v4960_v46  ;;  %6675 = vmatprep.subr.bf16.mxu0 %v4985_v21  ;;  %v4977_v46 = vld [vmem:[#allocation3 + $0x120] sm:$0xff]  ;;  %v4990_v29 = vld [vmem:[#allocation3 + $0x188] sm:$0xff] }
 0x922   :  { %v4981_v21 = vld [vmem:[#allocation3 + $0x140] sm:$0xff] }
 0x924   :  { %5091 = vmatpush1.bf16.msra.mxu1 %v4959_v49  ;;  %6676 = vmatpush3.bf16.msra.mxu0 %v4961_v40  ;;  %v5003_v49 = vld [vmem:[#allocation3 + $0x1f0] sm:$0xff]  ;;  %v5030_v40 = vld [vmem:[#allocation3 + $0x2c8] sm:$0xff] }
 0x925   :  { %5092 = vmatprep.subr.bf16.mxu1 %v4963_v58  ;;  %6677 = vmatprep.subr.bf16.mxu0 %v4988_v47  ;;  %v5006_v58 = vld [vmem:[#allocation3 + $0x208] sm:$0xff]  ;;  %v9581_v47 = vpack.c.bf16 %v9449_v62, %v9439_v48  ;;  %v9587_v48 = vpack.c.bf16 %v9445_v11, %v9433_v19  ;;  %v9591_v62 = vpack.c.bf16 %v9350_v56, %v9340_v53  ;;  %v4992_v19 = vld [vmem:[#allocation3 + $0x198] sm:$0xff] }
 0x926   :  { %v4996_v11 = vld [vmem:[#allocation3 + $0x1b8] sm:$0xff]  ;;  %v9600_v53 = vpack.c.bf16 %v9346_v4, %v9334_v27  ;;  %v9604_v56 = vpack.c.bf16 %v9374_v14, %v9364_v3  ;;  %v5002_v27 = vld [vmem:[#allocation3 + $0x1e8] sm:$0xff]  ;;  %v9613_v3 = vpack.c.bf16 %v9370_v28, %v9358_v18  ;;  %v9617_v14 = vpack.c.bf16 %v9405_v54, %v9393_v1 }
 0x927   :  { %v5042_v4 = vld [vmem:[#allocation3 + $0x328] sm:$0xff]  ;;  %v5004_v18 = vld [vmem:[#allocation3 + $0x1f8] sm:$0xff]  ;;  %v9627_v54 = vpack.c.bf16 %v9399_v52, %v9387_v50 }
 0x928   :  { %5093 = vmatpush1.bf16.msra.mxu1 %v4962_v17  ;;  %6678 = vmatpush3.bf16.msra.mxu0 %v4964_v22  ;;  %v4983_v17 = vld [vmem:[#allocation3 + $0x150] sm:$0xff]  ;;  %v5008_v28 = vld [vmem:[#allocation3 + $0x218] sm:$0xff]  ;;  %v5010_v50 = vld [vmem:[#allocation3 + $0x228] sm:$0xff] }
 0x929   :  { %5094 = vmatprep.subr.bf16.mxu1 %v4966_v0  ;;  %6709 = vmatprep.subr.bf16.mxu0 %v5015_v33  ;;  %v4987_v22 = vld [vmem:[#allocation3 + $0x170] sm:$0xff]  ;;  %v5009_v0 = vld [vmem:[#allocation3 + $0x220] sm:$0xff]  ;;  %v5036_v33 = vld [vmem:[#allocation3 + $0x2f8] sm:$0xff] }
 0x92a   :  { %v5048_v1 = vld [vmem:[#allocation3 + $0x358] sm:$0xff]  ;;  %v5014_v52 = vld [vmem:[#allocation3 + $0x248] sm:$0xff] }
 0x92b   :  { %5360 = vmatmul.mubr.bf16.vlgmr.msra.gmra.mrb[192].mxu0 %v9547_v39 }
 0x92c   :  { %5095 = vmatpush1.bf16.msra.mxu1 %v4965_v5  ;;  %5367 = vmatprep.mubr.bf16.mxu0 %v9551_v60  ;;  %v5012_v5 = vld [vmem:[#allocation3 + $0x238] sm:$0xff] }
 0x92d   :  { %5096 = vmatprep.subr.bf16.mxu1 %v4969_v26  ;;  %6710 = vmatpush3.bf16.msra.mxu0 %v4991_v8  ;;  %v4989_v26 = vld [vmem:[#allocation3 + $0x180] sm:$0xff] }
 0x92e   :  { %6711 = vmatprep.subr.bf16.mxu0 %v5018_v16  ;;  %v4993_v8 = vld [vmem:[#allocation3 + $0x1a0] sm:$0xff]  ;;  %v10091_v16 = vmov 0.0  }
 0x930   :  { %5097 = vmatpush1.bf16.msra.mxu1 %v4968_v57  ;;  %v4995_v57 = vld [vmem:[#allocation3 + $0x1b0] sm:$0xff] }
 0x931   :  { %5098 = vmatprep.subr.bf16.mxu1 %v4972_v35  ;;  %6712 = vmatpush3.bf16.msra.mxu0 %v4994_v59  ;;  %v5039_v35 = vld [vmem:[#allocation3 + $0x310] sm:$0xff]  ;;  %v5001_v59 = vld [vmem:[#allocation3 + $0x1e0] sm:$0xff] }
 0x932   :  { %6713 = vmatprep.subr.bf16.mxu0 %v5021_v6  ;;  %v5045_v6 = vld [vmem:[#allocation3 + $0x340] sm:$0xff] }
 0x933   :  { %5368 = vmatmul.mubr.bf16.gmra.mrb[196].mxu0 %v9557_v41 }
 0x934   :  { %5099 = vmatpush1.bf16.msra.mxu1 %v4971_v20  ;;  %5375 = vmatprep.mubr.bf16.mxu0 %v9561_v15  ;;  %v10093_v20 = vld [vmem:[#allocation65_spill] sm:$0xff] }
 0x935   :  { %5100 = vmatprep.subr.bf16.mxu1 %v4975_v55  ;;  %6714 = vmatpush3.bf16.msra.mxu0 %v4997_v42  ;;  %v5007_v42 = vld [vmem:[#allocation3 + $0x210] sm:$0xff] }
 0x936   :  { %6715 = vmatprep.subr.bf16.mxu0 %v5024_v7  ;;  %v5011_v7 = vld [vmem:[#allocation3 + $0x230] sm:$0xff] }
 0x938   :  { %5101 = vmatpush1.bf16.msra.mxu1 %v4974_v61  ;;  %v5051_v61 = vld [vmem:[#allocation3 + $0x370] sm:$0xff] }
 0x939   :  { %5102 = vmatprep.subr.bf16.mxu1 %v4978_v63  ;;  %6716 = vmatpush3.bf16.msra.mxu0 %v5000_v9  ;;  %v5054_v63 = vld [vmem:[#allocation3 + $0x388] sm:$0xff]  ;;  %v10094_v9 = vld [vmem:[#allocation51_spill] sm:$0xff] }
 0x93a   :  { %6717 = vmatprep.subr.bf16.mxu0 %v5027_v13 }
 0x93b   :  { %5376 = vmatmul.mubr.bf16.gmra.mrb[200].mxu0 %v9567_v44 }
 0x93c   :  { %5103 = vmatpush1.bf16.msra.mxu1 %v4977_v46  ;;  %5383 = vmatprep.mubr.bf16.mxu0 %v9571_v32  ;;  %v10097_v46 = vld [vmem:[#allocation69_spill] sm:$0xff] }
 0x93d   :  { %5104 = vmatprep.subr.bf16.mxu1 %v4981_v21  ;;  %6718 = vmatpush3.bf16.msra.mxu0 %v5003_v49  ;;  %v5013_v49 = vld [vmem:[#allocation3 + $0x240] sm:$0xff] }
 0x93e   :  { %6719 = vmatprep.subr.bf16.mxu0 %v5030_v40  ;;  %v5017_v40 = vld [vmem:[#allocation3 + $0x260] sm:$0xff] }
 0x940   :  { %5105 = vmatpush1.bf16.msra.mxu1 %v4980_v37  ;;  %v5057_v37 = vld [vmem:[#allocation3 + $0x3a0] sm:$0xff] }
 0x941   :  { %5106 = vmatprep.subr.bf16.mxu1 %v4984_v10  ;;  %6720 = vmatpush3.bf16.msra.mxu0 %v5006_v58  ;;  %v5016_v10 = vld [vmem:[#allocation3 + $0x258] sm:$0xff] }
 0x942   :  { %6721 = vmatprep.subr.bf16.mxu0 %v5033_v38  ;;  %v5020_v58 = vld [vmem:[#allocation3 + $0x278] sm:$0xff]  ;;  %v10098_v38 = vld [vmem:[#allocation53_spill] sm:$0xff] }
 0x943   :  { %5384 = vmatmul.mubr.bf16.gmra.mrb[204].mxu0 %v9577_v31 }
 0x944   :  { %5107 = vmatpush1.bf16.msra.mxu1 %v4983_v17  ;;  %5391 = vmatprep.mubr.bf16.mxu0 %v9581_v47 }
 0x945   :  { %5108 = vmatprep.subr.bf16.mxu1 %v4987_v22  ;;  %6722 = vmatpush3.bf16.msra.mxu0 %v5009_v0  ;;  %v5019_v22 = vld [vmem:[#allocation3 + $0x270] sm:$0xff] }
 0x946   :  { %6723 = vmatprep.subr.bf16.mxu0 %v5036_v33  ;;  %v5023_v0 = vld [vmem:[#allocation3 + $0x290] sm:$0xff]  ;;  %v5022_v33 = vld [vmem:[#allocation3 + $0x288] sm:$0xff] }
 0x948   :  { %5109 = vmatpush1.bf16.msra.mxu1 %v4986_v23  ;;  %v5026_v23 = vld [vmem:[#allocation3 + $0x2a8] sm:$0xff] }
 0x949   :  { %5161 = vmatprep.subr.bf16.mxu1 %v4990_v29  ;;  %6724 = vmatpush3.bf16.msra.mxu0 %v5012_v5  ;;  %v9662_v29 = vpack.c.bf16 %v9517_v43, %v9515_v12  ;;  %v5025_v5 = vld [vmem:[#allocation3 + $0x2a0] sm:$0xff]  ;;  %v5031_v12 = vld [vmem:[#allocation3 + $0x2d0] sm:$0xff] }
 0x94a   :  { %6967 = vmatprep.subr.bf16.mxu0 %v10091_v16  ;;  %v5035_v43 = vld [vmem:[#allocation3 + $0x2f0] sm:$0xff] }
 0x94b   :  { %5392 = vmatmul.mubr.bf16.gmra.mrb[208].mxu0 %v9587_v48  ;;  %5111 = vmatmul.mubr.bf16.vlgmr.msra.gmra.mrb[184].mxu1 %v9547_v39  ;;  %v4999_v39 = vld [vmem:[#allocation3 + $0x1d0] sm:$0xff] }
 0x94c   :  { %5162 = vmatpush1.bf16.msra.mxu1 %v4989_v26  ;;  %5432 = vmatprep.mubr.bf16.mxu0 %v9591_v62  ;;  %v5032_v26 = vld [vmem:[#allocation3 + $0x2d8] sm:$0xff] }
 0x94d   :  { %5163 = vmatprep.subr.bf16.mxu1 %v4993_v8  ;;  %5120 = vmatprep.mubr.bf16.mxu1 %v9551_v60  ;;  %v4998_v60 = vld [vmem:[#allocation3 + $0x1c8] sm:$0xff]  ;;  %v4925_v8 = vpack.c.bf16 %v9523_v30, %v9521_v45  ;;  %v5040_v45 = vld [vmem:[#allocation3 + $0x318] sm:$0xff] }
 0x94e   :  { %v5044_v30 = vld [vmem:[#allocation3 + $0x338] sm:$0xff] }
 0x950   :  { %5164 = vmatpush1.bf16.msra.mxu1 %v4992_v19  ;;  %v5034_v19 = vld [vmem:[#allocation3 + $0x2e8] sm:$0xff] }
 0x951   :  { %5165 = vmatprep.subr.bf16.mxu1 %v4996_v11  ;;  %v5038_v11 = vld [vmem:[#allocation3 + $0x308] sm:$0xff] }
 0x953   :  { %5433 = vmatmul.mubr.bf16.vlgmr.msra.gmra.mrb[212].mxu0 %v9600_v53  ;;  %5121 = vmatmul.mubr.bf16.gmra.mrb[188].mxu1 %v9557_v41  ;;  %v5005_v41 = vld [vmem:[#allocation3 + $0x200] sm:$0xff] }
 0x954   :  { %5166 = vmatpush1.bf16.msra.mxu1 %v4995_v57  ;;  %5440 = vmatprep.mubr.bf16.mxu0 %v9604_v56  ;;  %v4930_v57 = vpack.c.bf16 %v9529_v34, %v9527_v51  ;;  %v5043_v51 = vld [vmem:[#allocation3 + $0x330] sm:$0xff] }
 0x955   :  { %5167 = vmatprep.subr.bf16.mxu1 %v4999_v39  ;;  %6968 = vmatpush3.bf16.msra.mxu0 %v5039_v35  ;;  %v5037_v39 = vld [vmem:[#allocation3 + $0x300] sm:$0xff]  ;;  %v5047_v34 = vld [vmem:[#allocation3 + $0x350] sm:$0xff] }
 0x956   :  { %6969 = vmatprep.subr.bf16.mxu0 %v10091_v16  ;;  %5130 = vmatprep.mubr.bf16.mxu1 %v9561_v15  ;;  %v10092_v15 = vld [vmem:[#allocation63_spill] sm:$0xff]  ;;  %v5041_v35 = vld [vmem:[#allocation3 + $0x320] sm:$0xff] }
 0x957   :  { %v9631_v55 = vpack.c.bf16 %v10093_v20, %v10092_v15 }
 0x958   :  { %5168 = vmatpush1.bf16.msra.mxu1 %v4998_v60  ;;  %v4935_v60 = vpack.c.bf16 %v9535_v36, %v9533_v2  ;;  %v5049_v2 = vld [vmem:[#allocation3 + $0x360] sm:$0xff] }
 0x959   :  { %5169 = vmatprep.subr.bf16.mxu1 %v5002_v27  ;;  %6970 = vmatpush3.bf16.msra.mxu0 %v5042_v4  ;;  %v4940_v27 = vpack.c.bf16 %v9541_v24, %v9539_v25  ;;  %v5053_v36 = vld [vmem:[#allocation3 + $0x380] sm:$0xff]  ;;  %v5052_v4 = vld [vmem:[#allocation3 + $0x378] sm:$0xff]  ;;  %v5058_v25 = vld [vmem:[#allocation3 + $0x3a8] sm:$0xff]  ;;  %v10100_v24 = vmov 0  }
 0x95a   :  { %6971 = vmatprep.subr.bf16.mxu0 %v10091_v16 }
 0x95b   :  { %5441 = vmatmul.mubr.bf16.gmra.mrb[216].mxu0 %v9613_v3  ;;  %5131 = vmatmul.mubr.bf16.gmra.mrb[192].mxu1 %v9567_v44  ;;  %v10095_v44 = vld [vmem:[#allocation52_spill] sm:$0xff] }
 0x95c   :  { %5170 = vmatpush1.bf16.msra.mxu1 %v5001_v59  ;;  %5448 = vmatprep.mubr.bf16.mxu0 %v9617_v14  ;;  %v9641_v13 = vpack.c.bf16 %v10095_v44, %v10094_v9 }
 0x95d   :  { %5171 = vmatprep.subr.bf16.mxu1 %v5005_v41  ;;  %6972 = vmatpush3.bf16.msra.mxu0 %v5045_v6 }
 0x95e   :  { %6973 = vmatprep.subr.bf16.mxu0 %v10091_v16  ;;  %5140 = vmatprep.mubr.bf16.mxu1 %v9571_v32  ;;  %v10096_v32 = vld [vmem:[#allocation67_spill] sm:$0xff] }
 0x95f   :  { %v9645_v21 = vpack.c.bf16 %v10097_v46, %v10096_v32 }
 0x960   :  { %5172 = vmatpush1.bf16.msra.mxu1 %v5004_v18 }
 0x961   :  { %5173 = vmatprep.subr.bf16.mxu1 %v5008_v28  ;;  %6974 = vmatpush3.bf16.msra.mxu0 %v5048_v1 }
 0x962   :  { %6975 = vmatprep.subr.bf16.mxu0 %v10091_v16 }
 0x963   :  { %5449 = vmatmul.mubr.bf16.gmra.mrb[220].mxu0 %v9627_v54  ;;  %5141 = vmatmul.mubr.bf16.gmra.mrb[196].mxu1 %v9577_v31  ;;  %v5060_v31 = vld [vmem:[#allocation3 + $0x3b8] sm:$0xff] }
 0x964   :  { %5174 = vmatpush1.bf16.msra.mxu1 %v5007_v42  ;;  %5456 = vmatprep.mubr.bf16.mxu0 %v9631_v55 }
 0x965   :  { %5175 = vmatprep.subr.bf16.mxu1 %v5011_v7  ;;  %6976 = vmatpush3.bf16.msra.mxu0 %v5051_v61 }
 0x966   :  { %6977 = vmatprep.subr.bf16.mxu0 %v10091_v16  ;;  %5150 = vmatprep.mubr.bf16.mxu1 %v9581_v47  ;;  %v10099_v47 = vld [vmem:[#allocation54_spill] sm:$0xff] }
 0x967   :  { %v9655_v17 = vpack.c.bf16 %v10099_v47, %v10098_v38 }
 0x968   :  { %5176 = vmatpush1.bf16.msra.mxu1 %v5010_v50 }
 0x969   :  { %5177 = vmatprep.subr.bf16.mxu1 %v5014_v52  ;;  %6978 = vmatpush3.bf16.msra.mxu0 %v5054_v63 }
 0x96a   :  { %6979 = vmatprep.subr.bf16.mxu0 %v10091_v16 }
 0x96b   :  { %5457 = vmatmul.mubr.bf16.gmra.mrb[224].mxu0 %v9641_v13  ;;  %5151 = vmatmul.mubr.bf16.gmra.mrb[200].mxu1 %v9587_v48  ;;  %v5029_v48 = vld [vmem:[#allocation3 + $0x2c0] sm:$0xff] }
 0x96c   :  { %5178 = vmatpush1.bf16.msra.mxu1 %v5013_v49  ;;  %5464 = vmatprep.mubr.bf16.mxu0 %v9645_v21 }
 0x96d   :  { %5179 = vmatprep.subr.bf16.mxu1 %v5017_v40  ;;  %6980 = vmatpush3.bf16.msra.mxu0 %v5057_v37 }
 0x96e   :  { %6981 = vmatprep.subr.bf16.mxu0 %v10091_v16  ;;  %5193 = vmatprep.mubr.bf16.mxu1 %v9591_v62  ;;  %v5028_v62 = vld [vmem:[#allocation3 + $0x2b8] sm:$0xff] }
 0x970   :  { %5180 = vmatpush1.bf16.msra.mxu1 %v5016_v10  ;;  %v9696_v10 = vld [vmem:[#allocation19] sm:$0x7] }
 0x971   :  { %5181 = vmatprep.subr.bf16.mxu1 %v5020_v58  ;;  %6982 = vmatpush3.bf16.msra.mxu0 %v5060_v31 }
 0x973   :  { %5465 = vmatmul.mubr.bf16.gmra.mrb[228].mxu0 %v9655_v17 }
 0x974   :  { %5182 = vmatpush1.bf16.msra.mxu1 %v5019_v22  ;;  %6983 = vmatprep.mubr.msk.bf16.mxu0 %vm7928_vm5, %v10091_v16 }
 0x975   :  { %5183 = vmatprep.subr.bf16.mxu1 %v5023_v0 }
 0x978   :  { %5184 = vmatpush1.bf16.msra.mxu1 %v5022_v33 }
 0x979   :  { %5185 = vmatprep.subr.bf16.mxu1 %v5026_v23 }
 0x97b   :  { %6984 = vmatmul.mubr.bf16.vlgmr.msra.gmra.mrb[232].mxu0 %v9662_v29 }
 0x97c   :  { %5186 = vmatpush1.bf16.msra.mxu1 %v5025_v5  ;;  %6987 = vmatprep.mubr.msk.bf16.mxu0 %vm7928_vm5, %v10091_v16 }
 0x97d   :  { %5187 = vmatprep.subr.bf16.mxu1 %v5029_v48 }
 0x980   :  { %5188 = vmatpush1.bf16.msra.mxu1 %v5028_v62 }
 0x981   :  { %5189 = vmatprep.subr.bf16.mxu1 %v5032_v26 }
 0x983   :  { %6988 = vmatmul.mubr.bf16.gmra.mrb[236].mxu0 %v4925_v8 }
 0x984   :  { %5190 = vmatpush1.bf16.msra.mxu1 %v5031_v12  ;;  %6991 = vmatprep.mubr.msk.bf16.mxu0 %vm7928_vm5, %v10091_v16 }
 0x985   :  { %5191 = vmatprep.subr.bf16.mxu1 %v5035_v43 }
 0x988   :  { %5192 = vmatpush1.bf16.msra.mxu1 %v5034_v19 }
 0x989   :  { %5244 = vmatprep.subr.bf16.mxu1 %v5038_v11 }
 0x98b   :  { %5194 = vmatmul.mubr.bf16.vlgmr.msra.gmra.mrb[184].mxu1 %v9600_v53  ;;  %6992 = vmatmul.mubr.bf16.gmra.mrb[240].mxu0 %v4930_v57  ;;  %v5046_v53 = vld [vmem:[#allocation3 + $0x348] sm:$0xff] }
 0x98c   :  { %5245 = vmatpush1.bf16.msra.mxu1 %v5037_v39  ;;  %5203 = vmatprep.mubr.bf16.mxu1 %v9604_v56  ;;  %v5050_v56 = vld [vmem:[#allocation3 + $0x368] sm:$0xff] }
 0x98d   :  { %5246 = vmatprep.subr.bf16.mxu1 %v5041_v35  ;;  %6995 = vmatprep.mubr.msk.bf16.mxu0 %vm7928_vm5, %v10091_v16 }
 0x990   :  { %5247 = vmatpush1.bf16.msra.mxu1 %v5040_v45 }
 0x991   :  { %5248 = vmatprep.subr.bf16.mxu1 %v5044_v30 }
 0x993   :  { %5204 = vmatmul.mubr.bf16.gmra.mrb[188].mxu1 %v9613_v3  ;;  %6996 = vmatmul.mubr.bf16.gmra.mrb[244].mxu0 %v4935_v60  ;;  %v5056_v3 = vld [vmem:[#allocation3 + $0x398] sm:$0xff] }
 0x994   :  { %5249 = vmatpush1.bf16.msra.mxu1 %v5043_v51  ;;  %5213 = vmatprep.mubr.bf16.mxu1 %v9617_v14  ;;  %v5059_v14 = vld [vmem:[#allocation3 + $0x3b0] sm:$0xff] }
 0x995   :  { %5250 = vmatprep.subr.bf16.mxu1 %v5047_v34  ;;  %6999 = vmatprep.mubr.msk.bf16.mxu0 %vm7928_vm5, %v10091_v16  ;;  %v5055_v16 = vld [vmem:[#allocation3 + $0x390] sm:$0xff] }
 0x998   :  { %5251 = vmatpush1.bf16.msra.mxu1 %v5046_v53 }
 0x999   :  { %5252 = vmatprep.subr.bf16.mxu1 %v5050_v56 }
 0x99b   :  { %5214 = vmatmul.mubr.bf16.gmra.mrb[192].mxu1 %v9627_v54  ;;  %7000 = vmatmul.mubr.bf16.gmra.mrb[248].mxu0 %v4940_v27 }
 0x99c   :  { %5253 = vmatpush1.bf16.msra.mxu1 %v5049_v2  ;;  %5223 = vmatprep.mubr.bf16.mxu1 %v9631_v55 }
 0x99d   :  { %5254 = vmatprep.subr.bf16.mxu1 %v5053_v36 }
 0x9a0   :  { %5255 = vmatpush1.bf16.msra.mxu1 %v5052_v4 }
 0x9a1   :  { %5256 = vmatprep.subr.bf16.mxu1 %v5056_v3 }
 0x9a3   :  { %5224 = vmatmul.mubr.bf16.gmra.mrb[196].mxu1 %v9641_v13 }
 0x9a4   :  { %5233 = vmatprep.mubr.bf16.mxu1 %v9645_v21  ;;  %5257 = vmatpush1.bf16.msra.mxu1 %v5055_v16 }
 0x9a5   :  { %5258 = vmatprep.subr.bf16.mxu1 %v5059_v14 }
 0x9a8   :  { %5259 = vmatpush1.bf16.msra.mxu1 %v5058_v25 }
 0x9ab   :  { %5234 = vmatmul.mubr.bf16.gmra.mrb[200].mxu1 %v9655_v17  ;;  %v10101_v17 = vld [vmem:[#allocation49_spill] sm:$0xff] }
 0x9ac   :  { %5276 = vmatprep.mubr.bf16.mxu1 %v10100_v24  ;;  %v5074_v22 = vrot.slane %v9696_v10, %v10101_v17 }
 0x9b3   :  { %5277 = vmatmul.mubr.bf16.vlgmr.msra.gmra.mrb[184].mxu1 %v9662_v29 }
 0x9b4   :  { %5286 = vmatprep.mubr.bf16.mxu1 %v10100_v24 }
 0x9bb   :  { %5287 = vmatmul.mubr.bf16.gmra.mrb[188].mxu1 %v4925_v8 }
 0x9bc   :  { %5296 = vmatprep.mubr.bf16.mxu1 %v10100_v24 }
 0x9c3   :  { %5297 = vmatmul.mubr.bf16.gmra.mrb[192].mxu1 %v4930_v57 }
 0x9c4   :  { %5306 = vmatprep.mubr.bf16.mxu1 %v10100_v24 }
 0x9cb   :  { %5307 = vmatmul.mubr.bf16.gmra.mrb[196].mxu1 %v4935_v60 }
 0x9cc   :  { %5316 = vmatprep.mubr.bf16.mxu1 %v10100_v24 }
 0x9d3   :  { %5317 = vmatmul.mubr.bf16.gmra.mrb[200].mxu1 %v4940_v27 }
 0x9fe   :  { %v6679_v59 = vpop.f32.mrb[192].mxu0 }
 0x9ff   :  { %v6680_v41 = vpop.f32.mrb[193].mxu0 }
 0xa00   :  { %v6681_v6 = vadd.f32 %v6680_v41, %v6679_v59  ;;  %v6682_v18 = vpop.f32.mrb[194].mxu0 }
 0xa01   :  { %v6683_v28 = vpop.f32.mrb[195].mxu0 }
 0xa02   :  { %v6684_v1 = vadd.f32 %v6683_v28, %v6682_v18  ;;  %v5362_v33 = vadd.f32 %v6681_v6, %v5074_v22 }
 0xa04   :  { %v5365_v5 = vadd.f32 %v6684_v1, %v5074_v22 }
 0xa06   :  { %v6685_v54 = vpop.f32.mrb[196].mxu0 }
 0xa07   :  { %v6686_v15 = vpop.f32.mrb[197].mxu0 }
 0xa08   :  { %v6687_v20 = vadd.f32 %v6686_v15, %v6685_v54  ;;  %v6688_v55 = vpop.f32.mrb[198].mxu0 }
 0xa09   :  { %v6689_v42 = vpop.f32.mrb[199].mxu0 }
 0xa0a   :  { %v6690_v7 = vadd.f32 %v6689_v42, %v6688_v55  ;;  %v5370_v19 = vadd.f32 %v6687_v20, %v5074_v22 }
 0xa0c   :  { %v5373_v39 = vadd.f32 %v6690_v7, %v5074_v22 }
 0xa0e   :  { %v6691_v61 = vpop.f32.mrb[200].mxu0 }
 0xa0f   :  { %v6692_v50 = vpop.f32.mrb[201].mxu0 }
 0xa10   :  { %v6693_v52 = vadd.f32 %v6692_v50, %v6691_v61  ;;  %v6694_v63 = vpop.f32.mrb[202].mxu0 }
 0xa11   :  { %v6695_v9 = vpop.f32.mrb[203].mxu0 }
 0xa12   :  { %v6696_v44 = vadd.f32 %v6695_v9, %v6694_v63  ;;  %v5378_v53 = vadd.f32 %v6693_v52, %v5074_v22 }
 0xa14   :  { %v5381_v2 = vadd.f32 %v6696_v44, %v5074_v22 }
 0xa16   :  { %v6697_v13 = vpop.f32.mrb[204].mxu0 }
 0xa17   :  { %v6698_v32 = vpop.f32.mrb[205].mxu0 }
 0xa18   :  { %v6699_v46 = vadd.f32 %v6698_v32, %v6697_v13  ;;  %v6700_v21 = vpop.f32.mrb[206].mxu0 }
 0xa19   :  { %v6701_v49 = vpop.f32.mrb[207].mxu0 }
 0xa1a   :  { %v6702_v40 = vadd.f32 %v6701_v49, %v6700_v21  ;;  %v5386_v59 = vadd.f32 %v6699_v46, %v5074_v22 }
 0xa1c   :  { %v5389_v18 = vadd.f32 %v6702_v40, %v5074_v22 }
 0xa1e   :  { %v6703_v37 = vpop.f32.mrb[208].mxu0 }
 0xa1f   :  { %v6704_v58 = vpop.f32.mrb[209].mxu0 }
 0xa20   :  { %v6705_v31 = vadd.f32 %v6704_v58, %v6703_v37  ;;  %v6706_v38 = vpop.f32.mrb[210].mxu0 }
 0xa21   :  { %v6707_v47 = vpop.f32.mrb[211].mxu0 }
 0xa22   :  { %v6708_v0 = vadd.f32 %v6707_v47, %v6706_v38  ;;  %v5394_v42 = vadd.f32 %v6705_v31, %v5074_v22 }
 0xa24   :  { %v5397_v50 = vadd.f32 %v6708_v0, %v5074_v22 }
 0xa26   :  { %v6725_v23 = vpop.f32.mrb[212].mxu0 }
 0xa27   :  { %v6726_v29 = vpop.f32.mrb[213].mxu0 }
 0xa28   :  { %v6727_v48 = vadd.f32 %v6726_v29, %v6725_v23  ;;  %v6728_v62 = vpop.f32.mrb[214].mxu0 }
 0xa29   :  { %v6729_v26 = vpop.f32.mrb[215].mxu0 }
 0xa2a   :  { %v6730_v8 = vadd.f32 %v6729_v26, %v6728_v62  ;;  %v5435_v12 = vadd.f32 %v6727_v48, %v5362_v33 }
 0xa2c   :  { %v5438_v43 = vadd.f32 %v6730_v8, %v5365_v5 }
 0xa2e   :  { %v6731_v11 = vpop.f32.mrb[216].mxu0 }
 0xa2f   :  { %v6732_v57 = vpop.f32.mrb[217].mxu0 }
 0xa30   :  { %v6733_v35 = vadd.f32 %v6732_v57, %v6731_v11  ;;  %v6734_v45 = vpop.f32.mrb[218].mxu0 }
 0xa31   :  { %v6735_v30 = vpop.f32.mrb[219].mxu0 }
 0xa32   :  { %v6736_v60 = vadd.f32 %v6735_v30, %v6734_v45  ;;  %v5443_v51 = vadd.f32 %v6733_v35, %v5370_v19 }
 0xa34   :  { %v5446_v34 = vadd.f32 %v6736_v60, %v5373_v39 }
 0xa36   :  { %v6737_v56 = vpop.f32.mrb[220].mxu0 }
 0xa37   :  { %v6738_v27 = vpop.f32.mrb[221].mxu0 }
 0xa38   :  { %v6739_v36 = vadd.f32 %v6738_v27, %v6737_v56  ;;  %v6740_v4 = vpop.f32.mrb[222].mxu0 }
 0xa39   :  { %v6741_v3 = vpop.f32.mrb[223].mxu0 }
 0xa3a   :  { %v6742_v16 = vadd.f32 %v6741_v3, %v6740_v4  ;;  %v5451_v14 = vadd.f32 %v6739_v36, %v5378_v53 }
 0xa3c   :  { %v5454_v25 = vadd.f32 %v6742_v16, %v5381_v2 }
 0xa3e   :  { %v6743_v41 = vpop.f32.mrb[224].mxu0 }
 0xa3f   :  { %v6744_v6 = vpop.f32.mrb[225].mxu0 }
 0xa40   :  { %v6745_v28 = vadd.f32 %v6744_v6, %v6743_v41  ;;  %v6746_v1 = vpop.f32.mrb[226].mxu0 }
 0xa41   :  { %v6747_v54 = vpop.f32.mrb[227].mxu0 }
 0xa42   :  { %v6748_v15 = vadd.f32 %v6747_v54, %v6746_v1  ;;  %v5459_v20 = vadd.f32 %v6745_v28, %v5386_v59 }
 0xa44   :  { %v5462_v55 = vadd.f32 %v6748_v15, %v5389_v18 }
 0xa46   :  { %v6749_v7 = vpop.f32.mrb[228].mxu0 }
 0xa47   :  { %v6750_v61 = vpop.f32.mrb[229].mxu0 }
 0xa48   :  { %v6751_v52 = vadd.f32 %v6750_v61, %v6749_v7  ;;  %v6752_v63 = vpop.f32.mrb[230].mxu0 }
 0xa49   :  { %v6753_v9 = vpop.f32.mrb[231].mxu0 }
 0xa4a   :  { %v6754_v44 = vadd.f32 %v6753_v9, %v6752_v63  ;;  %v5467_v13 = vadd.f32 %v6751_v52, %v5394_v42  ;;  %v10103_v42 = vld [vmem:[#allocation48_spill] sm:$0xff] }
 0xa4b   :  { %v9726_v7 = vrot.slane %v9696_v10, %v10103_v42 }
 0xa4c   :  { %v5470_v32 = vadd.f32 %v6754_v44, %v5397_v50 }
 0xa4e   :  { %v5507_v46 = vpop.f32.mrb[232].mxu0 }
 0xa4f   :  { %v5508_v21 = vadd.f32 %v5507_v46, %v5435_v12  ;;  %v6985_v49 = vpop.f32.mrb[233].mxu0 }
 0xa50   :  { %v5510_v40 = vpop.f32.mrb[234].mxu0 }
 0xa51   :  { %vm5548_vm6 = vcmp.gt.f32.partialorder %v5508_v21, 0.0  ;;  %v5578_v37 = vmul.f32 0.01, %v5508_v21  ;;  %v5511_v58 = vadd.f32 %v5510_v40, %v5438_v43  ;;  %v6986_v38 = vpop.f32.mrb[235].mxu0 }
 0xa53   :  { %v9700_v47 = vsel %vm5548_vm6, %v5508_v21, %v5578_v37  ;;  %vm5551_vm7 = vcmp.gt.f32.partialorder %v5511_v58, 0.0  ;;  %v5581_v31 = vmul.f32 0.01, %v5511_v58 }
 0xa55   :  { %v9702_v17 = vsel %vm5551_vm7, %v5511_v58, %v5581_v31 }
 0xa56   :  { %v5515_v22 = vpop.f32.mrb[236].mxu0 }
 0xa57   :  { %v5516_v0 = vadd.f32 %v5515_v22, %v5443_v51  ;;  %v6989_v33 = vpop.f32.mrb[237].mxu0 }
 0xa58   :  { %v5518_v23 = vpop.f32.mrb[238].mxu0 }
 0xa59   :  { %vm5554_vm8 = vcmp.gt.f32.partialorder %v5516_v0, 0.0  ;;  %v5584_v29 = vmul.f32 0.01, %v5516_v0  ;;  %v5519_v5 = vadd.f32 %v5518_v23, %v5446_v34  ;;  %v6990_v48 = vpop.f32.mrb[239].mxu0 }
 0xa5b   :  { %v9704_v62 = vsel %vm5554_vm8, %v5516_v0, %v5584_v29  ;;  %vm5557_vm9 = vcmp.gt.f32.partialorder %v5519_v5, 0.0  ;;  %v5587_v26 = vmul.f32 0.01, %v5519_v5 }
 0xa5d   :  { %v9706_v8 = vsel %vm5557_vm9, %v5519_v5, %v5587_v26 }
 0xa5e   :  { %v5523_v12 = vpop.f32.mrb[240].mxu0 }
 0xa5f   :  { %v5524_v43 = vadd.f32 %v5523_v12, %v5451_v14  ;;  %v6993_v19 = vpop.f32.mrb[241].mxu0 }
 0xa60   :  { %v5526_v11 = vpop.f32.mrb[242].mxu0 }
 0xa61   :  { %vm5560_vm10 = vcmp.gt.f32.partialorder %v5524_v43, 0.0  ;;  %v5590_v57 = vmul.f32 0.01, %v5524_v43  ;;  %v5527_v39 = vadd.f32 %v5526_v11, %v5454_v25  ;;  %v6994_v35 = vpop.f32.mrb[243].mxu0 }
 0xa63   :  { %v9708_v45 = vsel %vm5560_vm10, %v5524_v43, %v5590_v57  ;;  %vm5563_vm11 = vcmp.gt.f32.partialorder %v5527_v39, 0.0  ;;  %v5593_v30 = vmul.f32 0.01, %v5527_v39 }
 0xa65   :  { %v9710_v60 = vsel %vm5563_vm11, %v5527_v39, %v5593_v30 }
 0xa66   :  { %v5531_v51 = vpop.f32.mrb[244].mxu0 }
 0xa67   :  { %v5532_v34 = vadd.f32 %v5531_v51, %v5459_v20  ;;  %v6997_v53 = vpop.f32.mrb[245].mxu0  ;;  %v10102_v20 = vld [vmem:[#allocation47_spill] sm:$0xff] }
 0xa68   :  { %v5534_v56 = vpop.f32.mrb[246].mxu0 }
 0xa69   :  { %vm5566_vm12 = vcmp.gt.f32.partialorder %v5532_v34, 0.0  ;;  %v5596_v27 = vmul.f32 0.01, %v5532_v34  ;;  %v5535_v2 = vadd.f32 %v5534_v56, %v5462_v55  ;;  %v6998_v36 = vpop.f32.mrb[247].mxu0  ;;  %v9722_v55 = vrot.slane %v9696_v10, %v10102_v20 }
 0xa6b   :  { %v9712_v4 = vsel %vm5566_vm12, %v5532_v34, %v5596_v27  ;;  %vm5569_vm13 = vcmp.gt.f32.partialorder %v5535_v2, 0.0  ;;  %v5599_v3 = vmul.f32 0.01, %v5535_v2 }
 0xa6d   :  { %v9714_v16 = vsel %vm5569_vm13, %v5535_v2, %v5599_v3 }
 0xa6e   :  { %v5539_v14 = vpop.f32.mrb[248].mxu0 }
 0xa6f   :  { %v5540_v25 = vadd.f32 %v5539_v14, %v5467_v13  ;;  %v7001_v59 = vpop.f32.mrb[249].mxu0 }
 0xa70   :  { %v5542_v41 = vpop.f32.mrb[250].mxu0 }
 0xa71   :  { %vm5572_vm14 = vcmp.gt.f32.partialorder %v5540_v25, 0.0  ;;  %v5602_v6 = vmul.f32 0.01, %v5540_v25  ;;  %v5543_v18 = vadd.f32 %v5542_v41, %v5470_v32  ;;  %v7002_v28 = vpop.f32.mrb[251].mxu0 }
 0xa73   :  { %v9716_v1 = vsel %vm5572_vm14, %v5540_v25, %v5602_v6  ;;  %vm5575_vm15 = vcmp.gt.f32.partialorder %v5543_v18, 0.0  ;;  %v5605_v54 = vmul.f32 0.01, %v5543_v18 }
 0xa75   :  { %v9718_v15 = vsel %vm5575_vm15, %v5543_v18, %v5605_v54 }
 0xa86   :  { %v5278_v61 = vpop.f32.mrb[184].mxu1 }
 0xa87   :  { %v7199_v50 = vadd.f32 %v5278_v61, %v9722_v55  ;;  %v5280_v52 = vpop.f32.mrb[185].mxu1 }
 0xa88   :  { %v7200_v63 = vadd.f32 %v5280_v52, %v9726_v7  ;;  %v5282_v9 = vpop.f32.mrb[186].mxu1 }
 0xa89   :  { %vm5546_vm0 = vcmp.gt.f32.partialorder %v7199_v50, 0.0  ;;  %v5576_v44 = vmul.f32 0.01, %v7199_v50  ;;  %v7201_v13 = vadd.f32 %v5282_v9, %v9722_v55  ;;  %v5284_v32 = vpop.f32.mrb[187].mxu1 }
 0xa8a   :  { %vm5547_vm1 = vcmp.gt.f32.partialorder %v7200_v63, 0.0  ;;  %v5577_v46 = vmul.f32 0.01, %v7200_v63  ;;  %v7202_v21 = vadd.f32 %v5284_v32, %v9726_v7 }
 0xa8b   :  { %v9732_v49 = vsel %vm5546_vm0, %v7199_v50, %v5576_v44  ;;  %vm5549_vm2 = vcmp.gt.f32.partialorder %v7201_v13, 0.0  ;;  %v5579_v10 = vmul.f32 0.01, %v7201_v13 }
 0xa8c   :  { %v9734_v40 = vsel %vm5547_vm1, %v7200_v63, %v5577_v46  ;;  %vm5550_vm3 = vcmp.gt.f32.partialorder %v7202_v21, 0.0  ;;  %v5580_v37 = vmul.f32 0.01, %v7202_v21 }
 0xa8d   :  { %v9736_v58 = vsel %vm5549_vm2, %v7201_v13, %v5579_v10 }
 0xa8e   :  { %v9738_v38 = vsel %vm5550_vm3, %v7202_v21, %v5580_v37  ;;  %v5288_v31 = vpop.f32.mrb[188].mxu1 }
 0xa8f   :  { %v7203_v22 = vadd.f32 %v5288_v31, %v9722_v55  ;;  %v5290_v0 = vpop.f32.mrb[189].mxu1 }
 0xa90   :  { %v7204_v33 = vadd.f32 %v5290_v0, %v9726_v7  ;;  %v5292_v23 = vpop.f32.mrb[190].mxu1 }
 0xa91   :  { %vm5552_vm4 = vcmp.gt.f32.partialorder %v7203_v22, 0.0  ;;  %v5582_v29 = vmul.f32 0.01, %v7203_v22  ;;  %v7205_v5 = vadd.f32 %v5292_v23, %v9722_v55  ;;  %v5294_v48 = vpop.f32.mrb[191].mxu1 }
 0xa92   :  { %vm5553_vm5 = vcmp.gt.f32.partialorder %v7204_v33, 0.0  ;;  %v5583_v26 = vmul.f32 0.01, %v7204_v33  ;;  %v7206_v12 = vadd.f32 %v5294_v48, %v9726_v7 }
 0xa93   :  { %v9744_v43 = vsel %vm5552_vm4, %v7203_v22, %v5582_v29  ;;  %vm5555_vm6 = vcmp.gt.f32.partialorder %v7205_v5, 0.0  ;;  %v5585_v19 = vmul.f32 0.01, %v7205_v5 }
 0xa94   :  { %v9746_v11 = vsel %vm5553_vm5, %v7204_v33, %v5583_v26  ;;  %vm5556_vm7 = vcmp.gt.f32.partialorder %v7206_v12, 0.0  ;;  %v5586_v57 = vmul.f32 0.01, %v7206_v12 }
 0xa95   :  { %v9748_v39 = vsel %vm5555_vm6, %v7205_v5, %v5585_v19 }
 0xa96   :  { %v9750_v35 = vsel %vm5556_vm7, %v7206_v12, %v5586_v57  ;;  %v5298_v30 = vpop.f32.mrb[192].mxu1 }
 0xa97   :  { %v7207_v51 = vadd.f32 %v5298_v30, %v9722_v55  ;;  %v5300_v34 = vpop.f32.mrb[193].mxu1 }
 0xa98   :  { %v7208_v53 = vadd.f32 %v5300_v34, %v9726_v7  ;;  %v5302_v56 = vpop.f32.mrb[194].mxu1 }
 0xa99   :  { %vm5558_vm8 = vcmp.gt.f32.partialorder %v7207_v51, 0.0  ;;  %v5588_v27 = vmul.f32 0.01, %v7207_v51  ;;  %v7209_v2 = vadd.f32 %v5302_v56, %v9722_v55  ;;  %v5304_v36 = vpop.f32.mrb[195].mxu1 }
 0xa9a   :  { %vm5559_vm9 = vcmp.gt.f32.partialorder %v7208_v53, 0.0  ;;  %v5589_v3 = vmul.f32 0.01, %v7208_v53  ;;  %v7210_v14 = vadd.f32 %v5304_v36, %v9726_v7 }
 0xa9b   :  { %v9756_v25 = vsel %vm5558_vm8, %v7207_v51, %v5588_v27  ;;  %vm5561_vm10 = vcmp.gt.f32.partialorder %v7209_v2, 0.0  ;;  %v5591_v59 = vmul.f32 0.01, %v7209_v2 }
 0xa9c   :  { %v9758_v41 = vsel %vm5559_vm9, %v7208_v53, %v5589_v3  ;;  %vm5562_vm11 = vcmp.gt.f32.partialorder %v7210_v14, 0.0  ;;  %v5592_v6 = vmul.f32 0.01, %v7210_v14 }
 0xa9d   :  { %v9760_v18 = vsel %vm5561_vm10, %v7209_v2, %v5591_v59 }
 0xa9e   :  { %v9762_v28 = vsel %vm5562_vm11, %v7210_v14, %v5592_v6  ;;  %v5308_v54 = vpop.f32.mrb[196].mxu1 }
 0xa9f   :  { %v7211_v61 = vadd.f32 %v5308_v54, %v9722_v55  ;;  %v5310_v50 = vpop.f32.mrb[197].mxu1 }
 0xaa0   :  { %v7212_v52 = vadd.f32 %v5310_v50, %v9726_v7  ;;  %v5312_v63 = vpop.f32.mrb[198].mxu1 }
 0xaa1   :  { %vm5564_vm12 = vcmp.gt.f32.partialorder %v7211_v61, 0.0  ;;  %v5594_v9 = vmul.f32 0.01, %v7211_v61  ;;  %v7213_v44 = vadd.f32 %v5312_v63, %v9722_v55  ;;  %v5314_v13 = vpop.f32.mrb[199].mxu1 }
 0xaa2   :  { %vm5565_vm13 = vcmp.gt.f32.partialorder %v7212_v52, 0.0  ;;  %v5595_v32 = vmul.f32 0.01, %v7212_v52  ;;  %v7214_v46 = vadd.f32 %v5314_v13, %v9726_v7 }
 0xaa3   :  { %v9768_v21 = vsel %vm5564_vm12, %v7211_v61, %v5594_v9  ;;  %vm5567_vm14 = vcmp.gt.f32.partialorder %v7213_v44, 0.0  ;;  %v5597_v10 = vmul.f32 0.01, %v7213_v44 }
 0xaa4   :  { %v9770_v37 = vsel %vm5565_vm13, %v7212_v52, %v5595_v32  ;;  %vm5568_vm15 = vcmp.gt.f32.partialorder %v7214_v46, 0.0  ;;  %v5598_v31 = vmul.f32 0.01, %v7214_v46 }
 0xaa5   :  { %v9772_v22 = vsel %vm5567_vm14, %v7213_v44, %v5597_v10 }
 0xaa6   :  { %v9774_v0 = vsel %vm5568_vm15, %v7214_v46, %v5598_v31  ;;  %v5318_v33 = vpop.f32.mrb[200].mxu1 }
 0xaa7   :  { %v7215_v23 = vadd.f32 %v5318_v33, %v9722_v55  ;;  %v5320_v29 = vpop.f32.mrb[201].mxu1 }
 0xaa8   :  { %v7216_v5 = vadd.f32 %v5320_v29, %v9726_v7  ;;  %v5322_v48 = vpop.f32.mrb[202].mxu1 }
 0xaa9   :  { %vm5570_vm0 = vcmp.gt.f32.partialorder %v7215_v23, 0.0  ;;  %v5600_v26 = vmul.f32 0.01, %v7215_v23  ;;  %v7217_v12 = vadd.f32 %v5322_v48, %v9722_v55  ;;  %v5324_v19 = vpop.f32.mrb[203].mxu1 }
 0xaaa   :  { %vm5571_vm1 = vcmp.gt.f32.partialorder %v7216_v5, 0.0  ;;  %v5601_v57 = vmul.f32 0.01, %v7216_v5  ;;  %v7218_v30 = vadd.f32 %v5324_v19, %v9726_v7 }
 0xaab   :  { %v9780_v51 = vsel %vm5570_vm0, %v7215_v23, %v5600_v26  ;;  %vm5573_vm2 = vcmp.gt.f32.partialorder %v7217_v12, 0.0  ;;  %v5603_v34 = vmul.f32 0.01, %v7217_v12 }
 0xaac   :  { %v9782_v53 = vsel %vm5571_vm1, %v7216_v5, %v5601_v57  ;;  %vm5574_vm3 = vcmp.gt.f32.partialorder %v7218_v30, 0.0  ;;  %v5604_v56 = vmul.f32 0.01, %v7218_v30 }
 0xaad   :  { %v9784_v27 = vsel %vm5573_vm2, %v7217_v12, %v5603_v34 }
 0xaae   :  { %v9786_v2 = vsel %vm5574_vm3, %v7218_v30, %v5604_v56 }
 0xaaf   :  { %7886 = dma.done.wait [#allocation6 + $0x2], 6144 }
 0xab0   :  { %7887 = vsyncadd [#allocation6 + $0x2], 4294961152  ;;  %v5641_v55 = vpack.c.bf16 %v9738_v38, %v9734_v40  ;;  %v5656_v36 = vld [vmem:[#allocation4 + $0x8] sm:$0xff]  ;;  %v5655_v7 = vld [vmem:[#allocation4] sm:$0xff] }
 0xab1   :  { %v5658_v3 = vld [vmem:[#allocation4 + $0x18] sm:$0xff]  ;;  %5715 = vmatprep.subr.bf16.mxu0 %v5656_v36  ;;  %v5657_v14 = vld [vmem:[#allocation4 + $0x10] sm:$0xff]  ;;  %v5660_v59 = vld [vmem:[#allocation4 + $0x28] sm:$0xff]  ;;  %v5640_v36 = vpack.c.bf16 %v9736_v58, %v9732_v49  ;;  %v5647_v49 = vpack.c.bf16 %v9762_v28, %v9758_v41 }
 0xab2   :  { %5747 = vmatprep.mubr.bf16.mxu0 %v5641_v55  ;;  %5716 = vmatpush1.bf16.msra.mxu0 %v5655_v7  ;;  %v5659_v6 = vld [vmem:[#allocation4 + $0x20] sm:$0xff]  ;;  %v5662_v54 = vld [vmem:[#allocation4 + $0x38] sm:$0xff]  ;;  %v5661_v61 = vld [vmem:[#allocation4 + $0x30] sm:$0xff]  ;;  %v5644_v7 = vpack.c.bf16 %v9750_v35, %v9746_v11 }
 0xab3   :  { %5717 = vmatprep.subr.bf16.mxu0 %v5658_v3  ;;  %v5664_v50 = vld [vmem:[#allocation4 + $0x48] sm:$0xff]  ;;  %v5663_v40 = vld [vmem:[#allocation4 + $0x40] sm:$0xff]  ;;  %v5666_v38 = vld [vmem:[#allocation4 + $0x58] sm:$0xff] }
 0xab4   :  { %v5665_v52 = vld [vmem:[#allocation4 + $0x50] sm:$0xff]  ;;  %v5668_v63 = vld [vmem:[#allocation4 + $0x68] sm:$0xff]  ;;  %v5667_v9 = vld [vmem:[#allocation4 + $0x60] sm:$0xff] }
 0xab5   :  { %v5670_v44 = vld [vmem:[#allocation4 + $0x78] sm:$0xff]  ;;  %v5669_v13 = vld [vmem:[#allocation4 + $0x70] sm:$0xff]  ;;  %v5672_v32 = vld [vmem:[#allocation4 + $0x88] sm:$0xff] }
 0xab6   :  { %5718 = vmatpush1.bf16.msra.mxu0 %v5657_v14  ;;  %v5671_v46 = vld [vmem:[#allocation4 + $0x80] sm:$0xff]  ;;  %v5674_v10 = vld [vmem:[#allocation4 + $0x98] sm:$0xff]  ;;  %v5673_v31 = vld [vmem:[#allocation4 + $0x90] sm:$0xff] }
 0xab7   :  { %5719 = vmatprep.subr.bf16.mxu0 %v5660_v59  ;;  %v5676_v33 = vld [vmem:[#allocation4 + $0xa8] sm:$0xff]  ;;  %v5675_v23 = vld [vmem:[#allocation4 + $0xa0] sm:$0xff]  ;;  %v5678_v29 = vld [vmem:[#allocation4 + $0xb8] sm:$0xff] }
 0xab8   :  { %v5677_v5 = vld [vmem:[#allocation4 + $0xb0] sm:$0xff]  ;;  %v5680_v48 = vld [vmem:[#allocation4 + $0xc8] sm:$0xff]  ;;  %v5679_v26 = vld [vmem:[#allocation4 + $0xc0] sm:$0xff] }
 0xab9   :  { %v5682_v12 = vld [vmem:[#allocation4 + $0xd8] sm:$0xff]  ;;  %v5681_v19 = vld [vmem:[#allocation4 + $0xd0] sm:$0xff]  ;;  %v5684_v57 = vld [vmem:[#allocation4 + $0xe8] sm:$0xff] }
 0xaba   :  { %5720 = vmatpush1.bf16.msra.mxu0 %v5659_v6  ;;  %v5683_v30 = vld [vmem:[#allocation4 + $0xe0] sm:$0xff]  ;;  %v5686_v34 = vld [vmem:[#allocation4 + $0xf8] sm:$0xff]  ;;  %v5685_v56 = vld [vmem:[#allocation4 + $0xf0] sm:$0xff] }
 0xabb   :  { %5721 = vmatprep.subr.bf16.mxu0 %v5662_v54  ;;  %v5688_v55 = vld [vmem:[#allocation4 + $0x108] sm:$0xff]  ;;  %v5687_v3 = vld [vmem:[#allocation4 + $0x100] sm:$0xff]  ;;  %v5690_v14 = vld [vmem:[#allocation4 + $0x118] sm:$0xff]  ;;  %v5643_v54 = vpack.c.bf16 %v9748_v39, %v9744_v43  ;;  %v5650_v43 = vpack.c.bf16 %v9774_v0, %v9770_v37  ;;  %v5652_v0 = vpack.c.bf16 %v9784_v27, %v9780_v51  ;;  %v5651_v51 = vpack.c.bf16 %v9714_v16, %v9712_v4 }
 0xabc   :  { %v5689_v59 = vld [vmem:[#allocation4 + $0x110] sm:$0xff]  ;;  %v5692_v6 = vld [vmem:[#allocation4 + $0x128] sm:$0xff]  ;;  %v5691_v58 = vld [vmem:[#allocation4 + $0x120] sm:$0xff] }
 0xabd   :  { %v5693_v11 = vld [vmem:[#allocation4 + $0x130] sm:$0xff]  ;;  %v5696_v35 = vld [vmem:[#allocation4 + $0x148] sm:$0xff]  ;;  %v5695_v39 = vld [vmem:[#allocation4 + $0x140] sm:$0xff] }
 0xabe   :  { %5722 = vmatpush1.bf16.msra.mxu0 %v5661_v61  ;;  %v5694_v61 = vld [vmem:[#allocation4 + $0x138] sm:$0xff]  ;;  %v5697_v41 = vld [vmem:[#allocation4 + $0x150] sm:$0xff]  ;;  %v5700_v28 = vld [vmem:[#allocation4 + $0x168] sm:$0xff] }
 0xabf   :  { %5723 = vmatprep.subr.bf16.mxu0 %v5664_v50  ;;  %v5646_v50 = vpack.c.bf16 %v9760_v18, %v9756_v25  ;;  %v5653_v25 = vpack.c.bf16 %v9786_v2, %v9782_v53  ;;  %v5699_v18 = vld [vmem:[#allocation4 + $0x160] sm:$0xff]  ;;  %v5701_v37 = vld [vmem:[#allocation4 + $0x170] sm:$0xff]  ;;  %v5648_v53 = vpack.c.bf16 %v9710_v60, %v9708_v45 }
 0xac2   :  { %5724 = vmatpush1.bf16.msra.mxu0 %v5663_v40  ;;  %v5698_v40 = vld [vmem:[#allocation4 + $0x158] sm:$0xff] }
 0xac3   :  { %5725 = vmatprep.subr.bf16.mxu0 %v5666_v38  ;;  %v5649_v38 = vpack.c.bf16 %v9772_v22, %v9768_v21  ;;  %v5642_v21 = vpack.c.bf16 %v9702_v17, %v9700_v47  ;;  %v5645_v22 = vpack.c.bf16 %v9706_v8, %v9704_v62  ;;  %v5654_v47 = vpack.c.bf16 %v9718_v15, %v9716_v1  ;;  %v5703_v17 = vld [vmem:[#allocation21] sm:$0x3] }
 0xac4   :  { %v9824_v62 = vrot.slane %v5703_v17, %v10102_v20  ;;  %v9827_v8 = vrot.slane %v5703_v17, %v10103_v42 }
 0xac6   :  { %5726 = vmatpush1.bf16.msra.mxu0 %v5665_v52  ;;  %v5702_v52 = vld [vmem:[#allocation4 + $0x178] sm:$0xff] }
 0xac7   :  { %5727 = vmatprep.subr.bf16.mxu0 %v5668_v63 }
 0xaca   :  { %5728 = vmatpush1.bf16.msra.mxu0 %v5667_v9 }
 0xacb   :  { %5729 = vmatprep.subr.bf16.mxu0 %v5670_v44 }
 0xace   :  { %5730 = vmatpush1.bf16.msra.mxu0 %v5669_v13 }
 0xacf   :  { %5731 = vmatprep.subr.bf16.mxu0 %v5672_v32 }
 0xad2   :  { %5732 = vmatpush1.bf16.msra.mxu0 %v5671_v46 }
 0xad3   :  { %5733 = vmatprep.subr.bf16.mxu0 %v5674_v10 }
 0xad6   :  { %5734 = vmatpush1.bf16.msra.mxu0 %v5673_v31 }
 0xad7   :  { %5735 = vmatprep.subr.bf16.mxu0 %v5676_v33 }
 0xada   :  { %5736 = vmatpush1.bf16.msra.mxu0 %v5675_v23 }
 0xadb   :  { %5737 = vmatprep.subr.bf16.mxu0 %v5678_v29 }
 0xade   :  { %5738 = vmatpush1.bf16.msra.mxu0 %v5677_v5 }
 0xadf   :  { %5739 = vmatprep.subr.bf16.mxu0 %v5680_v48 }
 0xae2   :  { %5740 = vmatpush1.bf16.msra.mxu0 %v5679_v26 }
 0xae3   :  { %5741 = vmatprep.subr.bf16.mxu0 %v5682_v12 }
 0xae6   :  { %5742 = vmatpush1.bf16.msra.mxu0 %v5681_v19 }
 0xae7   :  { %5743 = vmatprep.subr.bf16.mxu0 %v5684_v57 }
 0xaea   :  { %5744 = vmatpush1.bf16.msra.mxu0 %v5683_v30 }
 0xaeb   :  { %5745 = vmatprep.subr.bf16.mxu0 %v5686_v34 }
 0xaee   :  { %5746 = vmatpush1.bf16.msra.mxu0 %v5685_v56 }
 0xaef   :  { %5798 = vmatprep.subr.bf16.mxu0 %v5688_v55 }
 0xaf1   :  { %5748 = vmatmul.mubr.bf16.vlgmr.msra.gmra.mrb[252].mxu0 %v5640_v36 }
 0xaf2   :  { %5799 = vmatpush1.bf16.msra.mxu0 %v5687_v3  ;;  %5757 = vmatprep.mubr.bf16.mxu0 %v5644_v7 }
 0xaf3   :  { %5800 = vmatprep.subr.bf16.mxu0 %v5690_v14 }
 0xaf6   :  { %5801 = vmatpush1.bf16.msra.mxu0 %v5689_v59 }
 0xaf7   :  { %5802 = vmatprep.subr.bf16.mxu0 %v5692_v6 }
 0xaf9   :  { %5758 = vmatmul.mubr.bf16.gmra.mrb[4].mxu0 %v5643_v54 }
 0xafa   :  { %5803 = vmatpush1.bf16.msra.mxu0 %v5691_v58  ;;  %5767 = vmatprep.mubr.bf16.mxu0 %v5647_v49 }
 0xafb   :  { %5804 = vmatprep.subr.bf16.mxu0 %v5694_v61 }
 0xafe   :  { %5805 = vmatpush1.bf16.msra.mxu0 %v5693_v11 }
 0xaff   :  { %5806 = vmatprep.subr.bf16.mxu0 %v5696_v35 }
 0xb01   :  { %5768 = vmatmul.mubr.bf16.gmra.mrb[8].mxu0 %v5646_v50 }
 0xb02   :  { %5807 = vmatpush1.bf16.msra.mxu0 %v5695_v39  ;;  %5777 = vmatprep.mubr.bf16.mxu0 %v5650_v43 }
 0xb03   :  { %5808 = vmatprep.subr.bf16.mxu0 %v5698_v40 }
 0xb06   :  { %5809 = vmatpush1.bf16.msra.mxu0 %v5697_v41 }
 0xb07   :  { %5810 = vmatprep.subr.bf16.mxu0 %v5700_v28 }
 0xb09   :  { %5778 = vmatmul.mubr.bf16.gmra.mrb[12].mxu0 %v5649_v38 }
 0xb0a   :  { %5787 = vmatprep.mubr.bf16.mxu0 %v5653_v25  ;;  %5811 = vmatpush1.bf16.msra.mxu0 %v5699_v18 }
 0xb0b   :  { %5812 = vmatprep.subr.bf16.mxu0 %v5702_v52 }
 0xb0e   :  { %5813 = vmatpush1.bf16.msra.mxu0 %v5701_v37 }
 0xb11   :  { %5788 = vmatmul.mubr.bf16.gmra.mrb[16].mxu0 %v5652_v0 }
 0xb12   :  { %5830 = vmatprep.mubr.bf16.mxu0 %v10100_v24 }
 0xb19   :  { %5831 = vmatmul.mubr.bf16.vlgmr.msra.gmra.mrb[252].mxu0 %v5642_v21 }
 0xb1a   :  { %5840 = vmatprep.mubr.bf16.mxu0 %v10100_v24 }
 0xb21   :  { %5841 = vmatmul.mubr.bf16.gmra.mrb[4].mxu0 %v5645_v22 }
 0xb22   :  { %5850 = vmatprep.mubr.bf16.mxu0 %v10100_v24 }
 0xb29   :  { %5851 = vmatmul.mubr.bf16.gmra.mrb[8].mxu0 %v5648_v53 }
 0xb2a   :  { %5860 = vmatprep.mubr.bf16.mxu0 %v10100_v24 }
 0xb31   :  { %5861 = vmatmul.mubr.bf16.gmra.mrb[12].mxu0 %v5651_v51 }
 0xb32   :  { %5870 = vmatprep.mubr.bf16.mxu0 %v10100_v24 }
 0xb39   :  { %5871 = vmatmul.mubr.bf16.gmra.mrb[16].mxu0 %v5654_v47 }
 0xbec   :  { %v5832_v45 = vpop.f32.mrb[252].mxu0 }
 0xbed   :  { %v7219_v60 = vadd.f32 %v5832_v45, %v9824_v62  ;;  %v5834_v27 = vpop.f32.mrb[253].mxu0 }
 0xbee   :  { %v7220_v4 = vadd.f32 %v5834_v27, %v9827_v8  ;;  %v5836_v16 = vpop.f32.mrb[254].mxu0 }
 0xbef   :  { %vm5881_vm4 = vcmp.gt.f32.partialorder %v7219_v60, 0.0  ;;  %v5901_v24 = vmul.f32 0.01, %v7219_v60  ;;  %v7221_v2 = vadd.f32 %v5836_v16, %v9824_v62  ;;  %v5838_v1 = vpop.f32.mrb[255].mxu0 }
 0xbf0   :  { %vm5882_vm5 = vcmp.gt.f32.partialorder %v7220_v4, 0.0  ;;  %v5902_v15 = vmul.f32 0.01, %v7220_v4  ;;  %v7222_v20 = vadd.f32 %v5838_v1, %v9827_v8 }
 0xbf1   :  { %v9833_v63 = vsel %vm5881_vm4, %v7219_v60, %v5901_v24  ;;  %vm5883_vm6 = vcmp.gt.f32.partialorder %v7221_v2, 0.0  ;;  %v5903_v42 = vmul.f32 0.01, %v7221_v2 }
 0xbf2   :  { %v9835_v9 = vsel %vm5882_vm5, %v7220_v4, %v5902_v15  ;;  %vm5884_vm7 = vcmp.gt.f32.partialorder %v7222_v20, 0.0  ;;  %v5904_v44 = vmul.f32 0.01, %v7222_v20 }
 0xbf3   :  { %v9837_v13 = vsel %vm5883_vm6, %v7221_v2, %v5903_v42 }
 0xbf4   :  { %v9839_v32 = vsel %vm5884_vm7, %v7222_v20, %v5904_v44  ;;  %v5842_v46 = vpop.f32.mrb[4].mxu0 }
 0xbf5   :  { %v7223_v10 = vadd.f32 %v5842_v46, %v9824_v62  ;;  %v5844_v31 = vpop.f32.mrb[5].mxu0 }
 0xbf6   :  { %v7224_v33 = vadd.f32 %v5844_v31, %v9827_v8  ;;  %v5846_v23 = vpop.f32.mrb[6].mxu0 }
 0xbf7   :  { %vm5885_vm8 = vcmp.gt.f32.partialorder %v7223_v10, 0.0  ;;  %v5905_v29 = vmul.f32 0.01, %v7223_v10  ;;  %v7225_v5 = vadd.f32 %v5846_v23, %v9824_v62  ;;  %v5848_v48 = vpop.f32.mrb[7].mxu0 }
 0xbf8   :  { %vm5886_vm9 = vcmp.gt.f32.partialorder %v7224_v33, 0.0  ;;  %v5906_v26 = vmul.f32 0.01, %v7224_v33  ;;  %v7226_v12 = vadd.f32 %v5848_v48, %v9827_v8 }
 0xbf9   :  { %v9845_v19 = vsel %vm5885_vm8, %v7223_v10, %v5905_v29  ;;  %vm5887_vm10 = vcmp.gt.f32.partialorder %v7225_v5, 0.0  ;;  %v5907_v57 = vmul.f32 0.01, %v7225_v5 }
 0xbfa   :  { %v9847_v30 = vsel %vm5886_vm9, %v7224_v33, %v5906_v26  ;;  %vm5888_vm11 = vcmp.gt.f32.partialorder %v7226_v12, 0.0  ;;  %v5908_v34 = vmul.f32 0.01, %v7226_v12 }
 0xbfb   :  { %v9849_v56 = vsel %vm5887_vm10, %v7225_v5, %v5907_v57 }
 0xbfc   :  { %v9851_v55 = vsel %vm5888_vm11, %v7226_v12, %v5908_v34  ;;  %v5852_v36 = vpop.f32.mrb[8].mxu0 }
 0xbfd   :  { %v7227_v7 = vadd.f32 %v5852_v36, %v9824_v62  ;;  %v5854_v3 = vpop.f32.mrb[9].mxu0 }
 0xbfe   :  { %v7228_v14 = vadd.f32 %v5854_v3, %v9827_v8  ;;  %v5856_v59 = vpop.f32.mrb[10].mxu0 }
 0xbff   :  { %vm5889_vm12 = vcmp.gt.f32.partialorder %v7227_v7, 0.0  ;;  %v5909_v6 = vmul.f32 0.01, %v7227_v7  ;;  %v7229_v54 = vadd.f32 %v5856_v59, %v9824_v62  ;;  %v5858_v49 = vpop.f32.mrb[11].mxu0 }
 0xc00   :  { %vm5890_vm13 = vcmp.gt.f32.partialorder %v7228_v14, 0.0  ;;  %v5910_v58 = vmul.f32 0.01, %v7228_v14  ;;  %v7230_v61 = vadd.f32 %v5858_v49, %v9827_v8 }
 0xc01   :  { %v9857_v11 = vsel %vm5889_vm12, %v7227_v7, %v5909_v6  ;;  %vm5891_vm14 = vcmp.gt.f32.partialorder %v7229_v54, 0.0  ;;  %v5911_v35 = vmul.f32 0.01, %v7229_v54 }
 0xc02   :  { %v9859_v50 = vsel %vm5890_vm13, %v7228_v14, %v5910_v58  ;;  %vm5892_vm15 = vcmp.gt.f32.partialorder %v7230_v61, 0.0  ;;  %v5912_v43 = vmul.f32 0.01, %v7230_v61 }
 0xc03   :  { %v9861_v39 = vsel %vm5891_vm14, %v7229_v54, %v5911_v35 }
 0xc04   :  { %v9863_v40 = vsel %vm5892_vm15, %v7230_v61, %v5912_v43  ;;  %v5862_v41 = vpop.f32.mrb[12].mxu0 }
 0xc05   :  { %v7231_v28 = vadd.f32 %v5862_v41, %v9824_v62  ;;  %v5864_v38 = vpop.f32.mrb[13].mxu0 }
 0xc06   :  { %v7232_v25 = vadd.f32 %v5864_v38, %v9827_v8  ;;  %v5866_v18 = vpop.f32.mrb[14].mxu0 }
 0xc07   :  { %vm5893_vm0 = vcmp.gt.f32.partialorder %v7231_v28, 0.0  ;;  %v5913_v52 = vmul.f32 0.01, %v7231_v28  ;;  %v7233_v37 = vadd.f32 %v5866_v18, %v9824_v62  ;;  %v5868_v0 = vpop.f32.mrb[15].mxu0 }
 0xc08   :  { %vm5894_vm1 = vcmp.gt.f32.partialorder %v7232_v25, 0.0  ;;  %v5914_v21 = vmul.f32 0.01, %v7232_v25  ;;  %v7234_v22 = vadd.f32 %v5868_v0, %v9827_v8 }
 0xc09   :  { %v9869_v53 = vsel %vm5893_vm0, %v7231_v28, %v5913_v52  ;;  %vm5895_vm2 = vcmp.gt.f32.partialorder %v7233_v37, 0.0  ;;  %v5915_v51 = vmul.f32 0.01, %v7233_v37 }
 0xc0a   :  { %v9871_v47 = vsel %vm5894_vm1, %v7232_v25, %v5914_v21  ;;  %vm5896_vm3 = vcmp.gt.f32.partialorder %v7234_v22, 0.0  ;;  %v5916_v17 = vmul.f32 0.01, %v7234_v22 }
 0xc0b   :  { %v9873_v45 = vsel %vm5895_vm2, %v7233_v37, %v5915_v51 }
 0xc0c   :  { %v9875_v60 = vsel %vm5896_vm3, %v7234_v22, %v5916_v17  ;;  %v5872_v27 = vpop.f32.mrb[16].mxu0 }
 0xc0d   :  { %v7235_v4 = vadd.f32 %v5872_v27, %v9824_v62  ;;  %v5874_v16 = vpop.f32.mrb[17].mxu0 }
 0xc0e   :  { %v7236_v24 = vadd.f32 %v5874_v16, %v9827_v8  ;;  %v5876_v2 = vpop.f32.mrb[18].mxu0 }
 0xc0f   :  { %vm5897_vm4 = vcmp.gt.f32.partialorder %v7235_v4, 0.0  ;;  %v5917_v1 = vmul.f32 0.01, %v7235_v4  ;;  %v7237_v15 = vadd.f32 %v5876_v2, %v9824_v62  ;;  %v5878_v20 = vpop.f32.mrb[19].mxu0 }
 0xc10   :  { %vm5898_vm5 = vcmp.gt.f32.partialorder %v7236_v24, 0.0  ;;  %v5918_v42 = vmul.f32 0.01, %v7236_v24  ;;  %v7238_v44 = vadd.f32 %v5878_v20, %v9827_v8 }
 0xc11   :  { %v5937_v46 = vsel %vm5897_vm4, %v7235_v4, %v5917_v1  ;;  %vm5899_vm6 = vcmp.gt.f32.partialorder %v7237_v15, 0.0  ;;  %v5919_v10 = vmul.f32 0.01, %v7237_v15 }
 0xc12   :  { %v5938_v31 = vsel %vm5898_vm5, %v7236_v24, %v5918_v42  ;;  %vm5900_vm7 = vcmp.gt.f32.partialorder %v7238_v44, 0.0  ;;  %v5920_v33 = vmul.f32 0.01, %v7238_v44 }
 0xc13   :  { %v5939_v23 = vsel %vm5899_vm6, %v7237_v15, %v5919_v10 }
 0xc14   :  { %v5940_v29 = vsel %vm5900_vm7, %v7238_v44, %v5920_v33 }
 0xc15   :  { %7888 = dma.done.wait [#allocation6 + $0x3], 2048 }
 0xc16   :  { %7889 = vsyncadd [#allocation6 + $0x3], 4294965248  ;;  %v5946_v5 = vpack.c.bf16 %v9839_v32, %v9835_v9  ;;  %v5963_v62 = vld [vmem:[#allocation5 + $0x40] sm:$0xff]  ;;  %v5964_v26 = vld [vmem:[#allocation5 + $0x48] sm:$0xff]  ;;  %v5945_v49 = vpack.c.bf16 %v9837_v13, %v9833_v63  ;;  %v5948_v58 = vpack.c.bf16 %v9851_v55, %v9847_v30  ;;  %v5947_v61 = vpack.c.bf16 %v9849_v56, %v9845_v19  ;;  %s7929_s15 = smov [#allocation22]  }
 0xc17   :  { %v5955_v48 = vld [vmem:[#allocation5] sm:$0xff]  ;;  %6768 = vmatprep.subr.bf16.mxu1 %v5963_v62  ;;  %v5956_v8 = vld [vmem:[#allocation5 + $0x8] sm:$0xff]  ;;  %v5965_v12 = vld [vmem:[#allocation5 + $0x50] sm:$0xff]  ;;  %v5950_v35 = vpack.c.bf16 %v9863_v40, %v9859_v50  ;;  %v5949_v43 = vpack.c.bf16 %v9861_v39, %v9857_v11  ;;  %v5952_v63 = vpack.c.bf16 %v9875_v60, %v9871_v47  ;;  %v5951_v13 = vpack.c.bf16 %v9873_v45, %v9869_v53  ;;  %s6109_s24 = sshll.u32 %s7929_s15, 4  ;;  %s6110_s24 = int_to_ptr.vmem [resolvable:$true] %s6109_s24 }
 0xc18   :  { %6003 = vmatprep.mubr.bf16.mxu1 %v5946_v5  ;;  %6769 = vmatpush3.bf16.msra.mxu1 %v5955_v48  ;;  %v5957_v57 = vld [vmem:[#allocation5 + $0x10] sm:$0xff]  ;;  %v5966_v34 = vld [vmem:[#allocation5 + $0x58] sm:$0xff]  ;;  %v5967_v7 = vld [vmem:[#allocation5 + $0x60] sm:$0xff]  ;;  %v5954_v30 = vpack.c.bf16 %v5940_v29, %v5938_v31  ;;  %v5953_v19 = vpack.c.bf16 %v5939_v23, %v5937_v46  ;;  %s7828_s26 = scalar_lea.vmem %s6110_s24, 2560  ;;  %p7833_p11 = scmp.lt.s32.totalorder %s6110_s24, %s6110_s24 }
 0xc19   :  { %6770 = vmatprep.subr.bf16.mxu1 %v5964_v26  ;;  %v5958_v36 = vld [vmem:[#allocation5 + $0x18] sm:$0xff]  ;;  %v5959_v9 = vld [vmem:[#allocation5 + $0x20] sm:$0xff]  ;;  %v5968_v32 = vld [vmem:[#allocation5 + $0x68] sm:$0xff]  ;;  %p7829_p10 = scmp.ne.s32.totalorder %s6110_s24, %s7828_s26  ;;  %p7834_p12 = scmp.lt.s32.totalorder %s7828_s26, %s7828_s26 }
 0xc1a   :  { %v5960_v3 = vld [vmem:[#allocation5 + $0x28] sm:$0xff]  ;;  %v5969_v14 = vld [vmem:[#allocation5 + $0x70] sm:$0xff]  ;;  %v5970_v6 = vld [vmem:[#allocation5 + $0x78] sm:$0xff] }
 0xc1b   :  { %v5961_v59 = vld [vmem:[#allocation5 + $0x30] sm:$0xff]  ;;  %v5962_v54 = vld [vmem:[#allocation5 + $0x38] sm:$0xff]  ;;  %p7835_p13 = por %p7834_p12, %p7833_p11 }
 0xc1c   :  { %6771 = vmatpush3.bf16.msra.mxu1 %v5956_v8 }
 0xc1d   :  { %6772 = vmatprep.subr.bf16.mxu1 %v5965_v12  ;;  %p7836_p0 = pnand %p7835_p13, %p7829_p10 }
 0xc20   :  { %6773 = vmatpush3.bf16.msra.mxu1 %v5957_v57 }
 0xc21   :  { %6774 = vmatprep.subr.bf16.mxu1 %v5966_v34 }
 0xc24   :  { %6775 = vmatpush3.bf16.msra.mxu1 %v5958_v36 }
 0xc25   :  { %6776 = vmatprep.subr.bf16.mxu1 %v5967_v7 }
 0xc28   :  { %6777 = vmatpush3.bf16.msra.mxu1 %v5959_v9 }
 0xc29   :  { %6778 = vmatprep.subr.bf16.mxu1 %v5968_v32 }
 0xc2c   :  { %6779 = vmatpush3.bf16.msra.mxu1 %v5960_v3 }
 0xc2d   :  { %6780 = vmatprep.subr.bf16.mxu1 %v5969_v14 }
 0xc30   :  { %6781 = vmatpush3.bf16.msra.mxu1 %v5961_v59 }
 0xc31   :  { %6782 = vmatprep.subr.bf16.mxu1 %v5970_v6 }
 0xc34   :  { %6783 = vmatpush3.bf16.msra.mxu1 %v5962_v54 }
 0xc37   :  { %6004 = vmatmul.mubr.bf16.vlgmr.msra.gmra.mrb[204].mxu1 %v5945_v49 }
 0xc38   :  { %6011 = vmatprep.mubr.bf16.mxu1 %v5948_v58 }
 0xc3f   :  { %6012 = vmatmul.mubr.bf16.gmra.mrb[208].mxu1 %v5947_v61 }
 0xc40   :  { %6019 = vmatprep.mubr.bf16.mxu1 %v5950_v35 }
 0xc47   :  { %6020 = vmatmul.mubr.bf16.gmra.mrb[212].mxu1 %v5949_v43 }
 0xc48   :  { %6027 = vmatprep.mubr.bf16.mxu1 %v5952_v63 }
 0xc4f   :  { %6028 = vmatmul.mubr.bf16.gmra.mrb[216].mxu1 %v5951_v13 }
 0xc50   :  { %6035 = vmatprep.mubr.bf16.mxu1 %v5954_v30 }
 0xc57   :  { %6036 = vmatmul.mubr.bf16.gmra.mrb[220].mxu1 %v5953_v19 }
 0xc58   :  { %7839 = shalt.err (!%p7836_p0)
}
 0xc59   :  { %s7840_s19 = scalar_lea.hbm %s9940_s16, 2560 }
 0xc5a   :  { %p7841_p1 = scmp.ne.s32.totalorder %s9940_s16, %s7840_s19  ;;  %p7844_p2 = scmp.lt.u32.totalorder %s7840_s19, %s9940_s16 }
 0xc5c   :  { %p7846_p3 = pnand %p7844_p2, %p7841_p1 }
 0xc5e   :  { %7849 = shalt.err (!%p7846_p3)
}
 0xc5f   :  { %s7930_s28 = smov 1280   ;;  %s7931_s9 = smov 80  }
 0xc60   :  { %6115 = dma.vmem_to_hbm [thread:$0]  %s6110_s24, 2560, %s9940_s16, [#allocation9], %s7930_s28, %s7930_s28, %s7931_s9  }
 0xc61   :  { %s7932_s16 = smov [#allocation23]  }
 0xc62   :  { %s6121_s25 = sshll.u32 %s7932_s16, 4  ;;  %s6122_s25 = int_to_ptr.vmem [resolvable:$true] %s6121_s25 }
 0xc63   :  { %s7850_s8 = scalar_lea.vmem %s6122_s25, 1280  ;;  %p7855_p5 = scmp.lt.s32.totalorder %s6122_s25, %s6122_s25 }
 0xc64   :  { %p7851_p4 = scmp.ne.s32.totalorder %s6122_s25, %s7850_s8  ;;  %p7856_p6 = scmp.lt.s32.totalorder %s7850_s8, %s7850_s8 }
 0xc66   :  { %p7857_p7 = por %p7856_p6, %p7855_p5 }
 0xc68   :  { %p7858_p8 = pnand %p7857_p7, %p7851_p4 }
 0xd0a   :  { %v6784_v56 = vpop.f32.mrb[204].mxu1 }
 0xd0b   :  { %v6785_v55 = vpop.f32.mrb[205].mxu1 }
 0xd0c   :  { %v6786_v11 = vadd.f32 %v6785_v55, %v6784_v56  ;;  %v6787_v50 = vpop.f32.mrb[206].mxu1 }
 0xd0d   :  { %v6788_v39 = vpop.f32.mrb[207].mxu1 }
 0xd0e   :  { %v6044_v40 = vsub.f32 0.0, %v6786_v11  ;;  %v6789_v41 = vadd.f32 %v6788_v39, %v6787_v50 }
 0xd10   :  { %v6054_v28 = vmul.f32 1.442695, %v6044_v40  ;;  %v6045_v38 = vsub.f32 0.0, %v6789_v41 }
 0xd12   :  { %7568 = vpow2.f32 %v6054_v28  ;;  %v6056_v25 = vmul.f32 1.442695, %v6045_v38  ;;  %v6790_v18 = vpop.f32.mrb[208].mxu1 }
 0xd13   :  { %v6791_v52 = vpop.f32.mrb[209].mxu1 }
 0xd14   :  { %7570 = vpow2.f32 %v6056_v25  ;;  %v6792_v37 = vadd.f32 %v6791_v52, %v6790_v18  ;;  %v6793_v0 = vpop.f32.mrb[210].mxu1 }
 0xd15   :  { %v6794_v21 = vpop.f32.mrb[211].mxu1 }
 0xd16   :  { %v6046_v22 = vsub.f32 0.0, %v6792_v37  ;;  %v6795_v53 = vadd.f32 %v6794_v21, %v6793_v0 }
 0xd18   :  { %v6058_v51 = vmul.f32 1.442695, %v6046_v22  ;;  %v6047_v47 = vsub.f32 0.0, %v6795_v53 }
 0xd1a   :  { %7572 = vpow2.f32 %v6058_v51  ;;  %v6060_v17 = vmul.f32 1.442695, %v6047_v47  ;;  %v6796_v45 = vpop.f32.mrb[212].mxu1 }
 0xd1b   :  { %v6797_v60 = vpop.f32.mrb[213].mxu1 }
 0xd1c   :  { %v7569_v27 = vpop.eup %7568  ;;  %7574 = vpow2.f32 %v6060_v17  ;;  %v6798_v4 = vadd.f32 %v6797_v60, %v6796_v45  ;;  %v6799_v16 = vpop.f32.mrb[214].mxu1 }
 0xd1d   :  { %v6074_v24 = vadd.f32 1.0, %v7569_v27  ;;  %v6800_v2 = vpop.f32.mrb[215].mxu1 }
 0xd1e   :  { %v7571_v1 = vpop.eup %7570  ;;  %v6048_v15 = vsub.f32 0.0, %v6798_v4  ;;  %v6801_v20 = vadd.f32 %v6800_v2, %v6799_v16 }
 0xd1f   :  { %7576 = vrcp.f32 %v6074_v24  ;;  %v6075_v42 = vadd.f32 1.0, %v7571_v1 }
 0xd20   :  { %v6062_v44 = vmul.f32 1.442695, %v6048_v15  ;;  %v6049_v46 = vsub.f32 0.0, %v6801_v20 }
 0xd21   :  { %7578 = vrcp.f32 %v6075_v42 }
 0xd22   :  { %7580 = vpow2.f32 %v6062_v44  ;;  %v6064_v10 = vmul.f32 1.442695, %v6049_v46  ;;  %v6802_v31 = vpop.f32.mrb[216].mxu1 }
 0xd23   :  { %v6803_v33 = vpop.f32.mrb[217].mxu1 }
 0xd24   :  { %v7573_v23 = vpop.eup %7572  ;;  %7582 = vpow2.f32 %v6064_v10  ;;  %v6804_v29 = vadd.f32 %v6803_v33, %v6802_v31  ;;  %v6805_v5 = vpop.f32.mrb[218].mxu1 }
 0xd25   :  { %v6076_v62 = vadd.f32 1.0, %v7573_v23  ;;  %v6806_v48 = vpop.f32.mrb[219].mxu1 }
 0xd26   :  { %v7575_v26 = vpop.eup %7574  ;;  %v6050_v8 = vsub.f32 0.0, %v6804_v29  ;;  %v6807_v12 = vadd.f32 %v6806_v48, %v6805_v5 }
 0xd27   :  { %7584 = vrcp.f32 %v6076_v62  ;;  %v6077_v57 = vadd.f32 1.0, %v7575_v26 }
 0xd28   :  { %v6066_v34 = vmul.f32 1.442695, %v6050_v8  ;;  %v6051_v36 = vsub.f32 0.0, %v6807_v12 }
 0xd29   :  { %v7577_v7 = vpop.eup %7576  ;;  %7586 = vrcp.f32 %v6077_v57 }
 0xd2a   :  { %6094 = vst [vmem:[#allocation23] sm:$0xff] %v7577_v7  ;;  %7588 = vpow2.f32 %v6066_v34  ;;  %v6068_v9 = vmul.f32 1.442695, %v6051_v36  ;;  %v6808_v32 = vpop.f32.mrb[220].mxu1 }
 0xd2b   :  { %v7579_v3 = vpop.eup %7578  ;;  %v6809_v14 = vpop.f32.mrb[221].mxu1 }
 0xd2c   :  { %v7581_v59 = vpop.eup %7580  ;;  %6095 = vst [vmem:[#allocation23 + $0x8] sm:$0xff] %v7579_v3  ;;  %7590 = vpow2.f32 %v6068_v9  ;;  %v6810_v6 = vadd.f32 %v6809_v14, %v6808_v32  ;;  %v6811_v54 = vpop.f32.mrb[222].mxu1 }
 0xd2d   :  { %v6078_v49 = vadd.f32 1.0, %v7581_v59  ;;  %v6812_v58 = vpop.f32.mrb[223].mxu1 }
 0xd2e   :  { %v7583_v61 = vpop.eup %7582  ;;  %v6052_v35 = vsub.f32 0.0, %v6810_v6  ;;  %v6813_v43 = vadd.f32 %v6812_v58, %v6811_v54 }
 0xd2f   :  { %7592 = vrcp.f32 %v6078_v49  ;;  %v6079_v63 = vadd.f32 1.0, %v7583_v61 }
 0xd30   :  { %v6070_v13 = vmul.f32 1.442695, %v6052_v35  ;;  %v6053_v30 = vsub.f32 0.0, %v6813_v43 }
 0xd31   :  { %v7585_v19 = vpop.eup %7584  ;;  %7594 = vrcp.f32 %v6079_v63 }
 0xd32   :  { %6096 = vst [vmem:[#allocation23 + $0x10] sm:$0xff] %v7585_v19  ;;  %7596 = vpow2.f32 %v6070_v13  ;;  %v6072_v56 = vmul.f32 1.442695, %v6053_v30 }
 0xd33   :  { %v7587_v55 = vpop.eup %7586 }
 0xd34   :  { %v7589_v11 = vpop.eup %7588  ;;  %6097 = vst [vmem:[#allocation23 + $0x18] sm:$0xff] %v7587_v55  ;;  %7598 = vpow2.f32 %v6072_v56 }
 0xd35   :  { %v6080_v50 = vadd.f32 1.0, %v7589_v11 }
 0xd36   :  { %v7591_v39 = vpop.eup %7590 }
 0xd37   :  { %7600 = vrcp.f32 %v6080_v50  ;;  %v6081_v40 = vadd.f32 1.0, %v7591_v39 }
 0xd39   :  { %v7593_v41 = vpop.eup %7592  ;;  %7602 = vrcp.f32 %v6081_v40 }
 0xd3a   :  { %6098 = vst [vmem:[#allocation23 + $0x20] sm:$0xff] %v7593_v41 }
 0xd3b   :  { %v7595_v28 = vpop.eup %7594 }
 0xd3c   :  { %v7597_v38 = vpop.eup %7596  ;;  %6099 = vst [vmem:[#allocation23 + $0x28] sm:$0xff] %v7595_v28 }
 0xd3d   :  { %v6082_v25 = vadd.f32 1.0, %v7597_v38 }
 0xd3e   :  { %v7599_v18 = vpop.eup %7598 }
 0xd3f   :  { %7604 = vrcp.f32 %v6082_v25  ;;  %v6083_v52 = vadd.f32 1.0, %v7599_v18 }
 0xd41   :  { %v7601_v37 = vpop.eup %7600  ;;  %7606 = vrcp.f32 %v6083_v52 }
 0xd42   :  { %6100 = vst [vmem:[#allocation23 + $0x30] sm:$0xff] %v7601_v37 }
 0xd43   :  { %v7603_v0 = vpop.eup %7602 }
 0xd44   :  { %6101 = vst [vmem:[#allocation23 + $0x38] sm:$0xff] %v7603_v0 }
 0xd49   :  { %v7605_v21 = vpop.eup %7604 }
 0xd4a   :  { %6102 = vst [vmem:[#allocation23 + $0x40] sm:$0xff] %v7605_v21 }
 0xd4b   :  { %v7607_v22 = vpop.eup %7606 }
 0xd4c   :  { %6103 = vst [vmem:[#allocation23 + $0x48] sm:$0xff] %v7607_v22 }
 0xd4d   :  { %7861 = shalt.err (!%p7858_p8)
}
 0xd4e   :  { %s7862_s1 = scalar_lea.hbm %s9941_s17, 1280 }
 0xd4f   :  { %p7863_p9 = scmp.ne.s32.totalorder %s9941_s17, %s7862_s1  ;;  %p7866_p10 = scmp.lt.u32.totalorder %s7862_s1, %s9941_s17 }
 0xd51   :  { %p7868_p11 = pnand %p7866_p10, %p7863_p9 }
 0xd53   :  { %7871 = shalt.err (!%p7868_p11)
}
 0xd54   :  { %6127 = dma.vmem_to_hbm [thread:$0]  %s6122_s25, 1280, %s9941_s17, [#allocation24], %s9968_s30, %s9968_s30, %s7897_s23  }
 0xd55   :  { %7890 = dma.done.wait [#allocation9], 2560  }
 0xd56   :  { %7891 = vsyncadd [#allocation9], 4294964736 }
 0xd57   :  { %7892 = dma.done.wait [#allocation24], 1280  }
 0xd58   :  { %7893 = vsyncadd [#allocation24], 4294966016 }
 0xd59   :  { %6134 = vsyncpa [#allocation8], 1 }
 0xd5a   :  { %6135 = vsyncpa [#allocation11], 1 }
 0xd5b   :  { %6136 = vsyncpa [#allocation14], 1 }
 0xd5c   :  { %6137 = vsyncpa [#allocation17], 1 }
 0xd5d   :  { %6138 = vsyncpa [#allocation20], 1 }
 0xd5e   :  { %6139 = vsyncpa [#allocation9], 1 }
 0xd5f   :  { %6140 = vsyncpa [#allocation24], 1 }
 0xd60   :  { %6141 = vsyncmov [#allocation6] }
 0xd63   :  { %s6142_s14 = vpop.sfrf %6141 }
 0xd64   :  { %p6346_p12 = scmp.ne.s32.totalorder %s6142_s14, 0 }
 0xd66   :  { %6146 = shalt.err (%p6346_p12)  }
 0xd67   :  { %6148 = vsyncmov [#allocation6 + $0x1] }
 0xd6a   :  { %s6149_s2 = vpop.sfrf %6148 }
 0xd6b   :  { %p6347_p13 = scmp.ne.s32.totalorder %s6149_s2, 0 }
 0xd6d   :  { %6153 = shalt.err (%p6347_p13)  }
 0xd6e   :  { %6155 = vsyncmov [#allocation6 + $0x2] }
 0xd71   :  { %s6156_s17 = vpop.sfrf %6155 }
 0xd72   :  { %p6348_p0 = scmp.ne.s32.totalorder %s6156_s17, 0 }
 0xd74   :  { %6160 = shalt.err (%p6348_p0)  }
 0xd75   :  { %6162 = vsyncmov [#allocation6 + $0x3] }
 0xd78   :  { %s6163_s23 = vpop.sfrf %6162 }
 0xd79   :  { %p6349_p1 = scmp.ne.s32.totalorder %s6163_s23, 0 }
 0xd7b   :  { %6167 = shalt.err (%p6349_p1)  }

</bundles_post_ra>
